<compile_context>
chip_gen: v7x
topology: tpu7x:2x2x1
jax: 0.10.0
libtpu: 0.0.40
codegen_flags: <defaults>
</compile_context>

<pallas_src>
import functools

import jax
import jax.numpy as jnp
from jax.experimental import pallas as pl
from jax.experimental.pallas import tpu as pltpu


def _round_up(x, m):
    return (x + m - 1) // m * m


def _cdiv(a, b):
    return (a + b - 1) // b


# ----------------------------------------------------------------------------
# Kernel 1: fused in-kernel-im2col stride-1 3x3 conv (decoder layers).
#
# The wrapper flattens the zero-padded NHWC image to (N, Hp*Wp, C) with Wp a
# multiple of 16.  For a stride-1 / pad-1 conv the tap relationship on the
# flattened rows is a *constant shift*:
#     y[r] = sum_{kh,kw} x_flat[r + kh*Wp + kw] @ W[kh, kw]
# so a row tile plus two halo image rows is all the kernel needs.
# ----------------------------------------------------------------------------
def _s1_conv_kernel(x_ref, ha_ref, hb_ref, w_ref, b_ref, o_ref,
                    slab_ref, acc_ref, *, wp, act):
    tm = x_ref.shape[1]
    c = x_ref.shape[2]
    # Assemble contiguous flat-row slab: [tile rows | 2 halo image rows | 0-pad].
    slab_ref[pl.ds(0, tm), :] = x_ref[0]
    slab_ref[pl.ds(tm, wp), :] = ha_ref[0]
    slab_ref[pl.ds(tm + wp, wp), :] = hb_ref[0]
    tail = slab_ref.shape[0] - (tm + 2 * wp)
    slab_ref[pl.ds(tm + 2 * wp, tail), :] = jnp.zeros((tail, c), slab_ref.dtype)

    acc_ref[...] = jnp.zeros_like(acc_ref)
    # 9 taps -> 9 MXU dots accumulated in f32 (in-kernel im2col, no HBM patches).
    for t in range(9):
        kh, kw = divmod(t, 3)
        off = kh * wp + kw
        acc_ref[...] += jnp.dot(slab_ref[pl.ds(off, tm), :], w_ref[t],
                                preferred_element_type=jnp.float32)

    y = acc_ref[...] + b_ref[...]
    if act == "relu":
        y = jnp.maximum(y, 0.0)
    else:  # leaky relu, negative slope 0.2 (matches F.leaky_relu(..., 0.2))
        y = jnp.where(y > 0.0, y, 0.2 * y)
    o_ref[0] = y.astype(o_ref.dtype)


def _plan_row_tiles(h, wp, c, cout, budget_bytes=24 << 20):
    """Pick output-rows-per-tile from a VMEM working-set budget (<=~24 MB)."""
    per_row = wp * (6 * c + 8 * cout) + 1   # dbl-buffered in/out + slab + f32 acc
    th_max = max(1, budget_bytes // per_row)
    n_tiles = _cdiv(h, th_max)
    if h >= 2:
        n_tiles = max(n_tiles, 2)           # >=2 parallel steps for megacore / v7x
    th = _cdiv(h, n_tiles)
    n_tiles = _cdiv(h, th)
    return th, n_tiles


def conv3x3_s1_fused(x_nhwc, param, act, out_dtype=jnp.bfloat16):
    """Stride-1 3x3 conv (padding=1), NHWC, im2col fused into the kernel."""
    w, b = param["w"], param["b"]                       # w: (3,3,Cin,Cout)
    n, h, wd, c = x_nhwc.shape
    cout = w.shape[-1]

    wp = _round_up(wd + 2, 16)                          # padded width, mult of 16
    th, n_tiles = _plan_row_tiles(h, wp, c, cout)
    hpad_out = th * n_tiles
    hp = hpad_out + 2                                   # padded rows the kernel touches
    tm = th * wp

    xp = jnp.pad(x_nhwc.astype(jnp.bfloat16),
                 ((0, 0), (1, hp - 1 - h), (1, wp - 1 - wd), (0, 0)))
    x_flat = xp.reshape(n, hp * wp, c)

    wt = w.reshape(9, c, cout).astype(jnp.bfloat16)
    b2 = b.reshape(1, cout).astype(jnp.float32)

    slab_rows = tm + 2 * wp + 16
    ob = jnp.dtype(out_dtype).itemsize
    est = (2 * tm * c * 2 + 8 * wp * c * 2 + 2 * 9 * c * cout * 2
           + 2 * tm * cout * ob + slab_rows * c * 2 + tm * cout * 4)
    cost = pl.CostEstimate(
        flops=2 * n * hpad_out * wp * 9 * c * cout,
        transcendentals=0,
        bytes_accessed=n * hp * wp * c * 2 + 9 * c * cout * 2
        + n * hpad_out * wp * cout * ob,
    )

    out = pl.pallas_call(
        functools.partial(_s1_conv_kernel, wp=wp, act=act),
        out_shape=jax.ShapeDtypeStruct((n, hpad_out * wp, cout), out_dtype),
        grid=(n, n_tiles),
        in_specs=[
            pl.BlockSpec((1, tm, c), lambda b_, i: (b_, i, 0)),                 # tile rows
            pl.BlockSpec((1, wp, c), lambda b_, i: (b_, (i + 1) * th, 0)),      # halo row 0
            pl.BlockSpec((1, wp, c), lambda b_, i: (b_, (i + 1) * th + 1, 0)),  # halo row 1
            pl.BlockSpec((9, c, cout), lambda b_, i: (0, 0, 0)),                # weights
            pl.BlockSpec((1, cout), lambda b_, i: (0, 0)),                      # bias
        ],
        out_specs=pl.BlockSpec((1, tm, cout), lambda b_, i: (b_, i, 0)),
        scratch_shapes=[pltpu.VMEM((slab_rows, c), jnp.bfloat16),
                        pltpu.VMEM((tm, cout), jnp.float32)],
        compiler_params=pltpu.CompilerParams(
            dimension_semantics=("parallel", "parallel"),
            vmem_limit_bytes=int(min(max(32 << 20, est * 3 // 2), 60 << 20)),
        ),
        cost_estimate=cost,
    )(x_flat, x_flat, x_flat, wt, b2)

    return out.reshape(n, hpad_out, wp, cout)[:, :h, :wd, :]


# ----------------------------------------------------------------------------
# Kernel 2: matmul + bias + activation for the stride-2 encoder convs
# (patches built with cheap XLA slices; at stride 2 the expansion is ~2.25x).
# ----------------------------------------------------------------------------
def _mm_bias_act_kernel(p_ref, w_ref, b_ref, o_ref, *, act):
    y = jnp.dot(p_ref[...], w_ref[...], preferred_element_type=jnp.float32)
    y = y + b_ref[...]
    if act == "relu":
        y = jnp.maximum(y, 0.0)
    else:
        y = jnp.where(y > 0.0, y, 0.2 * y)
    o_ref[...] = y.astype(o_ref.dtype)


def _pick_tm(m, cap=2048):
    """Row tile for the encoder matmul: prefer a multiple-of-16 divisor of m."""
    m16 = _round_up(m, 16)
    if m16 <= cap:
        return m16, m16
    for t in range(cap - cap % 16, 0, -16):
        if m % t == 0:
            return t, m
    return cap, _round_up(m, cap)


def conv3x3_s2(x_nhwc, param, act):
    """Stride-2 3x3 conv (padding=1), NHWC.

    # TODO(synk): fuse stride-2 patch extraction into the kernel DMA path as
    # well (currently only the stride-1 decoder convs have in-kernel im2col).
    """
    w, b = param["w"], param["b"]
    n, h, wd, c = x_nhwc.shape
    cout = w.shape[-1]

    xp = jnp.pad(x_nhwc.astype(jnp.bfloat16), ((0, 0), (1, 1), (1, 1), (0, 0)))
    ho = (h - 1) // 2 + 1
    wo = (wd - 1) // 2 + 1
    cols = []
    for kh in range(3):
        for kw in range(3):
            cols.append(xp[:, kh:kh + 2 * (ho - 1) + 1:2,
                           kw:kw + 2 * (wo - 1) + 1:2, :])
    patches = jnp.concatenate(cols, axis=-1).reshape(n * ho * wo, 9 * c)

    m = n * ho * wo
    k = 9 * c
    tm, m_pad = _pick_tm(m)
    if m_pad != m:
        patches = jnp.pad(patches, ((0, m_pad - m), (0, 0)))

    wmat = w.reshape(k, cout).astype(jnp.bfloat16)
    b2 = b.reshape(1, cout).astype(jnp.float32)

    grid_m = m_pad // tm
    est = 2 * tm * k * 2 + 2 * tm * cout * 2 + 2 * k * cout * 2 + cout * 4
    cost = pl.CostEstimate(
        flops=2 * m_pad * k * cout,
        transcendentals=0,
        bytes_accessed=m_pad * k * 2 + k * cout * 2 + m_pad * cout * 2,
    )

    out = pl.pallas_call(
        functools.partial(_mm_bias_act_kernel, act=act),
        out_shape=jax.ShapeDtypeStruct((m_pad, cout), jnp.bfloat16),
        grid=(grid_m,),
        in_specs=[
            pl.BlockSpec((tm, k), lambda i: (i, 0)),
            pl.BlockSpec((k, cout), lambda i: (0, 0)),
            pl.BlockSpec((1, cout), lambda i: (0, 0)),
        ],
        out_specs=pl.BlockSpec((tm, cout), lambda i: (i, 0)),
        compiler_params=pltpu.CompilerParams(
            dimension_semantics=("parallel",),
            vmem_limit_bytes=int(min(max(32 << 20, est * 2), 60 << 20)),
        ),
        cost_estimate=cost,
    )(patches, wmat, b2)

    return out[:m].reshape(n, ho, wo, cout)


# ----------------------------------------------------------------------------
# Glue ops (XLA): nearest upsample, d-net stub, params.
# ----------------------------------------------------------------------------
def nearest_resize_nhwc(x, out_h, out_w):
    """F.interpolate(mode='nearest') in NHWC (identity / exact-2x fast paths)."""
    n, h, w, c = x.shape
    if out_h == h and out_w == w:
        return x
    if out_h == 2 * h and out_w == 2 * w:
        y = jnp.broadcast_to(x[:, :, None, :, None, :], (n, h, 2, w, 2, c))
        return y.reshape(n, 2 * h, 2 * w, c)
    hi = (jnp.arange(out_h) * h) // out_h
    wi = (jnp.arange(out_w) * w) // out_w
    return x[:, hi[:, None], wi[None, :], :]


def d_net_stub(x_d, c0):
    # TODO(synk): `unguided_net` (normalized-convolution depth net) is referenced
    # by GEDNet but its source is not part of the provided module; pass
    # depth/confidence through unchanged so downstream shapes/semantics hold.
    return x_d, c0


_CONV_SHAPES = {
    "conv1": (5, 80),
    "conv2": (80, 80),
    "conv3": (80, 80),
    "conv4": (80, 80),
    "conv5": (80, 80),
    "conv6": (80 + 80, 64),
    "conv7": (64 + 80, 64),
    "conv8": (64 + 80, 32),
    "conv9": (32 + 80, 32),
}


def init_params(key, out_channels=1):
    shapes = dict(_CONV_SHAPES)
    shapes["conv10"] = (32 + 1, out_channels)
    params = {}
    keys = jax.random.split(key, len(shapes))
    for k_rng, (name, (cin, cout)) in zip(keys, shapes.items()):
        fan_in = cin * 9
        std = (2.0 / fan_in) ** 0.5           # kaiming_normal_, fan_in, relu gain
        w = std * jax.random.normal(k_rng, (3, 3, cin, cout), dtype=jnp.float32)
        b = jnp.full((cout,), 0.01, dtype=jnp.float32)
        params[name] = {"w": w, "b": b}
    return params


# ----------------------------------------------------------------------------
# GEDNet forward (public interface stays NCHW, internals NHWC / bf16).
# ----------------------------------------------------------------------------
def gednet_forward(x0, params, *, build_conf_input=True, out_channels=1):
    x = jnp.transpose(x0, (0, 2, 3, 1))                  # NCHW -> NHWC (once)
    x_rgb = x[..., :3]
    x_d = x[..., 3:4]
    if x0.shape[1] == 4:
        c0 = (x_d > 0).astype(jnp.float32)
    else:
        c0 = x[..., 4:5]

    xout_d, cout_d = d_net_stub(x_d, c0)

    enc_in = jnp.concatenate([xout_d, x_rgb, cout_d], -1)
    x1 = conv3x3_s2(enc_in, params["conv1"], "relu")
    x2 = conv3x3_s2(x1, params["conv2"], "relu")
    x3 = conv3x3_s2(x2, params["conv3"], "relu")
    x4 = conv3x3_s2(x3, params["conv4"], "relu")
    x5 = conv3x3_s2(x4, params["conv5"], "relu")

    # TODO(synk): fuse the nearest-2x upsample + skip concat into the decoder
    # conv's BlockSpec/DMA path to avoid materializing the concat in HBM
    # (kept as cheap bf16 XLA ops for now).
    x5u = nearest_resize_nhwc(x5, x4.shape[1], x4.shape[2])
    x6 = conv3x3_s1_fused(jnp.concatenate([x5u, x4], -1), params["conv6"], "leaky")
    x6u = nearest_resize_nhwc(x6, x3.shape[1], x3.shape[2])
    x7 = conv3x3_s1_fused(jnp.concatenate([x6u, x3], -1), params["conv7"], "leaky")
    x7u = nearest_resize_nhwc(x7, x2.shape[1], x2.shape[2])
    x8 = conv3x3_s1_fused(jnp.concatenate([x7u, x2], -1), params["conv8"], "leaky")
    x8u = nearest_resize_nhwc(x8, x1.shape[1], x1.shape[2])
    x9 = conv3x3_s1_fused(jnp.concatenate([x8u, x1], -1), params["conv9"], "leaky")
    x9u = nearest_resize_nhwc(x9, x_d.shape[1], x_d.shape[2])

    last_in = jnp.concatenate([x9u, x_d.astype(jnp.bfloat16)], -1)
    x10 = conv3x3_s1_fused(last_in, params["conv10"], "leaky",
                           out_dtype=jnp.float32)

    if build_conf_input:
        if out_channels == 1:
            feats = jnp.concatenate(
                [x9u.astype(jnp.float32), x_d, xout_d, cout_d, x10], -1)
            features = jnp.transpose(feats, (0, 3, 1, 2))
        else:
            # Only meaningful when out_channels >= 2 (mirrors the PyTorch module).
            features = jax.nn.sigmoid(jnp.transpose(x10[..., 1:2], (0, 3, 1, 2)))
    else:
        features = None

    depth = jnp.transpose(x10[..., 0:1], (0, 3, 1, 2))   # NHWC -> NCHW (once)
    return depth, features


if __name__ == "__main__":
    key = jax.random.PRNGKey(0)
    k_x, k_p = jax.random.split(key)

    N, C, H, W = 2, 4, 16, 16
    x0 = jax.random.normal(k_x, (N, C, H, W), dtype=jnp.float32)
    params = init_params(k_p)

    fwd = jax.jit(functools.partial(gednet_forward,
                                    build_conf_input=True, out_channels=1))
    depth, features = fwd(x0, params)
    jax.block_until_ready((depth, features))

    assert depth.shape == (N, 1, H, W), depth.shape
    assert features.shape == (N, 36, H, W), features.shape   # out_feature_channels == 36
    assert bool(jnp.all(jnp.isfinite(depth))), "non-finite depth"
    assert bool(jnp.all(jnp.isfinite(features))), "non-finite features"
    print("KERNEL_OK")
</pallas_src>

<mosaic_0001>
module attributes {stable_mosaic.version = 11 : i64} {
  func.func @_mm_bias_act_kernel(%arg0: i32, %arg1: memref<128x45xbf16, #tpu.memory_space<vmem>>, %arg2: memref<45x80xbf16, #tpu.memory_space<vmem>>, %arg3: memref<1x80xf32, #tpu.memory_space<vmem>>, %arg4: memref<128x80xbf16, #tpu.memory_space<vmem>>) attributes {dimension_semantics = [#tpu.dimension_semantics<parallel>], iteration_bounds = array<i64: 1>, scalar_prefetch = 0 : i64, scratch_operands = 0 : i64, tpu.core_type = #tpu.core_type<tc>, window_params = [{transform_indices = @transform_0, window_bounds = array<i64: 128, 45>}, {pipeline_mode = #tpu.pipeline_mode<synchronous>, transform_indices = @transform_1, window_bounds = array<i64: 45, 80>}, {pipeline_mode = #tpu.pipeline_mode<synchronous>, transform_indices = @transform_2, window_bounds = array<i64: 1, 80>}, {transform_indices = @transform_3, window_bounds = array<i64: 128, 80>}]} {
    %c0 = arith.constant 0 : index
    %c0_0 = arith.constant 0 : index
    %0 = vector.load %arg1[%c0, %c0_0] : memref<128x45xbf16, #tpu.memory_space<vmem>>, vector<128x45xbf16>
    %c0_1 = arith.constant 0 : index
    %c0_2 = arith.constant 0 : index
    %1 = vector.load %arg2[%c0_1, %c0_2] : memref<45x80xbf16, #tpu.memory_space<vmem>>, vector<45x80xbf16>
    %cst = arith.constant dense<0.000000e+00> : vector<128x80xf32>
    %2 = tpu.matmul %0, %1, %cst {dimension_numbers = #tpu.dot_dimension_numbers<[1], [0], [0], [1], [0, 0, 1, 1], [], []>} : vector<128x45xbf16>, vector<45x80xbf16>, vector<128x80xf32> -> vector<128x80xf32>
    %c0_3 = arith.constant 0 : index
    %c0_4 = arith.constant 0 : index
    %3 = vector.load %arg3[%c0_3, %c0_4] : memref<1x80xf32, #tpu.memory_space<vmem>>, vector<1x80xf32>
    %4 = vector.broadcast %3 : vector<1x80xf32> to vector<128x80xf32>
    %5 = arith.addf %2, %4 : vector<128x80xf32>
    %cst_5 = arith.constant 0.000000e+00 : f32
    %6 = vector.broadcast %cst_5 : f32 to vector<128x80xf32>
    %7 = arith.maximumf %5, %6 : vector<128x80xf32>
    %8 = arith.truncf %7 : vector<128x80xf32> to vector<128x80xbf16>
    %c0_6 = arith.constant 0 : index
    %c0_7 = arith.constant 0 : index
    %9 = vector.load %arg4[%c0_6, %c0_7] : memref<128x80xbf16, #tpu.memory_space<vmem>>, vector<128x80xbf16>
    tpu.vector_store %arg4[%c0_6, %c0_7], %8 {strides = array<i32>} : memref<128x80xbf16, #tpu.memory_space<vmem>>, vector<128x80xbf16>,
    return
  }
  func.func @transform_0(%arg0: i32) -> (i32, i32) {
    %c0_i32 = arith.constant 0 : i32
    %c0_i32_0 = arith.constant 0 : i32
    return %arg0, %c0_i32 : i32, i32
  }
  func.func @transform_1(%arg0: i32) -> (i32, i32) {
    %c0_i32 = arith.constant 0 : i32
    %c0_i32_0 = arith.constant 0 : i32
    %c0_i32_1 = arith.constant 0 : i32
    return %c0_i32, %c0_i32_0 : i32, i32
  }
  func.func @transform_2(%arg0: i32) -> (i32, i32) {
    %c0_i32 = arith.constant 0 : i32
    %c0_i32_0 = arith.constant 0 : i32
    %c0_i32_1 = arith.constant 0 : i32
    return %c0_i32, %c0_i32_0 : i32, i32
  }
  func.func @transform_3(%arg0: i32) -> (i32, i32) {
    %c0_i32 = arith.constant 0 : i32
    %c0_i32_0 = arith.constant 0 : i32
    return %arg0, %c0_i32 : i32, i32
  }
}

module attributes {stable_mosaic.version = 11 : i64} {
  func.func @_mm_bias_act_kernel(%arg0: i32, %arg1: memref<32x720xbf16, #tpu.memory_space<vmem>>, %arg2: memref<720x80xbf16, #tpu.memory_space<vmem>>, %arg3: memref<1x80xf32, #tpu.memory_space<vmem>>, %arg4: memref<32x80xbf16, #tpu.memory_space<vmem>>) attributes {dimension_semantics = [#tpu.dimension_semantics<parallel>], iteration_bounds = array<i64: 1>, scalar_prefetch = 0 : i64, scratch_operands = 0 : i64, tpu.core_type = #tpu.core_type<tc>, window_params = [{transform_indices = @transform_0, window_bounds = array<i64: 32, 720>}, {pipeline_mode = #tpu.pipeline_mode<synchronous>, transform_indices = @transform_1, window_bounds = array<i64: 720, 80>}, {pipeline_mode = #tpu.pipeline_mode<synchronous>, transform_indices = @transform_2, window_bounds = array<i64: 1, 80>}, {transform_indices = @transform_3, window_bounds = array<i64: 32, 80>}]} {
    %c0 = arith.constant 0 : index
    %c0_0 = arith.constant 0 : index
    %0 = vector.load %arg1[%c0, %c0_0] : memref<32x720xbf16, #tpu.memory_space<vmem>>, vector<32x720xbf16>
    %c0_1 = arith.constant 0 : index
    %c0_2 = arith.constant 0 : index
    %1 = vector.load %arg2[%c0_1, %c0_2] : memref<720x80xbf16, #tpu.memory_space<vmem>>, vector<720x80xbf16>
    %cst = arith.constant dense<0.000000e+00> : vector<32x80xf32>
    %2 = tpu.matmul %0, %1, %cst {dimension_numbers = #tpu.dot_dimension_numbers<[1], [0], [0], [1], [0, 0, 1, 1], [], []>} : vector<32x720xbf16>, vector<720x80xbf16>, vector<32x80xf32> -> vector<32x80xf32>
    %c0_3 = arith.constant 0 : index
    %c0_4 = arith.constant 0 : index
    %3 = vector.load %arg3[%c0_3, %c0_4] : memref<1x80xf32, #tpu.memory_space<vmem>>, vector<1x80xf32>
    %4 = vector.broadcast %3 : vector<1x80xf32> to vector<32x80xf32>
    %5 = arith.addf %2, %4 : vector<32x80xf32>
    %cst_5 = arith.constant 0.000000e+00 : f32
    %6 = vector.broadcast %cst_5 : f32 to vector<32x80xf32>
    %7 = arith.maximumf %5, %6 : vector<32x80xf32>
    %8 = arith.truncf %7 : vector<32x80xf32> to vector<32x80xbf16>
    %c0_6 = arith.constant 0 : index
    %c0_7 = arith.constant 0 : index
    %9 = vector.load %arg4[%c0_6, %c0_7] : memref<32x80xbf16, #tpu.memory_space<vmem>>, vector<32x80xbf16>
    tpu.vector_store %arg4[%c0_6, %c0_7], %8 {strides = array<i32>} : memref<32x80xbf16, #tpu.memory_space<vmem>>, vector<32x80xbf16>,
    return
  }
  func.func @transform_0(%arg0: i32) -> (i32, i32) {
    %c0_i32 = arith.constant 0 : i32
    %c0_i32_0 = arith.constant 0 : i32
    return %arg0, %c0_i32 : i32, i32
  }
  func.func @transform_1(%arg0: i32) -> (i32, i32) {
    %c0_i32 = arith.constant 0 : i32
    %c0_i32_0 = arith.constant 0 : i32
    %c0_i32_1 = arith.constant 0 : i32
    return %c0_i32, %c0_i32_0 : i32, i32
  }
  func.func @transform_2(%arg0: i32) -> (i32, i32) {
    %c0_i32 = arith.constant 0 : i32
    %c0_i32_0 = arith.constant 0 : i32
    %c0_i32_1 = arith.constant 0 : i32
    return %c0_i32, %c0_i32_0 : i32, i32
  }
  func.func @transform_3(%arg0: i32) -> (i32, i32) {
    %c0_i32 = arith.constant 0 : i32
    %c0_i32_0 = arith.constant 0 : i32
    return %arg0, %c0_i32 : i32, i32
  }
}

module attributes {stable_mosaic.version = 11 : i64} {
  func.func @_mm_bias_act_kernel(%arg0: i32, %arg1: memref<16x720xbf16, #tpu.memory_space<vmem>>, %arg2: memref<720x80xbf16, #tpu.memory_space<vmem>>, %arg3: memref<1x80xf32, #tpu.memory_space<vmem>>, %arg4: memref<16x80xbf16, #tpu.memory_space<vmem>>) attributes {dimension_semantics = [#tpu.dimension_semantics<parallel>], iteration_bounds = array<i64: 1>, scalar_prefetch = 0 : i64, scratch_operands = 0 : i64, tpu.core_type = #tpu.core_type<tc>, window_params = [{transform_indices = @transform_0, window_bounds = array<i64: 16, 720>}, {pipeline_mode = #tpu.pipeline_mode<synchronous>, transform_indices = @transform_1, window_bounds = array<i64: 720, 80>}, {pipeline_mode = #tpu.pipeline_mode<synchronous>, transform_indices = @transform_2, window_bounds = array<i64: 1, 80>}, {transform_indices = @transform_3, window_bounds = array<i64: 16, 80>}]} {
    %c0 = arith.constant 0 : index
    %c0_0 = arith.constant 0 : index
    %0 = vector.load %arg1[%c0, %c0_0] : memref<16x720xbf16, #tpu.memory_space<vmem>>, vector<16x720xbf16>
    %c0_1 = arith.constant 0 : index
    %c0_2 = arith.constant 0 : index
    %1 = vector.load %arg2[%c0_1, %c0_2] : memref<720x80xbf16, #tpu.memory_space<vmem>>, vector<720x80xbf16>
    %cst = arith.constant dense<0.000000e+00> : vector<16x80xf32>
    %2 = tpu.matmul %0, %1, %cst {dimension_numbers = #tpu.dot_dimension_numbers<[1], [0], [0], [1], [0, 0, 1, 1], [], []>} : vector<16x720xbf16>, vector<720x80xbf16>, vector<16x80xf32> -> vector<16x80xf32>
    %c0_3 = arith.constant 0 : index
    %c0_4 = arith.constant 0 : index
    %3 = vector.load %arg3[%c0_3, %c0_4] : memref<1x80xf32, #tpu.memory_space<vmem>>, vector<1x80xf32>
    %4 = vector.broadcast %3 : vector<1x80xf32> to vector<16x80xf32>
    %5 = arith.addf %2, %4 : vector<16x80xf32>
    %cst_5 = arith.constant 0.000000e+00 : f32
    %6 = vector.broadcast %cst_5 : f32 to vector<16x80xf32>
    %7 = arith.maximumf %5, %6 : vector<16x80xf32>
    %8 = arith.truncf %7 : vector<16x80xf32> to vector<16x80xbf16>
    %c0_6 = arith.constant 0 : index
    %c0_7 = arith.constant 0 : index
    %9 = vector.load %arg4[%c0_6, %c0_7] : memref<16x80xbf16, #tpu.memory_space<vmem>>, vector<16x80xbf16>
    tpu.vector_store %arg4[%c0_6, %c0_7], %8 {strides = array<i32>} : memref<16x80xbf16, #tpu.memory_space<vmem>>, vector<16x80xbf16>,
    return
  }
  func.func @transform_0(%arg0: i32) -> (i32, i32) {
    %c0_i32 = arith.constant 0 : i32
    %c0_i32_0 = arith.constant 0 : i32
    return %arg0, %c0_i32 : i32, i32
  }
  func.func @transform_1(%arg0: i32) -> (i32, i32) {
    %c0_i32 = arith.constant 0 : i32
    %c0_i32_0 = arith.constant 0 : i32
    %c0_i32_1 = arith.constant 0 : i32
    return %c0_i32, %c0_i32_0 : i32, i32
  }
  func.func @transform_2(%arg0: i32) -> (i32, i32) {
    %c0_i32 = arith.constant 0 : i32
    %c0_i32_0 = arith.constant 0 : i32
    %c0_i32_1 = arith.constant 0 : i32
    return %c0_i32, %c0_i32_0 : i32, i32
  }
  func.func @transform_3(%arg0: i32) -> (i32, i32) {
    %c0_i32 = arith.constant 0 : i32
    %c0_i32_0 = arith.constant 0 : i32
    return %arg0, %c0_i32 : i32, i32
  }
}

module attributes {stable_mosaic.version = 11 : i64} {
  func.func @_s1_conv_kernel(%arg0: i32, %arg1: i32, %arg2: memref<1x16x160xbf16, #tpu.memory_space<vmem>>, %arg3: memref<1x16x160xbf16, #tpu.memory_space<vmem>>, %arg4: memref<1x16x160xbf16, #tpu.memory_space<vmem>>, %arg5: memref<9x160x64xbf16, #tpu.memory_space<vmem>>, %arg6: memref<1x64xf32, #tpu.memory_space<vmem>>, %arg7: memref<1x16x64xbf16, #tpu.memory_space<vmem>>, %arg8: memref<64x160xbf16, #tpu.memory_space<vmem>>, %arg9: memref<16x64xf32, #tpu.memory_space<vmem>>) attributes {dimension_semantics = [#tpu.dimension_semantics<parallel>, #tpu.dimension_semantics<parallel>], iteration_bounds = array<i64: 2, 1>, scalar_prefetch = 0 : i64, scratch_operands = 2 : i64, tpu.core_type = #tpu.core_type<tc>, window_params = [{transform_indices = @transform_0, window_bounds = array<i64: 1, 16, 160>}, {transform_indices = @transform_1, window_bounds = array<i64: 1, 16, 160>}, {transform_indices = @transform_2, window_bounds = array<i64: 1, 16, 160>}, {pipeline_mode = #tpu.pipeline_mode<synchronous>, transform_indices = @transform_3, window_bounds = array<i64: 9, 160, 64>}, {pipeline_mode = #tpu.pipeline_mode<synchronous>, transform_indices = @transform_4, window_bounds = array<i64: 1, 64>}, {transform_indices = @transform_5, window_bounds = array<i64: 1, 16, 64>}]} {
    %c0 = arith.constant 0 : index
    %c0_0 = arith.constant 0 : index
    %c0_1 = arith.constant 0 : index
    %0 = vector.load %arg2[%c0, %c0_0, %c0_1] : memref<1x16x160xbf16, #tpu.memory_space<vmem>>, vector<1x16x160xbf16>
    %1 = vector.shape_cast %0 : vector<1x16x160xbf16> to vector<16x160xbf16>
    %c0_2 = arith.constant 0 : index
    %c0_3 = arith.constant 0 : index
    %2 = vector.load %arg8[%c0_2, %c0_3] : memref<64x160xbf16, #tpu.memory_space<vmem>>, vector<16x160xbf16>
    tpu.vector_store %arg8[%c0_2, %c0_3], %1 {strides = array<i32>} : memref<64x160xbf16, #tpu.memory_space<vmem>>, vector<16x160xbf16>,
    %c0_4 = arith.constant 0 : index
    %c0_5 = arith.constant 0 : index
    %c0_6 = arith.constant 0 : index
    %3 = vector.load %arg3[%c0_4, %c0_5, %c0_6] : memref<1x16x160xbf16, #tpu.memory_space<vmem>>, vector<1x16x160xbf16>
    %4 = vector.shape_cast %3 : vector<1x16x160xbf16> to vector<16x160xbf16>
    %c16 = arith.constant 16 : index
    %c0_7 = arith.constant 0 : index
    %5 = vector.load %arg8[%c16, %c0_7] : memref<64x160xbf16, #tpu.memory_space<vmem>>, vector<16x160xbf16>
    tpu.vector_store %arg8[%c16, %c0_7], %4 {strides = array<i32>} : memref<64x160xbf16, #tpu.memory_space<vmem>>, vector<16x160xbf16>,
    %c0_8 = arith.constant 0 : index
    %c0_9 = arith.constant 0 : index
    %c0_10 = arith.constant 0 : index
    %6 = vector.load %arg4[%c0_8, %c0_9, %c0_10] : memref<1x16x160xbf16, #tpu.memory_space<vmem>>, vector<1x16x160xbf16>
    %7 = vector.shape_cast %6 : vector<1x16x160xbf16> to vector<16x160xbf16>
    %c32 = arith.constant 32 : index
    %c0_11 = arith.constant 0 : index
    %8 = vector.load %arg8[%c32, %c0_11] : memref<64x160xbf16, #tpu.memory_space<vmem>>, vector<16x160xbf16>
    tpu.vector_store %arg8[%c32, %c0_11], %7 {strides = array<i32>} : memref<64x160xbf16, #tpu.memory_space<vmem>>, vector<16x160xbf16>,
    %cst = arith.constant 0.000000e+00 : bf16
    %9 = vector.broadcast %cst : bf16 to vector<16x160xbf16>
    %c48 = arith.constant 48 : index
    %c0_12 = arith.constant 0 : index
    %10 = vector.load %arg8[%c48, %c0_12] : memref<64x160xbf16, #tpu.memory_space<vmem>>, vector<16x160xbf16>
    tpu.vector_store %arg8[%c48, %c0_12], %9 {strides = array<i32>} : memref<64x160xbf16, #tpu.memory_space<vmem>>, vector<16x160xbf16>,
    %cst_13 = arith.constant 0.000000e+00 : f32
    %11 = vector.broadcast %cst_13 : f32 to vector<16x64xf32>
    %c0_14 = arith.constant 0 : index
    %c0_15 = arith.constant 0 : index
    %12 = vector.load %arg9[%c0_14, %c0_15] : memref<16x64xf32, #tpu.memory_space<vmem>>, vector<16x64xf32>
    tpu.vector_store %arg9[%c0_14, %c0_15], %11 {strides = array<i32>} : memref<16x64xf32, #tpu.memory_space<vmem>>, vector<16x64xf32>,
    %c0_16 = arith.constant 0 : index
    %c0_17 = arith.constant 0 : index
    %13 = vector.load %arg9[%c0_16, %c0_17] : memref<16x64xf32, #tpu.memory_space<vmem>>, vector<16x64xf32>
    %c0_18 = arith.constant 0 : index
    %c0_19 = arith.constant 0 : index
    %14 = vector.load %arg8[%c0_18, %c0_19] : memref<64x160xbf16, #tpu.memory_space<vmem>>, vector<16x160xbf16>
    %c0_20 = arith.constant 0 : index
    %c0_21 = arith.constant 0 : index
    %c0_22 = arith.constant 0 : index
    %15 = vector.load %arg5[%c0_20, %c0_21, %c0_22] : memref<9x160x64xbf16, #tpu.memory_space<vmem>>, vector<1x160x64xbf16>
    %16 = vector.shape_cast %15 : vector<1x160x64xbf16> to vector<160x64xbf16>
    %cst_23 = arith.constant dense<0.000000e+00> : vector<16x64xf32>
    %17 = tpu.matmul %14, %16, %cst_23 {dimension_numbers = #tpu.dot_dimension_numbers<[1], [0], [0], [1], [0, 0, 1, 1], [], []>} : vector<16x160xbf16>, vector<160x64xbf16>, vector<16x64xf32> -> vector<16x64xf32>
    %18 = arith.addf %13, %17 : vector<16x64xf32>
    %c0_24 = arith.constant 0 : index
    %c0_25 = arith.constant 0 : index
    %19 = vector.load %arg9[%c0_24, %c0_25] : memref<16x64xf32, #tpu.memory_space<vmem>>, vector<16x64xf32>
    tpu.vector_store %arg9[%c0_24, %c0_25], %18 {strides = array<i32>} : memref<16x64xf32, #tpu.memory_space<vmem>>, vector<16x64xf32>,
    %c0_26 = arith.constant 0 : index
    %c0_27 = arith.constant 0 : index
    %20 = vector.load %arg9[%c0_26, %c0_27] : memref<16x64xf32, #tpu.memory_space<vmem>>, vector<16x64xf32>
    %c1 = arith.constant 1 : index
    %c0_28 = arith.constant 0 : index
    %21 = vector.load %arg8[%c1, %c0_28] : memref<64x160xbf16, #tpu.memory_space<vmem>>, vector<16x160xbf16>
    %c1_29 = arith.constant 1 : index
    %c0_30 = arith.constant 0 : index
    %c0_31 = arith.constant 0 : index
    %22 = vector.load %arg5[%c1_29, %c0_30, %c0_31] : memref<9x160x64xbf16, #tpu.memory_space<vmem>>, vector<1x160x64xbf16>
    %23 = vector.shape_cast %22 : vector<1x160x64xbf16> to vector<160x64xbf16>
    %cst_32 = arith.constant dense<0.000000e+00> : vector<16x64xf32>
    %24 = tpu.matmul %21, %23, %cst_32 {dimension_numbers = #tpu.dot_dimension_numbers<[1], [0], [0], [1], [0, 0, 1, 1], [], []>} : vector<16x160xbf16>, vector<160x64xbf16>, vector<16x64xf32> -> vector<16x64xf32>
    %25 = arith.addf %20, %24 : vector<16x64xf32>
    %c0_33 = arith.constant 0 : index
    %c0_34 = arith.constant 0 : index
    %26 = vector.load %arg9[%c0_33, %c0_34] : memref<16x64xf32, #tpu.memory_space<vmem>>, vector<16x64xf32>
    tpu.vector_store %arg9[%c0_33, %c0_34], %25 {strides = array<i32>} : memref<16x64xf32, #tpu.memory_space<vmem>>, vector<16x64xf32>,
    %c0_35 = arith.constant 0 : index
    %c0_36 = arith.constant 0 : index
    %27 = vector.load %arg9[%c0_35, %c0_36] : memref<16x64xf32, #tpu.memory_space<vmem>>, vector<16x64xf32>
    %c2 = arith.constant 2 : index
    %c0_37 = arith.constant 0 : index
    %28 = vector.load %arg8[%c2, %c0_37] : memref<64x160xbf16, #tpu.memory_space<vmem>>, vector<16x160xbf16>
    %c2_38 = arith.constant 2 : index
    %c0_39 = arith.constant 0 : index
    %c0_40 = arith.constant 0 : index
    %29 = vector.load %arg5[%c2_38, %c0_39, %c0_40] : memref<9x160x64xbf16, #tpu.memory_space<vmem>>, vector<1x160x64xbf16>
    %30 = vector.shape_cast %29 : vector<1x160x64xbf16> to vector<160x64xbf16>
    %cst_41 = arith.constant dense<0.000000e+00> : vector<16x64xf32>
    %31 = tpu.matmul %28, %30, %cst_41 {dimension_numbers = #tpu.dot_dimension_numbers<[1], [0], [0], [1], [0, 0, 1, 1], [], []>} : vector<16x160xbf16>, vector<160x64xbf16>, vector<16x64xf32> -> vector<16x64xf32>
    %32 = arith.addf %27, %31 : vector<16x64xf32>
    %c0_42 = arith.constant 0 : index
    %c0_43 = arith.constant 0 : index
    %33 = vector.load %arg9[%c0_42, %c0_43] : memref<16x64xf32, #tpu.memory_space<vmem>>, vector<16x64xf32>
    tpu.vector_store %arg9[%c0_42, %c0_43], %32 {strides = array<i32>} : memref<16x64xf32, #tpu.memory_space<vmem>>, vector<16x64xf32>,
    %c0_44 = arith.constant 0 : index
    %c0_45 = arith.constant 0 : index
    %34 = vector.load %arg9[%c0_44, %c0_45] : memref<16x64xf32, #tpu.memory_space<vmem>>, vector<16x64xf32>
    %c16_46 = arith.constant 16 : index
    %c0_47 = arith.constant 0 : index
    %35 = vector.load %arg8[%c16_46, %c0_47] : memref<64x160xbf16, #tpu.memory_space<vmem>>, vector<16x160xbf16>
    %c3 = arith.constant 3 : index
    %c0_48 = arith.constant 0 : index
    %c0_49 = arith.constant 0 : index
    %36 = vector.load %arg5[%c3, %c0_48, %c0_49] : memref<9x160x64xbf16, #tpu.memory_space<vmem>>, vector<1x160x64xbf16>
    %37 = vector.shape_cast %36 : vector<1x160x64xbf16> to vector<160x64xbf16>
    %cst_50 = arith.constant dense<0.000000e+00> : vector<16x64xf32>
    %38 = tpu.matmul %35, %37, %cst_50 {dimension_numbers = #tpu.dot_dimension_numbers<[1], [0], [0], [1], [0, 0, 1, 1], [], []>} : vector<16x160xbf16>, vector<160x64xbf16>, vector<16x64xf32> -> vector<16x64xf32>
    %39 = arith.addf %34, %38 : vector<16x64xf32>
    %c0_51 = arith.constant 0 : index
    %c0_52 = arith.constant 0 : index
    %40 = vector.load %arg9[%c0_51, %c0_52] : memref<16x64xf32, #tpu.memory_space<vmem>>, vector<16x64xf32>
    tpu.vector_store %arg9[%c0_51, %c0_52], %39 {strides = array<i32>} : memref<16x64xf32, #tpu.memory_space<vmem>>, vector<16x64xf32>,
    %c0_53 = arith.constant 0 : index
    %c0_54 = arith.constant 0 : index
    %41 = vector.load %arg9[%c0_53, %c0_54] : memref<16x64xf32, #tpu.memory_space<vmem>>, vector<16x64xf32>
    %c17 = arith.constant 17 : index
    %c0_55 = arith.constant 0 : index
    %42 = vector.load %arg8[%c17, %c0_55] : memref<64x160xbf16, #tpu.memory_space<vmem>>, vector<16x160xbf16>
    %c4 = arith.constant 4 : index
    %c0_56 = arith.constant 0 : index
    %c0_57 = arith.constant 0 : index
    %43 = vector.load %arg5[%c4, %c0_56, %c0_57] : memref<9x160x64xbf16, #tpu.memory_space<vmem>>, vector<1x160x64xbf16>
    %44 = vector.shape_cast %43 : vector<1x160x64xbf16> to vector<160x64xbf16>
    %cst_58 = arith.constant dense<0.000000e+00> : vector<16x64xf32>
    %45 = tpu.matmul %42, %44, %cst_58 {dimension_numbers = #tpu.dot_dimension_numbers<[1], [0], [0], [1], [0, 0, 1, 1], [], []>} : vector<16x160xbf16>, vector<160x64xbf16>, vector<16x64xf32> -> vector<16x64xf32>
    %46 = arith.addf %41, %45 : vector<16x64xf32>
    %c0_59 = arith.constant 0 : index
    %c0_60 = arith.constant 0 : index
    %47 = vector.load %arg9[%c0_59, %c0_60] : memref<16x64xf32, #tpu.memory_space<vmem>>, vector<16x64xf32>
    tpu.vector_store %arg9[%c0_59, %c0_60], %46 {strides = array<i32>} : memref<16x64xf32, #tpu.memory_space<vmem>>, vector<16x64xf32>,
    %c0_61 = arith.constant 0 : index
    %c0_62 = arith.constant 0 : index
    %48 = vector.load %arg9[%c0_61, %c0_62] : memref<16x64xf32, #tpu.memory_space<vmem>>, vector<16x64xf32>
    %c18 = arith.constant 18 : index
    %c0_63 = arith.constant 0 : index
    %49 = vector.load %arg8[%c18, %c0_63] : memref<64x160xbf16, #tpu.memory_space<vmem>>, vector<16x160xbf16>
    %c5 = arith.constant 5 : index
    %c0_64 = arith.constant 0 : index
    %c0_65 = arith.constant 0 : index
    %50 = vector.load %arg5[%c5, %c0_64, %c0_65] : memref<9x160x64xbf16, #tpu.memory_space<vmem>>, vector<1x160x64xbf16>
    %51 = vector.shape_cast %50 : vector<1x160x64xbf16> to vector<160x64xbf16>
    %cst_66 = arith.constant dense<0.000000e+00> : vector<16x64xf32>
    %52 = tpu.matmul %49, %51, %cst_66 {dimension_numbers = #tpu.dot_dimension_numbers<[1], [0], [0], [1], [0, 0, 1, 1], [], []>} : vector<16x160xbf16>, vector<160x64xbf16>, vector<16x64xf32> -> vector<16x64xf32>
    %53 = arith.addf %48, %52 : vector<16x64xf32>
    %c0_67 = arith.constant 0 : index
    %c0_68 = arith.constant 0 : index
    %54 = vector.load %arg9[%c0_67, %c0_68] : memref<16x64xf32, #tpu.memory_space<vmem>>, vector<16x64xf32>
    tpu.vector_store %arg9[%c0_67, %c0_68], %53 {strides = array<i32>} : memref<16x64xf32, #tpu.memory_space<vmem>>, vector<16x64xf32>,
    %c0_69 = arith.constant 0 : index
    %c0_70 = arith.constant 0 : index
    %55 = vector.load %arg9[%c0_69, %c0_70] : memref<16x64xf32, #tpu.memory_space<vmem>>, vector<16x64xf32>
    %c32_71 = arith.constant 32 : index
    %c0_72 = arith.constant 0 : index
    %56 = vector.load %arg8[%c32_71, %c0_72] : memref<64x160xbf16, #tpu.memory_space<vmem>>, vector<16x160xbf16>
    %c6 = arith.constant 6 : index
    %c0_73 = arith.constant 0 : index
    %c0_74 = arith.constant 0 : index
    %57 = vector.load %arg5[%c6, %c0_73, %c0_74] : memref<9x160x64xbf16, #tpu.memory_space<vmem>>, vector<1x160x64xbf16>
    %58 = vector.shape_cast %57 : vector<1x160x64xbf16> to vector<160x64xbf16>
    %cst_75 = arith.constant dense<0.000000e+00> : vector<16x64xf32>
    %59 = tpu.matmul %56, %58, %cst_75 {dimension_numbers = #tpu.dot_dimension_numbers<[1], [0], [0], [1], [0, 0, 1, 1], [], []>} : vector<16x160xbf16>, vector<160x64xbf16>, vector<16x64xf32> -> vector<16x64xf32>
    %60 = arith.addf %55, %59 : vector<16x64xf32>
    %c0_76 = arith.constant 0 : index
    %c0_77 = arith.constant 0 : index
    %61 = vector.load %arg9[%c0_76, %c0_77] : memref<16x64xf32, #tpu.memory_space<vmem>>, vector<16x64xf32>
    tpu.vector_store %arg9[%c0_76, %c0_77], %60 {strides = array<i32>} : memref<16x64xf32, #tpu.memory_space<vmem>>, vector<16x64xf32>,
    %c0_78 = arith.constant 0 : index
    %c0_79 = arith.constant 0 : index
    %62 = vector.load %arg9[%c0_78, %c0_79] : memref<16x64xf32, #tpu.memory_space<vmem>>, vector<16x64xf32>
    %c33 = arith.constant 33 : index
    %c0_80 = arith.constant 0 : index
    %63 = vector.load %arg8[%c33, %c0_80] : memref<64x160xbf16, #tpu.memory_space<vmem>>, vector<16x160xbf16>
    %c7 = arith.constant 7 : index
    %c0_81 = arith.constant 0 : index
    %c0_82 = arith.constant 0 : index
    %64 = vector.load %arg5[%c7, %c0_81, %c0_82] : memref<9x160x64xbf16, #tpu.memory_space<vmem>>, vector<1x160x64xbf16>
    %65 = vector.shape_cast %64 : vector<1x160x64xbf16> to vector<160x64xbf16>
    %cst_83 = arith.constant dense<0.000000e+00> : vector<16x64xf32>
    %66 = tpu.matmul %63, %65, %cst_83 {dimension_numbers = #tpu.dot_dimension_numbers<[1], [0], [0], [1], [0, 0, 1, 1], [], []>} : vector<16x160xbf16>, vector<160x64xbf16>, vector<16x64xf32> -> vector<16x64xf32>
    %67 = arith.addf %62, %66 : vector<16x64xf32>
    %c0_84 = arith.constant 0 : index
    %c0_85 = arith.constant 0 : index
    %68 = vector.load %arg9[%c0_84, %c0_85] : memref<16x64xf32, #tpu.memory_space<vmem>>, vector<16x64xf32>
    tpu.vector_store %arg9[%c0_84, %c0_85], %67 {strides = array<i32>} : memref<16x64xf32, #tpu.memory_space<vmem>>, vector<16x64xf32>,
    %c0_86 = arith.constant 0 : index
    %c0_87 = arith.constant 0 : index
    %69 = vector.load %arg9[%c0_86, %c0_87] : memref<16x64xf32, #tpu.memory_space<vmem>>, vector<16x64xf32>
    %c34 = arith.constant 34 : index
    %c0_88 = arith.constant 0 : index
    %70 = vector.load %arg8[%c34, %c0_88] : memref<64x160xbf16, #tpu.memory_space<vmem>>, vector<16x160xbf16>
    %c8 = arith.constant 8 : index
    %c0_89 = arith.constant 0 : index
    %c0_90 = arith.constant 0 : index
    %71 = vector.load %arg5[%c8, %c0_89, %c0_90] : memref<9x160x64xbf16, #tpu.memory_space<vmem>>, vector<1x160x64xbf16>
    %72 = vector.shape_cast %71 : vector<1x160x64xbf16> to vector<160x64xbf16>
    %cst_91 = arith.constant dense<0.000000e+00> : vector<16x64xf32>
    %73 = tpu.matmul %70, %72, %cst_91 {dimension_numbers = #tpu.dot_dimension_numbers<[1], [0], [0], [1], [0, 0, 1, 1], [], []>} : vector<16x160xbf16>, vector<160x64xbf16>, vector<16x64xf32> -> vector<16x64xf32>
    %74 = arith.addf %69, %73 : vector<16x64xf32>
    %c0_92 = arith.constant 0 : index
    %c0_93 = arith.constant 0 : index
    %75 = vector.load %arg9[%c0_92, %c0_93] : memref<16x64xf32, #tpu.memory_space<vmem>>, vector<16x64xf32>
    tpu.vector_store %arg9[%c0_92, %c0_93], %74 {strides = array<i32>} : memref<16x64xf32, #tpu.memory_space<vmem>>, vector<16x64xf32>,
    %c0_94 = arith.constant 0 : index
    %c0_95 = arith.constant 0 : index
    %76 = vector.load %arg9[%c0_94, %c0_95] : memref<16x64xf32, #tpu.memory_space<vmem>>, vector<16x64xf32>
    %c0_96 = arith.constant 0 : index
    %c0_97 = arith.constant 0 : index
    %77 = vector.load %arg6[%c0_96, %c0_97] : memref<1x64xf32, #tpu.memory_space<vmem>>, vector<1x64xf32>
    %78 = vector.broadcast %77 : vector<1x64xf32> to vector<16x64xf32>
    %79 = arith.addf %76, %78 : vector<16x64xf32>
    %cst_98 = arith.constant 0.000000e+00 : f32
    %80 = vector.broadcast %cst_98 : f32 to vector<16x64xf32>
    %81 = arith.cmpf ogt, %79, %80 : vector<16x64xf32>
    %cst_99 = arith.constant 2.000000e-01 : f32
    %82 = vector.broadcast %cst_99 : f32 to vector<16x64xf32>
    %83 = arith.mulf %82, %79 : vector<16x64xf32>
    %84 = arith.select %81, %79, %83 : vector<16x64xi1>, vector<16x64xf32>
    %85 = arith.truncf %84 : vector<16x64xf32> to vector<16x64xbf16>
    %c0_100 = arith.constant 0 : index
    %c0_101 = arith.constant 0 : index
    %c0_102 = arith.constant 0 : index
    %86 = vector.load %arg7[%c0_100, %c0_101, %c0_102] : memref<1x16x64xbf16, #tpu.memory_space<vmem>>, vector<1x16x64xbf16>
    %87 = vector.shape_cast %86 : vector<1x16x64xbf16> to vector<16x64xbf16>
    %88 = vector.shape_cast %85 : vector<16x64xbf16> to vector<1x16x64xbf16>
    tpu.vector_store %arg7[%c0_100, %c0_101, %c0_102], %88 {strides = array<i32>} : memref<1x16x64xbf16, #tpu.memory_space<vmem>>, vector<1x16x64xbf16>,
    return
  }
  func.func @transform_0(%arg0: i32, %arg1: i32) -> (i32, i32, i32) {
    %c0_i32 = arith.constant 0 : i32
    %c0_i32_0 = arith.constant 0 : i32
    return %arg0, %arg1, %c0_i32 : i32, i32, i32
  }
  func.func @transform_1(%arg0: i32, %arg1: i32) -> (i32, i32, i32) {
    %c1_i32 = arith.constant 1 : i32
    %0 = arith.addi %arg1, %c1_i32 : i32
    %c1_i32_0 = arith.constant 1 : i32
    %1 = arith.muli %0, %c1_i32_0 : i32
    %c0_i32 = arith.constant 0 : i32
    %c0_i32_1 = arith.constant 0 : i32
    return %arg0, %1, %c0_i32 : i32, i32, i32
  }
  func.func @transform_2(%arg0: i32, %arg1: i32) -> (i32, i32, i32) {
    %c1_i32 = arith.constant 1 : i32
    %0 = arith.addi %arg1, %c1_i32 : i32
    %c1_i32_0 = arith.constant 1 : i32
    %1 = arith.muli %0, %c1_i32_0 : i32
    %c1_i32_1 = arith.constant 1 : i32
    %2 = arith.addi %1, %c1_i32_1 : i32
    %c0_i32 = arith.constant 0 : i32
    %c0_i32_2 = arith.constant 0 : i32
    return %arg0, %2, %c0_i32 : i32, i32, i32
  }
  func.func @transform_3(%arg0: i32, %arg1: i32) -> (i32, i32, i32) {
    %c0_i32 = arith.constant 0 : i32
    %c0_i32_0 = arith.constant 0 : i32
    %c0_i32_1 = arith.constant 0 : i32
    %c0_i32_2 = arith.constant 0 : i32
    return %c0_i32, %c0_i32_0, %c0_i32_1 : i32, i32, i32
  }
  func.func @transform_4(%arg0: i32, %arg1: i32) -> (i32, i32) {
    %c0_i32 = arith.constant 0 : i32
    %c0_i32_0 = arith.constant 0 : i32
    %c0_i32_1 = arith.constant 0 : i32
    return %c0_i32, %c0_i32_0 : i32, i32
  }
  func.func @transform_5(%arg0: i32, %arg1: i32) -> (i32, i32, i32) {
    %c0_i32 = arith.constant 0 : i32
    %c0_i32_0 = arith.constant 0 : i32
    return %arg0, %arg1, %c0_i32 : i32, i32, i32
  }
}

module attributes {stable_mosaic.version = 11 : i64} {
  func.func @_s1_conv_kernel(%arg0: i32, %arg1: i32, %arg2: memref<1x16x144xbf16, #tpu.memory_space<vmem>>, %arg3: memref<1x16x144xbf16, #tpu.memory_space<vmem>>, %arg4: memref<1x16x144xbf16, #tpu.memory_space<vmem>>, %arg5: memref<9x144x64xbf16, #tpu.memory_space<vmem>>, %arg6: memref<1x64xf32, #tpu.memory_space<vmem>>, %arg7: memref<1x16x64xbf16, #tpu.memory_space<vmem>>, %arg8: memref<64x144xbf16, #tpu.memory_space<vmem>>, %arg9: memref<16x64xf32, #tpu.memory_space<vmem>>) attributes {dimension_semantics = [#tpu.dimension_semantics<parallel>, #tpu.dimension_semantics<parallel>], iteration_bounds = array<i64: 2, 2>, scalar_prefetch = 0 : i64, scratch_operands = 2 : i64, tpu.core_type = #tpu.core_type<tc>, window_params = [{transform_indices = @transform_0, window_bounds = array<i64: 1, 16, 144>}, {transform_indices = @transform_1, window_bounds = array<i64: 1, 16, 144>}, {transform_indices = @transform_2, window_bounds = array<i64: 1, 16, 144>}, {pipeline_mode = #tpu.pipeline_mode<synchronous>, transform_indices = @transform_3, window_bounds = array<i64: 9, 144, 64>}, {pipeline_mode = #tpu.pipeline_mode<synchronous>, transform_indices = @transform_4, window_bounds = array<i64: 1, 64>}, {transform_indices = @transform_5, window_bounds = array<i64: 1, 16, 64>}]} {
    %c0 = arith.constant 0 : index
    %c0_0 = arith.constant 0 : index
    %c0_1 = arith.constant 0 : index
    %0 = vector.load %arg2[%c0, %c0_0, %c0_1] : memref<1x16x144xbf16, #tpu.memory_space<vmem>>, vector<1x16x144xbf16>
    %1 = vector.shape_cast %0 : vector<1x16x144xbf16> to vector<16x144xbf16>
    %c0_2 = arith.constant 0 : index
    %c0_3 = arith.constant 0 : index
    %2 = vector.load %arg8[%c0_2, %c0_3] : memref<64x144xbf16, #tpu.memory_space<vmem>>, vector<16x144xbf16>
    tpu.vector_store %arg8[%c0_2, %c0_3], %1 {strides = array<i32>} : memref<64x144xbf16, #tpu.memory_space<vmem>>, vector<16x144xbf16>,
    %c0_4 = arith.constant 0 : index
    %c0_5 = arith.constant 0 : index
    %c0_6 = arith.constant 0 : index
    %3 = vector.load %arg3[%c0_4, %c0_5, %c0_6] : memref<1x16x144xbf16, #tpu.memory_space<vmem>>, vector<1x16x144xbf16>
    %4 = vector.shape_cast %3 : vector<1x16x144xbf16> to vector<16x144xbf16>
    %c16 = arith.constant 16 : index
    %c0_7 = arith.constant 0 : index
    %5 = vector.load %arg8[%c16, %c0_7] : memref<64x144xbf16, #tpu.memory_space<vmem>>, vector<16x144xbf16>
    tpu.vector_store %arg8[%c16, %c0_7], %4 {strides = array<i32>} : memref<64x144xbf16, #tpu.memory_space<vmem>>, vector<16x144xbf16>,
    %c0_8 = arith.constant 0 : index
    %c0_9 = arith.constant 0 : index
    %c0_10 = arith.constant 0 : index
    %6 = vector.load %arg4[%c0_8, %c0_9, %c0_10] : memref<1x16x144xbf16, #tpu.memory_space<vmem>>, vector<1x16x144xbf16>
    %7 = vector.shape_cast %6 : vector<1x16x144xbf16> to vector<16x144xbf16>
    %c32 = arith.constant 32 : index
    %c0_11 = arith.constant 0 : index
    %8 = vector.load %arg8[%c32, %c0_11] : memref<64x144xbf16, #tpu.memory_space<vmem>>, vector<16x144xbf16>
    tpu.vector_store %arg8[%c32, %c0_11], %7 {strides = array<i32>} : memref<64x144xbf16, #tpu.memory_space<vmem>>, vector<16x144xbf16>,
    %cst = arith.constant 0.000000e+00 : bf16
    %9 = vector.broadcast %cst : bf16 to vector<16x144xbf16>
    %c48 = arith.constant 48 : index
    %c0_12 = arith.constant 0 : index
    %10 = vector.load %arg8[%c48, %c0_12] : memref<64x144xbf16, #tpu.memory_space<vmem>>, vector<16x144xbf16>
    tpu.vector_store %arg8[%c48, %c0_12], %9 {strides = array<i32>} : memref<64x144xbf16, #tpu.memory_space<vmem>>, vector<16x144xbf16>,
    %cst_13 = arith.constant 0.000000e+00 : f32
    %11 = vector.broadcast %cst_13 : f32 to vector<16x64xf32>
    %c0_14 = arith.constant 0 : index
    %c0_15 = arith.constant 0 : index
    %12 = vector.load %arg9[%c0_14, %c0_15] : memref<16x64xf32, #tpu.memory_space<vmem>>, vector<16x64xf32>
    tpu.vector_store %arg9[%c0_14, %c0_15], %11 {strides = array<i32>} : memref<16x64xf32, #tpu.memory_space<vmem>>, vector<16x64xf32>,
    %c0_16 = arith.constant 0 : index
    %c0_17 = arith.constant 0 : index
    %13 = vector.load %arg9[%c0_16, %c0_17] : memref<16x64xf32, #tpu.memory_space<vmem>>, vector<16x64xf32>
    %c0_18 = arith.constant 0 : index
    %c0_19 = arith.constant 0 : index
    %14 = vector.load %arg8[%c0_18, %c0_19] : memref<64x144xbf16, #tpu.memory_space<vmem>>, vector<16x144xbf16>
    %c0_20 = arith.constant 0 : index
    %c0_21 = arith.constant 0 : index
    %c0_22 = arith.constant 0 : index
    %15 = vector.load %arg5[%c0_20, %c0_21, %c0_22] : memref<9x144x64xbf16, #tpu.memory_space<vmem>>, vector<1x144x64xbf16>
    %16 = vector.shape_cast %15 : vector<1x144x64xbf16> to vector<144x64xbf16>
    %cst_23 = arith.constant dense<0.000000e+00> : vector<16x64xf32>
    %17 = tpu.matmul %14, %16, %cst_23 {dimension_numbers = #tpu.dot_dimension_numbers<[1], [0], [0], [1], [0, 0, 1, 1], [], []>} : vector<16x144xbf16>, vector<144x64xbf16>, vector<16x64xf32> -> vector<16x64xf32>
    %18 = arith.addf %13, %17 : vector<16x64xf32>
    %c0_24 = arith.constant 0 : index
    %c0_25 = arith.constant 0 : index
    %19 = vector.load %arg9[%c0_24, %c0_25] : memref<16x64xf32, #tpu.memory_space<vmem>>, vector<16x64xf32>
    tpu.vector_store %arg9[%c0_24, %c0_25], %18 {strides = array<i32>} : memref<16x64xf32, #tpu.memory_space<vmem>>, vector<16x64xf32>,
    %c0_26 = arith.constant 0 : index
    %c0_27 = arith.constant 0 : index
    %20 = vector.load %arg9[%c0_26, %c0_27] : memref<16x64xf32, #tpu.memory_space<vmem>>, vector<16x64xf32>
    %c1 = arith.constant 1 : index
    %c0_28 = arith.constant 0 : index
    %21 = vector.load %arg8[%c1, %c0_28] : memref<64x144xbf16, #tpu.memory_space<vmem>>, vector<16x144xbf16>
    %c1_29 = arith.constant 1 : index
    %c0_30 = arith.constant 0 : index
    %c0_31 = arith.constant 0 : index
    %22 = vector.load %arg5[%c1_29, %c0_30, %c0_31] : memref<9x144x64xbf16, #tpu.memory_space<vmem>>, vector<1x144x64xbf16>
    %23 = vector.shape_cast %22 : vector<1x144x64xbf16> to vector<144x64xbf16>
    %cst_32 = arith.constant dense<0.000000e+00> : vector<16x64xf32>
    %24 = tpu.matmul %21, %23, %cst_32 {dimension_numbers = #tpu.dot_dimension_numbers<[1], [0], [0], [1], [0, 0, 1, 1], [], []>} : vector<16x144xbf16>, vector<144x64xbf16>, vector<16x64xf32> -> vector<16x64xf32>
    %25 = arith.addf %20, %24 : vector<16x64xf32>
    %c0_33 = arith.constant 0 : index
    %c0_34 = arith.constant 0 : index
    %26 = vector.load %arg9[%c0_33, %c0_34] : memref<16x64xf32, #tpu.memory_space<vmem>>, vector<16x64xf32>
    tpu.vector_store %arg9[%c0_33, %c0_34], %25 {strides = array<i32>} : memref<16x64xf32, #tpu.memory_space<vmem>>, vector<16x64xf32>,
    %c0_35 = arith.constant 0 : index
    %c0_36 = arith.constant 0 : index
    %27 = vector.load %arg9[%c0_35, %c0_36] : memref<16x64xf32, #tpu.memory_space<vmem>>, vector<16x64xf32>
    %c2 = arith.constant 2 : index
    %c0_37 = arith.constant 0 : index
    %28 = vector.load %arg8[%c2, %c0_37] : memref<64x144xbf16, #tpu.memory_space<vmem>>, vector<16x144xbf16>
    %c2_38 = arith.constant 2 : index
    %c0_39 = arith.constant 0 : index
    %c0_40 = arith.constant 0 : index
    %29 = vector.load %arg5[%c2_38, %c0_39, %c0_40] : memref<9x144x64xbf16, #tpu.memory_space<vmem>>, vector<1x144x64xbf16>
    %30 = vector.shape_cast %29 : vector<1x144x64xbf16> to vector<144x64xbf16>
    %cst_41 = arith.constant dense<0.000000e+00> : vector<16x64xf32>
    %31 = tpu.matmul %28, %30, %cst_41 {dimension_numbers = #tpu.dot_dimension_numbers<[1], [0], [0], [1], [0, 0, 1, 1], [], []>} : vector<16x144xbf16>, vector<144x64xbf16>, vector<16x64xf32> -> vector<16x64xf32>
    %32 = arith.addf %27, %31 : vector<16x64xf32>
    %c0_42 = arith.constant 0 : index
    %c0_43 = arith.constant 0 : index
    %33 = vector.load %arg9[%c0_42, %c0_43] : memref<16x64xf32, #tpu.memory_space<vmem>>, vector<16x64xf32>
    tpu.vector_store %arg9[%c0_42, %c0_43], %32 {strides = array<i32>} : memref<16x64xf32, #tpu.memory_space<vmem>>, vector<16x64xf32>,
    %c0_44 = arith.constant 0 : index
    %c0_45 = arith.constant 0 : index
    %34 = vector.load %arg9[%c0_44, %c0_45] : memref<16x64xf32, #tpu.memory_space<vmem>>, vector<16x64xf32>
    %c16_46 = arith.constant 16 : index
    %c0_47 = arith.constant 0 : index
    %35 = vector.load %arg8[%c16_46, %c0_47] : memref<64x144xbf16, #tpu.memory_space<vmem>>, vector<16x144xbf16>
    %c3 = arith.constant 3 : index
    %c0_48 = arith.constant 0 : index
    %c0_49 = arith.constant 0 : index
    %36 = vector.load %arg5[%c3, %c0_48, %c0_49] : memref<9x144x64xbf16, #tpu.memory_space<vmem>>, vector<1x144x64xbf16>
    %37 = vector.shape_cast %36 : vector<1x144x64xbf16> to vector<144x64xbf16>
    %cst_50 = arith.constant dense<0.000000e+00> : vector<16x64xf32>
    %38 = tpu.matmul %35, %37, %cst_50 {dimension_numbers = #tpu.dot_dimension_numbers<[1], [0], [0], [1], [0, 0, 1, 1], [], []>} : vector<16x144xbf16>, vector<144x64xbf16>, vector<16x64xf32> -> vector<16x64xf32>
    %39 = arith.addf %34, %38 : vector<16x64xf32>
    %c0_51 = arith.constant 0 : index
    %c0_52 = arith.constant 0 : index
    %40 = vector.load %arg9[%c0_51, %c0_52] : memref<16x64xf32, #tpu.memory_space<vmem>>, vector<16x64xf32>
    tpu.vector_store %arg9[%c0_51, %c0_52], %39 {strides = array<i32>} : memref<16x64xf32, #tpu.memory_space<vmem>>, vector<16x64xf32>,
    %c0_53 = arith.constant 0 : index
    %c0_54 = arith.constant 0 : index
    %41 = vector.load %arg9[%c0_53, %c0_54] : memref<16x64xf32, #tpu.memory_space<vmem>>, vector<16x64xf32>
    %c17 = arith.constant 17 : index
    %c0_55 = arith.constant 0 : index
    %42 = vector.load %arg8[%c17, %c0_55] : memref<64x144xbf16, #tpu.memory_space<vmem>>, vector<16x144xbf16>
    %c4 = arith.constant 4 : index
    %c0_56 = arith.constant 0 : index
    %c0_57 = arith.constant 0 : index
    %43 = vector.load %arg5[%c4, %c0_56, %c0_57] : memref<9x144x64xbf16, #tpu.memory_space<vmem>>, vector<1x144x64xbf16>
    %44 = vector.shape_cast %43 : vector<1x144x64xbf16> to vector<144x64xbf16>
    %cst_58 = arith.constant dense<0.000000e+00> : vector<16x64xf32>
    %45 = tpu.matmul %42, %44, %cst_58 {dimension_numbers = #tpu.dot_dimension_numbers<[1], [0], [0], [1], [0, 0, 1, 1], [], []>} : vector<16x144xbf16>, vector<144x64xbf16>, vector<16x64xf32> -> vector<16x64xf32>
    %46 = arith.addf %41, %45 : vector<16x64xf32>
    %c0_59 = arith.constant 0 : index
    %c0_60 = arith.constant 0 : index
    %47 = vector.load %arg9[%c0_59, %c0_60] : memref<16x64xf32, #tpu.memory_space<vmem>>, vector<16x64xf32>
    tpu.vector_store %arg9[%c0_59, %c0_60], %46 {strides = array<i32>} : memref<16x64xf32, #tpu.memory_space<vmem>>, vector<16x64xf32>,
    %c0_61 = arith.constant 0 : index
    %c0_62 = arith.constant 0 : index
    %48 = vector.load %arg9[%c0_61, %c0_62] : memref<16x64xf32, #tpu.memory_space<vmem>>, vector<16x64xf32>
    %c18 = arith.constant 18 : index
    %c0_63 = arith.constant 0 : index
    %49 = vector.load %arg8[%c18, %c0_63] : memref<64x144xbf16, #tpu.memory_space<vmem>>, vector<16x144xbf16>
    %c5 = arith.constant 5 : index
    %c0_64 = arith.constant 0 : index
    %c0_65 = arith.constant 0 : index
    %50 = vector.load %arg5[%c5, %c0_64, %c0_65] : memref<9x144x64xbf16, #tpu.memory_space<vmem>>, vector<1x144x64xbf16>
    %51 = vector.shape_cast %50 : vector<1x144x64xbf16> to vector<144x64xbf16>
    %cst_66 = arith.constant dense<0.000000e+00> : vector<16x64xf32>
    %52 = tpu.matmul %49, %51, %cst_66 {dimension_numbers = #tpu.dot_dimension_numbers<[1], [0], [0], [1], [0, 0, 1, 1], [], []>} : vector<16x144xbf16>, vector<144x64xbf16>, vector<16x64xf32> -> vector<16x64xf32>
    %53 = arith.addf %48, %52 : vector<16x64xf32>
    %c0_67 = arith.constant 0 : index
    %c0_68 = arith.constant 0 : index
    %54 = vector.load %arg9[%c0_67, %c0_68] : memref<16x64xf32, #tpu.memory_space<vmem>>, vector<16x64xf32>
    tpu.vector_store %arg9[%c0_67, %c0_68], %53 {strides = array<i32>} : memref<16x64xf32, #tpu.memory_space<vmem>>, vector<16x64xf32>,
    %c0_69 = arith.constant 0 : index
    %c0_70 = arith.constant 0 : index
    %55 = vector.load %arg9[%c0_69, %c0_70] : memref<16x64xf32, #tpu.memory_space<vmem>>, vector<16x64xf32>
    %c32_71 = arith.constant 32 : index
    %c0_72 = arith.constant 0 : index
    %56 = vector.load %arg8[%c32_71, %c0_72] : memref<64x144xbf16, #tpu.memory_space<vmem>>, vector<16x144xbf16>
    %c6 = arith.constant 6 : index
    %c0_73 = arith.constant 0 : index
    %c0_74 = arith.constant 0 : index
    %57 = vector.load %arg5[%c6, %c0_73, %c0_74] : memref<9x144x64xbf16, #tpu.memory_space<vmem>>, vector<1x144x64xbf16>
    %58 = vector.shape_cast %57 : vector<1x144x64xbf16> to vector<144x64xbf16>
    %cst_75 = arith.constant dense<0.000000e+00> : vector<16x64xf32>
    %59 = tpu.matmul %56, %58, %cst_75 {dimension_numbers = #tpu.dot_dimension_numbers<[1], [0], [0], [1], [0, 0, 1, 1], [], []>} : vector<16x144xbf16>, vector<144x64xbf16>, vector<16x64xf32> -> vector<16x64xf32>
    %60 = arith.addf %55, %59 : vector<16x64xf32>
    %c0_76 = arith.constant 0 : index
    %c0_77 = arith.constant 0 : index
    %61 = vector.load %arg9[%c0_76, %c0_77] : memref<16x64xf32, #tpu.memory_space<vmem>>, vector<16x64xf32>
    tpu.vector_store %arg9[%c0_76, %c0_77], %60 {strides = array<i32>} : memref<16x64xf32, #tpu.memory_space<vmem>>, vector<16x64xf32>,
    %c0_78 = arith.constant 0 : index
    %c0_79 = arith.constant 0 : index
    %62 = vector.load %arg9[%c0_78, %c0_79] : memref<16x64xf32, #tpu.memory_space<vmem>>, vector<16x64xf32>
    %c33 = arith.constant 33 : index
    %c0_80 = arith.constant 0 : index
    %63 = vector.load %arg8[%c33, %c0_80] : memref<64x144xbf16, #tpu.memory_space<vmem>>, vector<16x144xbf16>
    %c7 = arith.constant 7 : index
    %c0_81 = arith.constant 0 : index
    %c0_82 = arith.constant 0 : index
    %64 = vector.load %arg5[%c7, %c0_81, %c0_82] : memref<9x144x64xbf16, #tpu.memory_space<vmem>>, vector<1x144x64xbf16>
    %65 = vector.shape_cast %64 : vector<1x144x64xbf16> to vector<144x64xbf16>
    %cst_83 = arith.constant dense<0.000000e+00> : vector<16x64xf32>
    %66 = tpu.matmul %63, %65, %cst_83 {dimension_numbers = #tpu.dot_dimension_numbers<[1], [0], [0], [1], [0, 0, 1, 1], [], []>} : vector<16x144xbf16>, vector<144x64xbf16>, vector<16x64xf32> -> vector<16x64xf32>
    %67 = arith.addf %62, %66 : vector<16x64xf32>
    %c0_84 = arith.constant 0 : index
    %c0_85 = arith.constant 0 : index
    %68 = vector.load %arg9[%c0_84, %c0_85] : memref<16x64xf32, #tpu.memory_space<vmem>>, vector<16x64xf32>
    tpu.vector_store %arg9[%c0_84, %c0_85], %67 {strides = array<i32>} : memref<16x64xf32, #tpu.memory_space<vmem>>, vector<16x64xf32>,
    %c0_86 = arith.constant 0 : index
    %c0_87 = arith.constant 0 : index
    %69 = vector.load %arg9[%c0_86, %c0_87] : memref<16x64xf32, #tpu.memory_space<vmem>>, vector<16x64xf32>
    %c34 = arith.constant 34 : index
    %c0_88 = arith.constant 0 : index
    %70 = vector.load %arg8[%c34, %c0_88] : memref<64x144xbf16, #tpu.memory_space<vmem>>, vector<16x144xbf16>
    %c8 = arith.constant 8 : index
    %c0_89 = arith.constant 0 : index
    %c0_90 = arith.constant 0 : index
    %71 = vector.load %arg5[%c8, %c0_89, %c0_90] : memref<9x144x64xbf16, #tpu.memory_space<vmem>>, vector<1x144x64xbf16>
    %72 = vector.shape_cast %71 : vector<1x144x64xbf16> to vector<144x64xbf16>
    %cst_91 = arith.constant dense<0.000000e+00> : vector<16x64xf32>
    %73 = tpu.matmul %70, %72, %cst_91 {dimension_numbers = #tpu.dot_dimension_numbers<[1], [0], [0], [1], [0, 0, 1, 1], [], []>} : vector<16x144xbf16>, vector<144x64xbf16>, vector<16x64xf32> -> vector<16x64xf32>
    %74 = arith.addf %69, %73 : vector<16x64xf32>
    %c0_92 = arith.constant 0 : index
    %c0_93 = arith.constant 0 : index
    %75 = vector.load %arg9[%c0_92, %c0_93] : memref<16x64xf32, #tpu.memory_space<vmem>>, vector<16x64xf32>
    tpu.vector_store %arg9[%c0_92, %c0_93], %74 {strides = array<i32>} : memref<16x64xf32, #tpu.memory_space<vmem>>, vector<16x64xf32>,
    %c0_94 = arith.constant 0 : index
    %c0_95 = arith.constant 0 : index
    %76 = vector.load %arg9[%c0_94, %c0_95] : memref<16x64xf32, #tpu.memory_space<vmem>>, vector<16x64xf32>
    %c0_96 = arith.constant 0 : index
    %c0_97 = arith.constant 0 : index
    %77 = vector.load %arg6[%c0_96, %c0_97] : memref<1x64xf32, #tpu.memory_space<vmem>>, vector<1x64xf32>
    %78 = vector.broadcast %77 : vector<1x64xf32> to vector<16x64xf32>
    %79 = arith.addf %76, %78 : vector<16x64xf32>
    %cst_98 = arith.constant 0.000000e+00 : f32
    %80 = vector.broadcast %cst_98 : f32 to vector<16x64xf32>
    %81 = arith.cmpf ogt, %79, %80 : vector<16x64xf32>
    %cst_99 = arith.constant 2.000000e-01 : f32
    %82 = vector.broadcast %cst_99 : f32 to vector<16x64xf32>
    %83 = arith.mulf %82, %79 : vector<16x64xf32>
    %84 = arith.select %81, %79, %83 : vector<16x64xi1>, vector<16x64xf32>
    %85 = arith.truncf %84 : vector<16x64xf32> to vector<16x64xbf16>
    %c0_100 = arith.constant 0 : index
    %c0_101 = arith.constant 0 : index
    %c0_102 = arith.constant 0 : index
    %86 = vector.load %arg7[%c0_100, %c0_101, %c0_102] : memref<1x16x64xbf16, #tpu.memory_space<vmem>>, vector<1x16x64xbf16>
    %87 = vector.shape_cast %86 : vector<1x16x64xbf16> to vector<16x64xbf16>
    %88 = vector.shape_cast %85 : vector<16x64xbf16> to vector<1x16x64xbf16>
    tpu.vector_store %arg7[%c0_100, %c0_101, %c0_102], %88 {strides = array<i32>} : memref<1x16x64xbf16, #tpu.memory_space<vmem>>, vector<1x16x64xbf16>,
    return
  }
  func.func @transform_0(%arg0: i32, %arg1: i32) -> (i32, i32, i32) {
    %c0_i32 = arith.constant 0 : i32
    %c0_i32_0 = arith.constant 0 : i32
    return %arg0, %arg1, %c0_i32 : i32, i32, i32
  }
  func.func @transform_1(%arg0: i32, %arg1: i32) -> (i32, i32, i32) {
    %c1_i32 = arith.constant 1 : i32
    %0 = arith.addi %arg1, %c1_i32 : i32
    %c1_i32_0 = arith.constant 1 : i32
    %1 = arith.muli %0, %c1_i32_0 : i32
    %c0_i32 = arith.constant 0 : i32
    %c0_i32_1 = arith.constant 0 : i32
    return %arg0, %1, %c0_i32 : i32, i32, i32
  }
  func.func @transform_2(%arg0: i32, %arg1: i32) -> (i32, i32, i32) {
    %c1_i32 = arith.constant 1 : i32
    %0 = arith.addi %arg1, %c1_i32 : i32
    %c1_i32_0 = arith.constant 1 : i32
    %1 = arith.muli %0, %c1_i32_0 : i32
    %c1_i32_1 = arith.constant 1 : i32
    %2 = arith.addi %1, %c1_i32_1 : i32
    %c0_i32 = arith.constant 0 : i32
    %c0_i32_2 = arith.constant 0 : i32
    return %arg0, %2, %c0_i32 : i32, i32, i32
  }
  func.func @transform_3(%arg0: i32, %arg1: i32) -> (i32, i32, i32) {
    %c0_i32 = arith.constant 0 : i32
    %c0_i32_0 = arith.constant 0 : i32
    %c0_i32_1 = arith.constant 0 : i32
    %c0_i32_2 = arith.constant 0 : i32
    return %c0_i32, %c0_i32_0, %c0_i32_1 : i32, i32, i32
  }
  func.func @transform_4(%arg0: i32, %arg1: i32) -> (i32, i32) {
    %c0_i32 = arith.constant 0 : i32
    %c0_i32_0 = arith.constant 0 : i32
    %c0_i32_1 = arith.constant 0 : i32
    return %c0_i32, %c0_i32_0 : i32, i32
  }
  func.func @transform_5(%arg0: i32, %arg1: i32) -> (i32, i32, i32) {
    %c0_i32 = arith.constant 0 : i32
    %c0_i32_0 = arith.constant 0 : i32
    return %arg0, %arg1, %c0_i32 : i32, i32, i32
  }
}

module attributes {stable_mosaic.version = 11 : i64} {
  func.func @_s1_conv_kernel(%arg0: i32, %arg1: i32, %arg2: memref<1x32x144xbf16, #tpu.memory_space<vmem>>, %arg3: memref<1x16x144xbf16, #tpu.memory_space<vmem>>, %arg4: memref<1x16x144xbf16, #tpu.memory_space<vmem>>, %arg5: memref<9x144x32xbf16, #tpu.memory_space<vmem>>, %arg6: memref<1x32xf32, #tpu.memory_space<vmem>>, %arg7: memref<1x32x32xbf16, #tpu.memory_space<vmem>>, %arg8: memref<80x144xbf16, #tpu.memory_space<vmem>>, %arg9: memref<32x32xf32, #tpu.memory_space<vmem>>) attributes {dimension_semantics = [#tpu.dimension_semantics<parallel>, #tpu.dimension_semantics<parallel>], iteration_bounds = array<i64: 2, 2>, scalar_prefetch = 0 : i64, scratch_operands = 2 : i64, tpu.core_type = #tpu.core_type<tc>, window_params = [{transform_indices = @transform_0, window_bounds = array<i64: 1, 32, 144>}, {transform_indices = @transform_1, window_bounds = array<i64: 1, 16, 144>}, {transform_indices = @transform_2, window_bounds = array<i64: 1, 16, 144>}, {pipeline_mode = #tpu.pipeline_mode<synchronous>, transform_indices = @transform_3, window_bounds = array<i64: 9, 144, 32>}, {pipeline_mode = #tpu.pipeline_mode<synchronous>, transform_indices = @transform_4, window_bounds = array<i64: 1, 32>}, {transform_indices = @transform_5, window_bounds = array<i64: 1, 32, 32>}]} {
    %c0 = arith.constant 0 : index
    %c0_0 = arith.constant 0 : index
    %c0_1 = arith.constant 0 : index
    %0 = vector.load %arg2[%c0, %c0_0, %c0_1] : memref<1x32x144xbf16, #tpu.memory_space<vmem>>, vector<1x32x144xbf16>
    %1 = vector.shape_cast %0 : vector<1x32x144xbf16> to vector<32x144xbf16>
    %c0_2 = arith.constant 0 : index
    %c0_3 = arith.constant 0 : index
    %2 = vector.load %arg8[%c0_2, %c0_3] : memref<80x144xbf16, #tpu.memory_space<vmem>>, vector<32x144xbf16>
    tpu.vector_store %arg8[%c0_2, %c0_3], %1 {strides = array<i32>} : memref<80x144xbf16, #tpu.memory_space<vmem>>, vector<32x144xbf16>,
    %c0_4 = arith.constant 0 : index
    %c0_5 = arith.constant 0 : index
    %c0_6 = arith.constant 0 : index
    %3 = vector.load %arg3[%c0_4, %c0_5, %c0_6] : memref<1x16x144xbf16, #tpu.memory_space<vmem>>, vector<1x16x144xbf16>
    %4 = vector.shape_cast %3 : vector<1x16x144xbf16> to vector<16x144xbf16>
    %c32 = arith.constant 32 : index
    %c0_7 = arith.constant 0 : index
    %5 = vector.load %arg8[%c32, %c0_7] : memref<80x144xbf16, #tpu.memory_space<vmem>>, vector<16x144xbf16>
    tpu.vector_store %arg8[%c32, %c0_7], %4 {strides = array<i32>} : memref<80x144xbf16, #tpu.memory_space<vmem>>, vector<16x144xbf16>,
    %c0_8 = arith.constant 0 : index
    %c0_9 = arith.constant 0 : index
    %c0_10 = arith.constant 0 : index
    %6 = vector.load %arg4[%c0_8, %c0_9, %c0_10] : memref<1x16x144xbf16, #tpu.memory_space<vmem>>, vector<1x16x144xbf16>
    %7 = vector.shape_cast %6 : vector<1x16x144xbf16> to vector<16x144xbf16>
    %c48 = arith.constant 48 : index
    %c0_11 = arith.constant 0 : index
    %8 = vector.load %arg8[%c48, %c0_11] : memref<80x144xbf16, #tpu.memory_space<vmem>>, vector<16x144xbf16>
    tpu.vector_store %arg8[%c48, %c0_11], %7 {strides = array<i32>} : memref<80x144xbf16, #tpu.memory_space<vmem>>, vector<16x144xbf16>,
    %cst = arith.constant 0.000000e+00 : bf16
    %9 = vector.broadcast %cst : bf16 to vector<16x144xbf16>
    %c64 = arith.constant 64 : index
    %c0_12 = arith.constant 0 : index
    %10 = vector.load %arg8[%c64, %c0_12] : memref<80x144xbf16, #tpu.memory_space<vmem>>, vector<16x144xbf16>
    tpu.vector_store %arg8[%c64, %c0_12], %9 {strides = array<i32>} : memref<80x144xbf16, #tpu.memory_space<vmem>>, vector<16x144xbf16>,
    %cst_13 = arith.constant 0.000000e+00 : f32
    %11 = vector.broadcast %cst_13 : f32 to vector<32x32xf32>
    %c0_14 = arith.constant 0 : index
    %c0_15 = arith.constant 0 : index
    %12 = vector.load %arg9[%c0_14, %c0_15] : memref<32x32xf32, #tpu.memory_space<vmem>>, vector<32x32xf32>
    tpu.vector_store %arg9[%c0_14, %c0_15], %11 {strides = array<i32>} : memref<32x32xf32, #tpu.memory_space<vmem>>, vector<32x32xf32>,
    %c0_16 = arith.constant 0 : index
    %c0_17 = arith.constant 0 : index
    %13 = vector.load %arg9[%c0_16, %c0_17] : memref<32x32xf32, #tpu.memory_space<vmem>>, vector<32x32xf32>
    %c0_18 = arith.constant 0 : index
    %c0_19 = arith.constant 0 : index
    %14 = vector.load %arg8[%c0_18, %c0_19] : memref<80x144xbf16, #tpu.memory_space<vmem>>, vector<32x144xbf16>
    %c0_20 = arith.constant 0 : index
    %c0_21 = arith.constant 0 : index
    %c0_22 = arith.constant 0 : index
    %15 = vector.load %arg5[%c0_20, %c0_21, %c0_22] : memref<9x144x32xbf16, #tpu.memory_space<vmem>>, vector<1x144x32xbf16>
    %16 = vector.shape_cast %15 : vector<1x144x32xbf16> to vector<144x32xbf16>
    %cst_23 = arith.constant dense<0.000000e+00> : vector<32x32xf32>
    %17 = tpu.matmul %14, %16, %cst_23 {dimension_numbers = #tpu.dot_dimension_numbers<[1], [0], [0], [1], [0, 0, 1, 1], [], []>} : vector<32x144xbf16>, vector<144x32xbf16>, vector<32x32xf32> -> vector<32x32xf32>
    %18 = arith.addf %13, %17 : vector<32x32xf32>
    %c0_24 = arith.constant 0 : index
    %c0_25 = arith.constant 0 : index
    %19 = vector.load %arg9[%c0_24, %c0_25] : memref<32x32xf32, #tpu.memory_space<vmem>>, vector<32x32xf32>
    tpu.vector_store %arg9[%c0_24, %c0_25], %18 {strides = array<i32>} : memref<32x32xf32, #tpu.memory_space<vmem>>, vector<32x32xf32>,
    %c0_26 = arith.constant 0 : index
    %c0_27 = arith.constant 0 : index
    %20 = vector.load %arg9[%c0_26, %c0_27] : memref<32x32xf32, #tpu.memory_space<vmem>>, vector<32x32xf32>
    %c1 = arith.constant 1 : index
    %c0_28 = arith.constant 0 : index
    %21 = vector.load %arg8[%c1, %c0_28] : memref<80x144xbf16, #tpu.memory_space<vmem>>, vector<32x144xbf16>
    %c1_29 = arith.constant 1 : index
    %c0_30 = arith.constant 0 : index
    %c0_31 = arith.constant 0 : index
    %22 = vector.load %arg5[%c1_29, %c0_30, %c0_31] : memref<9x144x32xbf16, #tpu.memory_space<vmem>>, vector<1x144x32xbf16>
    %23 = vector.shape_cast %22 : vector<1x144x32xbf16> to vector<144x32xbf16>
    %cst_32 = arith.constant dense<0.000000e+00> : vector<32x32xf32>
    %24 = tpu.matmul %21, %23, %cst_32 {dimension_numbers = #tpu.dot_dimension_numbers<[1], [0], [0], [1], [0, 0, 1, 1], [], []>} : vector<32x144xbf16>, vector<144x32xbf16>, vector<32x32xf32> -> vector<32x32xf32>
    %25 = arith.addf %20, %24 : vector<32x32xf32>
    %c0_33 = arith.constant 0 : index
    %c0_34 = arith.constant 0 : index
    %26 = vector.load %arg9[%c0_33, %c0_34] : memref<32x32xf32, #tpu.memory_space<vmem>>, vector<32x32xf32>
    tpu.vector_store %arg9[%c0_33, %c0_34], %25 {strides = array<i32>} : memref<32x32xf32, #tpu.memory_space<vmem>>, vector<32x32xf32>,
    %c0_35 = arith.constant 0 : index
    %c0_36 = arith.constant 0 : index
    %27 = vector.load %arg9[%c0_35, %c0_36] : memref<32x32xf32, #tpu.memory_space<vmem>>, vector<32x32xf32>
    %c2 = arith.constant 2 : index
    %c0_37 = arith.constant 0 : index
    %28 = vector.load %arg8[%c2, %c0_37] : memref<80x144xbf16, #tpu.memory_space<vmem>>, vector<32x144xbf16>
    %c2_38 = arith.constant 2 : index
    %c0_39 = arith.constant 0 : index
    %c0_40 = arith.constant 0 : index
    %29 = vector.load %arg5[%c2_38, %c0_39, %c0_40] : memref<9x144x32xbf16, #tpu.memory_space<vmem>>, vector<1x144x32xbf16>
    %30 = vector.shape_cast %29 : vector<1x144x32xbf16> to vector<144x32xbf16>
    %cst_41 = arith.constant dense<0.000000e+00> : vector<32x32xf32>
    %31 = tpu.matmul %28, %30, %cst_41 {dimension_numbers = #tpu.dot_dimension_numbers<[1], [0], [0], [1], [0, 0, 1, 1], [], []>} : vector<32x144xbf16>, vector<144x32xbf16>, vector<32x32xf32> -> vector<32x32xf32>
    %32 = arith.addf %27, %31 : vector<32x32xf32>
    %c0_42 = arith.constant 0 : index
    %c0_43 = arith.constant 0 : index
    %33 = vector.load %arg9[%c0_42, %c0_43] : memref<32x32xf32, #tpu.memory_space<vmem>>, vector<32x32xf32>
    tpu.vector_store %arg9[%c0_42, %c0_43], %32 {strides = array<i32>} : memref<32x32xf32, #tpu.memory_space<vmem>>, vector<32x32xf32>,
    %c0_44 = arith.constant 0 : index
    %c0_45 = arith.constant 0 : index
    %34 = vector.load %arg9[%c0_44, %c0_45] : memref<32x32xf32, #tpu.memory_space<vmem>>, vector<32x32xf32>
    %c16 = arith.constant 16 : index
    %c0_46 = arith.constant 0 : index
    %35 = vector.load %arg8[%c16, %c0_46] : memref<80x144xbf16, #tpu.memory_space<vmem>>, vector<32x144xbf16>
    %c3 = arith.constant 3 : index
    %c0_47 = arith.constant 0 : index
    %c0_48 = arith.constant 0 : index
    %36 = vector.load %arg5[%c3, %c0_47, %c0_48] : memref<9x144x32xbf16, #tpu.memory_space<vmem>>, vector<1x144x32xbf16>
    %37 = vector.shape_cast %36 : vector<1x144x32xbf16> to vector<144x32xbf16>
    %cst_49 = arith.constant dense<0.000000e+00> : vector<32x32xf32>
    %38 = tpu.matmul %35, %37, %cst_49 {dimension_numbers = #tpu.dot_dimension_numbers<[1], [0], [0], [1], [0, 0, 1, 1], [], []>} : vector<32x144xbf16>, vector<144x32xbf16>, vector<32x32xf32> -> vector<32x32xf32>
    %39 = arith.addf %34, %38 : vector<32x32xf32>
    %c0_50 = arith.constant 0 : index
    %c0_51 = arith.constant 0 : index
    %40 = vector.load %arg9[%c0_50, %c0_51] : memref<32x32xf32, #tpu.memory_space<vmem>>, vector<32x32xf32>
    tpu.vector_store %arg9[%c0_50, %c0_51], %39 {strides = array<i32>} : memref<32x32xf32, #tpu.memory_space<vmem>>, vector<32x32xf32>,
    %c0_52 = arith.constant 0 : index
    %c0_53 = arith.constant 0 : index
    %41 = vector.load %arg9[%c0_52, %c0_53] : memref<32x32xf32, #tpu.memory_space<vmem>>, vector<32x32xf32>
    %c17 = arith.constant 17 : index
    %c0_54 = arith.constant 0 : index
    %42 = vector.load %arg8[%c17, %c0_54] : memref<80x144xbf16, #tpu.memory_space<vmem>>, vector<32x144xbf16>
    %c4 = arith.constant 4 : index
    %c0_55 = arith.constant 0 : index
    %c0_56 = arith.constant 0 : index
    %43 = vector.load %arg5[%c4, %c0_55, %c0_56] : memref<9x144x32xbf16, #tpu.memory_space<vmem>>, vector<1x144x32xbf16>
    %44 = vector.shape_cast %43 : vector<1x144x32xbf16> to vector<144x32xbf16>
    %cst_57 = arith.constant dense<0.000000e+00> : vector<32x32xf32>
    %45 = tpu.matmul %42, %44, %cst_57 {dimension_numbers = #tpu.dot_dimension_numbers<[1], [0], [0], [1], [0, 0, 1, 1], [], []>} : vector<32x144xbf16>, vector<144x32xbf16>, vector<32x32xf32> -> vector<32x32xf32>
    %46 = arith.addf %41, %45 : vector<32x32xf32>
    %c0_58 = arith.constant 0 : index
    %c0_59 = arith.constant 0 : index
    %47 = vector.load %arg9[%c0_58, %c0_59] : memref<32x32xf32, #tpu.memory_space<vmem>>, vector<32x32xf32>
    tpu.vector_store %arg9[%c0_58, %c0_59], %46 {strides = array<i32>} : memref<32x32xf32, #tpu.memory_space<vmem>>, vector<32x32xf32>,
    %c0_60 = arith.constant 0 : index
    %c0_61 = arith.constant 0 : index
    %48 = vector.load %arg9[%c0_60, %c0_61] : memref<32x32xf32, #tpu.memory_space<vmem>>, vector<32x32xf32>
    %c18 = arith.constant 18 : index
    %c0_62 = arith.constant 0 : index
    %49 = vector.load %arg8[%c18, %c0_62] : memref<80x144xbf16, #tpu.memory_space<vmem>>, vector<32x144xbf16>
    %c5 = arith.constant 5 : index
    %c0_63 = arith.constant 0 : index
    %c0_64 = arith.constant 0 : index
    %50 = vector.load %arg5[%c5, %c0_63, %c0_64] : memref<9x144x32xbf16, #tpu.memory_space<vmem>>, vector<1x144x32xbf16>
    %51 = vector.shape_cast %50 : vector<1x144x32xbf16> to vector<144x32xbf16>
    %cst_65 = arith.constant dense<0.000000e+00> : vector<32x32xf32>
    %52 = tpu.matmul %49, %51, %cst_65 {dimension_numbers = #tpu.dot_dimension_numbers<[1], [0], [0], [1], [0, 0, 1, 1], [], []>} : vector<32x144xbf16>, vector<144x32xbf16>, vector<32x32xf32> -> vector<32x32xf32>
    %53 = arith.addf %48, %52 : vector<32x32xf32>
    %c0_66 = arith.constant 0 : index
    %c0_67 = arith.constant 0 : index
    %54 = vector.load %arg9[%c0_66, %c0_67] : memref<32x32xf32, #tpu.memory_space<vmem>>, vector<32x32xf32>
    tpu.vector_store %arg9[%c0_66, %c0_67], %53 {strides = array<i32>} : memref<32x32xf32, #tpu.memory_space<vmem>>, vector<32x32xf32>,
    %c0_68 = arith.constant 0 : index
    %c0_69 = arith.constant 0 : index
    %55 = vector.load %arg9[%c0_68, %c0_69] : memref<32x32xf32, #tpu.memory_space<vmem>>, vector<32x32xf32>
    %c32_70 = arith.constant 32 : index
    %c0_71 = arith.constant 0 : index
    %56 = vector.load %arg8[%c32_70, %c0_71] : memref<80x144xbf16, #tpu.memory_space<vmem>>, vector<32x144xbf16>
    %c6 = arith.constant 6 : index
    %c0_72 = arith.constant 0 : index
    %c0_73 = arith.constant 0 : index
    %57 = vector.load %arg5[%c6, %c0_72, %c0_73] : memref<9x144x32xbf16, #tpu.memory_space<vmem>>, vector<1x144x32xbf16>
    %58 = vector.shape_cast %57 : vector<1x144x32xbf16> to vector<144x32xbf16>
    %cst_74 = arith.constant dense<0.000000e+00> : vector<32x32xf32>
    %59 = tpu.matmul %56, %58, %cst_74 {dimension_numbers = #tpu.dot_dimension_numbers<[1], [0], [0], [1], [0, 0, 1, 1], [], []>} : vector<32x144xbf16>, vector<144x32xbf16>, vector<32x32xf32> -> vector<32x32xf32>
    %60 = arith.addf %55, %59 : vector<32x32xf32>
    %c0_75 = arith.constant 0 : index
    %c0_76 = arith.constant 0 : index
    %61 = vector.load %arg9[%c0_75, %c0_76] : memref<32x32xf32, #tpu.memory_space<vmem>>, vector<32x32xf32>
    tpu.vector_store %arg9[%c0_75, %c0_76], %60 {strides = array<i32>} : memref<32x32xf32, #tpu.memory_space<vmem>>, vector<32x32xf32>,
    %c0_77 = arith.constant 0 : index
    %c0_78 = arith.constant 0 : index
    %62 = vector.load %arg9[%c0_77, %c0_78] : memref<32x32xf32, #tpu.memory_space<vmem>>, vector<32x32xf32>
    %c33 = arith.constant 33 : index
    %c0_79 = arith.constant 0 : index
    %63 = vector.load %arg8[%c33, %c0_79] : memref<80x144xbf16, #tpu.memory_space<vmem>>, vector<32x144xbf16>
    %c7 = arith.constant 7 : index
    %c0_80 = arith.constant 0 : index
    %c0_81 = arith.constant 0 : index
    %64 = vector.load %arg5[%c7, %c0_80, %c0_81] : memref<9x144x32xbf16, #tpu.memory_space<vmem>>, vector<1x144x32xbf16>
    %65 = vector.shape_cast %64 : vector<1x144x32xbf16> to vector<144x32xbf16>
    %cst_82 = arith.constant dense<0.000000e+00> : vector<32x32xf32>
    %66 = tpu.matmul %63, %65, %cst_82 {dimension_numbers = #tpu.dot_dimension_numbers<[1], [0], [0], [1], [0, 0, 1, 1], [], []>} : vector<32x144xbf16>, vector<144x32xbf16>, vector<32x32xf32> -> vector<32x32xf32>
    %67 = arith.addf %62, %66 : vector<32x32xf32>
    %c0_83 = arith.constant 0 : index
    %c0_84 = arith.constant 0 : index
    %68 = vector.load %arg9[%c0_83, %c0_84] : memref<32x32xf32, #tpu.memory_space<vmem>>, vector<32x32xf32>
    tpu.vector_store %arg9[%c0_83, %c0_84], %67 {strides = array<i32>} : memref<32x32xf32, #tpu.memory_space<vmem>>, vector<32x32xf32>,
    %c0_85 = arith.constant 0 : index
    %c0_86 = arith.constant 0 : index
    %69 = vector.load %arg9[%c0_85, %c0_86] : memref<32x32xf32, #tpu.memory_space<vmem>>, vector<32x32xf32>
    %c34 = arith.constant 34 : index
    %c0_87 = arith.constant 0 : index
    %70 = vector.load %arg8[%c34, %c0_87] : memref<80x144xbf16, #tpu.memory_space<vmem>>, vector<32x144xbf16>
    %c8 = arith.constant 8 : index
    %c0_88 = arith.constant 0 : index
    %c0_89 = arith.constant 0 : index
    %71 = vector.load %arg5[%c8, %c0_88, %c0_89] : memref<9x144x32xbf16, #tpu.memory_space<vmem>>, vector<1x144x32xbf16>
    %72 = vector.shape_cast %71 : vector<1x144x32xbf16> to vector<144x32xbf16>
    %cst_90 = arith.constant dense<0.000000e+00> : vector<32x32xf32>
    %73 = tpu.matmul %70, %72, %cst_90 {dimension_numbers = #tpu.dot_dimension_numbers<[1], [0], [0], [1], [0, 0, 1, 1], [], []>} : vector<32x144xbf16>, vector<144x32xbf16>, vector<32x32xf32> -> vector<32x32xf32>
    %74 = arith.addf %69, %73 : vector<32x32xf32>
    %c0_91 = arith.constant 0 : index
    %c0_92 = arith.constant 0 : index
    %75 = vector.load %arg9[%c0_91, %c0_92] : memref<32x32xf32, #tpu.memory_space<vmem>>, vector<32x32xf32>
    tpu.vector_store %arg9[%c0_91, %c0_92], %74 {strides = array<i32>} : memref<32x32xf32, #tpu.memory_space<vmem>>, vector<32x32xf32>,
    %c0_93 = arith.constant 0 : index
    %c0_94 = arith.constant 0 : index
    %76 = vector.load %arg9[%c0_93, %c0_94] : memref<32x32xf32, #tpu.memory_space<vmem>>, vector<32x32xf32>
    %c0_95 = arith.constant 0 : index
    %c0_96 = arith.constant 0 : index
    %77 = vector.load %arg6[%c0_95, %c0_96] : memref<1x32xf32, #tpu.memory_space<vmem>>, vector<1x32xf32>
    %78 = vector.broadcast %77 : vector<1x32xf32> to vector<32x32xf32>
    %79 = arith.addf %76, %78 : vector<32x32xf32>
    %cst_97 = arith.constant 0.000000e+00 : f32
    %80 = vector.broadcast %cst_97 : f32 to vector<32x32xf32>
    %81 = arith.cmpf ogt, %79, %80 : vector<32x32xf32>
    %cst_98 = arith.constant 2.000000e-01 : f32
    %82 = vector.broadcast %cst_98 : f32 to vector<32x32xf32>
    %83 = arith.mulf %82, %79 : vector<32x32xf32>
    %84 = arith.select %81, %79, %83 : vector<32x32xi1>, vector<32x32xf32>
    %85 = arith.truncf %84 : vector<32x32xf32> to vector<32x32xbf16>
    %c0_99 = arith.constant 0 : index
    %c0_100 = arith.constant 0 : index
    %c0_101 = arith.constant 0 : index
    %86 = vector.load %arg7[%c0_99, %c0_100, %c0_101] : memref<1x32x32xbf16, #tpu.memory_space<vmem>>, vector<1x32x32xbf16>
    %87 = vector.shape_cast %86 : vector<1x32x32xbf16> to vector<32x32xbf16>
    %88 = vector.shape_cast %85 : vector<32x32xbf16> to vector<1x32x32xbf16>
    tpu.vector_store %arg7[%c0_99, %c0_100, %c0_101], %88 {strides = array<i32>} : memref<1x32x32xbf16, #tpu.memory_space<vmem>>, vector<1x32x32xbf16>,
    return
  }
  func.func @transform_0(%arg0: i32, %arg1: i32) -> (i32, i32, i32) {
    %c0_i32 = arith.constant 0 : i32
    %c0_i32_0 = arith.constant 0 : i32
    return %arg0, %arg1, %c0_i32 : i32, i32, i32
  }
  func.func @transform_1(%arg0: i32, %arg1: i32) -> (i32, i32, i32) {
    %c1_i32 = arith.constant 1 : i32
    %0 = arith.addi %arg1, %c1_i32 : i32
    %c2_i32 = arith.constant 2 : i32
    %1 = arith.muli %0, %c2_i32 : i32
    %c0_i32 = arith.constant 0 : i32
    %c0_i32_0 = arith.constant 0 : i32
    return %arg0, %1, %c0_i32 : i32, i32, i32
  }
  func.func @transform_2(%arg0: i32, %arg1: i32) -> (i32, i32, i32) {
    %c1_i32 = arith.constant 1 : i32
    %0 = arith.addi %arg1, %c1_i32 : i32
    %c2_i32 = arith.constant 2 : i32
    %1 = arith.muli %0, %c2_i32 : i32
    %c1_i32_0 = arith.constant 1 : i32
    %2 = arith.addi %1, %c1_i32_0 : i32
    %c0_i32 = arith.constant 0 : i32
    %c0_i32_1 = arith.constant 0 : i32
    return %arg0, %2, %c0_i32 : i32, i32, i32
  }
  func.func @transform_3(%arg0: i32, %arg1: i32) -> (i32, i32, i32) {
    %c0_i32 = arith.constant 0 : i32
    %c0_i32_0 = arith.constant 0 : i32
    %c0_i32_1 = arith.constant 0 : i32
    %c0_i32_2 = arith.constant 0 : i32
    return %c0_i32, %c0_i32_0, %c0_i32_1 : i32, i32, i32
  }
  func.func @transform_4(%arg0: i32, %arg1: i32) -> (i32, i32) {
    %c0_i32 = arith.constant 0 : i32
    %c0_i32_0 = arith.constant 0 : i32
    %c0_i32_1 = arith.constant 0 : i32
    return %c0_i32, %c0_i32_0 : i32, i32
  }
  func.func @transform_5(%arg0: i32, %arg1: i32) -> (i32, i32, i32) {
    %c0_i32 = arith.constant 0 : i32
    %c0_i32_0 = arith.constant 0 : i32
    return %arg0, %arg1, %c0_i32 : i32, i32, i32
  }
}

module attributes {stable_mosaic.version = 11 : i64} {
  func.func @_s1_conv_kernel(%arg0: i32, %arg1: i32, %arg2: memref<1x64x112xbf16, #tpu.memory_space<vmem>>, %arg3: memref<1x16x112xbf16, #tpu.memory_space<vmem>>, %arg4: memref<1x16x112xbf16, #tpu.memory_space<vmem>>, %arg5: memref<9x112x32xbf16, #tpu.memory_space<vmem>>, %arg6: memref<1x32xf32, #tpu.memory_space<vmem>>, %arg7: memref<1x64x32xbf16, #tpu.memory_space<vmem>>, %arg8: memref<112x112xbf16, #tpu.memory_space<vmem>>, %arg9: memref<64x32xf32, #tpu.memory_space<vmem>>) attributes {dimension_semantics = [#tpu.dimension_semantics<parallel>, #tpu.dimension_semantics<parallel>], iteration_bounds = array<i64: 2, 2>, scalar_prefetch = 0 : i64, scratch_operands = 2 : i64, tpu.core_type = #tpu.core_type<tc>, window_params = [{transform_indices = @transform_0, window_bounds = array<i64: 1, 64, 112>}, {transform_indices = @transform_1, window_bounds = array<i64: 1, 16, 112>}, {transform_indices = @transform_2, window_bounds = array<i64: 1, 16, 112>}, {pipeline_mode = #tpu.pipeline_mode<synchronous>, transform_indices = @transform_3, window_bounds = array<i64: 9, 112, 32>}, {pipeline_mode = #tpu.pipeline_mode<synchronous>, transform_indices = @transform_4, window_bounds = array<i64: 1, 32>}, {transform_indices = @transform_5, window_bounds = array<i64: 1, 64, 32>}]} {
    %c0 = arith.constant 0 : index
    %c0_0 = arith.constant 0 : index
    %c0_1 = arith.constant 0 : index
    %0 = vector.load %arg2[%c0, %c0_0, %c0_1] : memref<1x64x112xbf16, #tpu.memory_space<vmem>>, vector<1x64x112xbf16>
    %1 = vector.shape_cast %0 : vector<1x64x112xbf16> to vector<64x112xbf16>
    %c0_2 = arith.constant 0 : index
    %c0_3 = arith.constant 0 : index
    %2 = vector.load %arg8[%c0_2, %c0_3] : memref<112x112xbf16, #tpu.memory_space<vmem>>, vector<64x112xbf16>
    tpu.vector_store %arg8[%c0_2, %c0_3], %1 {strides = array<i32>} : memref<112x112xbf16, #tpu.memory_space<vmem>>, vector<64x112xbf16>,
    %c0_4 = arith.constant 0 : index
    %c0_5 = arith.constant 0 : index
    %c0_6 = arith.constant 0 : index
    %3 = vector.load %arg3[%c0_4, %c0_5, %c0_6] : memref<1x16x112xbf16, #tpu.memory_space<vmem>>, vector<1x16x112xbf16>
    %4 = vector.shape_cast %3 : vector<1x16x112xbf16> to vector<16x112xbf16>
    %c64 = arith.constant 64 : index
    %c0_7 = arith.constant 0 : index
    %5 = vector.load %arg8[%c64, %c0_7] : memref<112x112xbf16, #tpu.memory_space<vmem>>, vector<16x112xbf16>
    tpu.vector_store %arg8[%c64, %c0_7], %4 {strides = array<i32>} : memref<112x112xbf16, #tpu.memory_space<vmem>>, vector<16x112xbf16>,
    %c0_8 = arith.constant 0 : index
    %c0_9 = arith.constant 0 : index
    %c0_10 = arith.constant 0 : index
    %6 = vector.load %arg4[%c0_8, %c0_9, %c0_10] : memref<1x16x112xbf16, #tpu.memory_space<vmem>>, vector<1x16x112xbf16>
    %7 = vector.shape_cast %6 : vector<1x16x112xbf16> to vector<16x112xbf16>
    %c80 = arith.constant 80 : index
    %c0_11 = arith.constant 0 : index
    %8 = vector.load %arg8[%c80, %c0_11] : memref<112x112xbf16, #tpu.memory_space<vmem>>, vector<16x112xbf16>
    tpu.vector_store %arg8[%c80, %c0_11], %7 {strides = array<i32>} : memref<112x112xbf16, #tpu.memory_space<vmem>>, vector<16x112xbf16>,
    %cst = arith.constant 0.000000e+00 : bf16
    %9 = vector.broadcast %cst : bf16 to vector<16x112xbf16>
    %c96 = arith.constant 96 : index
    %c0_12 = arith.constant 0 : index
    %10 = vector.load %arg8[%c96, %c0_12] : memref<112x112xbf16, #tpu.memory_space<vmem>>, vector<16x112xbf16>
    tpu.vector_store %arg8[%c96, %c0_12], %9 {strides = array<i32>} : memref<112x112xbf16, #tpu.memory_space<vmem>>, vector<16x112xbf16>,
    %cst_13 = arith.constant 0.000000e+00 : f32
    %11 = vector.broadcast %cst_13 : f32 to vector<64x32xf32>
    %c0_14 = arith.constant 0 : index
    %c0_15 = arith.constant 0 : index
    %12 = vector.load %arg9[%c0_14, %c0_15] : memref<64x32xf32, #tpu.memory_space<vmem>>, vector<64x32xf32>
    tpu.vector_store %arg9[%c0_14, %c0_15], %11 {strides = array<i32>} : memref<64x32xf32, #tpu.memory_space<vmem>>, vector<64x32xf32>,
    %c0_16 = arith.constant 0 : index
    %c0_17 = arith.constant 0 : index
    %13 = vector.load %arg9[%c0_16, %c0_17] : memref<64x32xf32, #tpu.memory_space<vmem>>, vector<64x32xf32>
    %c0_18 = arith.constant 0 : index
    %c0_19 = arith.constant 0 : index
    %14 = vector.load %arg8[%c0_18, %c0_19] : memref<112x112xbf16, #tpu.memory_space<vmem>>, vector<64x112xbf16>
    %c0_20 = arith.constant 0 : index
    %c0_21 = arith.constant 0 : index
    %c0_22 = arith.constant 0 : index
    %15 = vector.load %arg5[%c0_20, %c0_21, %c0_22] : memref<9x112x32xbf16, #tpu.memory_space<vmem>>, vector<1x112x32xbf16>
    %16 = vector.shape_cast %15 : vector<1x112x32xbf16> to vector<112x32xbf16>
    %cst_23 = arith.constant dense<0.000000e+00> : vector<64x32xf32>
    %17 = tpu.matmul %14, %16, %cst_23 {dimension_numbers = #tpu.dot_dimension_numbers<[1], [0], [0], [1], [0, 0, 1, 1], [], []>} : vector<64x112xbf16>, vector<112x32xbf16>, vector<64x32xf32> -> vector<64x32xf32>
    %18 = arith.addf %13, %17 : vector<64x32xf32>
    %c0_24 = arith.constant 0 : index
    %c0_25 = arith.constant 0 : index
    %19 = vector.load %arg9[%c0_24, %c0_25] : memref<64x32xf32, #tpu.memory_space<vmem>>, vector<64x32xf32>
    tpu.vector_store %arg9[%c0_24, %c0_25], %18 {strides = array<i32>} : memref<64x32xf32, #tpu.memory_space<vmem>>, vector<64x32xf32>,
    %c0_26 = arith.constant 0 : index
    %c0_27 = arith.constant 0 : index
    %20 = vector.load %arg9[%c0_26, %c0_27] : memref<64x32xf32, #tpu.memory_space<vmem>>, vector<64x32xf32>
    %c1 = arith.constant 1 : index
    %c0_28 = arith.constant 0 : index
    %21 = vector.load %arg8[%c1, %c0_28] : memref<112x112xbf16, #tpu.memory_space<vmem>>, vector<64x112xbf16>
    %c1_29 = arith.constant 1 : index
    %c0_30 = arith.constant 0 : index
    %c0_31 = arith.constant 0 : index
    %22 = vector.load %arg5[%c1_29, %c0_30, %c0_31] : memref<9x112x32xbf16, #tpu.memory_space<vmem>>, vector<1x112x32xbf16>
    %23 = vector.shape_cast %22 : vector<1x112x32xbf16> to vector<112x32xbf16>
    %cst_32 = arith.constant dense<0.000000e+00> : vector<64x32xf32>
    %24 = tpu.matmul %21, %23, %cst_32 {dimension_numbers = #tpu.dot_dimension_numbers<[1], [0], [0], [1], [0, 0, 1, 1], [], []>} : vector<64x112xbf16>, vector<112x32xbf16>, vector<64x32xf32> -> vector<64x32xf32>
    %25 = arith.addf %20, %24 : vector<64x32xf32>
    %c0_33 = arith.constant 0 : index
    %c0_34 = arith.constant 0 : index
    %26 = vector.load %arg9[%c0_33, %c0_34] : memref<64x32xf32, #tpu.memory_space<vmem>>, vector<64x32xf32>
    tpu.vector_store %arg9[%c0_33, %c0_34], %25 {strides = array<i32>} : memref<64x32xf32, #tpu.memory_space<vmem>>, vector<64x32xf32>,
    %c0_35 = arith.constant 0 : index
    %c0_36 = arith.constant 0 : index
    %27 = vector.load %arg9[%c0_35, %c0_36] : memref<64x32xf32, #tpu.memory_space<vmem>>, vector<64x32xf32>
    %c2 = arith.constant 2 : index
    %c0_37 = arith.constant 0 : index
    %28 = vector.load %arg8[%c2, %c0_37] : memref<112x112xbf16, #tpu.memory_space<vmem>>, vector<64x112xbf16>
    %c2_38 = arith.constant 2 : index
    %c0_39 = arith.constant 0 : index
    %c0_40 = arith.constant 0 : index
    %29 = vector.load %arg5[%c2_38, %c0_39, %c0_40] : memref<9x112x32xbf16, #tpu.memory_space<vmem>>, vector<1x112x32xbf16>
    %30 = vector.shape_cast %29 : vector<1x112x32xbf16> to vector<112x32xbf16>
    %cst_41 = arith.constant dense<0.000000e+00> : vector<64x32xf32>
    %31 = tpu.matmul %28, %30, %cst_41 {dimension_numbers = #tpu.dot_dimension_numbers<[1], [0], [0], [1], [0, 0, 1, 1], [], []>} : vector<64x112xbf16>, vector<112x32xbf16>, vector<64x32xf32> -> vector<64x32xf32>
    %32 = arith.addf %27, %31 : vector<64x32xf32>
    %c0_42 = arith.constant 0 : index
    %c0_43 = arith.constant 0 : index
    %33 = vector.load %arg9[%c0_42, %c0_43] : memref<64x32xf32, #tpu.memory_space<vmem>>, vector<64x32xf32>
    tpu.vector_store %arg9[%c0_42, %c0_43], %32 {strides = array<i32>} : memref<64x32xf32, #tpu.memory_space<vmem>>, vector<64x32xf32>,
    %c0_44 = arith.constant 0 : index
    %c0_45 = arith.constant 0 : index
    %34 = vector.load %arg9[%c0_44, %c0_45] : memref<64x32xf32, #tpu.memory_space<vmem>>, vector<64x32xf32>
    %c16 = arith.constant 16 : index
    %c0_46 = arith.constant 0 : index
    %35 = vector.load %arg8[%c16, %c0_46] : memref<112x112xbf16, #tpu.memory_space<vmem>>, vector<64x112xbf16>
    %c3 = arith.constant 3 : index
    %c0_47 = arith.constant 0 : index
    %c0_48 = arith.constant 0 : index
    %36 = vector.load %arg5[%c3, %c0_47, %c0_48] : memref<9x112x32xbf16, #tpu.memory_space<vmem>>, vector<1x112x32xbf16>
    %37 = vector.shape_cast %36 : vector<1x112x32xbf16> to vector<112x32xbf16>
    %cst_49 = arith.constant dense<0.000000e+00> : vector<64x32xf32>
    %38 = tpu.matmul %35, %37, %cst_49 {dimension_numbers = #tpu.dot_dimension_numbers<[1], [0], [0], [1], [0, 0, 1, 1], [], []>} : vector<64x112xbf16>, vector<112x32xbf16>, vector<64x32xf32> -> vector<64x32xf32>
    %39 = arith.addf %34, %38 : vector<64x32xf32>
    %c0_50 = arith.constant 0 : index
    %c0_51 = arith.constant 0 : index
    %40 = vector.load %arg9[%c0_50, %c0_51] : memref<64x32xf32, #tpu.memory_space<vmem>>, vector<64x32xf32>
    tpu.vector_store %arg9[%c0_50, %c0_51], %39 {strides = array<i32>} : memref<64x32xf32, #tpu.memory_space<vmem>>, vector<64x32xf32>,
    %c0_52 = arith.constant 0 : index
    %c0_53 = arith.constant 0 : index
    %41 = vector.load %arg9[%c0_52, %c0_53] : memref<64x32xf32, #tpu.memory_space<vmem>>, vector<64x32xf32>
    %c17 = arith.constant 17 : index
    %c0_54 = arith.constant 0 : index
    %42 = vector.load %arg8[%c17, %c0_54] : memref<112x112xbf16, #tpu.memory_space<vmem>>, vector<64x112xbf16>
    %c4 = arith.constant 4 : index
    %c0_55 = arith.constant 0 : index
    %c0_56 = arith.constant 0 : index
    %43 = vector.load %arg5[%c4, %c0_55, %c0_56] : memref<9x112x32xbf16, #tpu.memory_space<vmem>>, vector<1x112x32xbf16>
    %44 = vector.shape_cast %43 : vector<1x112x32xbf16> to vector<112x32xbf16>
    %cst_57 = arith.constant dense<0.000000e+00> : vector<64x32xf32>
    %45 = tpu.matmul %42, %44, %cst_57 {dimension_numbers = #tpu.dot_dimension_numbers<[1], [0], [0], [1], [0, 0, 1, 1], [], []>} : vector<64x112xbf16>, vector<112x32xbf16>, vector<64x32xf32> -> vector<64x32xf32>
    %46 = arith.addf %41, %45 : vector<64x32xf32>
    %c0_58 = arith.constant 0 : index
    %c0_59 = arith.constant 0 : index
    %47 = vector.load %arg9[%c0_58, %c0_59] : memref<64x32xf32, #tpu.memory_space<vmem>>, vector<64x32xf32>
    tpu.vector_store %arg9[%c0_58, %c0_59], %46 {strides = array<i32>} : memref<64x32xf32, #tpu.memory_space<vmem>>, vector<64x32xf32>,
    %c0_60 = arith.constant 0 : index
    %c0_61 = arith.constant 0 : index
    %48 = vector.load %arg9[%c0_60, %c0_61] : memref<64x32xf32, #tpu.memory_space<vmem>>, vector<64x32xf32>
    %c18 = arith.constant 18 : index
    %c0_62 = arith.constant 0 : index
    %49 = vector.load %arg8[%c18, %c0_62] : memref<112x112xbf16, #tpu.memory_space<vmem>>, vector<64x112xbf16>
    %c5 = arith.constant 5 : index
    %c0_63 = arith.constant 0 : index
    %c0_64 = arith.constant 0 : index
    %50 = vector.load %arg5[%c5, %c0_63, %c0_64] : memref<9x112x32xbf16, #tpu.memory_space<vmem>>, vector<1x112x32xbf16>
    %51 = vector.shape_cast %50 : vector<1x112x32xbf16> to vector<112x32xbf16>
    %cst_65 = arith.constant dense<0.000000e+00> : vector<64x32xf32>
    %52 = tpu.matmul %49, %51, %cst_65 {dimension_numbers = #tpu.dot_dimension_numbers<[1], [0], [0], [1], [0, 0, 1, 1], [], []>} : vector<64x112xbf16>, vector<112x32xbf16>, vector<64x32xf32> -> vector<64x32xf32>
    %53 = arith.addf %48, %52 : vector<64x32xf32>
    %c0_66 = arith.constant 0 : index
    %c0_67 = arith.constant 0 : index
    %54 = vector.load %arg9[%c0_66, %c0_67] : memref<64x32xf32, #tpu.memory_space<vmem>>, vector<64x32xf32>
    tpu.vector_store %arg9[%c0_66, %c0_67], %53 {strides = array<i32>} : memref<64x32xf32, #tpu.memory_space<vmem>>, vector<64x32xf32>,
    %c0_68 = arith.constant 0 : index
    %c0_69 = arith.constant 0 : index
    %55 = vector.load %arg9[%c0_68, %c0_69] : memref<64x32xf32, #tpu.memory_space<vmem>>, vector<64x32xf32>
    %c32 = arith.constant 32 : index
    %c0_70 = arith.constant 0 : index
    %56 = vector.load %arg8[%c32, %c0_70] : memref<112x112xbf16, #tpu.memory_space<vmem>>, vector<64x112xbf16>
    %c6 = arith.constant 6 : index
    %c0_71 = arith.constant 0 : index
    %c0_72 = arith.constant 0 : index
    %57 = vector.load %arg5[%c6, %c0_71, %c0_72] : memref<9x112x32xbf16, #tpu.memory_space<vmem>>, vector<1x112x32xbf16>
    %58 = vector.shape_cast %57 : vector<1x112x32xbf16> to vector<112x32xbf16>
    %cst_73 = arith.constant dense<0.000000e+00> : vector<64x32xf32>
    %59 = tpu.matmul %56, %58, %cst_73 {dimension_numbers = #tpu.dot_dimension_numbers<[1], [0], [0], [1], [0, 0, 1, 1], [], []>} : vector<64x112xbf16>, vector<112x32xbf16>, vector<64x32xf32> -> vector<64x32xf32>
    %60 = arith.addf %55, %59 : vector<64x32xf32>
    %c0_74 = arith.constant 0 : index
    %c0_75 = arith.constant 0 : index
    %61 = vector.load %arg9[%c0_74, %c0_75] : memref<64x32xf32, #tpu.memory_space<vmem>>, vector<64x32xf32>
    tpu.vector_store %arg9[%c0_74, %c0_75], %60 {strides = array<i32>} : memref<64x32xf32, #tpu.memory_space<vmem>>, vector<64x32xf32>,
    %c0_76 = arith.constant 0 : index
    %c0_77 = arith.constant 0 : index
    %62 = vector.load %arg9[%c0_76, %c0_77] : memref<64x32xf32, #tpu.memory_space<vmem>>, vector<64x32xf32>
    %c33 = arith.constant 33 : index
    %c0_78 = arith.constant 0 : index
    %63 = vector.load %arg8[%c33, %c0_78] : memref<112x112xbf16, #tpu.memory_space<vmem>>, vector<64x112xbf16>
    %c7 = arith.constant 7 : index
    %c0_79 = arith.constant 0 : index
    %c0_80 = arith.constant 0 : index
    %64 = vector.load %arg5[%c7, %c0_79, %c0_80] : memref<9x112x32xbf16, #tpu.memory_space<vmem>>, vector<1x112x32xbf16>
    %65 = vector.shape_cast %64 : vector<1x112x32xbf16> to vector<112x32xbf16>
    %cst_81 = arith.constant dense<0.000000e+00> : vector<64x32xf32>
    %66 = tpu.matmul %63, %65, %cst_81 {dimension_numbers = #tpu.dot_dimension_numbers<[1], [0], [0], [1], [0, 0, 1, 1], [], []>} : vector<64x112xbf16>, vector<112x32xbf16>, vector<64x32xf32> -> vector<64x32xf32>
    %67 = arith.addf %62, %66 : vector<64x32xf32>
    %c0_82 = arith.constant 0 : index
    %c0_83 = arith.constant 0 : index
    %68 = vector.load %arg9[%c0_82, %c0_83] : memref<64x32xf32, #tpu.memory_space<vmem>>, vector<64x32xf32>
    tpu.vector_store %arg9[%c0_82, %c0_83], %67 {strides = array<i32>} : memref<64x32xf32, #tpu.memory_space<vmem>>, vector<64x32xf32>,
    %c0_84 = arith.constant 0 : index
    %c0_85 = arith.constant 0 : index
    %69 = vector.load %arg9[%c0_84, %c0_85] : memref<64x32xf32, #tpu.memory_space<vmem>>, vector<64x32xf32>
    %c34 = arith.constant 34 : index
    %c0_86 = arith.constant 0 : index
    %70 = vector.load %arg8[%c34, %c0_86] : memref<112x112xbf16, #tpu.memory_space<vmem>>, vector<64x112xbf16>
    %c8 = arith.constant 8 : index
    %c0_87 = arith.constant 0 : index
    %c0_88 = arith.constant 0 : index
    %71 = vector.load %arg5[%c8, %c0_87, %c0_88] : memref<9x112x32xbf16, #tpu.memory_space<vmem>>, vector<1x112x32xbf16>
    %72 = vector.shape_cast %71 : vector<1x112x32xbf16> to vector<112x32xbf16>
    %cst_89 = arith.constant dense<0.000000e+00> : vector<64x32xf32>
    %73 = tpu.matmul %70, %72, %cst_89 {dimension_numbers = #tpu.dot_dimension_numbers<[1], [0], [0], [1], [0, 0, 1, 1], [], []>} : vector<64x112xbf16>, vector<112x32xbf16>, vector<64x32xf32> -> vector<64x32xf32>
    %74 = arith.addf %69, %73 : vector<64x32xf32>
    %c0_90 = arith.constant 0 : index
    %c0_91 = arith.constant 0 : index
    %75 = vector.load %arg9[%c0_90, %c0_91] : memref<64x32xf32, #tpu.memory_space<vmem>>, vector<64x32xf32>
    tpu.vector_store %arg9[%c0_90, %c0_91], %74 {strides = array<i32>} : memref<64x32xf32, #tpu.memory_space<vmem>>, vector<64x32xf32>,
    %c0_92 = arith.constant 0 : index
    %c0_93 = arith.constant 0 : index
    %76 = vector.load %arg9[%c0_92, %c0_93] : memref<64x32xf32, #tpu.memory_space<vmem>>, vector<64x32xf32>
    %c0_94 = arith.constant 0 : index
    %c0_95 = arith.constant 0 : index
    %77 = vector.load %arg6[%c0_94, %c0_95] : memref<1x32xf32, #tpu.memory_space<vmem>>, vector<1x32xf32>
    %78 = vector.broadcast %77 : vector<1x32xf32> to vector<64x32xf32>
    %79 = arith.addf %76, %78 : vector<64x32xf32>
    %cst_96 = arith.constant 0.000000e+00 : f32
    %80 = vector.broadcast %cst_96 : f32 to vector<64x32xf32>
    %81 = arith.cmpf ogt, %79, %80 : vector<64x32xf32>
    %cst_97 = arith.constant 2.000000e-01 : f32
    %82 = vector.broadcast %cst_97 : f32 to vector<64x32xf32>
    %83 = arith.mulf %82, %79 : vector<64x32xf32>
    %84 = arith.select %81, %79, %83 : vector<64x32xi1>, vector<64x32xf32>
    %85 = arith.truncf %84 : vector<64x32xf32> to vector<64x32xbf16>
    %c0_98 = arith.constant 0 : index
    %c0_99 = arith.constant 0 : index
    %c0_100 = arith.constant 0 : index
    %86 = vector.load %arg7[%c0_98, %c0_99, %c0_100] : memref<1x64x32xbf16, #tpu.memory_space<vmem>>, vector<1x64x32xbf16>
    %87 = vector.shape_cast %86 : vector<1x64x32xbf16> to vector<64x32xbf16>
    %88 = vector.shape_cast %85 : vector<64x32xbf16> to vector<1x64x32xbf16>
    tpu.vector_store %arg7[%c0_98, %c0_99, %c0_100], %88 {strides = array<i32>} : memref<1x64x32xbf16, #tpu.memory_space<vmem>>, vector<1x64x32xbf16>,
    return
  }
  func.func @transform_0(%arg0: i32, %arg1: i32) -> (i32, i32, i32) {
    %c0_i32 = arith.constant 0 : i32
    %c0_i32_0 = arith.constant 0 : i32
    return %arg0, %arg1, %c0_i32 : i32, i32, i32
  }
  func.func @transform_1(%arg0: i32, %arg1: i32) -> (i32, i32, i32) {
    %c1_i32 = arith.constant 1 : i32
    %0 = arith.addi %arg1, %c1_i32 : i32
    %c4_i32 = arith.constant 4 : i32
    %1 = arith.muli %0, %c4_i32 : i32
    %c0_i32 = arith.constant 0 : i32
    %c0_i32_0 = arith.constant 0 : i32
    return %arg0, %1, %c0_i32 : i32, i32, i32
  }
  func.func @transform_2(%arg0: i32, %arg1: i32) -> (i32, i32, i32) {
    %c1_i32 = arith.constant 1 : i32
    %0 = arith.addi %arg1, %c1_i32 : i32
    %c4_i32 = arith.constant 4 : i32
    %1 = arith.muli %0, %c4_i32 : i32
    %c1_i32_0 = arith.constant 1 : i32
    %2 = arith.addi %1, %c1_i32_0 : i32
    %c0_i32 = arith.constant 0 : i32
    %c0_i32_1 = arith.constant 0 : i32
    return %arg0, %2, %c0_i32 : i32, i32, i32
  }
  func.func @transform_3(%arg0: i32, %arg1: i32) -> (i32, i32, i32) {
    %c0_i32 = arith.constant 0 : i32
    %c0_i32_0 = arith.constant 0 : i32
    %c0_i32_1 = arith.constant 0 : i32
    %c0_i32_2 = arith.constant 0 : i32
    return %c0_i32, %c0_i32_0, %c0_i32_1 : i32, i32, i32
  }
  func.func @transform_4(%arg0: i32, %arg1: i32) -> (i32, i32) {
    %c0_i32 = arith.constant 0 : i32
    %c0_i32_0 = arith.constant 0 : i32
    %c0_i32_1 = arith.constant 0 : i32
    return %c0_i32, %c0_i32_0 : i32, i32
  }
  func.func @transform_5(%arg0: i32, %arg1: i32) -> (i32, i32, i32) {
    %c0_i32 = arith.constant 0 : i32
    %c0_i32_0 = arith.constant 0 : i32
    return %arg0, %arg1, %c0_i32 : i32, i32, i32
  }
}

module attributes {stable_mosaic.version = 11 : i64} {
  func.func @_s1_conv_kernel(%arg0: i32, %arg1: i32, %arg2: memref<1x256x33xbf16, #tpu.memory_space<vmem>>, %arg3: memref<1x32x33xbf16, #tpu.memory_space<vmem>>, %arg4: memref<1x32x33xbf16, #tpu.memory_space<vmem>>, %arg5: memref<9x33x1xbf16, #tpu.memory_space<vmem>>, %arg6: memref<1x1xf32, #tpu.memory_space<vmem>>, %arg7: memref<1x256x1xf32, #tpu.memory_space<vmem>>, %arg8: memref<336x33xbf16, #tpu.memory_space<vmem>>, %arg9: memref<256x1xf32, #tpu.memory_space<vmem>>) attributes {dimension_semantics = [#tpu.dimension_semantics<parallel>, #tpu.dimension_semantics<parallel>], iteration_bounds = array<i64: 2, 2>, scalar_prefetch = 0 : i64, scratch_operands = 2 : i64, tpu.core_type = #tpu.core_type<tc>, window_params = [{transform_indices = @transform_0, window_bounds = array<i64: 1, 256, 33>}, {transform_indices = @transform_1, window_bounds = array<i64: 1, 32, 33>}, {transform_indices = @transform_2, window_bounds = array<i64: 1, 32, 33>}, {pipeline_mode = #tpu.pipeline_mode<synchronous>, transform_indices = @transform_3, window_bounds = array<i64: 9, 33, 1>}, {pipeline_mode = #tpu.pipeline_mode<synchronous>, transform_indices = @transform_4, window_bounds = array<i64: 1, 1>}, {transform_indices = @transform_5, window_bounds = array<i64: 1, 256, 1>}]} {
    %c0 = arith.constant 0 : index
    %c0_0 = arith.constant 0 : index
    %c0_1 = arith.constant 0 : index
    %0 = vector.load %arg2[%c0, %c0_0, %c0_1] : memref<1x256x33xbf16, #tpu.memory_space<vmem>>, vector<1x256x33xbf16>
    %1 = vector.shape_cast %0 : vector<1x256x33xbf16> to vector<256x33xbf16>
    %c0_2 = arith.constant 0 : index
    %c0_3 = arith.constant 0 : index
    %2 = vector.load %arg8[%c0_2, %c0_3] : memref<336x33xbf16, #tpu.memory_space<vmem>>, vector<256x33xbf16>
    tpu.vector_store %arg8[%c0_2, %c0_3], %1 {strides = array<i32>} : memref<336x33xbf16, #tpu.memory_space<vmem>>, vector<256x33xbf16>,
    %c0_4 = arith.constant 0 : index
    %c0_5 = arith.constant 0 : index
    %c0_6 = arith.constant 0 : index
    %3 = vector.load %arg3[%c0_4, %c0_5, %c0_6] : memref<1x32x33xbf16, #tpu.memory_space<vmem>>, vector<1x32x33xbf16>
    %4 = vector.shape_cast %3 : vector<1x32x33xbf16> to vector<32x33xbf16>
    %c256 = arith.constant 256 : index
    %c0_7 = arith.constant 0 : index
    %5 = vector.load %arg8[%c256, %c0_7] : memref<336x33xbf16, #tpu.memory_space<vmem>>, vector<32x33xbf16>
    tpu.vector_store %arg8[%c256, %c0_7], %4 {strides = array<i32>} : memref<336x33xbf16, #tpu.memory_space<vmem>>, vector<32x33xbf16>,
    %c0_8 = arith.constant 0 : index
    %c0_9 = arith.constant 0 : index
    %c0_10 = arith.constant 0 : index
    %6 = vector.load %arg4[%c0_8, %c0_9, %c0_10] : memref<1x32x33xbf16, #tpu.memory_space<vmem>>, vector<1x32x33xbf16>
    %7 = vector.shape_cast %6 : vector<1x32x33xbf16> to vector<32x33xbf16>
    %c288 = arith.constant 288 : index
    %c0_11 = arith.constant 0 : index
    %8 = vector.load %arg8[%c288, %c0_11] : memref<336x33xbf16, #tpu.memory_space<vmem>>, vector<32x33xbf16>
    tpu.vector_store %arg8[%c288, %c0_11], %7 {strides = array<i32>} : memref<336x33xbf16, #tpu.memory_space<vmem>>, vector<32x33xbf16>,
    %cst = arith.constant 0.000000e+00 : bf16
    %9 = vector.broadcast %cst : bf16 to vector<16x33xbf16>
    %c320 = arith.constant 320 : index
    %c0_12 = arith.constant 0 : index
    %10 = vector.load %arg8[%c320, %c0_12] : memref<336x33xbf16, #tpu.memory_space<vmem>>, vector<16x33xbf16>
    tpu.vector_store %arg8[%c320, %c0_12], %9 {strides = array<i32>} : memref<336x33xbf16, #tpu.memory_space<vmem>>, vector<16x33xbf16>,
    %cst_13 = arith.constant 0.000000e+00 : f32
    %11 = vector.broadcast %cst_13 : f32 to vector<256x1xf32>
    %c0_14 = arith.constant 0 : index
    %c0_15 = arith.constant 0 : index
    %12 = vector.load %arg9[%c0_14, %c0_15] : memref<256x1xf32, #tpu.memory_space<vmem>>, vector<256x1xf32>
    tpu.vector_store %arg9[%c0_14, %c0_15], %11 {strides = array<i32>} : memref<256x1xf32, #tpu.memory_space<vmem>>, vector<256x1xf32>,
    %c0_16 = arith.constant 0 : index
    %c0_17 = arith.constant 0 : index
    %13 = vector.load %arg9[%c0_16, %c0_17] : memref<256x1xf32, #tpu.memory_space<vmem>>, vector<256x1xf32>
    %c0_18 = arith.constant 0 : index
    %c0_19 = arith.constant 0 : index
    %14 = vector.load %arg8[%c0_18, %c0_19] : memref<336x33xbf16, #tpu.memory_space<vmem>>, vector<256x33xbf16>
    %c0_20 = arith.constant 0 : index
    %c0_21 = arith.constant 0 : index
    %c0_22 = arith.constant 0 : index
    %15 = vector.load %arg5[%c0_20, %c0_21, %c0_22] : memref<9x33x1xbf16, #tpu.memory_space<vmem>>, vector<1x33x1xbf16>
    %16 = vector.shape_cast %15 : vector<1x33x1xbf16> to vector<33x1xbf16>
    %cst_23 = arith.constant dense<0.000000e+00> : vector<256x1xf32>
    %17 = tpu.matmul %14, %16, %cst_23 {dimension_numbers = #tpu.dot_dimension_numbers<[1], [0], [0], [1], [0, 0, 1, 1], [], []>} : vector<256x33xbf16>, vector<33x1xbf16>, vector<256x1xf32> -> vector<256x1xf32>
    %18 = arith.addf %13, %17 : vector<256x1xf32>
    %c0_24 = arith.constant 0 : index
    %c0_25 = arith.constant 0 : index
    %19 = vector.load %arg9[%c0_24, %c0_25] : memref<256x1xf32, #tpu.memory_space<vmem>>, vector<256x1xf32>
    tpu.vector_store %arg9[%c0_24, %c0_25], %18 {strides = array<i32>} : memref<256x1xf32, #tpu.memory_space<vmem>>, vector<256x1xf32>,
    %c0_26 = arith.constant 0 : index
    %c0_27 = arith.constant 0 : index
    %20 = vector.load %arg9[%c0_26, %c0_27] : memref<256x1xf32, #tpu.memory_space<vmem>>, vector<256x1xf32>
    %c1 = arith.constant 1 : index
    %c0_28 = arith.constant 0 : index
    %21 = vector.load %arg8[%c1, %c0_28] : memref<336x33xbf16, #tpu.memory_space<vmem>>, vector<256x33xbf16>
    %c1_29 = arith.constant 1 : index
    %c0_30 = arith.constant 0 : index
    %c0_31 = arith.constant 0 : index
    %22 = vector.load %arg5[%c1_29, %c0_30, %c0_31] : memref<9x33x1xbf16, #tpu.memory_space<vmem>>, vector<1x33x1xbf16>
    %23 = vector.shape_cast %22 : vector<1x33x1xbf16> to vector<33x1xbf16>
    %cst_32 = arith.constant dense<0.000000e+00> : vector<256x1xf32>
    %24 = tpu.matmul %21, %23, %cst_32 {dimension_numbers = #tpu.dot_dimension_numbers<[1], [0], [0], [1], [0, 0, 1, 1], [], []>} : vector<256x33xbf16>, vector<33x1xbf16>, vector<256x1xf32> -> vector<256x1xf32>
    %25 = arith.addf %20, %24 : vector<256x1xf32>
    %c0_33 = arith.constant 0 : index
    %c0_34 = arith.constant 0 : index
    %26 = vector.load %arg9[%c0_33, %c0_34] : memref<256x1xf32, #tpu.memory_space<vmem>>, vector<256x1xf32>
    tpu.vector_store %arg9[%c0_33, %c0_34], %25 {strides = array<i32>} : memref<256x1xf32, #tpu.memory_space<vmem>>, vector<256x1xf32>,
    %c0_35 = arith.constant 0 : index
    %c0_36 = arith.constant 0 : index
    %27 = vector.load %arg9[%c0_35, %c0_36] : memref<256x1xf32, #tpu.memory_space<vmem>>, vector<256x1xf32>
    %c2 = arith.constant 2 : index
    %c0_37 = arith.constant 0 : index
    %28 = vector.load %arg8[%c2, %c0_37] : memref<336x33xbf16, #tpu.memory_space<vmem>>, vector<256x33xbf16>
    %c2_38 = arith.constant 2 : index
    %c0_39 = arith.constant 0 : index
    %c0_40 = arith.constant 0 : index
    %29 = vector.load %arg5[%c2_38, %c0_39, %c0_40] : memref<9x33x1xbf16, #tpu.memory_space<vmem>>, vector<1x33x1xbf16>
    %30 = vector.shape_cast %29 : vector<1x33x1xbf16> to vector<33x1xbf16>
    %cst_41 = arith.constant dense<0.000000e+00> : vector<256x1xf32>
    %31 = tpu.matmul %28, %30, %cst_41 {dimension_numbers = #tpu.dot_dimension_numbers<[1], [0], [0], [1], [0, 0, 1, 1], [], []>} : vector<256x33xbf16>, vector<33x1xbf16>, vector<256x1xf32> -> vector<256x1xf32>
    %32 = arith.addf %27, %31 : vector<256x1xf32>
    %c0_42 = arith.constant 0 : index
    %c0_43 = arith.constant 0 : index
    %33 = vector.load %arg9[%c0_42, %c0_43] : memref<256x1xf32, #tpu.memory_space<vmem>>, vector<256x1xf32>
    tpu.vector_store %arg9[%c0_42, %c0_43], %32 {strides = array<i32>} : memref<256x1xf32, #tpu.memory_space<vmem>>, vector<256x1xf32>,
    %c0_44 = arith.constant 0 : index
    %c0_45 = arith.constant 0 : index
    %34 = vector.load %arg9[%c0_44, %c0_45] : memref<256x1xf32, #tpu.memory_space<vmem>>, vector<256x1xf32>
    %c32 = arith.constant 32 : index
    %c0_46 = arith.constant 0 : index
    %35 = vector.load %arg8[%c32, %c0_46] : memref<336x33xbf16, #tpu.memory_space<vmem>>, vector<256x33xbf16>
    %c3 = arith.constant 3 : index
    %c0_47 = arith.constant 0 : index
    %c0_48 = arith.constant 0 : index
    %36 = vector.load %arg5[%c3, %c0_47, %c0_48] : memref<9x33x1xbf16, #tpu.memory_space<vmem>>, vector<1x33x1xbf16>
    %37 = vector.shape_cast %36 : vector<1x33x1xbf16> to vector<33x1xbf16>
    %cst_49 = arith.constant dense<0.000000e+00> : vector<256x1xf32>
    %38 = tpu.matmul %35, %37, %cst_49 {dimension_numbers = #tpu.dot_dimension_numbers<[1], [0], [0], [1], [0, 0, 1, 1], [], []>} : vector<256x33xbf16>, vector<33x1xbf16>, vector<256x1xf32> -> vector<256x1xf32>
    %39 = arith.addf %34, %38 : vector<256x1xf32>
    %c0_50 = arith.constant 0 : index
    %c0_51 = arith.constant 0 : index
    %40 = vector.load %arg9[%c0_50, %c0_51] : memref<256x1xf32, #tpu.memory_space<vmem>>, vector<256x1xf32>
    tpu.vector_store %arg9[%c0_50, %c0_51], %39 {strides = array<i32>} : memref<256x1xf32, #tpu.memory_space<vmem>>, vector<256x1xf32>,
    %c0_52 = arith.constant 0 : index
    %c0_53 = arith.constant 0 : index
    %41 = vector.load %arg9[%c0_52, %c0_53] : memref<256x1xf32, #tpu.memory_space<vmem>>, vector<256x1xf32>
    %c33 = arith.constant 33 : index
    %c0_54 = arith.constant 0 : index
    %42 = vector.load %arg8[%c33, %c0_54] : memref<336x33xbf16, #tpu.memory_space<vmem>>, vector<256x33xbf16>
    %c4 = arith.constant 4 : index
    %c0_55 = arith.constant 0 : index
    %c0_56 = arith.constant 0 : index
    %43 = vector.load %arg5[%c4, %c0_55, %c0_56] : memref<9x33x1xbf16, #tpu.memory_space<vmem>>, vector<1x33x1xbf16>
    %44 = vector.shape_cast %43 : vector<1x33x1xbf16> to vector<33x1xbf16>
    %cst_57 = arith.constant dense<0.000000e+00> : vector<256x1xf32>
    %45 = tpu.matmul %42, %44, %cst_57 {dimension_numbers = #tpu.dot_dimension_numbers<[1], [0], [0], [1], [0, 0, 1, 1], [], []>} : vector<256x33xbf16>, vector<33x1xbf16>, vector<256x1xf32> -> vector<256x1xf32>
    %46 = arith.addf %41, %45 : vector<256x1xf32>
    %c0_58 = arith.constant 0 : index
    %c0_59 = arith.constant 0 : index
    %47 = vector.load %arg9[%c0_58, %c0_59] : memref<256x1xf32, #tpu.memory_space<vmem>>, vector<256x1xf32>
    tpu.vector_store %arg9[%c0_58, %c0_59], %46 {strides = array<i32>} : memref<256x1xf32, #tpu.memory_space<vmem>>, vector<256x1xf32>,
    %c0_60 = arith.constant 0 : index
    %c0_61 = arith.constant 0 : index
    %48 = vector.load %arg9[%c0_60, %c0_61] : memref<256x1xf32, #tpu.memory_space<vmem>>, vector<256x1xf32>
    %c34 = arith.constant 34 : index
    %c0_62 = arith.constant 0 : index
    %49 = vector.load %arg8[%c34, %c0_62] : memref<336x33xbf16, #tpu.memory_space<vmem>>, vector<256x33xbf16>
    %c5 = arith.constant 5 : index
    %c0_63 = arith.constant 0 : index
    %c0_64 = arith.constant 0 : index
    %50 = vector.load %arg5[%c5, %c0_63, %c0_64] : memref<9x33x1xbf16, #tpu.memory_space<vmem>>, vector<1x33x1xbf16>
    %51 = vector.shape_cast %50 : vector<1x33x1xbf16> to vector<33x1xbf16>
    %cst_65 = arith.constant dense<0.000000e+00> : vector<256x1xf32>
    %52 = tpu.matmul %49, %51, %cst_65 {dimension_numbers = #tpu.dot_dimension_numbers<[1], [0], [0], [1], [0, 0, 1, 1], [], []>} : vector<256x33xbf16>, vector<33x1xbf16>, vector<256x1xf32> -> vector<256x1xf32>
    %53 = arith.addf %48, %52 : vector<256x1xf32>
    %c0_66 = arith.constant 0 : index
    %c0_67 = arith.constant 0 : index
    %54 = vector.load %arg9[%c0_66, %c0_67] : memref<256x1xf32, #tpu.memory_space<vmem>>, vector<256x1xf32>
    tpu.vector_store %arg9[%c0_66, %c0_67], %53 {strides = array<i32>} : memref<256x1xf32, #tpu.memory_space<vmem>>, vector<256x1xf32>,
    %c0_68 = arith.constant 0 : index
    %c0_69 = arith.constant 0 : index
    %55 = vector.load %arg9[%c0_68, %c0_69] : memref<256x1xf32, #tpu.memory_space<vmem>>, vector<256x1xf32>
    %c64 = arith.constant 64 : index
    %c0_70 = arith.constant 0 : index
    %56 = vector.load %arg8[%c64, %c0_70] : memref<336x33xbf16, #tpu.memory_space<vmem>>, vector<256x33xbf16>
    %c6 = arith.constant 6 : index
    %c0_71 = arith.constant 0 : index
    %c0_72 = arith.constant 0 : index
    %57 = vector.load %arg5[%c6, %c0_71, %c0_72] : memref<9x33x1xbf16, #tpu.memory_space<vmem>>, vector<1x33x1xbf16>
    %58 = vector.shape_cast %57 : vector<1x33x1xbf16> to vector<33x1xbf16>
    %cst_73 = arith.constant dense<0.000000e+00> : vector<256x1xf32>
    %59 = tpu.matmul %56, %58, %cst_73 {dimension_numbers = #tpu.dot_dimension_numbers<[1], [0], [0], [1], [0, 0, 1, 1], [], []>} : vector<256x33xbf16>, vector<33x1xbf16>, vector<256x1xf32> -> vector<256x1xf32>
    %60 = arith.addf %55, %59 : vector<256x1xf32>
    %c0_74 = arith.constant 0 : index
    %c0_75 = arith.constant 0 : index
    %61 = vector.load %arg9[%c0_74, %c0_75] : memref<256x1xf32, #tpu.memory_space<vmem>>, vector<256x1xf32>
    tpu.vector_store %arg9[%c0_74, %c0_75], %60 {strides = array<i32>} : memref<256x1xf32, #tpu.memory_space<vmem>>, vector<256x1xf32>,
    %c0_76 = arith.constant 0 : index
    %c0_77 = arith.constant 0 : index
    %62 = vector.load %arg9[%c0_76, %c0_77] : memref<256x1xf32, #tpu.memory_space<vmem>>, vector<256x1xf32>
    %c65 = arith.constant 65 : index
    %c0_78 = arith.constant 0 : index
    %63 = vector.load %arg8[%c65, %c0_78] : memref<336x33xbf16, #tpu.memory_space<vmem>>, vector<256x33xbf16>
    %c7 = arith.constant 7 : index
    %c0_79 = arith.constant 0 : index
    %c0_80 = arith.constant 0 : index
    %64 = vector.load %arg5[%c7, %c0_79, %c0_80] : memref<9x33x1xbf16, #tpu.memory_space<vmem>>, vector<1x33x1xbf16>
    %65 = vector.shape_cast %64 : vector<1x33x1xbf16> to vector<33x1xbf16>
    %cst_81 = arith.constant dense<0.000000e+00> : vector<256x1xf32>
    %66 = tpu.matmul %63, %65, %cst_81 {dimension_numbers = #tpu.dot_dimension_numbers<[1], [0], [0], [1], [0, 0, 1, 1], [], []>} : vector<256x33xbf16>, vector<33x1xbf16>, vector<256x1xf32> -> vector<256x1xf32>
    %67 = arith.addf %62, %66 : vector<256x1xf32>
    %c0_82 = arith.constant 0 : index
    %c0_83 = arith.constant 0 : index
    %68 = vector.load %arg9[%c0_82, %c0_83] : memref<256x1xf32, #tpu.memory_space<vmem>>, vector<256x1xf32>
    tpu.vector_store %arg9[%c0_82, %c0_83], %67 {strides = array<i32>} : memref<256x1xf32, #tpu.memory_space<vmem>>, vector<256x1xf32>,
    %c0_84 = arith.constant 0 : index
    %c0_85 = arith.constant 0 : index
    %69 = vector.load %arg9[%c0_84, %c0_85] : memref<256x1xf32, #tpu.memory_space<vmem>>, vector<256x1xf32>
    %c66 = arith.constant 66 : index
    %c0_86 = arith.constant 0 : index
    %70 = vector.load %arg8[%c66, %c0_86] : memref<336x33xbf16, #tpu.memory_space<vmem>>, vector<256x33xbf16>
    %c8 = arith.constant 8 : index
    %c0_87 = arith.constant 0 : index
    %c0_88 = arith.constant 0 : index
    %71 = vector.load %arg5[%c8, %c0_87, %c0_88] : memref<9x33x1xbf16, #tpu.memory_space<vmem>>, vector<1x33x1xbf16>
    %72 = vector.shape_cast %71 : vector<1x33x1xbf16> to vector<33x1xbf16>
    %cst_89 = arith.constant dense<0.000000e+00> : vector<256x1xf32>
    %73 = tpu.matmul %70, %72, %cst_89 {dimension_numbers = #tpu.dot_dimension_numbers<[1], [0], [0], [1], [0, 0, 1, 1], [], []>} : vector<256x33xbf16>, vector<33x1xbf16>, vector<256x1xf32> -> vector<256x1xf32>
    %74 = arith.addf %69, %73 : vector<256x1xf32>
    %c0_90 = arith.constant 0 : index
    %c0_91 = arith.constant 0 : index
    %75 = vector.load %arg9[%c0_90, %c0_91] : memref<256x1xf32, #tpu.memory_space<vmem>>, vector<256x1xf32>
    tpu.vector_store %arg9[%c0_90, %c0_91], %74 {strides = array<i32>} : memref<256x1xf32, #tpu.memory_space<vmem>>, vector<256x1xf32>,
    %c0_92 = arith.constant 0 : index
    %c0_93 = arith.constant 0 : index
    %76 = vector.load %arg9[%c0_92, %c0_93] : memref<256x1xf32, #tpu.memory_space<vmem>>, vector<256x1xf32>
    %c0_94 = arith.constant 0 : index
    %c0_95 = arith.constant 0 : index
    %77 = vector.load %arg6[%c0_94, %c0_95] : memref<1x1xf32, #tpu.memory_space<vmem>>, vector<1x1xf32>
    %78 = vector.broadcast %77 : vector<1x1xf32> to vector<256x1xf32>
    %79 = arith.addf %76, %78 : vector<256x1xf32>
    %cst_96 = arith.constant 0.000000e+00 : f32
    %80 = vector.broadcast %cst_96 : f32 to vector<256x1xf32>
    %81 = arith.cmpf ogt, %79, %80 : vector<256x1xf32>
    %cst_97 = arith.constant 2.000000e-01 : f32
    %82 = vector.broadcast %cst_97 : f32 to vector<256x1xf32>
    %83 = arith.mulf %82, %79 : vector<256x1xf32>
    %84 = arith.select %81, %79, %83 : vector<256x1xi1>, vector<256x1xf32>
    %c0_98 = arith.constant 0 : index
    %c0_99 = arith.constant 0 : index
    %c0_100 = arith.constant 0 : index
    %85 = vector.load %arg7[%c0_98, %c0_99, %c0_100] : memref<1x256x1xf32, #tpu.memory_space<vmem>>, vector<1x256x1xf32>
    %86 = vector.shape_cast %85 : vector<1x256x1xf32> to vector<256x1xf32>
    %87 = vector.shape_cast %84 : vector<256x1xf32> to vector<1x256x1xf32>
    tpu.vector_store %arg7[%c0_98, %c0_99, %c0_100], %87 {strides = array<i32>} : memref<1x256x1xf32, #tpu.memory_space<vmem>>, vector<1x256x1xf32>,
    return
  }
  func.func @transform_0(%arg0: i32, %arg1: i32) -> (i32, i32, i32) {
    %c0_i32 = arith.constant 0 : i32
    %c0_i32_0 = arith.constant 0 : i32
    return %arg0, %arg1, %c0_i32 : i32, i32, i32
  }
  func.func @transform_1(%arg0: i32, %arg1: i32) -> (i32, i32, i32) {
    %c1_i32 = arith.constant 1 : i32
    %0 = arith.addi %arg1, %c1_i32 : i32
    %c8_i32 = arith.constant 8 : i32
    %1 = arith.muli %0, %c8_i32 : i32
    %c0_i32 = arith.constant 0 : i32
    %c0_i32_0 = arith.constant 0 : i32
    return %arg0, %1, %c0_i32 : i32, i32, i32
  }
  func.func @transform_2(%arg0: i32, %arg1: i32) -> (i32, i32, i32) {
    %c1_i32 = arith.constant 1 : i32
    %0 = arith.addi %arg1, %c1_i32 : i32
    %c8_i32 = arith.constant 8 : i32
    %1 = arith.muli %0, %c8_i32 : i32
    %c1_i32_0 = arith.constant 1 : i32
    %2 = arith.addi %1, %c1_i32_0 : i32
    %c0_i32 = arith.constant 0 : i32
    %c0_i32_1 = arith.constant 0 : i32
    return %arg0, %2, %c0_i32 : i32, i32, i32
  }
  func.func @transform_3(%arg0: i32, %arg1: i32) -> (i32, i32, i32) {
    %c0_i32 = arith.constant 0 : i32
    %c0_i32_0 = arith.constant 0 : i32
    %c0_i32_1 = arith.constant 0 : i32
    %c0_i32_2 = arith.constant 0 : i32
    return %c0_i32, %c0_i32_0, %c0_i32_1 : i32, i32, i32
  }
  func.func @transform_4(%arg0: i32, %arg1: i32) -> (i32, i32) {
    %c0_i32 = arith.constant 0 : i32
    %c0_i32_0 = arith.constant 0 : i32
    %c0_i32_1 = arith.constant 0 : i32
    return %c0_i32, %c0_i32_0 : i32, i32
  }
  func.func @transform_5(%arg0: i32, %arg1: i32) -> (i32, i32, i32) {
    %c0_i32 = arith.constant 0 : i32
    %c0_i32_0 = arith.constant 0 : i32
    return %arg0, %arg1, %c0_i32 : i32, i32, i32
  }
}

</mosaic_0001>

<bundles_post_ra>
// kernel: gednet_forward.10
= control target key start
LH: loop header
LB: loop body
LE: loop exit
PB: predicated region body
PF: predicated region fallthrough
CT: control target
= control target key end

     0   :  { %vm126_vm0 = vcmask 1045504   ;;  %vm127_vm1 = vcmask 1046528   ;;  %vm101_vm2 = vcmask 367616   ;;  %v434_v1 = vmov 65535   ;;  %s563_s1 = inlined_call_operand.vmem [shape: bf16[45,80], index: 1, kind: input, shape index: {}]   ;;  %s564_s0 = inlined_call_operand.vmem [shape: bf16[128,45], index: 0, kind: input, shape index: {}]   ;;  %s565_s2 = inlined_call_operand.vmem [shape: f32[1,80], index: 2, kind: input, shape index: {}]   ;;  %s566_s3 = inlined_call_operand.vmem [shape: bf16[128,80], index: 3, kind: output, shape index: {}]  }
   0x1   :  { %v423_v0 = vld [vmem:[%s563_s1] sm:$0xff]   ;;  %v128_v2 = vsel %vm126_vm0, 4294967295, %v434_v1  ;;  %v424_v3 = vld [vmem:[%s563_s1 + $0x8] sm:$0xff]   ;;  %v425_v5 = vld [vmem:[%s563_s1 + $0x10] sm:$0x7f]   ;;  %vm310_vm3 = vcmask 650240  }
   0x2   :  { %v129_v4 = vsel %vm127_vm1, %v128_v2, 0  ;;  %394 = vmatprep.subr.bf16.mxu0 %v423_v0  ;;  %416 = vmatprep.subr.bf16.mxu1 %v423_v0  ;;  %v426_v6 = vld [vmem:[%s564_s0] sm:$0xff]   ;;  %v428_v9 = vld [vmem:[%s564_s0 + $0x8] sm:$0xff]   ;;  %v430_v11 = vld [vmem:[%s564_s0 + $0x10] sm:$0xff]  }
   0x3   :  { %395 = vmatpush3.bf16.msra.mxu0 %v423_v0  ;;  %419 = vmatpush3.bf16.msra.mxu1 %v423_v0  ;;  %v131_v7 = vand.u32 %v425_v5, %v129_v4  ;;  %v427_v8 = vld [vmem:[%s564_s0 + $0x20] sm:$0xff]   ;;  %v429_v10 = vld [vmem:[%s564_s0 + $0x28] sm:$0xff]   ;;  %v431_v12 = vld [vmem:[%s564_s0 + $0x30] sm:$0xff]  }
   0x4   :  { %396 = vmatprep.subr.bf16.mxu0 %v424_v3  ;;  %417 = vmatprep.subr.bf16.mxu1 %v424_v3  ;;  %v432_v13 = vld [vmem:[%s564_s0 + $0x18] sm:$0xff]   ;;  %v331_v15 = vld [vmem:[%s565_s2] ss:$0 sm:$0xff] }
   0x5   :  { %400 = vmatprep.mubr.msk.bf16.mxu0 %vm101_vm2, %v426_v6  ;;  %408 = vmatprep.mubr.msk.bf16.mxu1 %vm101_vm2, %v427_v8  ;;  %v433_v14 = vld [vmem:[%s564_s0 + $0x38] sm:$0xff]  }
   0x7   :  { %397 = vmatpush3.bf16.msra.mxu0 %v424_v3  ;;  %420 = vmatpush3.bf16.msra.mxu1 %v424_v3 }
   0x8   :  { %398 = vmatprep.subr.bf16.mxu0 %v131_v7  ;;  %418 = vmatprep.subr.bf16.mxu1 %v131_v7 }
   0xb   :  { %399 = vmatpush3.bf16.msra.mxu0 %v131_v7  ;;  %421 = vmatpush3.bf16.msra.mxu1 %v131_v7 }
   0xe   :  { %401 = vmatmul.mubr.msk.bf16.vlgmr.msra.gmra.mrb[0].mxu0 %vm101_vm2, %v428_v9  ;;  %409 = vmatmul.mubr.msk.bf16.vlgmr.msra.gmra.mrb[0].mxu1 %vm101_vm2, %v429_v10 }
   0xf   :  { %404 = vmatprep.mubr.msk.bf16.mxu0 %vm101_vm2, %v430_v11  ;;  %412 = vmatprep.mubr.msk.bf16.mxu1 %vm101_vm2, %v431_v12 }
  0x16   :  { %405 = vmatmul.mubr.msk.bf16.gmra.mrb[4].mxu0 %vm101_vm2, %v432_v13  ;;  %413 = vmatmul.mubr.msk.bf16.gmra.mrb[4].mxu1 %vm101_vm2, %v433_v14 }
  0xe1   :  { %v402_v16 = vpop.f32.mrb[0].mxu0  ;;  %v410_v17 = vpop.f32.mrb[0].mxu1 }
  0xe2   :  { %v176_v18 = vadd.f32 %v402_v16, %v331_v15  ;;  %v208_v19 = vadd.f32 %v410_v17, %v331_v15  ;;  %v167_v20 = vpop.f32.mrb[1].mxu0  ;;  %v199_v21 = vpop.f32.mrb[1].mxu1 }
  0xe3   :  { %v168_v22 = vadd.f32 %v331_v15, %v167_v20  ;;  %v200_v23 = vadd.f32 %v331_v15, %v199_v21  ;;  %v403_v24 = vpop.f32.mrb[2].mxu0  ;;  %v411_v25 = vpop.f32.mrb[2].mxu1 }
  0xe4   :  { %v232_v26 = vmax.f32 %v176_v18, 0.0  ;;  %v240_v27 = vmax.f32 %v208_v19, 0.0  ;;  %v179_v28 = vadd.f32 %v403_v24, %v331_v15  ;;  %v211_v29 = vadd.f32 %v411_v25, %v331_v15  ;;  %v170_v30 = vpop.f32.mrb[3].mxu0  ;;  %v202_v31 = vpop.f32.mrb[3].mxu1 }
  0xe5   :  { %v230_v32 = vmax.f32 %v168_v22, 0.0  ;;  %v238_v33 = vmax.f32 %v200_v23, 0.0  ;;  %v171_v34 = vadd.f32 %v331_v15, %v170_v30  ;;  %v203_v35 = vadd.f32 %v331_v15, %v202_v31 }
  0xe6   :  { %v369_v36 = vpack.c.bf16 %v232_v26, %v232_v26  ;;  %v377_v37 = vpack.c.bf16 %v240_v27, %v240_v27  ;;  %v233_v38 = vmax.f32 %v179_v28, 0.0  ;;  %v241_v39 = vmax.f32 %v211_v29, 0.0 }
  0xe7   :  { %v367_v40 = vpack.c.bf16 %v230_v32, %v230_v32  ;;  %v375_v41 = vpack.c.bf16 %v238_v33, %v238_v33  ;;  %v231_v42 = vmax.f32 %v171_v34, 0.0  ;;  %v239_v43 = vmax.f32 %v203_v35, 0.0 }
  0xe8   :  { %313 = vst.msk [vmem:[%s566_s3 + $0x8] sm:$0xf] %vm310_vm3, %v369_v36  ;;  %321 = vst.msk [vmem:[%s566_s3 + $0x28] sm:$0xf] %vm310_vm3, %v377_v37  ;;  %v370_v44 = vpack.c.bf16 %v233_v38, %v233_v38  ;;  %v378_v45 = vpack.c.bf16 %v241_v39, %v241_v39 }
  0xe9   :  { %311 = vst.msk [vmem:[%s566_s3] sm:$0xf] %vm310_vm3, %v367_v40  ;;  %319 = vst.msk [vmem:[%s566_s3 + $0x20] sm:$0xf] %vm310_vm3, %v375_v41  ;;  %v368_v46 = vpack.c.bf16 %v231_v42, %v231_v42  ;;  %v376_v47 = vpack.c.bf16 %v239_v43, %v239_v43  ;;  %v406_v48 = vpop.f32.mrb[4].mxu0  ;;  %v414_v49 = vpop.f32.mrb[4].mxu1 }
  0xea   :  { %314 = vst.msk [vmem:[%s566_s3 + $0xc] sm:$0xf] %vm310_vm3, %v370_v44  ;;  %322 = vst.msk [vmem:[%s566_s3 + $0x2c] sm:$0xf] %vm310_vm3, %v378_v45  ;;  %v192_v50 = vadd.f32 %v406_v48, %v331_v15  ;;  %v224_v51 = vadd.f32 %v414_v49, %v331_v15  ;;  %v183_v52 = vpop.f32.mrb[5].mxu0  ;;  %v215_v53 = vpop.f32.mrb[5].mxu1 }
  0xeb   :  { %312 = vst.msk [vmem:[%s566_s3 + $0x4] sm:$0xf] %vm310_vm3, %v368_v46  ;;  %320 = vst.msk [vmem:[%s566_s3 + $0x24] sm:$0xf] %vm310_vm3, %v376_v47  ;;  %v184_v54 = vadd.f32 %v331_v15, %v183_v52  ;;  %v216_v55 = vadd.f32 %v331_v15, %v215_v53  ;;  %v407_v56 = vpop.f32.mrb[6].mxu0  ;;  %v415_v57 = vpop.f32.mrb[6].mxu1 }
  0xec   :  { %v236_v58 = vmax.f32 %v192_v50, 0.0  ;;  %v244_v59 = vmax.f32 %v224_v51, 0.0  ;;  %v195_v60 = vadd.f32 %v407_v56, %v331_v15  ;;  %v227_v61 = vadd.f32 %v415_v57, %v331_v15  ;;  %v186_v62 = vpop.f32.mrb[7].mxu0  ;;  %v218_v63 = vpop.f32.mrb[7].mxu1 }
  0xed   :  { %v234_v0 = vmax.f32 %v184_v54, 0.0  ;;  %v242_v1 = vmax.f32 %v216_v55, 0.0  ;;  %v187_v2 = vadd.f32 %v331_v15, %v186_v62  ;;  %v219_v3 = vadd.f32 %v331_v15, %v218_v63 }
  0xee   :  { %v373_v4 = vpack.c.bf16 %v236_v58, %v236_v58  ;;  %v381_v5 = vpack.c.bf16 %v244_v59, %v244_v59  ;;  %v237_v6 = vmax.f32 %v195_v60, 0.0  ;;  %v245_v7 = vmax.f32 %v227_v61, 0.0 }
  0xef   :  { %v371_v8 = vpack.c.bf16 %v234_v0, %v234_v0  ;;  %v379_v9 = vpack.c.bf16 %v242_v1, %v242_v1  ;;  %v235_v10 = vmax.f32 %v187_v2, 0.0  ;;  %v243_v11 = vmax.f32 %v219_v3, 0.0 }
  0xf0   :  { %317 = vst.msk [vmem:[%s566_s3 + $0x18] sm:$0xf] %vm310_vm3, %v373_v4  ;;  %325 = vst.msk [vmem:[%s566_s3 + $0x38] sm:$0xf] %vm310_vm3, %v381_v5  ;;  %v374_v12 = vpack.c.bf16 %v237_v6, %v237_v6  ;;  %v382_v13 = vpack.c.bf16 %v245_v7, %v245_v7 }
  0xf1   :  { %315 = vst.msk [vmem:[%s566_s3 + $0x10] sm:$0xf] %vm310_vm3, %v371_v8  ;;  %323 = vst.msk [vmem:[%s566_s3 + $0x30] sm:$0xf] %vm310_vm3, %v379_v9  ;;  %v372_v14 = vpack.c.bf16 %v235_v10, %v235_v10  ;;  %v380_v15 = vpack.c.bf16 %v243_v11, %v243_v11 }
  0xf2   :  { %318 = vst.msk [vmem:[%s566_s3 + $0x1c] sm:$0xf] %vm310_vm3, %v374_v12  ;;  %326 = vst.msk [vmem:[%s566_s3 + $0x3c] sm:$0xf] %vm310_vm3, %v382_v13 }
  0xf3   :  { %316 = vst.msk [vmem:[%s566_s3 + $0x14] sm:$0xf] %vm310_vm3, %v372_v14  ;;  %324 = vst.msk [vmem:[%s566_s3 + $0x34] sm:$0xf] %vm310_vm3, %v380_v15 }

// kernel: gednet_forward.11
= control target key start
LH: loop header
LB: loop body
LE: loop exit
PB: predicated region body
PF: predicated region fallthrough
CT: control target
= control target key end

     0   :  { %v823_v1 = vmov 0   ;;  %vm452_vm0 = vcmask 654336   ;;  %vm626_vm1 = vcmask 650240   ;;  %s1049_s1 = inlined_call_operand.vmem [shape: bf16[720,80], index: 1, kind: input, shape index: {}]   ;;  %s1050_s0 = inlined_call_operand.vmem [shape: bf16[32,720], index: 0, kind: input, shape index: {}]   ;;  %s1051_s2 = inlined_call_operand.vmem [shape: f32[1,80], index: 2, kind: input, shape index: {}]   ;;  %s1052_s3 = inlined_call_operand.vmem [shape: bf16[32,80], index: 3, kind: output, shape index: {}]  }
   0x1   :  { %v760_v0 = vld [vmem:[%s1049_s1 + $0x40] sm:$0xff]   ;;  %557 = vmatprep.subr.bf16.mxu0 %v823_v1  ;;  %v762_v3 = vld [vmem:[%s1049_s1 + $0x48] sm:$0xff]   ;;  %v764_v5 = vld [vmem:[%s1049_s1 + $0x50] sm:$0xff]  }
   0x2   :  { %v761_v2 = vld [vmem:[%s1049_s1] sm:$0xff]   ;;  %703 = vmatprep.subr.bf16.mxu1 %v760_v0  ;;  %v763_v4 = vld [vmem:[%s1049_s1 + $0x8] sm:$0xff]   ;;  %v765_v6 = vld [vmem:[%s1049_s1 + $0x10] sm:$0xff]  }
   0x3   :  { %704 = vmatpush3.bf16.msra.mxu1 %v761_v2  ;;  %v766_v7 = vld [vmem:[%s1049_s1 + $0x58] sm:$0xff]   ;;  %v768_v8 = vld [vmem:[%s1049_s1 + $0x100] sm:$0xff]   ;;  %v771_v10 = vld [vmem:[%s1049_s1 + $0x108] sm:$0xff]  }
   0x4   :  { %705 = vmatprep.subr.bf16.mxu1 %v762_v3  ;;  %v767_v9 = vld [vmem:[%s1049_s1 + $0x18] sm:$0xff]   ;;  %558 = vmatpush1.bf16.msra.mxu0 %v768_v8  ;;  %v769_v11 = vld [vmem:[%s1049_s1 + $0x60] sm:$0xff]   ;;  %v774_v12 = vld [vmem:[%s1049_s1 + $0x110] sm:$0xff]  }
   0x5   :  { %559 = vmatprep.subr.bf16.mxu0 %v823_v1  ;;  %v770_v13 = vld [vmem:[%s1049_s1 + $0x20] sm:$0xff]   ;;  %v772_v14 = vld [vmem:[%s1049_s1 + $0x68] sm:$0xff]   ;;  %v777_v15 = vld [vmem:[%s1049_s1 + $0x118] sm:$0xff]  }
   0x6   :  { %v773_v16 = vld [vmem:[%s1049_s1 + $0x28] sm:$0xff]   ;;  %v775_v17 = vld [vmem:[%s1049_s1 + $0x70] sm:$0xff]   ;;  %v782_v18 = vld [vmem:[%s1050_s0 + $0x4] ss:$24 sps:$4 sm:$0xff]  }
   0x7   :  { %706 = vmatpush3.bf16.msra.mxu1 %v763_v4  ;;  %v783_v19 = vld [vmem:[%s1049_s1 + $0x120] sm:$0xff]   ;;  %v776_v20 = vld [vmem:[%s1049_s1 + $0x30] sm:$0xff]   ;;  %v778_v21 = vld [vmem:[%s1049_s1 + $0x78] sm:$0xff]   ;;  %491 = vmatprep.mubr.bf16.mxu1 %v782_v18 }
   0x8   :  { %707 = vmatprep.subr.bf16.mxu1 %v764_v5  ;;  %560 = vmatpush1.bf16.msra.mxu0 %v771_v10  ;;  %v786_v22 = vld [vmem:[%s1049_s1 + $0x128] sm:$0xff]   ;;  %v779_v23 = vld [vmem:[%s1049_s1 + $0x38] sm:$0xff]   ;;  %v784_v24 = vld [vmem:[%s1049_s1 + $0xc0] sm:$0xff]  }
   0x9   :  { %561 = vmatprep.subr.bf16.mxu0 %v823_v1  ;;  %v780_v25 = vld [vmem:[%s1050_s0] ss:$24 sps:$4 sm:$0xff]   ;;  %v789_v26 = vld [vmem:[%s1049_s1 + $0x130] sm:$0xff]   ;;  %v787_v28 = vld [vmem:[%s1049_s1 + $0xc8] sm:$0xff]  }
   0xa   :  { %v785_v27 = vld [vmem:[%s1049_s1 + $0x80] sm:$0xff]   ;;  %v792_v29 = vld [vmem:[%s1049_s1 + $0x138] sm:$0xff]   ;;  %v788_v30 = vld [vmem:[%s1049_s1 + $0x88] sm:$0xff]  }
   0xb   :  { %708 = vmatpush3.bf16.msra.mxu1 %v765_v6  ;;  %v790_v31 = vld [vmem:[%s1049_s1 + $0xd0] sm:$0xff]   ;;  %v795_v32 = vld [vmem:[%s1049_s1 + $0x140] sm:$0xff]   ;;  %v793_v36 = vld [vmem:[%s1049_s1 + $0xd8] sm:$0xff]  }
   0xc   :  { %709 = vmatprep.subr.bf16.mxu1 %v766_v7  ;;  %562 = vmatpush1.bf16.msra.mxu0 %v774_v12  ;;  %v799_v33 = vld [vmem:[%s1050_s0 + $0x34] ss:$24 sps:$4 sm:$0xff]   ;;  %v802_v35 = vld [vmem:[%s1050_s0 + $0x30] ss:$24 sps:$4 sm:$0xff]   ;;  %v794_v38 = vld [vmem:[%s1049_s1 + $0x98] sm:$0xff]  }
   0xd   :  { %563 = vmatprep.subr.bf16.mxu0 %v823_v1  ;;  %v791_v34 = vld [vmem:[%s1049_s1 + $0x90] sm:$0xff]   ;;  %v798_v37 = vld [vmem:[%s1049_s1 + $0x148] sm:$0xff]   ;;  %v796_v39 = vld [vmem:[%s1049_s1 + $0xe0] sm:$0xff]  }
   0xe   :  { %v804_v40 = vld [vmem:[%s1049_s1 + $0x150] sm:$0xff]   ;;  %v797_v41 = vld [vmem:[%s1049_s1 + $0xa0] sm:$0xff]   ;;  %v801_v43 = vld [vmem:[%s1049_s1 + $0xe8] sm:$0xff]  }
   0xf   :  { %710 = vmatpush3.bf16.msra.mxu1 %v767_v9  ;;  %v812_v42 = vld [vmem:[%s1050_s0 + $0xc] ss:$24 sps:$4 sm:$0xff]   ;;  %v807_v44 = vld [vmem:[%s1049_s1 + $0x158] sm:$0xff]   ;;  %v805_v47 = vld [vmem:[%s1049_s1 + $0xf0] sm:$0xff]  }
  0x10   :  { %711 = vmatprep.subr.bf16.mxu1 %v769_v11  ;;  %564 = vmatpush1.bf16.msra.mxu0 %v777_v15  ;;  %v816_v45 = vld [vmem:[%s1050_s0 + $0x14] ss:$24 sps:$4 sm:$0xff]   ;;  %v813_v48 = vld [vmem:[%s1049_s1 + $0x160] sm:$0xff]   ;;  %v808_v50 = vld [vmem:[%s1049_s1 + $0xf8] sm:$0xff]  }
  0x11   :  { %565 = vmatprep.subr.bf16.mxu0 %v823_v1  ;;  %v803_v46 = vld [vmem:[%s1049_s1 + $0xa8] sm:$0xff]   ;;  %693 = vmatprep.mubr.msk.bf16.mxu0 %vm452_vm0, %v816_v45  ;;  %v806_v49 = vld [vmem:[%s1049_s1 + $0xb0] sm:$0xff]   ;;  %v820_v52 = vld [vmem:[%s1050_s0 + $0x44] ss:$24 sps:$4 sm:$0xff]  }
  0x12   :  { %v814_v51 = vld [vmem:[%s1050_s0 + $0x10] ss:$24 sps:$4 sm:$0xff]   ;;  %v809_v53 = vld [vmem:[%s1049_s1 + $0xb8] sm:$0xff]   ;;  %v635_v10 = vld [vmem:[%s1051_s2] ss:$0 sm:$0xff] }
  0x13   :  { %712 = vmatpush3.bf16.msra.mxu1 %v770_v13  ;;  %v810_v54 = vld [vmem:[%s1050_s0 + $0x8] ss:$24 sps:$4 sm:$0xff]   ;;  %v817_v55 = vld [vmem:[%s1050_s0 + $0x3c] ss:$24 sps:$4 sm:$0xff]   ;;  %v819_v57 = vld [vmem:[%s1050_s0 + $0x38] ss:$24 sps:$4 sm:$0xff]  }
  0x14   :  { %713 = vmatprep.subr.bf16.mxu1 %v772_v14  ;;  %566 = vmatpush1.bf16.msra.mxu0 %v783_v19  ;;  %v822_v56 = vld [vmem:[%s1050_s0 + $0x40] ss:$24 sps:$4 sm:$0xff]  }
  0x15   :  { %567 = vmatprep.subr.bf16.mxu0 %v823_v1 }
  0x17   :  { %714 = vmatpush3.bf16.msra.mxu1 %v773_v16 }
  0x18   :  { %715 = vmatprep.subr.bf16.mxu1 %v775_v17  ;;  %568 = vmatpush1.bf16.msra.mxu0 %v786_v22 }
  0x19   :  { %569 = vmatprep.subr.bf16.mxu0 %v823_v1 }
  0x1b   :  { %716 = vmatpush3.bf16.msra.mxu1 %v776_v20 }
  0x1c   :  { %717 = vmatprep.subr.bf16.mxu1 %v778_v21  ;;  %570 = vmatpush1.bf16.msra.mxu0 %v789_v26 }
  0x1d   :  { %571 = vmatprep.subr.bf16.mxu0 %v823_v1 }
  0x1f   :  { %718 = vmatpush3.bf16.msra.mxu1 %v779_v23 }
  0x20   :  { %731 = vmatprep.subr.bf16.mxu1 %v784_v24  ;;  %572 = vmatpush1.bf16.msra.mxu0 %v792_v29 }
  0x21   :  { %573 = vmatprep.subr.bf16.mxu0 %v823_v1 }
  0x22   :  { %492 = vmatmul.mubr.bf16.vlgmr.msra.gmra.mrb[0].mxu1 %v780_v25 }
  0x23   :  { %732 = vmatpush3.bf16.msra.mxu1 %v785_v27  ;;  %499 = vmatprep.mubr.bf16.mxu1 %v799_v33 }
  0x24   :  { %733 = vmatprep.subr.bf16.mxu1 %v787_v28  ;;  %574 = vmatpush1.bf16.msra.mxu0 %v795_v32 }
  0x25   :  { %575 = vmatprep.subr.bf16.mxu0 %v823_v1 }
  0x27   :  { %734 = vmatpush3.bf16.msra.mxu1 %v788_v30 }
  0x28   :  { %735 = vmatprep.subr.bf16.mxu1 %v790_v31  ;;  %576 = vmatpush1.bf16.msra.mxu0 %v798_v37 }
  0x29   :  { %577 = vmatprep.subr.bf16.mxu0 %v823_v1 }
  0x2a   :  { %500 = vmatmul.mubr.bf16.gmra.mrb[4].mxu1 %v802_v35 }
  0x2b   :  { %736 = vmatpush3.bf16.msra.mxu1 %v791_v34  ;;  %540 = vmatprep.mubr.bf16.mxu1 %v812_v42 }
  0x2c   :  { %737 = vmatprep.subr.bf16.mxu1 %v793_v36  ;;  %578 = vmatpush1.bf16.msra.mxu0 %v804_v40 }
  0x2d   :  { %579 = vmatprep.subr.bf16.mxu0 %v823_v1 }
  0x2f   :  { %738 = vmatpush3.bf16.msra.mxu1 %v794_v38 }
  0x30   :  { %739 = vmatprep.subr.bf16.mxu1 %v796_v39  ;;  %580 = vmatpush1.bf16.msra.mxu0 %v807_v44 }
  0x31   :  { %581 = vmatprep.subr.bf16.mxu0 %v823_v1 }
  0x33   :  { %740 = vmatpush3.bf16.msra.mxu1 %v797_v41 }
  0x34   :  { %741 = vmatprep.subr.bf16.mxu1 %v801_v43  ;;  %582 = vmatpush1.bf16.msra.mxu0 %v813_v48 }
  0x37   :  { %742 = vmatpush3.bf16.msra.mxu1 %v803_v46  ;;  %590 = vmatmul.mubr.bf16.vlgmr.msra.gmra.mrb[0].mxu0 %v814_v51 }
  0x38   :  { %743 = vmatprep.subr.bf16.mxu1 %v805_v47  ;;  %694 = vmatprep.mubr.msk.bf16.mxu0 %vm452_vm0, %v820_v52 }
  0x3b   :  { %744 = vmatpush3.bf16.msra.mxu1 %v806_v49 }
  0x3c   :  { %745 = vmatprep.subr.bf16.mxu1 %v808_v50 }
  0x3f   :  { %746 = vmatpush3.bf16.msra.mxu1 %v809_v53  ;;  %598 = vmatmul.mubr.bf16.gmra.mrb[4].mxu0 %v822_v56 }
  0x42   :  { %541 = vmatmul.mubr.bf16.vlgmr.msra.gmra.mrb[8].mxu1 %v810_v54 }
  0x43   :  { %548 = vmatprep.mubr.bf16.mxu1 %v817_v55 }
  0x4a   :  { %549 = vmatmul.mubr.bf16.gmra.mrb[12].mxu1 %v819_v57 }
  0xf5   :  { %v719_v58 = vpop.f32.mrb[0].mxu1 }
  0xf6   :  { %v720_v59 = vpop.f32.mrb[1].mxu1 }
  0xf7   :  { %v721_v60 = vadd.f32 %v720_v59, %v719_v58  ;;  %v722_v61 = vpop.f32.mrb[2].mxu1 }
  0xf8   :  { %v723_v62 = vpop.f32.mrb[3].mxu1 }
  0xf9   :  { %v724_v63 = vadd.f32 %v723_v62, %v722_v61  ;;  %v494_v13 = vadd.f32 %v721_v60, %v635_v10 }
  0xfb   :  { %v497_v18 = vadd.f32 %v724_v63, %v635_v10 }
  0xfd   :  { %v725_v0 = vpop.f32.mrb[4].mxu1 }
  0xfe   :  { %v726_v1 = vpop.f32.mrb[5].mxu1 }
  0xff   :  { %v727_v2 = vadd.f32 %v726_v1, %v725_v0  ;;  %v728_v3 = vpop.f32.mrb[6].mxu1 }
 0x100   :  { %v729_v4 = vpop.f32.mrb[7].mxu1 }
 0x101   :  { %v730_v5 = vadd.f32 %v729_v4, %v728_v3  ;;  %v502_v30 = vadd.f32 %v727_v2, %v635_v10 }
 0x103   :  { %v505_v36 = vadd.f32 %v730_v5, %v635_v10 }
 0x10a   :  { %v591_v6 = vpop.f32.mrb[0].mxu0 }
 0x10b   :  { %v593_v7 = vpop.f32.mrb[1].mxu0 }
 0x10c   :  { %v594_v8 = vpop.f32.mrb[2].mxu0 }
 0x10d   :  { %v596_v9 = vpop.f32.mrb[3].mxu0 }
 0x112   :  { %v599_v17 = vpop.f32.mrb[4].mxu0 }
 0x113   :  { %v601_v21 = vpop.f32.mrb[5].mxu0 }
 0x114   :  { %v602_v22 = vpop.f32.mrb[6].mxu0 }
 0x115   :  { %v747_v11 = vpop.f32.mrb[8].mxu1  ;;  %v604_v25 = vpop.f32.mrb[7].mxu0 }
 0x116   :  { %v748_v12 = vpop.f32.mrb[9].mxu1 }
 0x117   :  { %v749_v14 = vadd.f32 %v748_v12, %v747_v11  ;;  %v750_v15 = vpop.f32.mrb[10].mxu1 }
 0x118   :  { %v751_v16 = vpop.f32.mrb[11].mxu1 }
 0x119   :  { %v543_v19 = vadd.f32 %v749_v14, %v494_v13  ;;  %v752_v20 = vadd.f32 %v751_v16, %v750_v15 }
 0x11b   :  { %v592_v23 = vadd.f32 %v591_v6, %v543_v19  ;;  %v546_v24 = vadd.f32 %v752_v20, %v497_v18 }
 0x11d   :  { %v606_v26 = vmax.f32 %v592_v23, 0.0  ;;  %v595_v27 = vadd.f32 %v594_v8, %v546_v24  ;;  %v753_v28 = vpop.f32.mrb[12].mxu1 }
 0x11e   :  { %v754_v29 = vpop.f32.mrb[13].mxu1 }
 0x11f   :  { %v699_v31 = vpack.c.bf16 %v606_v26, %v606_v26  ;;  %v607_v32 = vmax.f32 %v595_v27, 0.0  ;;  %v755_v33 = vadd.f32 %v754_v29, %v753_v28  ;;  %v756_v34 = vpop.f32.mrb[14].mxu1 }
 0x120   :  { %v757_v35 = vpop.f32.mrb[15].mxu1 }
 0x121   :  { %627 = vst.msk [vmem:[%s1052_s3] sm:$0xf] %vm626_vm1, %v699_v31  ;;  %v700_v37 = vpack.c.bf16 %v607_v32, %v607_v32  ;;  %v551_v38 = vadd.f32 %v755_v33, %v502_v30  ;;  %v758_v39 = vadd.f32 %v757_v35, %v756_v34 }
 0x123   :  { %628 = vst.msk [vmem:[%s1052_s3 + $0x4] sm:$0xf] %vm626_vm1, %v700_v37  ;;  %v600_v40 = vadd.f32 %v599_v17, %v551_v38  ;;  %v554_v41 = vadd.f32 %v758_v39, %v505_v36 }
 0x125   :  { %v608_v42 = vmax.f32 %v600_v40, 0.0  ;;  %v603_v43 = vadd.f32 %v602_v22, %v554_v41 }
 0x127   :  { %v701_v44 = vpack.c.bf16 %v608_v42, %v608_v42  ;;  %v609_v45 = vmax.f32 %v603_v43, 0.0 }
 0x129   :  { %629 = vst.msk [vmem:[%s1052_s3 + $0x8] sm:$0xf] %vm626_vm1, %v701_v44  ;;  %v702_v46 = vpack.c.bf16 %v609_v45, %v609_v45 }
 0x12b   :  { %630 = vst.msk [vmem:[%s1052_s3 + $0xc] sm:$0xf] %vm626_vm1, %v702_v46 }

// kernel: gednet_forward.12
= control target key start
LH: loop header
LB: loop body
LE: loop exit
PB: predicated region body
PF: predicated region fallthrough
CT: control target
= control target key end

     0   :  { %v717_v1 = vmov 0   ;;  %vm417_vm0 = vcmask 654336   ;;  %vm554_vm1 = vcmask 650240   ;;  %s913_s1 = inlined_call_operand.vmem [shape: bf16[720,80], index: 1, kind: input, shape index: {}]   ;;  %s914_s0 = inlined_call_operand.vmem [shape: bf16[16,720], index: 0, kind: input, shape index: {}]   ;;  %s915_s2 = inlined_call_operand.vmem [shape: f32[1,80], index: 2, kind: input, shape index: {}]   ;;  %s916_s3 = inlined_call_operand.vmem [shape: bf16[16,80], index: 3, kind: output, shape index: {}]  }
   0x1   :  { %v663_v0 = vld [vmem:[%s913_s1 + $0x40] sm:$0xff]   ;;  %503 = vmatprep.subr.bf16.mxu0 %v717_v1  ;;  %v665_v3 = vld [vmem:[%s913_s1 + $0x48] sm:$0xff]   ;;  %v667_v5 = vld [vmem:[%s913_s1 + $0x50] sm:$0xff]  }
   0x2   :  { %v664_v2 = vld [vmem:[%s913_s1] sm:$0xff]   ;;  %618 = vmatprep.subr.bf16.mxu1 %v663_v0  ;;  %v666_v4 = vld [vmem:[%s913_s1 + $0x8] sm:$0xff]   ;;  %v668_v6 = vld [vmem:[%s913_s1 + $0x10] sm:$0xff]  }
   0x3   :  { %619 = vmatpush3.bf16.msra.mxu1 %v664_v2  ;;  %v669_v7 = vld [vmem:[%s913_s1 + $0x58] sm:$0xff]   ;;  %v671_v8 = vld [vmem:[%s913_s1 + $0x100] sm:$0xff]   ;;  %v674_v10 = vld [vmem:[%s913_s1 + $0x108] sm:$0xff]  }
   0x4   :  { %620 = vmatprep.subr.bf16.mxu1 %v665_v3  ;;  %v670_v9 = vld [vmem:[%s913_s1 + $0x18] sm:$0xff]   ;;  %504 = vmatpush1.bf16.msra.mxu0 %v671_v8  ;;  %v672_v11 = vld [vmem:[%s913_s1 + $0x60] sm:$0xff]   ;;  %v677_v12 = vld [vmem:[%s913_s1 + $0x110] sm:$0xff]  }
   0x5   :  { %505 = vmatprep.subr.bf16.mxu0 %v717_v1  ;;  %v673_v13 = vld [vmem:[%s913_s1 + $0x20] sm:$0xff]   ;;  %v675_v14 = vld [vmem:[%s913_s1 + $0x68] sm:$0xff]   ;;  %v680_v15 = vld [vmem:[%s913_s1 + $0x118] sm:$0xff]  }
   0x6   :  { %v676_v16 = vld [vmem:[%s913_s1 + $0x28] sm:$0xff]   ;;  %v678_v17 = vld [vmem:[%s913_s1 + $0x70] sm:$0xff]   ;;  %v685_v18 = vld [vmem:[%s914_s0 + $0x4] ss:$24 sps:$4 sm:$0xff]  }
   0x7   :  { %621 = vmatpush3.bf16.msra.mxu1 %v666_v4  ;;  %v686_v19 = vld [vmem:[%s913_s1 + $0x120] sm:$0xff]   ;;  %v679_v20 = vld [vmem:[%s913_s1 + $0x30] sm:$0xff]   ;;  %v681_v21 = vld [vmem:[%s913_s1 + $0x78] sm:$0xff]   ;;  %453 = vmatprep.mubr.bf16.mxu1 %v685_v18 }
   0x8   :  { %622 = vmatprep.subr.bf16.mxu1 %v667_v5  ;;  %506 = vmatpush1.bf16.msra.mxu0 %v674_v10  ;;  %v689_v22 = vld [vmem:[%s913_s1 + $0x128] sm:$0xff]   ;;  %v682_v23 = vld [vmem:[%s913_s1 + $0x38] sm:$0xff]   ;;  %v687_v24 = vld [vmem:[%s913_s1 + $0xc0] sm:$0xff]  }
   0x9   :  { %507 = vmatprep.subr.bf16.mxu0 %v717_v1  ;;  %v683_v25 = vld [vmem:[%s914_s0] ss:$24 sps:$4 sm:$0xff]   ;;  %v692_v26 = vld [vmem:[%s913_s1 + $0x130] sm:$0xff]   ;;  %v690_v28 = vld [vmem:[%s913_s1 + $0xc8] sm:$0xff]  }
   0xa   :  { %v688_v27 = vld [vmem:[%s913_s1 + $0x80] sm:$0xff]   ;;  %v695_v29 = vld [vmem:[%s913_s1 + $0x138] sm:$0xff]   ;;  %v691_v30 = vld [vmem:[%s913_s1 + $0x88] sm:$0xff]  }
   0xb   :  { %623 = vmatpush3.bf16.msra.mxu1 %v668_v6  ;;  %v693_v31 = vld [vmem:[%s913_s1 + $0xd0] sm:$0xff]   ;;  %v698_v32 = vld [vmem:[%s913_s1 + $0x140] sm:$0xff]   ;;  %v696_v34 = vld [vmem:[%s913_s1 + $0xd8] sm:$0xff]  }
   0xc   :  { %624 = vmatprep.subr.bf16.mxu1 %v669_v7  ;;  %508 = vmatpush1.bf16.msra.mxu0 %v677_v12  ;;  %v694_v33 = vld [vmem:[%s913_s1 + $0x90] sm:$0xff]   ;;  %v701_v35 = vld [vmem:[%s913_s1 + $0x148] sm:$0xff]   ;;  %v697_v36 = vld [vmem:[%s913_s1 + $0x98] sm:$0xff]  }
   0xd   :  { %509 = vmatprep.subr.bf16.mxu0 %v717_v1  ;;  %v699_v37 = vld [vmem:[%s913_s1 + $0xe0] sm:$0xff]   ;;  %v704_v38 = vld [vmem:[%s913_s1 + $0x150] sm:$0xff]   ;;  %v702_v41 = vld [vmem:[%s913_s1 + $0xe8] sm:$0xff]  }
   0xe   :  { %v712_v39 = vld [vmem:[%s914_s0 + $0xc] ss:$24 sps:$4 sm:$0xff]   ;;  %v707_v43 = vld [vmem:[%s913_s1 + $0x158] sm:$0xff]   ;;  %v705_v45 = vld [vmem:[%s913_s1 + $0xf0] sm:$0xff]  }
   0xf   :  { %625 = vmatpush3.bf16.msra.mxu1 %v670_v9  ;;  %v700_v40 = vld [vmem:[%s913_s1 + $0xa0] sm:$0xff]   ;;  %v716_v42 = vld [vmem:[%s914_s0 + $0x14] ss:$24 sps:$4 sm:$0xff]   ;;  %v708_v48 = vld [vmem:[%s913_s1 + $0xf8] sm:$0xff]  }
  0x10   :  { %626 = vmatprep.subr.bf16.mxu1 %v672_v11  ;;  %510 = vmatpush1.bf16.msra.mxu0 %v680_v15  ;;  %v703_v44 = vld [vmem:[%s913_s1 + $0xa8] sm:$0xff]   ;;  %v713_v46 = vld [vmem:[%s913_s1 + $0x160] sm:$0xff]   ;;  %v706_v47 = vld [vmem:[%s913_s1 + $0xb0] sm:$0xff]  }
  0x11   :  { %511 = vmatprep.subr.bf16.mxu0 %v717_v1  ;;  %613 = vmatprep.mubr.msk.bf16.mxu0 %vm417_vm0, %v716_v42  ;;  %v714_v49 = vld [vmem:[%s914_s0 + $0x10] ss:$24 sps:$4 sm:$0xff]   ;;  %v709_v50 = vld [vmem:[%s913_s1 + $0xb8] sm:$0xff]   ;;  %v561_v62 = vld [vmem:[%s915_s2] ss:$0 sm:$0xff] }
  0x12   :  { %v710_v51 = vld [vmem:[%s914_s0 + $0x8] ss:$24 sps:$4 sm:$0xff]  }
  0x13   :  { %627 = vmatpush3.bf16.msra.mxu1 %v673_v13 }
  0x14   :  { %628 = vmatprep.subr.bf16.mxu1 %v675_v14  ;;  %512 = vmatpush1.bf16.msra.mxu0 %v686_v19 }
  0x15   :  { %513 = vmatprep.subr.bf16.mxu0 %v717_v1 }
  0x17   :  { %629 = vmatpush3.bf16.msra.mxu1 %v676_v16 }
  0x18   :  { %630 = vmatprep.subr.bf16.mxu1 %v678_v17  ;;  %514 = vmatpush1.bf16.msra.mxu0 %v689_v22 }
  0x19   :  { %515 = vmatprep.subr.bf16.mxu0 %v717_v1 }
  0x1b   :  { %631 = vmatpush3.bf16.msra.mxu1 %v679_v20 }
  0x1c   :  { %632 = vmatprep.subr.bf16.mxu1 %v681_v21  ;;  %516 = vmatpush1.bf16.msra.mxu0 %v692_v26 }
  0x1d   :  { %517 = vmatprep.subr.bf16.mxu0 %v717_v1 }
  0x1f   :  { %633 = vmatpush3.bf16.msra.mxu1 %v682_v23 }
  0x20   :  { %640 = vmatprep.subr.bf16.mxu1 %v687_v24  ;;  %518 = vmatpush1.bf16.msra.mxu0 %v695_v29 }
  0x21   :  { %519 = vmatprep.subr.bf16.mxu0 %v717_v1 }
  0x22   :  { %454 = vmatmul.mubr.bf16.vlgmr.msra.gmra.mrb[0].mxu1 %v683_v25 }
  0x23   :  { %641 = vmatpush3.bf16.msra.mxu1 %v688_v27  ;;  %494 = vmatprep.mubr.bf16.mxu1 %v712_v39 }
  0x24   :  { %642 = vmatprep.subr.bf16.mxu1 %v690_v28  ;;  %520 = vmatpush1.bf16.msra.mxu0 %v698_v32 }
  0x25   :  { %521 = vmatprep.subr.bf16.mxu0 %v717_v1 }
  0x27   :  { %643 = vmatpush3.bf16.msra.mxu1 %v691_v30 }
  0x28   :  { %644 = vmatprep.subr.bf16.mxu1 %v693_v31  ;;  %522 = vmatpush1.bf16.msra.mxu0 %v701_v35 }
  0x29   :  { %523 = vmatprep.subr.bf16.mxu0 %v717_v1 }
  0x2b   :  { %645 = vmatpush3.bf16.msra.mxu1 %v694_v33 }
  0x2c   :  { %646 = vmatprep.subr.bf16.mxu1 %v696_v34  ;;  %524 = vmatpush1.bf16.msra.mxu0 %v704_v38 }
  0x2d   :  { %525 = vmatprep.subr.bf16.mxu0 %v717_v1 }
  0x2f   :  { %647 = vmatpush3.bf16.msra.mxu1 %v697_v36 }
  0x30   :  { %648 = vmatprep.subr.bf16.mxu1 %v699_v37  ;;  %526 = vmatpush1.bf16.msra.mxu0 %v707_v43 }
  0x31   :  { %527 = vmatprep.subr.bf16.mxu0 %v717_v1 }
  0x33   :  { %649 = vmatpush3.bf16.msra.mxu1 %v700_v40 }
  0x34   :  { %650 = vmatprep.subr.bf16.mxu1 %v702_v41  ;;  %528 = vmatpush1.bf16.msra.mxu0 %v713_v46 }
  0x37   :  { %651 = vmatpush3.bf16.msra.mxu1 %v703_v44  ;;  %536 = vmatmul.mubr.bf16.vlgmr.msra.gmra.mrb[0].mxu0 %v714_v49 }
  0x38   :  { %652 = vmatprep.subr.bf16.mxu1 %v705_v45 }
  0x3b   :  { %653 = vmatpush3.bf16.msra.mxu1 %v706_v47 }
  0x3c   :  { %654 = vmatprep.subr.bf16.mxu1 %v708_v48 }
  0x3f   :  { %655 = vmatpush3.bf16.msra.mxu1 %v709_v50 }
  0x42   :  { %495 = vmatmul.mubr.bf16.vlgmr.msra.gmra.mrb[4].mxu1 %v710_v51 }
  0xf5   :  { %v634_v52 = vpop.f32.mrb[0].mxu1 }
  0xf6   :  { %v635_v53 = vpop.f32.mrb[1].mxu1 }
  0xf7   :  { %v636_v54 = vadd.f32 %v635_v53, %v634_v52  ;;  %v637_v55 = vpop.f32.mrb[2].mxu1 }
  0xf8   :  { %v638_v56 = vpop.f32.mrb[3].mxu1 }
  0xf9   :  { %v639_v57 = vadd.f32 %v638_v56, %v637_v55  ;;  %v456_v1 = vadd.f32 %v636_v54, %v561_v62 }
  0xfb   :  { %v459_v5 = vadd.f32 %v639_v57, %v561_v62 }
 0x10a   :  { %v537_v58 = vpop.f32.mrb[0].mxu0 }
 0x10b   :  { %v539_v59 = vpop.f32.mrb[1].mxu0 }
 0x10c   :  { %v540_v60 = vpop.f32.mrb[2].mxu0 }
 0x10d   :  { %v542_v61 = vpop.f32.mrb[3].mxu0 }
 0x115   :  { %v656_v63 = vpop.f32.mrb[4].mxu1 }
 0x116   :  { %v657_v0 = vpop.f32.mrb[5].mxu1 }
 0x117   :  { %v658_v2 = vadd.f32 %v657_v0, %v656_v63  ;;  %v659_v3 = vpop.f32.mrb[6].mxu1 }
 0x118   :  { %v660_v4 = vpop.f32.mrb[7].mxu1 }
 0x119   :  { %v497_v6 = vadd.f32 %v658_v2, %v456_v1  ;;  %v661_v7 = vadd.f32 %v660_v4, %v659_v3 }
 0x11b   :  { %v538_v8 = vadd.f32 %v537_v58, %v497_v6  ;;  %v500_v9 = vadd.f32 %v661_v7, %v459_v5 }
 0x11d   :  { %v544_v10 = vmax.f32 %v538_v8, 0.0  ;;  %v541_v11 = vadd.f32 %v540_v60, %v500_v9 }
 0x11f   :  { %v616_v12 = vpack.c.bf16 %v544_v10, %v544_v10  ;;  %v545_v13 = vmax.f32 %v541_v11, 0.0 }
 0x121   :  { %555 = vst.msk [vmem:[%s916_s3] sm:$0xf] %vm554_vm1, %v616_v12  ;;  %v617_v14 = vpack.c.bf16 %v545_v13, %v545_v13 }
 0x123   :  { %556 = vst.msk [vmem:[%s916_s3 + $0x4] sm:$0xf] %vm554_vm1, %v617_v14 }

// kernel: gednet_forward.15
= control target key start
LH: loop header
LB: loop body
LE: loop exit
PB: predicated region body
PF: predicated region fallthrough
CT: control target
= control target key end

     0   :  { %s2355_s18 = smov 0   ;;  %s2357_s19 = smov 0   ;;  %s2818_s0 = inlined_call_operand.vmem [shape: bf16[2,48,160], index: 0, kind: input, shape index: {}, may-alias: {0,1,2}]   ;;  %s2819_s1 = inlined_call_operand.vmem [shape: bf16[2,48,160], index: 1, kind: input, shape index: {}, may-alias: {0,1,2}]   ;;  %s2820_s2 = inlined_call_operand.vmem [shape: bf16[2,48,160], index: 2, kind: input, shape index: {}, may-alias: {0,1,2}]   ;;  %s2821_s3 = inlined_call_operand.vmem [shape: bf16[9,160,64], index: 3, kind: input, shape index: {}]   ;;  %s2822_s4 = inlined_call_operand.vmem [shape: f32[1,64], index: 4, kind: input, shape index: {}]   ;;  %s2823_s5 = inlined_call_operand.vmem [shape: bf16[2,16,64], index: 5, kind: output, shape index: {}]  }
   0x1   :  { %s2359_s20 = smov 0  }
   0x2 LB: > { %s27_s21 = sadd.s32 1, %s2317_s19  ;;  %p1890_p0 = scmp.ge.s32.totalorder %s2321_s20, 1  ;;  %s2321_s20 = sphi %s2359_s20, %s15_s20   ;;  %s2317_s19 = sphi %s2357_s19, %s2825_s19   ;;  %s2313_s18 = sphi %s2355_s18, %s2824_s18  }
   0x3   : > { %p29_p1 = scmp.ge.s32.totalorder %s27_s21, 2  ;;  %p253_p2 = scmp.lt.s32.totalorder %s2321_s20, 3 }
   0x5   : > { %s2827_s21 = smov (%p29_p1, %s27_s21), 0  ;;  %p254_p3 = pnand %p1890_p0, %p253_p2 }
   0x6   : > { %v2202_v0 = vld [vmem:[%s2821_s3] sm:$0xff] (!%p254_p3)   ;;  %v2323_v1 = vmov (!%p254_p3), 0   ;;  %p313_p4 = scmp.lt.s32.totalorder (!%p254_p3), %s2313_s18, 1  ;;  %v2203_v2 = vld [vmem:[%s2821_s3 + $0x8] sm:$0xff] (!%p254_p3)   ;;  %vm373_vm0 = vcmask (!%p254_p3), 261120   ;;  %v2205_v3 = vld [vmem:[%s2821_s3 + $0x50] sm:$0xff] (!%p254_p3)  }
   0x7   : > { %257 = sbr.rel (%p254_p3) target bundleno = 439 (0x1b7), region = 40  ;;  %495 = vmatprep.subr.bf16.mxu0 (!%p254_p3), %v2323_v1  ;;  %403 = vst [vmem:[#allocation2 + $0x30] sm:$0xff] (!%p254_p3), %v2323_v1  ;;  %656 = vmatprep.subr.bf16.mxu1 (!%p254_p3), %v2323_v1  ;;  %404 = vst.msk [vmem:[#allocation2 + $0x38] sm:$0xff] (!%p254_p3), %vm373_vm0, %v2323_v1  ;;  %v2207_v4 = vld [vmem:[%s2821_s3 + $0x58] sm:$0xff] (!%p254_p3)   ;;  %v2204_v5 = vld [vmem:[%s2821_s3 + $0x10] sm:$0xff] (!%p254_p3)   ;;  %vm732_vm2 = vcmask (!%p254_p3), 1046528  }
   0x8   : > { %496 = vmatpush1.bf16.msra.mxu0 (!%p254_p3), %v2202_v0  ;;  %657 = vmatpush1.bf16.msra.mxu1 (!%p254_p3), %v2205_v3  ;;  %v2209_v6 = vld [vmem:[%s2821_s3 + $0x60] sm:$0xff] (!%p254_p3)   ;;  %v2206_v7 = vld [vmem:[%s2821_s3 + $0x18] sm:$0xff] (!%p254_p3)   ;;  %v2211_v8 = vld [vmem:[%s2821_s3 + $0x68] sm:$0xff] (!%p254_p3)   ;;  %vm567_vm1 = vsmask.f32 (!%p254_p3), 7424  ;;  %vm405_vm3 = vcmask (!%p254_p3), 523264  }
   0x9   : > { %497 = vmatprep.subr.bf16.mxu0 (!%p254_p3), %v2323_v1  ;;  %658 = vmatprep.subr.bf16.mxu1 (!%p254_p3), %v2323_v1  ;;  %v2208_v9 = vld [vmem:[%s2821_s3 + $0x20] sm:$0xff] (!%p254_p3)   ;;  %v2213_v10 = vld [vmem:[%s2821_s3 + $0x70] sm:$0xff] (!%p254_p3)   ;;  %v2210_v14 = vld [vmem:[%s2821_s3 + $0x28] sm:$0xff] (!%p254_p3)   ;;  %vm1751_vm5 = vcmask (!%p254_p3), 519168  }
   0xa   : > { %v2215_v16 = vld [vmem:[%s2821_s3 + $0x78] sm:$0xff] (!%p254_p3)   ;;  %v2212_v17 = vld [vmem:[%s2821_s3 + $0x30] sm:$0xff] (!%p254_p3)   ;;  %v2217_v23 = vld [vmem:[%s2821_s3 + $0x80] sm:$0xff] (!%p254_p3)  }
   0xb   : > { %v2214_v21 = vld [vmem:[%s2821_s3 + $0x38] sm:$0xff] (!%p254_p3)   ;;  %v2221_v25 = vld [vmem:[%s2821_s3 + $0x88] sm:$0xff] (!%p254_p3)   ;;  %v2216_v30 = vld [vmem:[%s2821_s3 + $0x40] sm:$0xff] (!%p254_p3)  }
   0xc   : > { %498 = vmatpush1.bf16.msra.mxu0 (!%p254_p3), %v2203_v2  ;;  %659 = vmatpush1.bf16.msra.mxu1 (!%p254_p3), %v2207_v4  ;;  %v2223_v31 = vld [vmem:[%s2821_s3 + $0x90] sm:$0xff] (!%p254_p3)   ;;  %v2218_v38 = vld [vmem:[%s2821_s3 + $0x48] sm:$0xff] (!%p254_p3)   ;;  %v2225_v41 = vld [vmem:[%s2821_s3 + $0x98] sm:$0xff] (!%p254_p3)  }
   0xd   : > { %499 = vmatprep.subr.bf16.mxu0 (!%p254_p3), %v2323_v1  ;;  %660 = vmatprep.subr.bf16.mxu1 (!%p254_p3), %v2323_v1  ;;  %v2222_v45 = vld [vmem:[%s2821_s3 + $0xa0] sm:$0xff] (!%p254_p3)   ;;  %v2229_v49 = vld [vmem:[%s2821_s3 + $0xf0] sm:$0xff] (!%p254_p3)   ;;  %v2224_v52 = vld [vmem:[%s2821_s3 + $0xa8] sm:$0xff] (!%p254_p3)  }
   0xe   : > { %s2829_s18 = smov (!%p313_p4, %s2313_s18), 1  ;;  %v2231_v54 = vld [vmem:[%s2821_s3 + $0xf8] sm:$0xff]   ;;  %v2228_v55 = vld [vmem:[%s2821_s3 + $0xb0] sm:$0xff]   ;;  %v2233_v57 = vld [vmem:[%s2821_s3 + $0x100] sm:$0xff]  }
   0xf   : > { %s2406_s11 = smul.u32 48, %s2829_s18  ;;  %v2230_v58 = vld [vmem:[%s2821_s3 + $0xb8] sm:$0xff]   ;;  %v2235_v59 = vld [vmem:[%s2821_s3 + $0x108] sm:$0xff]   ;;  %v2232_v60 = vld [vmem:[%s2821_s3 + $0xc0] sm:$0xff]   ;;  %s2170_s29 = sshll.u32 %s2829_s18, 3 }
  0x10   : > { %500 = vmatpush1.bf16.msra.mxu0 %v2204_v5  ;;  %661 = vmatpush1.bf16.msra.mxu1 %v2209_v6  ;;  %v2237_v61 = vld [vmem:[%s2821_s3 + $0x110] sm:$0xff]   ;;  %v2234_v62 = vld [vmem:[%s2821_s3 + $0xc8] sm:$0xff]   ;;  %v2239_v0 = vld [vmem:[%s2821_s3 + $0x118] sm:$0xff]   ;;  %s357_s7 = scalar_lea.vmem %s2823_s5, %s2170_s29 }
  0x11   : > { %501 = vmatprep.subr.bf16.mxu0 %v2323_v1  ;;  %662 = vmatprep.subr.bf16.mxu1 %v2323_v1  ;;  %s321_s22 = scalar_lea.vmem %s2818_s0, %s2406_s11  ;;  %s2167_s25 = sadd.s32 16, %s2406_s11  ;;  %v2236_v63 = vld [vmem:[%s2821_s3 + $0xd0] sm:$0xff]   ;;  %v2241_v6 = vld [vmem:[%s2821_s3 + $0x120] sm:$0xff]  }
  0x12   : > { %v360_v11 = vld [vmem:[%s321_s22] sm:$0xff]  ;;  %v361_v12 = vld [vmem:[%s321_s22 + $0x8] sm:$0xff]  ;;  %s333_s30 = scalar_lea.vmem %s2819_s1, %s2167_s25  ;;  %s2169_s27 = sadd.s32 32, %s2406_s11 }
  0x13   : > { %v2219_v13 = vld [vmem:[%s321_s22 + $0x4] ss:$8 sps:$4 sm:$0xff]   ;;  %v1896_v15 = vcombine.low %v360_v11, %v361_v12  ;;  %s346_s9 = scalar_lea.vmem %s2820_s2, %s2169_s27 }
  0x14   : > { %502 = vmatpush1.bf16.msra.mxu0 %v2206_v7  ;;  %663 = vmatpush1.bf16.msra.mxu1 %v2211_v8  ;;  %374 = vst.msk [vmem:[#allocation2 + $0x8] sm:$0xff] %vm373_vm0, %v2219_v13  ;;  %v375_v18 = vld [vmem:[%s333_s30] sm:$0xff]  ;;  %v376_v19 = vld [vmem:[%s333_s30 + $0x8] sm:$0xff]  ;;  %v2238_v8 = vld [vmem:[%s2821_s3 + $0xd8] sm:$0xff]  }
  0x15   : > { %503 = vmatprep.subr.bf16.mxu0 %v2323_v1  ;;  %664 = vmatprep.subr.bf16.mxu1 %v2323_v1  ;;  %372 = vst [vmem:[#allocation2] sm:$0xff] %v1896_v15  ;;  %v2226_v20 = vld [vmem:[%s333_s30 + $0x4] ss:$8 sps:$4 sm:$0xff]   ;;  %v2445_v22 = vcombine.low %v375_v18, %v376_v19  ;;  %v571_v27 = vshll.u32 %v1896_v15, 16  ;;  %v569_v33 = vshrl.u32 %v1896_v15, 16 }
  0x16   : > { %388 = vst.msk [vmem:[#allocation2 + $0x18] sm:$0xff] %vm373_vm0, %v2226_v20  ;;  %v389_v2 = vld [vmem:[%s346_s9] sm:$0xff]  ;;  %v390_v3 = vld [vmem:[%s346_s9 + $0x8] sm:$0xff] }
  0x17   : > { %387 = vst [vmem:[#allocation2 + $0x10] sm:$0xff] %v2445_v22  ;;  %v573_v37 = vrot.slane %v571_v27, 1  ;;  %v2263_v4 = vld [vmem:[%s346_s9 + $0x4] ss:$8 sps:$4 sm:$0xff]   ;;  %v2540_v5 = vcombine.low %v389_v2, %v390_v3  ;;  %v1011_v7 = vshll.u32 %v2445_v22, 16  ;;  %v1009_v11 = vshrl.u32 %v2445_v22, 16 }
  0x18   : > { %504 = vmatpush1.bf16.msra.mxu0 %v2208_v9  ;;  %665 = vmatpush1.bf16.msra.mxu1 %v2213_v10  ;;  %402 = vst.msk [vmem:[#allocation2 + $0x28] sm:$0xff] %vm373_vm0, %v2263_v4  ;;  %v2243_v12 = vld [vmem:[%s2821_s3 + $0x128] sm:$0xff]   ;;  %v2269_v4 = vld [vmem:[%s2821_s3 + $0x1d8] sm:$0xff]  }
  0x19   : > { %505 = vmatprep.subr.bf16.mxu0 %v2323_v1  ;;  %666 = vmatprep.subr.bf16.mxu1 %v2323_v1  ;;  %v574_v43 = vor.u32 %v573_v37, %v569_v33  ;;  %401 = vst [vmem:[#allocation2 + $0x20] sm:$0xff] %v2540_v5  ;;  %v2242_v18 = vld [vmem:[%s2821_s3 + $0xe8] sm:$0xff]  }
  0x1b   : > { %v411_v24 = vld [vmem:[#allocation2 + $0x8] sm:$0xff] }
  0x1c   : > { %506 = vmatpush1.bf16.msra.mxu0 %v2210_v14  ;;  %667 = vmatpush1.bf16.msra.mxu1 %v2215_v16  ;;  %v583_v26 = vshll.u32 %v411_v24, 16  ;;  %v581_v28 = vshrl.u32 %v411_v24, 16  ;;  %v704_v46 = vld [vmem:[#allocation2 + $0x8] sm:$0xfe]  ;;  %v703_v9 = vld [vmem:[#allocation2] sm:$0xfe] }
  0x1d   : > { %507 = vmatprep.subr.bf16.mxu0 %v2323_v1  ;;  %668 = vmatprep.subr.bf16.mxu1 %v2323_v1  ;;  %v545_v32 = vld [vmem:[#allocation2 + $0x18] sm:$0x1]  ;;  %v736_v50 = vrot.slane %v704_v46, 1  ;;  %v1013_v14 = vrot.slane %v1011_v7, 1  ;;  %v733_v16 = vrot.slane %v703_v9, 1 }
  0x1e   : > { %1912 = vmatprep.mubr.msk.bf16.mxu0 %vm373_vm0, %v411_v24  ;;  %v585_v29 = vrot.slane %v583_v26, 1  ;;  %v588_v35 = vshll.u32 %v545_v32, 16  ;;  %v544_v36 = vld [vmem:[#allocation2 + $0x10] sm:$0x1]  ;;  %v706_v47 = vld [vmem:[#allocation2 + $0x18] sm:$0x1] }
  0x1f   : > { %v576_v39 = vshll.u32 %v544_v36, 16  ;;  %v737_v51 = vrot.slane %v706_v47, 1  ;;  %v2499_v56 = vld [vmem:[#allocation2 + $0x18] sm:$0xff]  ;;  %v705_v13 = vld [vmem:[#allocation2 + $0x10] sm:$0x1]  ;;  %v1014_v26 = vor.u32 %v1013_v14, %v1009_v11  ;;  %v2244_v32 = vld [vmem:[%s2821_s3 + $0x140] sm:$0xff]  }
  0x20   : > { %508 = vmatpush1.bf16.msra.mxu0 %v2212_v17  ;;  %669 = vmatpush1.bf16.msra.mxu1 %v2217_v23  ;;  %v586_v34 = vor.u32 %v585_v29, %v581_v28  ;;  %v590_v40 = vrot.slane %v588_v35, 1  ;;  %v1023_v10 = vshll.u32 %v2499_v56, 16  ;;  %v986_v17 = vld [vmem:[#allocation2 + $0x28] sm:$0x1]  ;;  %v734_v19 = vrot.slane %v705_v13, 1  ;;  %v2250_v46 = vld [vmem:[%s2821_s3 + $0x158] sm:$0xff]  }
  0x21   : > { %509 = vmatprep.subr.bf16.mxu0 %v2323_v1  ;;  %670 = vmatprep.subr.bf16.mxu1 %v2323_v1  ;;  %v578_v44 = vrot.slane %v576_v39, 1  ;;  %v738_v53 = vsel %vm732_vm2, %v736_v50, %v737_v51  ;;  %v1021_v20 = vshrl.u32 %v2499_v56, 16  ;;  %v1028_v23 = vshll.u32 %v986_v17, 16  ;;  %v985_v24 = vld [vmem:[#allocation2 + $0x20] sm:$0x1]  ;;  %v2254_v50 = vld [vmem:[%s2821_s3 + $0x168] sm:$0xff]  }
  0x22   : > { %v591_v42 = vsel %vm567_vm1, %v586_v34, %v590_v40  ;;  %v1016_v27 = vshll.u32 %v985_v24, 16  ;;  %v1144_v28 = vld [vmem:[#allocation2 + $0x18] sm:$0xfe]  ;;  %v1146_v29 = vld [vmem:[#allocation2 + $0x28] sm:$0x1]  ;;  %v735_v37 = vsel %vm732_vm2, %v733_v16, %v734_v19  ;;  %v2324_v40 = vmov 0.0  }
  0x23   : > { %1943 = vmatprep.mubr.msk.bf16.mxu1 %vm373_vm0, %v591_v42  ;;  %v579_v48 = vsel %vm567_vm1, %v574_v43, %v578_v44  ;;  %v2247_v34 = vld [vmem:[%s2821_s3 + $0x138] sm:$0xff]   ;;  %v1175_v36 = vrot.slane %v1144_v28, 1  ;;  %406 = vst.msk [vmem:[#allocation3] sm:$0xff] %vm405_vm3, %v2324_v40  ;;  %407 = vst.msk [vmem:[#allocation3 + $0x8] sm:$0xff] %vm405_vm3, %v2324_v40  ;;  %v2246_v42 = vld [vmem:[%s2821_s3 + $0x148] sm:$0xff]  }
  0x24   : > { %510 = vmatpush1.bf16.msra.mxu0 %v2214_v21  ;;  %671 = vmatpush1.bf16.msra.mxu1 %v2221_v25  ;;  %v1025_v21 = vrot.slane %v1023_v10, 1  ;;  %v2245_v25 = vld [vmem:[%s2821_s3 + $0x130] sm:$0xff]   ;;  %v2251_v44 = vld [vmem:[%s2821_s3 + $0x198] sm:$0xff]   ;;  %v2252_v47 = vld [vmem:[%s2821_s3 + $0x160] sm:$0xff]  }
  0x25   : > { %511 = vmatprep.subr.bf16.mxu0 %v2323_v1  ;;  %672 = vmatprep.subr.bf16.mxu1 %v2323_v1  ;;  %v2259_v51 = vld [vmem:[%s2821_s3 + $0x1b8] sm:$0xff]   ;;  %v2268_v13 = vld [vmem:[%s2821_s3 + $0x1e8] sm:$0xff]   ;;  %v2270_v16 = vld [vmem:[%s2821_s3 + $0x1f0] sm:$0xff]  }
  0x26   : > { %v1026_v33 = vor.u32 %v1025_v21, %v1021_v20  ;;  %v2275_v17 = vld [vmem:[%s2821_s3 + $0x240] sm:$0xff]   ;;  %v2277_v19 = vld [vmem:[%s2821_s3 + $0x248] sm:$0xff]   ;;  %v2279_v21 = vld [vmem:[%s2821_s3 + $0x250] sm:$0xff]  }
  0x27   : > { %v2274_v20 = vld [vmem:[%s2821_s3 + $0x200] sm:$0xff]   ;;  %v2281_v24 = vld [vmem:[%s2821_s3 + $0x258] sm:$0xff]   ;;  %v2285_v28 = vld [vmem:[%s2821_s3 + $0x268] sm:$0xff]  }
  0x28   : > { %512 = vmatpush1.bf16.msra.mxu0 %v2216_v30  ;;  %673 = vmatpush1.bf16.msra.mxu1 %v2223_v31  ;;  %v1030_v30 = vrot.slane %v1028_v23, 1  ;;  %v1018_v31 = vrot.slane %v1016_v27, 1  ;;  %v2276_v23 = vld [vmem:[%s2821_s3 + $0x208] sm:$0xff]   ;;  %v2280_v27 = vld [vmem:[%s2821_s3 + $0x218] sm:$0xff]  }
  0x29   : > { %513 = vmatprep.subr.bf16.mxu0 %v2323_v1  ;;  %674 = vmatprep.subr.bf16.mxu1 %v2323_v1 }
  0x2a   : > { %v2579_v35 = vsel %vm567_vm1, %v1014_v26, %v1018_v31  ;;  %v1031_v39 = vsel %vm567_vm1, %v1026_v33, %v1030_v30  ;;  %v2283_v26 = vld [vmem:[%s2821_s3 + $0x260] sm:$0xff]   ;;  %v2298_v31 = vld [vmem:[#allocation2 + $0x30] sm:$0xff]  ;;  %v1583_v33 = vld [vmem:[#allocation2 + $0x28] sm:$0xfe] }
  0x2b   : > { %v2282_v30 = vld [vmem:[%s2821_s3 + $0x220] sm:$0xff]  }
  0x2c   : > { %514 = vmatpush1.bf16.msra.mxu0 %v2218_v38  ;;  %675 = vmatpush1.bf16.msra.mxu1 %v2225_v41  ;;  %v1176_v38 = vrot.slane %v1146_v29, 1  ;;  %v2249_v41 = vld [vmem:[%s2821_s3 + $0x190] sm:$0xff]   ;;  %v1450_v29 = vshll.u32 %v2540_v5, 16 }
  0x2d   : > { %803 = vmatprep.subr.bf16.mxu0 %v2323_v1  ;;  %936 = vmatprep.subr.bf16.mxu1 %v2323_v1 }
  0x2e   : > { %v1177_v43 = vsel %vm732_vm2, %v1175_v36, %v1176_v38  ;;  %v1452_v36 = vrot.slane %v1450_v29, 1  ;;  %v2284_v38 = vld [vmem:[%s2821_s3 + $0x228] sm:$0xff]  }
  0x2f   : > { %528 = vmatmul.mubr.bf16.vlgmr.msra.gmra.mrb[0].mxu0 %v1896_v15  ;;  %689 = vmatmul.mubr.bf16.vlgmr.msra.gmra.mrb[0].mxu1 %v579_v48  ;;  %v2240_v15 = vld [vmem:[%s2821_s3 + $0xe0] sm:$0xff]   ;;  %v2255_v48 = vld [vmem:[%s2821_s3 + $0x1a8] sm:$0xff]  }
  0x30   : > { %804 = vmatpush1.bf16.msra.mxu0 %v2222_v45  ;;  %1974 = vmatprep.mubr.msk.bf16.mxu0 %vm373_vm0, %v738_v53  ;;  %v2248_v45 = vld [vmem:[%s2821_s3 + $0x150] sm:$0xff]   ;;  %v2261_v53 = vld [vmem:[%s2821_s3 + $0x1c0] sm:$0xff]  }
  0x31   : > { %805 = vmatprep.subr.bf16.mxu0 %v2323_v1  ;;  %937 = vmatpush1.bf16.msra.mxu1 %v2229_v49  ;;  %v2257_v49 = vld [vmem:[%s2821_s3 + $0x1b0] sm:$0xff]  }
  0x32   : > { %938 = vmatprep.subr.bf16.mxu1 %v2323_v1  ;;  %2005 = vmatprep.mubr.msk.bf16.mxu1 %vm373_vm0, %v2499_v56  ;;  %v1290_v56 = vld [vmem:[#allocation2 + $0x28] sm:$0xff] }
  0x34   : > { %806 = vmatpush1.bf16.msra.mxu0 %v2224_v52  ;;  %v2256_v52 = vld [vmem:[%s2821_s3 + $0x170] sm:$0xff]  }
  0x35   : > { %807 = vmatprep.subr.bf16.mxu0 %v2323_v1  ;;  %939 = vmatpush1.bf16.msra.mxu1 %v2231_v54  ;;  %v2258_v54 = vld [vmem:[%s2821_s3 + $0x178] sm:$0xff]  }
  0x36   : > { %940 = vmatprep.subr.bf16.mxu1 %v2323_v1 }
  0x38   : > { %808 = vmatpush1.bf16.msra.mxu0 %v2228_v55  ;;  %v2265_v55 = vld [vmem:[%s2821_s3 + $0x1c8] sm:$0xff]  }
  0x39   : > { %809 = vmatprep.subr.bf16.mxu0 %v2323_v1  ;;  %941 = vmatpush1.bf16.msra.mxu1 %v2233_v57  ;;  %v2260_v57 = vld [vmem:[%s2821_s3 + $0x180] sm:$0xff]  }
  0x3a   : > { %942 = vmatprep.subr.bf16.mxu1 %v2323_v1 }
  0x3c   : > { %810 = vmatpush1.bf16.msra.mxu0 %v2230_v58  ;;  %v1462_v58 = vshll.u32 %v1290_v56, 16 }
  0x3d   : > { %811 = vmatprep.subr.bf16.mxu0 %v2323_v1  ;;  %943 = vmatpush1.bf16.msra.mxu1 %v2235_v59  ;;  %v1425_v59 = vld [vmem:[#allocation2 + $0x38] sm:$0x1] }
  0x3e   : > { %944 = vmatprep.subr.bf16.mxu1 %v2323_v1  ;;  %v1464_v2 = vrot.slane %v1462_v58, 1  ;;  %v1467_v3 = vshll.u32 %v1425_v59, 16  ;;  %v408_v59 = vld [vmem:[#allocation3] sm:$0xff] }
  0x40   : > { %812 = vmatpush1.bf16.msra.mxu0 %v2232_v60  ;;  %v2267_v60 = vld [vmem:[%s2821_s3 + $0x1d0] sm:$0xff]   ;;  %v1469_v10 = vrot.slane %v1467_v3, 1 }
  0x41   : > { %813 = vmatprep.subr.bf16.mxu0 %v2323_v1  ;;  %945 = vmatpush1.bf16.msra.mxu1 %v2237_v61  ;;  %v1143_v61 = vld [vmem:[#allocation2 + $0x10] sm:$0xfe] }
  0x42   : > { %946 = vmatprep.subr.bf16.mxu1 %v2323_v1 }
  0x44   : > { %814 = vmatpush1.bf16.msra.mxu0 %v2234_v62  ;;  %v2262_v62 = vld [vmem:[%s2821_s3 + $0x188] sm:$0xff]  }
  0x45   : > { %815 = vmatprep.subr.bf16.mxu0 %v2323_v1  ;;  %947 = vmatpush1.bf16.msra.mxu1 %v2239_v0  ;;  %v1460_v0 = vshrl.u32 %v1290_v56, 16 }
  0x46   : > { %948 = vmatprep.subr.bf16.mxu1 %v2323_v1 }
  0x47   : > { %v1465_v9 = vor.u32 %v1464_v2, %v1460_v0 }
  0x48   : > { %816 = vmatpush1.bf16.msra.mxu0 %v2236_v63  ;;  %v1145_v63 = vld [vmem:[#allocation2 + $0x20] sm:$0x1] }
  0x49   : > { %817 = vmatprep.subr.bf16.mxu0 %v2323_v1  ;;  %949 = vmatpush1.bf16.msra.mxu1 %v2241_v6  ;;  %v1172_v6 = vrot.slane %v1143_v61, 1  ;;  %v1173_v7 = vrot.slane %v1145_v63, 1  ;;  %v1470_v14 = vsel %vm567_vm1, %v1465_v9, %v1469_v10  ;;  %v409_v61 = vld [vmem:[#allocation3 + $0x8] sm:$0xff] }
  0x4a   : > { %950 = vmatprep.subr.bf16.mxu1 %v2323_v1 }
  0x4b   : > { %v1174_v11 = vsel %vm732_vm2, %v1172_v6, %v1173_v7 }
  0x4c   : > { %818 = vmatpush1.bf16.msra.mxu0 %v2238_v8  ;;  %v2266_v8 = vld [vmem:[%s2821_s3 + $0x1e0] sm:$0xff]  }
  0x4d   : > { %819 = vmatprep.subr.bf16.mxu0 %v2323_v1  ;;  %951 = vmatpush1.bf16.msra.mxu1 %v2243_v12  ;;  %v2271_v12 = vld [vmem:[%s2821_s3 + $0x230] sm:$0xff]  }
  0x4e   : > { %952 = vmatprep.subr.bf16.mxu1 %v2323_v1 }
  0x50   : > { %820 = vmatpush1.bf16.msra.mxu0 %v2240_v15  ;;  %v2273_v15 = vld [vmem:[%s2821_s3 + $0x238] sm:$0xff]  }
  0x51   : > { %821 = vmatprep.subr.bf16.mxu0 %v2323_v1  ;;  %953 = vmatpush1.bf16.msra.mxu1 %v2245_v25  ;;  %v2278_v25 = vld [vmem:[%s2821_s3 + $0x210] sm:$0xff]  }
  0x52   : > { %954 = vmatprep.subr.bf16.mxu1 %v2323_v1 }
  0x54   : > { %822 = vmatpush1.bf16.msra.mxu0 %v2242_v18  ;;  %v2272_v18 = vld [vmem:[%s2821_s3 + $0x1f8] sm:$0xff]  }
  0x55   : > { %1096 = vmatprep.subr.bf16.mxu0 %v2323_v1  ;;  %955 = vmatpush1.bf16.msra.mxu1 %v2247_v34  ;;  %v1585_v34 = vld [vmem:[#allocation2 + $0x38] sm:$0x1] }
  0x56   : > { %1242 = vmatprep.subr.bf16.mxu1 %v2323_v1  ;;  %v1615_v40 = vrot.slane %v1585_v34, 1 }
  0x57   : > { %836 = vmatmul.mubr.bf16.vlgmr.msra.gmra.mrb[4].mxu0 %v735_v37 }
  0x58   : > { %1097 = vmatpush1.bf16.msra.mxu0 %v2244_v32  ;;  %2036 = vmatprep.mubr.msk.bf16.mxu0 %vm373_vm0, %v1031_v39  ;;  %v1424_v32 = vld [vmem:[#allocation2 + $0x30] sm:$0x1]  ;;  %v1614_v39 = vrot.slane %v1583_v33, 1 }
  0x59   : > { %1098 = vmatprep.subr.bf16.mxu0 %v2323_v1  ;;  %969 = vmatmul.mubr.bf16.vlgmr.msra.gmra.mrb[4].mxu1 %v2445_v22  ;;  %v2253_v22 = vld [vmem:[%s2821_s3 + $0x1a0] sm:$0xff]   ;;  %v1455_v37 = vshll.u32 %v1424_v32, 16 }
  0x5a   : > { %1243 = vmatpush1.bf16.msra.mxu1 %v2249_v41  ;;  %2067 = vmatprep.mubr.msk.bf16.mxu1 %vm373_vm0, %v1177_v43  ;;  %v2289_v41 = vld [vmem:[%s2821_s3 + $0x278] sm:$0xff]  }
  0x5b   : > { %1244 = vmatprep.subr.bf16.mxu1 %v2323_v1  ;;  %v1457_v43 = vrot.slane %v1455_v37, 1 }
  0x5c   : > { %1099 = vmatpush1.bf16.msra.mxu0 %v2246_v42 }
  0x5d   : > { %1100 = vmatprep.subr.bf16.mxu0 %v2323_v1 }
  0x5e   : > { %1245 = vmatpush1.bf16.msra.mxu1 %v2251_v44  ;;  %v2286_v44 = vld [vmem:[%s2821_s3 + $0x280] sm:$0xff]  }
  0x5f   : > { %1246 = vmatprep.subr.bf16.mxu1 %v2323_v1 }
  0x60   : > { %1101 = vmatpush1.bf16.msra.mxu0 %v2248_v45  ;;  %v1616_v45 = vsel %vm732_vm2, %v1614_v39, %v1615_v40 }
  0x61   : > { %1102 = vmatprep.subr.bf16.mxu0 %v2323_v1 }
  0x62   : > { %1247 = vmatpush1.bf16.msra.mxu1 %v2253_v22 }
  0x63   : > { %1248 = vmatprep.subr.bf16.mxu1 %v2323_v1 }
  0x64   : > { %1103 = vmatpush1.bf16.msra.mxu0 %v2250_v46  ;;  %v2288_v46 = vld [vmem:[%s2821_s3 + $0x288] sm:$0xff]  }
  0x65   : > { %1104 = vmatprep.subr.bf16.mxu0 %v2323_v1 }
  0x66   : > { %1249 = vmatpush1.bf16.msra.mxu1 %v2255_v48  ;;  %v2292_v48 = vld [vmem:[%s2821_s3 + $0x2a0] sm:$0xff]  }
  0x67   : > { %1250 = vmatprep.subr.bf16.mxu1 %v2323_v1 }
  0x68   : > { %1105 = vmatpush1.bf16.msra.mxu0 %v2252_v47  ;;  %v2290_v47 = vld [vmem:[%s2821_s3 + $0x290] sm:$0xff]  }
  0x69   : > { %1106 = vmatprep.subr.bf16.mxu0 %v2323_v1 }
  0x6a   : > { %1251 = vmatpush1.bf16.msra.mxu1 %v2257_v49  ;;  %v2293_v49 = vld [vmem:[%s2821_s3 + $0x2a8] sm:$0xff]  }
  0x6b   : > { %1252 = vmatprep.subr.bf16.mxu1 %v2323_v1 }
  0x6c   : > { %1107 = vmatpush1.bf16.msra.mxu0 %v2254_v50  ;;  %v2294_v50 = vld [vmem:[%s2821_s3 + $0x2b0] sm:$0xff]  }
  0x6d   : > { %1108 = vmatprep.subr.bf16.mxu0 %v2323_v1 }
  0x6e   : > { %1253 = vmatpush1.bf16.msra.mxu1 %v2259_v51  ;;  %v2295_v51 = vld [vmem:[%s2821_s3 + $0x2b8] sm:$0xff]  }
  0x6f   : > { %1254 = vmatprep.subr.bf16.mxu1 %v2323_v1 }
  0x70   : > { %1109 = vmatpush1.bf16.msra.mxu0 %v2256_v52  ;;  %v2296_v52 = vld [vmem:[%s2821_s3 + $0x2c0] sm:$0xff]  }
  0x71   : > { %1110 = vmatprep.subr.bf16.mxu0 %v2323_v1 }
  0x72   : > { %1255 = vmatpush1.bf16.msra.mxu1 %v2261_v53  ;;  %v1582_v53 = vld [vmem:[#allocation2 + $0x20] sm:$0xfe] }
  0x73   : > { %1256 = vmatprep.subr.bf16.mxu1 %v2323_v1 }
  0x74   : > { %1111 = vmatpush1.bf16.msra.mxu0 %v2258_v54  ;;  %v1584_v54 = vld [vmem:[#allocation2 + $0x30] sm:$0x1] }
  0x75   : > { %1112 = vmatprep.subr.bf16.mxu0 %v2323_v1 }
  0x76   : > { %1257 = vmatpush1.bf16.msra.mxu1 %v2265_v55  ;;  %v2297_v55 = vld [vmem:[%s2821_s3 + $0x2c8] sm:$0xff]  }
  0x77   : > { %1258 = vmatprep.subr.bf16.mxu1 %v2323_v1 }
  0x78   : > { %1113 = vmatpush1.bf16.msra.mxu0 %v2260_v57  ;;  %v1612_v57 = vrot.slane %v1584_v54, 1 }
  0x79   : > { %1114 = vmatprep.subr.bf16.mxu0 %v2323_v1 }
  0x7a   : > { %1259 = vmatpush1.bf16.msra.mxu1 %v2267_v60 }
  0x7b   : > { %1260 = vmatprep.subr.bf16.mxu1 %v2323_v1 }
  0x7c   : > { %1115 = vmatpush1.bf16.msra.mxu0 %v2262_v62 }
  0x7d   : > { %1375 = vmatprep.subr.bf16.mxu0 %v2323_v1 }
  0x7e   : > { %1261 = vmatpush1.bf16.msra.mxu1 %v2269_v4 }
  0x7f   : > { %1129 = vmatmul.mubr.bf16.vlgmr.msra.gmra.mrb[8].mxu0 %v2579_v35  ;;  %1535 = vmatprep.subr.bf16.mxu1 %v2323_v1  ;;  %v1448_v35 = vshrl.u32 %v2540_v5, 16 }
  0x80   : > { %1376 = vmatpush1.bf16.msra.mxu0 %v2266_v8  ;;  %2098 = vmatprep.mubr.msk.bf16.mxu0 %vm373_vm0, %v1290_v56  ;;  %v1611_v56 = vrot.slane %v1582_v53, 1 }
  0x81   : > { %1377 = vmatprep.subr.bf16.mxu0 %v2323_v1  ;;  %1275 = vmatmul.mubr.bf16.vlgmr.msra.gmra.mrb[8].mxu1 %v1174_v11  ;;  %v1453_v42 = vor.u32 %v1452_v36, %v1448_v35 }
  0x82   : > { %1536 = vmatpush1.bf16.msra.mxu1 %v2271_v12  ;;  %2129 = vmatprep.mubr.msk.bf16.mxu1 %vm373_vm0, %v1470_v14  ;;  %v1613_v58 = vsel %vm732_vm2, %v1611_v56, %v1612_v57 }
  0x83   : > { %1537 = vmatprep.subr.bf16.mxu1 %v2323_v1  ;;  %v1458_v22 = vsel %vm567_vm1, %v1453_v42, %v1457_v43 }
  0x84   : > { %1378 = vmatpush1.bf16.msra.mxu0 %v2268_v13 }
  0x85   : > { %1379 = vmatprep.subr.bf16.mxu0 %v2323_v1 }
  0x86   : > { %1538 = vmatpush1.bf16.msra.mxu1 %v2273_v15 }
  0x87   : > { %1539 = vmatprep.subr.bf16.mxu1 %v2323_v1 }
  0x88   : > { %1380 = vmatpush1.bf16.msra.mxu0 %v2270_v16 }
  0x89   : > { %1381 = vmatprep.subr.bf16.mxu0 %v2323_v1 }
  0x8a   : > { %1540 = vmatpush1.bf16.msra.mxu1 %v2275_v17 }
  0x8b   : > { %1541 = vmatprep.subr.bf16.mxu1 %v2323_v1 }
  0x8c   : > { %1382 = vmatpush1.bf16.msra.mxu0 %v2272_v18 }
  0x8d   : > { %1383 = vmatprep.subr.bf16.mxu0 %v2323_v1 }
  0x8e   : > { %1542 = vmatpush1.bf16.msra.mxu1 %v2277_v19 }
  0x8f   : > { %1543 = vmatprep.subr.bf16.mxu1 %v2323_v1 }
  0x90   : > { %1384 = vmatpush1.bf16.msra.mxu0 %v2274_v20 }
  0x91   : > { %1385 = vmatprep.subr.bf16.mxu0 %v2323_v1 }
  0x92   : > { %1544 = vmatpush1.bf16.msra.mxu1 %v2279_v21 }
  0x93   : > { %1545 = vmatprep.subr.bf16.mxu1 %v2323_v1 }
  0x94   : > { %1386 = vmatpush1.bf16.msra.mxu0 %v2276_v23 }
  0x95   : > { %1387 = vmatprep.subr.bf16.mxu0 %v2323_v1 }
  0x96   : > { %1546 = vmatpush1.bf16.msra.mxu1 %v2281_v24 }
  0x97   : > { %1547 = vmatprep.subr.bf16.mxu1 %v2323_v1 }
  0x98   : > { %1388 = vmatpush1.bf16.msra.mxu0 %v2278_v25 }
  0x99   : > { %1389 = vmatprep.subr.bf16.mxu0 %v2323_v1  ;;  %v2287_v1 = vld [vmem:[%s2821_s3 + $0x270] sm:$0xff]  }
  0x9a   : > { %1548 = vmatpush1.bf16.msra.mxu1 %v2283_v26 }
  0x9b   : > { %1549 = vmatprep.subr.bf16.mxu1 %v2298_v31 }
  0x9c   : > { %1390 = vmatpush1.bf16.msra.mxu0 %v2280_v27 }
  0x9d   : > { %1391 = vmatprep.subr.bf16.mxu0 %v2298_v31 }
  0x9e   : > { %1550 = vmatpush1.bf16.msra.mxu1 %v2285_v28 }
  0x9f   : > { %1551 = vmatprep.subr.bf16.mxu1 %v2298_v31 }
  0xa0   : > { %1392 = vmatpush1.bf16.msra.mxu0 %v2282_v30 }
  0xa1   : > { %1393 = vmatprep.subr.bf16.mxu0 %v2298_v31 }
  0xa2   : > { %1552 = vmatpush1.bf16.msra.mxu1 %v2287_v1 }
  0xa3   : > { %1553 = vmatprep.subr.bf16.mxu1 %v2298_v31 }
  0xa4   : > { %1394 = vmatpush1.bf16.msra.mxu0 %v2284_v38 }
  0xa5   : > { %1681 = vmatprep.subr.bf16.mxu0 %v2298_v31 }
  0xa6   : > { %1554 = vmatpush1.bf16.msra.mxu1 %v2289_v41 }
  0xa7   : > { %1408 = vmatmul.mubr.bf16.vlgmr.msra.gmra.mrb[12].mxu0 %v2540_v5  ;;  %v2291_v5 = vld [vmem:[%s2821_s3 + $0x298] sm:$0xff]  }
  0xa8   : > { %1682 = vmatpush1.bf16.msra.mxu0 %v2286_v44  ;;  %2160 = vmatprep.mubr.msk.bf16.mxu0 %vm373_vm0, %v1616_v45 }
  0xa9   : > { %1683 = vmatprep.subr.bf16.mxu0 %v2298_v31  ;;  %1568 = vmatmul.mubr.bf16.vlgmr.msra.gmra.mrb[12].mxu1 %v1458_v22 }
  0xac   : > { %1684 = vmatpush1.bf16.msra.mxu0 %v2288_v46 }
  0xad   : > { %1685 = vmatprep.subr.bf16.mxu0 %v2298_v31 }
  0xb0   : > { %1686 = vmatpush1.bf16.msra.mxu0 %v2290_v47 }
  0xb1   : > { %1687 = vmatprep.subr.bf16.mxu0 %v2298_v31 }
  0xb4   : > { %1688 = vmatpush1.bf16.msra.mxu0 %v2291_v5 }
  0xb5   : > { %1689 = vmatprep.subr.bf16.mxu0 %v2298_v31 }
  0xb8   : > { %1690 = vmatpush1.bf16.msra.mxu0 %v2292_v48 }
  0xb9   : > { %1691 = vmatprep.subr.bf16.mxu0 %v2298_v31 }
  0xbc   : > { %1692 = vmatpush1.bf16.msra.mxu0 %v2293_v49 }
  0xbd   : > { %1693 = vmatprep.subr.bf16.mxu0 %v2298_v31 }
  0xc0   : > { %1694 = vmatpush1.bf16.msra.mxu0 %v2294_v50 }
  0xc1   : > { %1695 = vmatprep.subr.bf16.mxu0 %v2298_v31 }
  0xc4   : > { %1696 = vmatpush1.bf16.msra.mxu0 %v2295_v51 }
  0xc5   : > { %1697 = vmatprep.subr.bf16.mxu0 %v2298_v31 }
  0xc8   : > { %1698 = vmatpush1.bf16.msra.mxu0 %v2296_v52 }
  0xc9   : > { %1699 = vmatprep.subr.bf16.mxu0 %v2298_v31 }
  0xcc   : > { %1700 = vmatpush1.bf16.msra.mxu0 %v2297_v55 }
  0xcf   : > { %1714 = vmatmul.mubr.bf16.vlgmr.msra.gmra.mrb[16].mxu0 %v1613_v58 }
 0x102   : > { %v529_v60 = vpop.f32.mrb[0].mxu0  ;;  %v690_v4 = vpop.f32.mrb[0].mxu1 }
 0x103   : > { %v536_v62 = vadd.f32 %v529_v60, %v408_v59  ;;  %v531_v63 = vpop.f32.mrb[1].mxu0  ;;  %v692_v6 = vpop.f32.mrb[1].mxu1 }
 0x104   : > { %v532_v0 = vpop.f32.mrb[2].mxu0  ;;  %v693_v7 = vpop.f32.mrb[2].mxu1 }
 0x105   : > { %538 = vst.msk [vmem:[#allocation3] sm:$0xff] %vm405_vm3, %v536_v62  ;;  %v537_v2 = vadd.f32 %v532_v0, %v409_v61  ;;  %v534_v3 = vpop.f32.mrb[3].mxu0  ;;  %v695_v8 = vpop.f32.mrb[3].mxu1 }
 0x107   : > { %539 = vst.msk [vmem:[#allocation3 + $0x8] sm:$0xff] %vm405_vm3, %v537_v2 }
 0x10c   : > { %v540_v9 = vld [vmem:[#allocation3] sm:$0xff] }
 0x10d   : > { %v697_v10 = vadd.f32 %v690_v4, %v540_v9  ;;  %v2161_v4 = vld [vmem:[%s2822_s4] ss:$0 sm:$0xff] }
 0x10e   : > { %v541_v11 = vld [vmem:[#allocation3 + $0x8] sm:$0xff] }
 0x10f   : > { %699 = vst.msk [vmem:[#allocation3] sm:$0xff] %vm405_vm3, %v697_v10  ;;  %v698_v12 = vadd.f32 %v693_v7, %v541_v11 }
 0x111   : > { %700 = vst.msk [vmem:[#allocation3 + $0x8] sm:$0xff] %vm405_vm3, %v698_v12 }
 0x116   : > { %v701_v13 = vld [vmem:[#allocation3] sm:$0xff] }
 0x118   : > { %v702_v17 = vld [vmem:[#allocation3 + $0x8] sm:$0xff] }
 0x12a   : > { %v837_v14 = vpop.f32.mrb[4].mxu0 }
 0x12b   : > { %v844_v15 = vadd.f32 %v837_v14, %v701_v13  ;;  %v839_v16 = vpop.f32.mrb[5].mxu0 }
 0x12c   : > { %v840_v18 = vpop.f32.mrb[6].mxu0  ;;  %v970_v21 = vpop.f32.mrb[4].mxu1 }
 0x12d   : > { %846 = vst.msk [vmem:[#allocation3] sm:$0xff] %vm405_vm3, %v844_v15  ;;  %v845_v19 = vadd.f32 %v840_v18, %v702_v17  ;;  %v842_v20 = vpop.f32.mrb[7].mxu0  ;;  %v972_v23 = vpop.f32.mrb[5].mxu1 }
 0x12e   : > { %v973_v24 = vpop.f32.mrb[6].mxu1 }
 0x12f   : > { %847 = vst.msk [vmem:[#allocation3 + $0x8] sm:$0xff] %vm405_vm3, %v845_v19  ;;  %v975_v25 = vpop.f32.mrb[7].mxu1 }
 0x134   : > { %v848_v26 = vld [vmem:[#allocation3] sm:$0xff] }
 0x135   : > { %v977_v27 = vadd.f32 %v970_v21, %v848_v26 }
 0x136   : > { %v849_v28 = vld [vmem:[#allocation3 + $0x8] sm:$0xff] }
 0x137   : > { %979 = vst.msk [vmem:[#allocation3] sm:$0xff] %vm405_vm3, %v977_v27  ;;  %v978_v29 = vadd.f32 %v973_v24, %v849_v28 }
 0x139   : > { %980 = vst.msk [vmem:[#allocation3 + $0x8] sm:$0xff] %vm405_vm3, %v978_v29 }
 0x13e   : > { %v981_v30 = vld [vmem:[#allocation3] sm:$0xff] }
 0x140   : > { %v982_v34 = vld [vmem:[#allocation3 + $0x8] sm:$0xff] }
 0x152   : > { %v1130_v31 = vpop.f32.mrb[8].mxu0 }
 0x153   : > { %v1137_v32 = vadd.f32 %v1130_v31, %v981_v30  ;;  %v1132_v33 = vpop.f32.mrb[9].mxu0 }
 0x154   : > { %v1133_v1 = vpop.f32.mrb[10].mxu0  ;;  %v1276_v37 = vpop.f32.mrb[8].mxu1 }
 0x155   : > { %1139 = vst.msk [vmem:[#allocation3] sm:$0xff] %vm405_vm3, %v1137_v32  ;;  %v1138_v35 = vadd.f32 %v1133_v1, %v982_v34  ;;  %v1135_v36 = vpop.f32.mrb[11].mxu0  ;;  %v1278_v38 = vpop.f32.mrb[9].mxu1 }
 0x156   : > { %v1279_v39 = vpop.f32.mrb[10].mxu1 }
 0x157   : > { %1140 = vst.msk [vmem:[#allocation3 + $0x8] sm:$0xff] %vm405_vm3, %v1138_v35  ;;  %v1281_v40 = vpop.f32.mrb[11].mxu1 }
 0x15c   : > { %v1141_v41 = vld [vmem:[#allocation3] sm:$0xff] }
 0x15d   : > { %v1283_v42 = vadd.f32 %v1276_v37, %v1141_v41 }
 0x15e   : > { %v1142_v43 = vld [vmem:[#allocation3 + $0x8] sm:$0xff] }
 0x15f   : > { %1285 = vst.msk [vmem:[#allocation3] sm:$0xff] %vm405_vm3, %v1283_v42  ;;  %v1284_v44 = vadd.f32 %v1279_v39, %v1142_v43 }
 0x161   : > { %1286 = vst.msk [vmem:[#allocation3 + $0x8] sm:$0xff] %vm405_vm3, %v1284_v44 }
 0x166   : > { %v1287_v45 = vld [vmem:[#allocation3] sm:$0xff] }
 0x168   : > { %v1288_v5 = vld [vmem:[#allocation3 + $0x8] sm:$0xff] }
 0x17a   : > { %v1409_v22 = vpop.f32.mrb[12].mxu0 }
 0x17b   : > { %v1416_v46 = vadd.f32 %v1409_v22, %v1287_v45  ;;  %v1411_v47 = vpop.f32.mrb[13].mxu0 }
 0x17c   : > { %v1412_v48 = vpop.f32.mrb[14].mxu0  ;;  %v1569_v51 = vpop.f32.mrb[12].mxu1 }
 0x17d   : > { %1418 = vst.msk [vmem:[#allocation3] sm:$0xff] %vm405_vm3, %v1416_v46  ;;  %v1417_v49 = vadd.f32 %v1412_v48, %v1288_v5  ;;  %v1414_v50 = vpop.f32.mrb[15].mxu0  ;;  %v1571_v52 = vpop.f32.mrb[13].mxu1 }
 0x17e   : > { %v1572_v53 = vpop.f32.mrb[14].mxu1 }
 0x17f   : > { %1419 = vst.msk [vmem:[#allocation3 + $0x8] sm:$0xff] %vm405_vm3, %v1417_v49  ;;  %v1574_v54 = vpop.f32.mrb[15].mxu1 }
 0x184   : > { %v1420_v55 = vld [vmem:[#allocation3] sm:$0xff] }
 0x185   : > { %v1576_v56 = vadd.f32 %v1569_v51, %v1420_v55 }
 0x186   : > { %v1421_v57 = vld [vmem:[#allocation3 + $0x8] sm:$0xff] }
 0x187   : > { %1578 = vst.msk [vmem:[#allocation3] sm:$0xff] %vm405_vm3, %v1576_v56  ;;  %v1577_v58 = vadd.f32 %v1572_v53, %v1421_v57 }
 0x189   : > { %1579 = vst.msk [vmem:[#allocation3 + $0x8] sm:$0xff] %vm405_vm3, %v1577_v58 }
 0x18e   : > { %v1580_v59 = vld [vmem:[#allocation3] sm:$0xff] }
 0x190   : > { %v1581_v63 = vld [vmem:[#allocation3 + $0x8] sm:$0xff] }
 0x1a2   : > { %v1715_v60 = vpop.f32.mrb[16].mxu0 }
 0x1a3   : > { %v1722_v61 = vadd.f32 %v1715_v60, %v1580_v59  ;;  %v1717_v62 = vpop.f32.mrb[17].mxu0 }
 0x1a4   : > { %v1718_v0 = vpop.f32.mrb[18].mxu0 }
 0x1a5   : > { %1724 = vst.msk [vmem:[#allocation3] sm:$0xff] %vm405_vm3, %v1722_v61  ;;  %v1723_v2 = vadd.f32 %v1718_v0, %v1581_v63  ;;  %v1720_v3 = vpop.f32.mrb[19].mxu0 }
 0x1a7   : > { %1725 = vst.msk [vmem:[#allocation3 + $0x8] sm:$0xff] %vm405_vm3, %v1723_v2 }
 0x1ac   : > { %v1726_v6 = vld [vmem:[#allocation3] sm:$0xff] }
 0x1ad   : > { %v1735_v7 = vadd.f32 %v2161_v4, %v1726_v6 }
 0x1ae   : > { %v1727_v8 = vld [vmem:[#allocation3 + $0x8] sm:$0xff] }
 0x1af   : > { %vm1737_vm4 = vcmp.gt.f32.partialorder %v1735_v7, 0.0  ;;  %v1739_v9 = vmul.f32 0.2, %v1735_v7  ;;  %v1736_v10 = vadd.f32 %v2161_v4, %v1727_v8 }
 0x1b1   : > { %v1741_v11 = vsel %vm1737_vm4, %v1735_v7, %v1739_v9  ;;  %vm1738_vm6 = vcmp.gt.f32.partialorder %v1736_v10, 0.0  ;;  %v1740_v12 = vmul.f32 0.2, %v1736_v10 }
 0x1b2   : > { %v2171_v13 = vpack.c.bf16 %v1741_v11, %v1741_v11 }
 0x1b3   : > { %v1742_v14 = vsel %vm1738_vm6, %v1736_v10, %v1740_v12 }
 0x1b4   : > { %1752 = vst.msk [vmem:[%s357_s7] sm:$0xf] %vm1751_vm5, %v2171_v13  ;;  %v2172_v15 = vpack.c.bf16 %v1742_v14, %v1742_v14 }
 0x1b6   : > { %1753 = vst.msk [vmem:[%s357_s7 + $0x4] sm:$0xf] %vm1751_vm5, %v2172_v15 }
 0x1b7 PF: > { %s15_s20 = sadd.s32 1, %s2321_s20   ;;  %s2824_s18 = smov %s2317_s19 }
 0x1b8   : > { %p12_p5 = scmp.ge.s32.totalorder %s15_s20, 4   ;;  %s2825_s19 = smov %s2827_s21 }
 0x1ba   :  { %14 = sbr.rel (!%p12_p5) target bundleno = 2 (0x2), region = 84 }

// kernel: gednet_forward.16
= control target key start
LH: loop header
LB: loop body
LE: loop exit
PB: predicated region body
PF: predicated region fallthrough
CT: control target
= control target key end

     0   :  { %s2288_s18 = smov 0   ;;  %s2290_s19 = smov 0   ;;  %s2763_s0 = inlined_call_operand.vmem [shape: bf16[2,64,144], index: 0, kind: input, shape index: {}, may-alias: {0,1,2}]   ;;  %s2764_s1 = inlined_call_operand.vmem [shape: bf16[2,64,144], index: 1, kind: input, shape index: {}, may-alias: {0,1,2}]   ;;  %s2765_s2 = inlined_call_operand.vmem [shape: bf16[2,64,144], index: 2, kind: input, shape index: {}, may-alias: {0,1,2}]   ;;  %s2766_s3 = inlined_call_operand.vmem [shape: bf16[9,144,64], index: 3, kind: input, shape index: {}]   ;;  %s2767_s4 = inlined_call_operand.vmem [shape: f32[1,64], index: 4, kind: input, shape index: {}]   ;;  %s2768_s5 = inlined_call_operand.vmem [shape: bf16[2,32,64], index: 5, kind: output, shape index: {}]  }
   0x1   :  { %s2292_s20 = smov 0   ;;  %s2294_s21 = smov 0  }
   0x2   :  { %s2296_s22 = smov 0  }
   0x3 LB: > { %s24_s23 = sadd.s32 1, %s2246_s20  ;;  %s27_s24 = sadd.s32 1, %s2250_s21  ;;  %s2254_s22 = sphi %s2296_s22, %s15_s22   ;;  %s2250_s21 = sphi %s2294_s21, %s2773_s21   ;;  %s2246_s20 = sphi %s2292_s20, %s2772_s20   ;;  %s2242_s19 = sphi %s2290_s19, %s2771_s19   ;;  %s2238_s18 = sphi %s2288_s18, %s2770_s18  }
   0x4   : > { %p25_p0 = scmp.ge.s32.totalorder %s24_s23, 2  ;;  %p1821_p1 = scmp.ge.s32.totalorder %s2254_s22, 1 }
   0x5   : > { %p253_p2 = scmp.lt.s32.totalorder %s2254_s22, 5 }
   0x6   : > { %s2775_s23 = smov (%p25_p0, %s24_s23), 0  ;;  %s2777_s24 = smov (!%p25_p0, %s27_s24), %s2250_s21 }
   0x7   : > { %p254_p3 = pnand %p1821_p1, %p253_p2  ;;  %p29_p4 = scmp.ge.s32.totalorder %s2777_s24, 2 }
   0x8   : > { %v2130_v0 = vld [vmem:[%s2766_s3] sm:$0xff] (!%p254_p3)   ;;  %v2256_v1 = vmov (!%p254_p3), 0   ;;  %s2324_s27 = sshll.u32 (!%p254_p3), %s2238_s18, 1  ;;  %v2131_v2 = vld [vmem:[%s2766_s3 + $0x8] sm:$0xff] (!%p254_p3)   ;;  %p313_p5 = scmp.lt.s32.totalorder (!%p254_p3), %s2242_s19, 1  ;;  %v2135_v4 = vld [vmem:[%s2766_s3 + $0x50] sm:$0xff] (!%p254_p3)  }
   0x9   : > { %s2779_s24 = smov (%p29_p4, %s2777_s24), 0  ;;  %257 = sbr.rel (%p254_p3) target bundleno = 422 (0x1a6), region = 40 }
   0xa   : > { %487 = vmatprep.subr.bf16.mxu0 (!%p254_p3), %v2256_v1  ;;  %403 = vst [vmem:[#allocation2 + $0x30] sm:$0xff] (!%p254_p3), %v2256_v1  ;;  %640 = vmatprep.subr.bf16.mxu1 (!%p254_p3), %v2256_v1  ;;  %v2133_v3 = vld [vmem:[%s2766_s3 + $0x48] sm:$0xff] (!%p254_p3)   ;;  %p315_p6 = scmp.lt.s32.totalorder (!%p254_p3), %s2324_s27, 7  ;;  %v2132_v5 = vld [vmem:[%s2766_s3 + $0x10] sm:$0xff] (!%p254_p3)   ;;  %s2083_s15 = sadd.s32 (!%p254_p3), 2, %s2324_s27  ;;  %v2137_v6 = vld [vmem:[%s2766_s3 + $0x58] sm:$0xff] (!%p254_p3)  }
   0xb   : > { %488 = vmatpush1.bf16.msra.mxu0 (!%p254_p3), %v2130_v0  ;;  %641 = vmatpush1.bf16.msra.mxu1 (!%p254_p3), %v2133_v3  ;;  %v2134_v7 = vld [vmem:[%s2766_s3 + $0x18] sm:$0xff] (!%p254_p3)   ;;  %p327_p7 = scmp.lt.s32.totalorder (!%p254_p3), %s2083_s15, 7  ;;  %s2085_s6 = sadd.s32 (!%p254_p3), 4, %s2324_s27  ;;  %v2139_v8 = vld [vmem:[%s2766_s3 + $0x60] sm:$0xff] (!%p254_p3)   ;;  %vm373_vm0 = vcmask (!%p254_p3), 130048   ;;  %v2141_v14 = vld [vmem:[%s2766_s3 + $0x68] sm:$0xff] (!%p254_p3)  }
   0xc   : > { %489 = vmatprep.subr.bf16.mxu0 (!%p254_p3), %v2256_v1  ;;  %642 = vmatprep.subr.bf16.mxu1 (!%p254_p3), %v2256_v1  ;;  %p2365_p8 = scmp.lt.s32.totalorder (!%p254_p3), %s2085_s6, 7  ;;  %v2136_v9 = vld [vmem:[%s2766_s3 + $0x20] sm:$0xff] (!%p254_p3)   ;;  %p352_p9 = scmp.lt.s32.totalorder (!%p254_p3), %s2324_s27, 3  ;;  %404 = vst.msk [vmem:[#allocation2 + $0x38] sm:$0xff] (!%p254_p3), %vm373_vm0, %v2256_v1  ;;  %v2138_v15 = vld [vmem:[%s2766_s3 + $0x28] sm:$0xff] (!%p254_p3)   ;;  %v2143_v16 = vld [vmem:[%s2766_s3 + $0x70] sm:$0xff] (!%p254_p3)  }
   0xd   : > { %v2140_v19 = vld [vmem:[%s2766_s3 + $0x30] sm:$0xff] (!%p254_p3)   ;;  %v2142_v27 = vld [vmem:[%s2766_s3 + $0x38] sm:$0xff] (!%p254_p3)   ;;  %v2149_v31 = vld [vmem:[%s2766_s3 + $0x80] sm:$0xff] (!%p254_p3)   ;;  %vm557_vm1 = vsmask.f32 (!%p254_p3), 7424  ;;  %vm714_vm2 = vcmask (!%p254_p3), 1046528  }
   0xe   : > { %v2147_v28 = vld [vmem:[%s2766_s3 + $0x78] sm:$0xff] (!%p254_p3)   ;;  %v2144_v36 = vld [vmem:[%s2766_s3 + $0x40] sm:$0xff] (!%p254_p3)   ;;  %v2151_v37 = vld [vmem:[%s2766_s3 + $0x88] sm:$0xff] (!%p254_p3)   ;;  %vm405_vm3 = vcmask (!%p254_p3), 523264   ;;  %v2257_v3 = vmov (!%p254_p3), 0.0   ;;  %vm1679_vm5 = vcmask (!%p254_p3), 519168  }
   0xf   : > { %490 = vmatpush1.bf16.msra.mxu0 (!%p254_p3), %v2131_v2  ;;  %643 = vmatpush1.bf16.msra.mxu1 (!%p254_p3), %v2135_v4  ;;  %v2148_v44 = vld [vmem:[%s2766_s3 + $0x90] sm:$0xff] (!%p254_p3)   ;;  %v2150_v47 = vld [vmem:[%s2766_s3 + $0x98] sm:$0xff] (!%p254_p3)   ;;  %v2157_v56 = vld [vmem:[%s2766_s3 + $0xe0] sm:$0xff] (!%p254_p3)   ;;  %406 = vst.msk [vmem:[#allocation3] sm:$0xff] (!%p254_p3), %vm405_vm3, %v2257_v3 }
  0x10   : > { %s2781_s19 = smov (!%p313_p5, %s2242_s19), 1  ;;  %491 = vmatprep.subr.bf16.mxu0 %v2256_v1  ;;  %644 = vmatprep.subr.bf16.mxu1 %v2256_v1  ;;  %s2783_s15 = smov (!%p327_p7, %s2083_s15), 7  ;;  %v2155_v50 = vld [vmem:[%s2766_s3 + $0xd8] sm:$0xff]   ;;  %v2154_v57 = vld [vmem:[%s2766_s3 + $0xa0] sm:$0xff]   ;;  %v2159_v59 = vld [vmem:[%s2766_s3 + $0xe8] sm:$0xff]   ;;  %407 = vst.msk [vmem:[#allocation3 + $0x8] sm:$0xff] %vm405_vm3, %v2257_v3 }
  0x11   : > { %s316_s9 = scalar_select %p315_p6, %s2324_s27, 7  ;;  %v2156_v60 = vld [vmem:[%s2766_s3 + $0xa8] sm:$0xff]   ;;  %v2161_v61 = vld [vmem:[%s2766_s3 + $0xf0] sm:$0xff]   ;;  %v2163_v0 = vld [vmem:[%s2766_s3 + $0xf8] sm:$0xff]  }
  0x12   : > { %s2345_s12 = sshll.u32 %s2781_s19, 4  ;;  %s1835_s17 = sshll.u32 %s2781_s19, 2  ;;  %v2158_v62 = vld [vmem:[%s2766_s3 + $0xb0] sm:$0xff]   ;;  %v2160_v2 = vld [vmem:[%s2766_s3 + $0xb8] sm:$0xff]  }
  0x13   : > { %s1823_s13 = sshll.u32 %s316_s9, 1  ;;  %492 = vmatpush1.bf16.msra.mxu0 %v2132_v5  ;;  %645 = vmatpush1.bf16.msra.mxu1 %v2137_v6  ;;  %s2785_s6 = smov (!%p2365_p8, %s2085_s6), 7  ;;  %v2165_v6 = vld [vmem:[%s2766_s3 + $0x100] sm:$0xff]  }
  0x14   : > { %s319_s14 = sadd.s32 %s2345_s12, %s1823_s13  ;;  %493 = vmatprep.subr.bf16.mxu0 %v2256_v1  ;;  %646 = vmatprep.subr.bf16.mxu1 %v2256_v1  ;;  %s1827_s13 = sshll.u32 %s2783_s15, 1 }
  0x15   : > { %s1825_s18 = sshll.u32 %s319_s14, 2  ;;  %s331_s14 = sadd.s32 %s1827_s13, %s2345_s12 }
  0x16   : > { %s321_s30 = scalar_lea.vmem %s2763_s0, %s1825_s18  ;;  %s1829_s16 = sshll.u32 %s331_s14, 2 }
  0x17   : > { %494 = vmatpush1.bf16.msra.mxu0 %v2134_v7  ;;  %v360_v10 = vld [vmem:[%s321_s30] sm:$0xff]  ;;  %v361_v11 = vld [vmem:[%s321_s30 + $0x8] sm:$0xff]  ;;  %647 = vmatpush1.bf16.msra.mxu1 %v2139_v8  ;;  %s2787_s27 = smov (!%p352_p9, %s2324_s27), 3  ;;  %s1831_s19 = sshll.u32 %s2785_s6, 1 }
  0x18   : > { %495 = vmatprep.subr.bf16.mxu0 %v2256_v1  ;;  %v2145_v12 = vld [vmem:[%s321_s30 + $0x4] ss:$8 sps:$4 sm:$0xff]   ;;  %v2379_v13 = vcombine.low %v360_v10, %v361_v11  ;;  %648 = vmatprep.subr.bf16.mxu1 %v2256_v1  ;;  %s333_s30 = scalar_lea.vmem %s2764_s1, %s1829_s16  ;;  %s344_s7 = sadd.s32 %s1831_s19, %s2345_s12 }
  0x19   : > { %374 = vst.msk [vmem:[#allocation2 + $0x8] sm:$0xff] %vm373_vm0, %v2145_v12  ;;  %s2400_s8 = sadd.s32 %s1835_s17, %s2787_s27  ;;  %s1833_s11 = sshll.u32 %s344_s7, 2  ;;  %v375_v17 = vld [vmem:[%s333_s30] sm:$0xff]  ;;  %v376_v18 = vld [vmem:[%s333_s30 + $0x8] sm:$0xff] }
  0x1a   : > { %372 = vst [vmem:[#allocation2] sm:$0xff] %v2379_v13  ;;  %s346_s27 = scalar_lea.vmem %s2765_s2, %s1833_s11  ;;  %v2152_v20 = vld [vmem:[%s333_s30 + $0x4] ss:$8 sps:$4 sm:$0xff]   ;;  %v2412_v21 = vcombine.low %v375_v17, %v376_v18  ;;  %v561_v30 = vshll.u32 %v2379_v13, 16  ;;  %v559_v34 = vshrl.u32 %v2379_v13, 16  ;;  %s1836_s26 = sshll.u32 %s2400_s8, 2 }
  0x1b   : > { %496 = vmatpush1.bf16.msra.mxu0 %v2136_v9  ;;  %649 = vmatpush1.bf16.msra.mxu1 %v2141_v14  ;;  %v389_v22 = vld [vmem:[%s346_s27] sm:$0xff]  ;;  %v390_v23 = vld [vmem:[%s346_s27 + $0x8] sm:$0xff]  ;;  %388 = vst.msk [vmem:[#allocation2 + $0x18] sm:$0xff] %vm373_vm0, %v2152_v20  ;;  %s357_s29 = scalar_lea.vmem %s2768_s5, %s1836_s26 }
  0x1c   : > { %497 = vmatprep.subr.bf16.mxu0 %v2256_v1  ;;  %650 = vmatprep.subr.bf16.mxu1 %v2256_v1  ;;  %387 = vst [vmem:[#allocation2 + $0x10] sm:$0xff] %v2412_v21  ;;  %v1842_v25 = vcombine.high %v389_v22, %v390_v23  ;;  %v2417_v26 = vcombine.low %v389_v22, %v390_v23  ;;  %v563_v35 = vrot.slane %v561_v30, 1  ;;  %v977_v63 = vshll.u32 %v2412_v21, 16  ;;  %v2162_v7 = vld [vmem:[%s2766_s3 + $0xc0] sm:$0xff]   ;;  %v2167_v8 = vld [vmem:[%s2766_s3 + $0x108] sm:$0xff]   ;;  %v2166_v23 = vld [vmem:[%s2766_s3 + $0xd0] sm:$0xff]  }
  0x1d   : > { %v975_v4 = vshrl.u32 %v2412_v21, 16  ;;  %v2168_v30 = vld [vmem:[%s2766_s3 + $0x120] sm:$0xff]  }
  0x1e   : > { %402 = vst.msk [vmem:[#allocation2 + $0x28] sm:$0xff] %vm373_vm0, %v1842_v25  ;;  %401 = vst [vmem:[#allocation2 + $0x20] sm:$0xff] %v2417_v26  ;;  %v564_v43 = vor.u32 %v563_v35, %v559_v34  ;;  %v979_v5 = vrot.slane %v977_v63, 1 }
  0x1f   : > { %498 = vmatpush1.bf16.msra.mxu0 %v2138_v15  ;;  %651 = vmatpush1.bf16.msra.mxu1 %v2143_v16  ;;  %v2164_v16 = vld [vmem:[%s2766_s3 + $0xc8] sm:$0xff]  }
  0x20   : > { %499 = vmatprep.subr.bf16.mxu0 %v2256_v1  ;;  %v411_v24 = vld [vmem:[#allocation2 + $0x8] sm:$0xff]  ;;  %652 = vmatprep.subr.bf16.mxu1 %v2256_v1  ;;  %v980_v14 = vor.u32 %v979_v5, %v975_v4 }
  0x21   : > { %1852 = vmatprep.mubr.msk.bf16.mxu0 %vm373_vm0, %v411_v24  ;;  %v573_v29 = vshll.u32 %v411_v24, 16  ;;  %v571_v32 = vshrl.u32 %v411_v24, 16  ;;  %v688_v51 = vld [vmem:[#allocation2 + $0x8] sm:$0xfe]  ;;  %v687_v10 = vld [vmem:[#allocation2] sm:$0xfe] }
  0x22   : > { %v537_v38 = vld [vmem:[#allocation2 + $0x18] sm:$0x1]  ;;  %v718_v53 = vrot.slane %v688_v51, 1  ;;  %v715_v24 = vrot.slane %v687_v10, 1  ;;  %v2190_v10 = vld [vmem:[%s2766_s3 + $0x1c0] sm:$0xff]  }
  0x23   : > { %500 = vmatpush1.bf16.msra.mxu0 %v2140_v19  ;;  %v575_v33 = vrot.slane %v573_v29, 1  ;;  %653 = vmatpush1.bf16.msra.mxu1 %v2147_v28  ;;  %v536_v39 = vld [vmem:[#allocation2 + $0x10] sm:$0x1]  ;;  %v578_v41 = vshll.u32 %v537_v38, 16  ;;  %v690_v52 = vld [vmem:[#allocation2 + $0x18] sm:$0x1] }
  0x24   : > { %501 = vmatprep.subr.bf16.mxu0 %v2256_v1  ;;  %654 = vmatprep.subr.bf16.mxu1 %v2256_v1  ;;  %v566_v42 = vshll.u32 %v536_v39, 16  ;;  %v719_v54 = vrot.slane %v690_v52, 1  ;;  %v2470_v58 = vld [vmem:[#allocation2 + $0x18] sm:$0xff]  ;;  %v689_v11 = vld [vmem:[#allocation2 + $0x10] sm:$0x1]  ;;  %v2173_v38 = vld [vmem:[%s2766_s3 + $0x168] sm:$0xff]  }
  0x25   : > { %v576_v40 = vor.u32 %v575_v33, %v571_v32  ;;  %v580_v45 = vrot.slane %v578_v41, 1  ;;  %v953_v9 = vld [vmem:[#allocation2 + $0x20] sm:$0x1]  ;;  %v954_v12 = vld [vmem:[#allocation2 + $0x28] sm:$0x1]  ;;  %v987_v18 = vshrl.u32 %v2470_v58, 16 }
  0x26   : > { %v568_v46 = vrot.slane %v566_v42, 1  ;;  %v720_v55 = vsel %vm714_vm2, %v718_v53, %v719_v54  ;;  %v982_v15 = vshll.u32 %v953_v9, 16  ;;  %v994_v20 = vshll.u32 %v954_v12, 16  ;;  %v1104_v28 = vld [vmem:[#allocation2 + $0x18] sm:$0xfe]  ;;  %v2170_v39 = vld [vmem:[%s2766_s3 + $0x128] sm:$0xff]  }
  0x27   : > { %502 = vmatpush1.bf16.msra.mxu0 %v2142_v27  ;;  %655 = vmatpush1.bf16.msra.mxu1 %v2149_v31  ;;  %v581_v48 = vsel %vm557_vm1, %v576_v40, %v580_v45  ;;  %v716_v25 = vrot.slane %v689_v11, 1  ;;  %v2169_v27 = vld [vmem:[%s2766_s3 + $0x110] sm:$0xff]   ;;  %v1106_v29 = vld [vmem:[#allocation2 + $0x28] sm:$0x1]  ;;  %v2171_v33 = vld [vmem:[%s2766_s3 + $0x118] sm:$0xff]   ;;  %v1133_v35 = vrot.slane %v1104_v28, 1 }
  0x28   : > { %503 = vmatprep.subr.bf16.mxu0 %v2256_v1  ;;  %656 = vmatprep.subr.bf16.mxu1 %v2256_v1  ;;  %v569_v49 = vsel %vm557_vm1, %v564_v43, %v568_v46  ;;  %v984_v17 = vrot.slane %v982_v15, 1  ;;  %v996_v32 = vrot.slane %v994_v20, 1  ;;  %v2175_v41 = vld [vmem:[%s2766_s3 + $0x170] sm:$0xff]   ;;  %v2174_v43 = vld [vmem:[%s2766_s3 + $0x138] sm:$0xff]   ;;  %v2176_v45 = vld [vmem:[%s2766_s3 + $0x140] sm:$0xff]   ;;  %v1392_v20 = vshll.u32 %v2417_v26, 16 }
  0x29   : > { %1880 = vmatprep.mubr.msk.bf16.mxu1 %vm373_vm0, %v581_v48  ;;  %v717_v34 = vsel %vm714_vm2, %v715_v24, %v716_v25  ;;  %v2172_v42 = vld [vmem:[%s2766_s3 + $0x130] sm:$0xff]   ;;  %v2181_v46 = vld [vmem:[%s2766_s3 + $0x188] sm:$0xff]   ;;  %v2182_v52 = vld [vmem:[%s2766_s3 + $0x158] sm:$0xff]   ;;  %v1390_v28 = vshrl.u32 %v2417_v26, 16 }
  0x2a   : > { %v2521_v22 = vsel %vm557_vm1, %v980_v14, %v984_v17  ;;  %v2183_v48 = vld [vmem:[%s2766_s3 + $0x190] sm:$0xff]   ;;  %v1242_v51 = vld [vmem:[#allocation2 + $0x28] sm:$0xff]  ;;  %v1369_v54 = vld [vmem:[#allocation2 + $0x38] sm:$0x1] }
  0x2b   : > { %504 = vmatpush1.bf16.msra.mxu0 %v2144_v36  ;;  %657 = vmatpush1.bf16.msra.mxu1 %v2151_v37  ;;  %v1134_v36 = vrot.slane %v1106_v29, 1  ;;  %v1404_v53 = vshll.u32 %v1242_v51, 16  ;;  %v2193_v9 = vld [vmem:[%s2766_s3 + $0x200] sm:$0xff]   ;;  %v2195_v11 = vld [vmem:[%s2766_s3 + $0x208] sm:$0xff]   ;;  %v2194_v14 = vld [vmem:[%s2766_s3 + $0x1d0] sm:$0xff]   ;;  %v1394_v29 = vrot.slane %v1392_v20, 1 }
  0x2c   : > { %779 = vmatprep.subr.bf16.mxu0 %v2256_v1  ;;  %904 = vmatprep.subr.bf16.mxu1 %v2256_v1  ;;  %v2192_v12 = vld [vmem:[%s2766_s3 + $0x1c8] sm:$0xff]   ;;  %v2199_v15 = vld [vmem:[%s2766_s3 + $0x218] sm:$0xff]   ;;  %v2201_v17 = vld [vmem:[%s2766_s3 + $0x220] sm:$0xff]  }
  0x2d   : > { %v1135_v40 = vsel %vm714_vm2, %v1133_v35, %v1134_v36  ;;  %v1519_v24 = vld [vmem:[#allocation2 + $0x28] sm:$0xfe]  ;;  %v1521_v25 = vld [vmem:[#allocation2 + $0x38] sm:$0x1]  ;;  %v1395_v35 = vor.u32 %v1394_v29, %v1390_v28 }
  0x2e   : > { %520 = vmatmul.mubr.bf16.vlgmr.msra.gmra.mrb[0].mxu0 %v2379_v13  ;;  %673 = vmatmul.mubr.bf16.vlgmr.msra.gmra.mrb[0].mxu1 %v569_v49  ;;  %v989_v13 = vshll.u32 %v2470_v58, 16  ;;  %v2180_v49 = vld [vmem:[%s2766_s3 + $0x150] sm:$0xff]  }
  0x2f   : > { %780 = vmatpush1.bf16.msra.mxu0 %v2148_v44  ;;  %905 = vmatpush1.bf16.msra.mxu1 %v2155_v50  ;;  %v2179_v44 = vld [vmem:[%s2766_s3 + $0x180] sm:$0xff]   ;;  %v2185_v50 = vld [vmem:[%s2766_s3 + $0x198] sm:$0xff]  }
  0x30   : > { %781 = vmatprep.subr.bf16.mxu0 %v2256_v1  ;;  %1908 = vmatprep.mubr.msk.bf16.mxu0 %vm373_vm0, %v720_v55  ;;  %v991_v19 = vrot.slane %v989_v13, 1  ;;  %v2187_v55 = vld [vmem:[%s2766_s3 + $0x1a0] sm:$0xff]   ;;  %v2197_v13 = vld [vmem:[%s2766_s3 + $0x210] sm:$0xff]  }
  0x31   : > { %906 = vmatprep.subr.bf16.mxu1 %v2256_v1  ;;  %1936 = vmatprep.mubr.msk.bf16.mxu1 %vm373_vm0, %v2470_v58  ;;  %v1105_v58 = vld [vmem:[#allocation2 + $0x20] sm:$0x1] }
  0x32   : > { %v992_v31 = vor.u32 %v991_v19, %v987_v18  ;;  %v2198_v18 = vld [vmem:[%s2766_s3 + $0x1e0] sm:$0xff]   ;;  %v2203_v19 = vld [vmem:[%s2766_s3 + $0x228] sm:$0xff]  }
  0x33   : > { %782 = vmatpush1.bf16.msra.mxu0 %v2150_v47  ;;  %907 = vmatpush1.bf16.msra.mxu1 %v2157_v56  ;;  %v2178_v47 = vld [vmem:[%s2766_s3 + $0x148] sm:$0xff]   ;;  %v1103_v56 = vld [vmem:[#allocation2 + $0x10] sm:$0xfe] }
  0x34   : > { %783 = vmatprep.subr.bf16.mxu0 %v2256_v1  ;;  %908 = vmatprep.subr.bf16.mxu1 %v2256_v1  ;;  %v997_v37 = vsel %vm557_vm1, %v992_v31, %v996_v32  ;;  %v1130_v63 = vrot.slane %v1103_v56, 1  ;;  %v2202_v31 = vld [vmem:[%s2766_s3 + $0x1f0] sm:$0xff]   ;;  %v1548_v32 = vrot.slane %v1519_v24, 1 }
  0x37   : > { %784 = vmatpush1.bf16.msra.mxu0 %v2154_v57  ;;  %909 = vmatpush1.bf16.msra.mxu1 %v2159_v59  ;;  %v2184_v57 = vld [vmem:[%s2766_s3 + $0x160] sm:$0xff]   ;;  %v1402_v59 = vshrl.u32 %v1242_v51, 16 }
  0x38   : > { %785 = vmatprep.subr.bf16.mxu0 %v2256_v1  ;;  %910 = vmatprep.subr.bf16.mxu1 %v2256_v1 }
  0x3b   : > { %786 = vmatpush1.bf16.msra.mxu0 %v2156_v60  ;;  %911 = vmatpush1.bf16.msra.mxu1 %v2161_v61  ;;  %v1406_v60 = vrot.slane %v1404_v53, 1  ;;  %v1409_v61 = vshll.u32 %v1369_v54, 16  ;;  %v409_v53 = vld [vmem:[#allocation3 + $0x8] sm:$0xff] }
  0x3c   : > { %787 = vmatprep.subr.bf16.mxu0 %v2256_v1  ;;  %912 = vmatprep.subr.bf16.mxu1 %v2256_v1 }
  0x3d   : > { %v1407_v3 = vor.u32 %v1406_v60, %v1402_v59  ;;  %v1411_v4 = vrot.slane %v1409_v61, 1 }
  0x3f   : > { %788 = vmatpush1.bf16.msra.mxu0 %v2158_v62  ;;  %913 = vmatpush1.bf16.msra.mxu1 %v2163_v0  ;;  %v2189_v62 = vld [vmem:[%s2766_s3 + $0x1a8] sm:$0xff]   ;;  %v1131_v0 = vrot.slane %v1105_v58, 1 }
  0x40   : > { %789 = vmatprep.subr.bf16.mxu0 %v2256_v1  ;;  %914 = vmatprep.subr.bf16.mxu1 %v2256_v1 }
  0x41   : > { %v1132_v5 = vsel %vm714_vm2, %v1130_v63, %v1131_v0 }
  0x43   : > { %790 = vmatpush1.bf16.msra.mxu0 %v2160_v2  ;;  %915 = vmatpush1.bf16.msra.mxu1 %v2165_v6  ;;  %v2186_v2 = vld [vmem:[%s2766_s3 + $0x1b0] sm:$0xff]   ;;  %v2191_v6 = vld [vmem:[%s2766_s3 + $0x1f8] sm:$0xff]  }
  0x44   : > { %791 = vmatprep.subr.bf16.mxu0 %v2256_v1  ;;  %916 = vmatprep.subr.bf16.mxu1 %v2256_v1 }
  0x47   : > { %792 = vmatpush1.bf16.msra.mxu0 %v2162_v7  ;;  %917 = vmatpush1.bf16.msra.mxu1 %v2167_v8  ;;  %v2188_v7 = vld [vmem:[%s2766_s3 + $0x1b8] sm:$0xff]   ;;  %v1412_v8 = vsel %vm557_vm1, %v1407_v3, %v1411_v4 }
  0x48   : > { %793 = vmatprep.subr.bf16.mxu0 %v2256_v1  ;;  %918 = vmatprep.subr.bf16.mxu1 %v2256_v1 }
  0x4b   : > { %794 = vmatpush1.bf16.msra.mxu0 %v2164_v16  ;;  %919 = vmatpush1.bf16.msra.mxu1 %v2169_v27  ;;  %v2196_v16 = vld [vmem:[%s2766_s3 + $0x1d8] sm:$0xff]   ;;  %v2205_v27 = vld [vmem:[%s2766_s3 + $0x230] sm:$0xff]  }
  0x4c   : > { %795 = vmatprep.subr.bf16.mxu0 %v2256_v1  ;;  %920 = vmatprep.subr.bf16.mxu1 %v2256_v1 }
  0x4f   : > { %796 = vmatpush1.bf16.msra.mxu0 %v2166_v23  ;;  %921 = vmatpush1.bf16.msra.mxu1 %v2171_v33  ;;  %v1368_v23 = vld [vmem:[#allocation2 + $0x30] sm:$0x1]  ;;  %v1549_v33 = vrot.slane %v1521_v25, 1 }
  0x50   : > { %1056 = vmatprep.subr.bf16.mxu0 %v2256_v1  ;;  %1194 = vmatprep.subr.bf16.mxu1 %v2256_v1 }
  0x52   : > { %812 = vmatmul.mubr.bf16.vlgmr.msra.gmra.mrb[4].mxu0 %v717_v34  ;;  %937 = vmatmul.mubr.bf16.vlgmr.msra.gmra.mrb[4].mxu1 %v2412_v21  ;;  %v2177_v21 = vld [vmem:[%s2766_s3 + $0x178] sm:$0xff]  }
  0x53   : > { %1057 = vmatpush1.bf16.msra.mxu0 %v2168_v30  ;;  %1964 = vmatprep.mubr.msk.bf16.mxu0 %vm373_vm0, %v997_v37  ;;  %v1397_v30 = vshll.u32 %v1368_v23, 16  ;;  %v2207_v34 = vld [vmem:[%s2766_s3 + $0x238] sm:$0xff]   ;;  %v2204_v37 = vld [vmem:[%s2766_s3 + $0x240] sm:$0xff]  }
  0x54   : > { %1058 = vmatprep.subr.bf16.mxu0 %v2256_v1  ;;  %1195 = vmatpush1.bf16.msra.mxu1 %v2173_v38  ;;  %v2215_v38 = vld [vmem:[#allocation2 + $0x30] sm:$0xff] }
  0x55   : > { %1992 = vmatprep.mubr.msk.bf16.mxu1 %vm373_vm0, %v1135_v40  ;;  %1196 = vmatprep.subr.bf16.mxu1 %v2256_v1  ;;  %v1399_v36 = vrot.slane %v1397_v30, 1  ;;  %v2206_v40 = vld [vmem:[%s2766_s3 + $0x248] sm:$0xff]  }
  0x57   : > { %1059 = vmatpush1.bf16.msra.mxu0 %v2170_v39  ;;  %v1550_v39 = vsel %vm714_vm2, %v1548_v32, %v1549_v33 }
  0x58   : > { %1060 = vmatprep.subr.bf16.mxu0 %v2256_v1  ;;  %1197 = vmatpush1.bf16.msra.mxu1 %v2175_v41  ;;  %v2208_v41 = vld [vmem:[%s2766_s3 + $0x250] sm:$0xff]  }
  0x59   : > { %1198 = vmatprep.subr.bf16.mxu1 %v2256_v1 }
  0x5b   : > { %1061 = vmatpush1.bf16.msra.mxu0 %v2172_v42  ;;  %v2210_v42 = vld [vmem:[%s2766_s3 + $0x260] sm:$0xff]  }
  0x5c   : > { %1062 = vmatprep.subr.bf16.mxu0 %v2256_v1  ;;  %1199 = vmatpush1.bf16.msra.mxu1 %v2177_v21  ;;  %v2211_v21 = vld [vmem:[%s2766_s3 + $0x268] sm:$0xff]  }
  0x5d   : > { %1200 = vmatprep.subr.bf16.mxu1 %v2256_v1 }
  0x5f   : > { %1063 = vmatpush1.bf16.msra.mxu0 %v2174_v43  ;;  %v2212_v43 = vld [vmem:[%s2766_s3 + $0x270] sm:$0xff]  }
  0x60   : > { %1064 = vmatprep.subr.bf16.mxu0 %v2256_v1  ;;  %1201 = vmatpush1.bf16.msra.mxu1 %v2179_v44  ;;  %v2213_v44 = vld [vmem:[%s2766_s3 + $0x278] sm:$0xff]  }
  0x61   : > { %1202 = vmatprep.subr.bf16.mxu1 %v2256_v1 }
  0x63   : > { %1065 = vmatpush1.bf16.msra.mxu0 %v2176_v45  ;;  %v1518_v45 = vld [vmem:[#allocation2 + $0x20] sm:$0xfe] }
  0x64   : > { %1066 = vmatprep.subr.bf16.mxu0 %v2256_v1  ;;  %1203 = vmatpush1.bf16.msra.mxu1 %v2181_v46  ;;  %v1520_v46 = vld [vmem:[#allocation2 + $0x30] sm:$0x1] }
  0x65   : > { %1204 = vmatprep.subr.bf16.mxu1 %v2256_v1 }
  0x67   : > { %1067 = vmatpush1.bf16.msra.mxu0 %v2178_v47  ;;  %v2214_v47 = vld [vmem:[%s2766_s3 + $0x280] sm:$0xff]  }
  0x68   : > { %1068 = vmatprep.subr.bf16.mxu0 %v2256_v1  ;;  %1205 = vmatpush1.bf16.msra.mxu1 %v2183_v48  ;;  %v1545_v48 = vrot.slane %v1518_v45, 1 }
  0x69   : > { %1206 = vmatprep.subr.bf16.mxu1 %v2256_v1 }
  0x6b   : > { %1069 = vmatpush1.bf16.msra.mxu0 %v2180_v49  ;;  %v1546_v49 = vrot.slane %v1520_v46, 1 }
  0x6c   : > { %1070 = vmatprep.subr.bf16.mxu0 %v2256_v1  ;;  %1207 = vmatpush1.bf16.msra.mxu1 %v2185_v50 }
  0x6d   : > { %1208 = vmatprep.subr.bf16.mxu1 %v2256_v1  ;;  %v1547_v50 = vsel %vm714_vm2, %v1545_v48, %v1546_v49 }
  0x6f   : > { %1071 = vmatpush1.bf16.msra.mxu0 %v2182_v52 }
  0x70   : > { %1072 = vmatprep.subr.bf16.mxu0 %v2256_v1  ;;  %1209 = vmatpush1.bf16.msra.mxu1 %v2187_v55 }
  0x71   : > { %1210 = vmatprep.subr.bf16.mxu1 %v2256_v1 }
  0x73   : > { %1073 = vmatpush1.bf16.msra.mxu0 %v2184_v57 }
  0x74   : > { %1319 = vmatprep.subr.bf16.mxu0 %v2256_v1  ;;  %1211 = vmatpush1.bf16.msra.mxu1 %v2189_v62 }
  0x75   : > { %1471 = vmatprep.subr.bf16.mxu1 %v2256_v1 }
  0x76   : > { %1089 = vmatmul.mubr.bf16.vlgmr.msra.gmra.mrb[8].mxu0 %v2521_v22  ;;  %v2200_v22 = vld [vmem:[%s2766_s3 + $0x1e8] sm:$0xff]  }
  0x77   : > { %1320 = vmatpush1.bf16.msra.mxu0 %v2186_v2  ;;  %2020 = vmatprep.mubr.msk.bf16.mxu0 %vm373_vm0, %v1242_v51  ;;  %v408_v51 = vld [vmem:[#allocation3] sm:$0xff] }
  0x78   : > { %1321 = vmatprep.subr.bf16.mxu0 %v2256_v1  ;;  %1227 = vmatmul.mubr.bf16.vlgmr.msra.gmra.mrb[8].mxu1 %v1132_v5 }
  0x79   : > { %1472 = vmatpush1.bf16.msra.mxu1 %v2191_v6  ;;  %2048 = vmatprep.mubr.msk.bf16.mxu1 %vm373_vm0, %v1412_v8 }
  0x7a   : > { %1473 = vmatprep.subr.bf16.mxu1 %v2256_v1 }
  0x7b   : > { %1322 = vmatpush1.bf16.msra.mxu0 %v2188_v7 }
  0x7c   : > { %1323 = vmatprep.subr.bf16.mxu0 %v2256_v1 }
  0x7d   : > { %1474 = vmatpush1.bf16.msra.mxu1 %v2193_v9 }
  0x7e   : > { %1475 = vmatprep.subr.bf16.mxu1 %v2256_v1 }
  0x7f   : > { %1324 = vmatpush1.bf16.msra.mxu0 %v2190_v10 }
  0x80   : > { %1325 = vmatprep.subr.bf16.mxu0 %v2256_v1 }
  0x81   : > { %1476 = vmatpush1.bf16.msra.mxu1 %v2195_v11 }
  0x82   : > { %1477 = vmatprep.subr.bf16.mxu1 %v2256_v1 }
  0x83   : > { %1326 = vmatpush1.bf16.msra.mxu0 %v2192_v12 }
  0x84   : > { %1327 = vmatprep.subr.bf16.mxu0 %v2256_v1 }
  0x85   : > { %1478 = vmatpush1.bf16.msra.mxu1 %v2197_v13 }
  0x86   : > { %1479 = vmatprep.subr.bf16.mxu1 %v2256_v1 }
  0x87   : > { %1328 = vmatpush1.bf16.msra.mxu0 %v2194_v14 }
  0x88   : > { %1329 = vmatprep.subr.bf16.mxu0 %v2256_v1 }
  0x89   : > { %1480 = vmatpush1.bf16.msra.mxu1 %v2199_v15 }
  0x8a   : > { %1481 = vmatprep.subr.bf16.mxu1 %v2256_v1 }
  0x8b   : > { %1330 = vmatpush1.bf16.msra.mxu0 %v2196_v16 }
  0x8c   : > { %1331 = vmatprep.subr.bf16.mxu0 %v2256_v1 }
  0x8d   : > { %1482 = vmatpush1.bf16.msra.mxu1 %v2201_v17 }
  0x8e   : > { %1483 = vmatprep.subr.bf16.mxu1 %v2256_v1 }
  0x8f   : > { %1332 = vmatpush1.bf16.msra.mxu0 %v2198_v18 }
  0x90   : > { %1333 = vmatprep.subr.bf16.mxu0 %v2256_v1 }
  0x91   : > { %1484 = vmatpush1.bf16.msra.mxu1 %v2203_v19 }
  0x92   : > { %1485 = vmatprep.subr.bf16.mxu1 %v2256_v1 }
  0x93   : > { %1334 = vmatpush1.bf16.msra.mxu0 %v2200_v22 }
  0x94   : > { %1335 = vmatprep.subr.bf16.mxu0 %v2256_v1  ;;  %v1400_v1 = vsel %vm557_vm1, %v1395_v35, %v1399_v36 }
  0x95   : > { %1486 = vmatpush1.bf16.msra.mxu1 %v2205_v27 }
  0x96   : > { %1487 = vmatprep.subr.bf16.mxu1 %v2215_v38 }
  0x97   : > { %1336 = vmatpush1.bf16.msra.mxu0 %v2202_v31 }
  0x98   : > { %1609 = vmatprep.subr.bf16.mxu0 %v2215_v38 }
  0x99   : > { %1488 = vmatpush1.bf16.msra.mxu1 %v2207_v34 }
  0x9a   : > { %1352 = vmatmul.mubr.bf16.vlgmr.msra.gmra.mrb[12].mxu0 %v2417_v26  ;;  %v2209_v26 = vld [vmem:[%s2766_s3 + $0x258] sm:$0xff]  }
  0x9b   : > { %1610 = vmatpush1.bf16.msra.mxu0 %v2204_v37  ;;  %2076 = vmatprep.mubr.msk.bf16.mxu0 %vm373_vm0, %v1550_v39 }
  0x9c   : > { %1611 = vmatprep.subr.bf16.mxu0 %v2215_v38  ;;  %1504 = vmatmul.mubr.bf16.vlgmr.msra.gmra.mrb[12].mxu1 %v1400_v1 }
  0x9f   : > { %1612 = vmatpush1.bf16.msra.mxu0 %v2206_v40 }
  0xa0   : > { %1613 = vmatprep.subr.bf16.mxu0 %v2215_v38 }
  0xa3   : > { %1614 = vmatpush1.bf16.msra.mxu0 %v2208_v41 }
  0xa4   : > { %1615 = vmatprep.subr.bf16.mxu0 %v2215_v38 }
  0xa7   : > { %1616 = vmatpush1.bf16.msra.mxu0 %v2209_v26 }
  0xa8   : > { %1617 = vmatprep.subr.bf16.mxu0 %v2215_v38 }
  0xab   : > { %1618 = vmatpush1.bf16.msra.mxu0 %v2210_v42 }
  0xac   : > { %1619 = vmatprep.subr.bf16.mxu0 %v2215_v38 }
  0xaf   : > { %1620 = vmatpush1.bf16.msra.mxu0 %v2211_v21 }
  0xb0   : > { %1621 = vmatprep.subr.bf16.mxu0 %v2215_v38 }
  0xb3   : > { %1622 = vmatpush1.bf16.msra.mxu0 %v2212_v43 }
  0xb4   : > { %1623 = vmatprep.subr.bf16.mxu0 %v2215_v38 }
  0xb7   : > { %1624 = vmatpush1.bf16.msra.mxu0 %v2213_v44 }
  0xb8   : > { %1625 = vmatprep.subr.bf16.mxu0 %v2215_v38 }
  0xbb   : > { %1626 = vmatpush1.bf16.msra.mxu0 %v2214_v47 }
  0xbe   : > { %1642 = vmatmul.mubr.bf16.vlgmr.msra.gmra.mrb[16].mxu0 %v1547_v50 }
 0x101   : > { %v521_v52 = vpop.f32.mrb[0].mxu0  ;;  %v674_v59 = vpop.f32.mrb[0].mxu1 }
 0x102   : > { %v528_v54 = vadd.f32 %v521_v52, %v408_v51  ;;  %v523_v55 = vpop.f32.mrb[1].mxu0  ;;  %v676_v60 = vpop.f32.mrb[1].mxu1 }
 0x103   : > { %v524_v56 = vpop.f32.mrb[2].mxu0  ;;  %v677_v61 = vpop.f32.mrb[2].mxu1 }
 0x104   : > { %530 = vst.msk [vmem:[#allocation3] sm:$0xff] %vm405_vm3, %v528_v54  ;;  %v529_v57 = vadd.f32 %v524_v56, %v409_v53  ;;  %v526_v58 = vpop.f32.mrb[3].mxu0  ;;  %v679_v62 = vpop.f32.mrb[3].mxu1 }
 0x106   : > { %531 = vst.msk [vmem:[#allocation3 + $0x8] sm:$0xff] %vm405_vm3, %v529_v57 }
 0x10b   : > { %v532_v63 = vld [vmem:[#allocation3] sm:$0xff] }
 0x10c   : > { %v681_v0 = vadd.f32 %v674_v59, %v532_v63  ;;  %v2077_v59 = vld [vmem:[%s2767_s4] ss:$0 sm:$0xff] }
 0x10d   : > { %v533_v2 = vld [vmem:[#allocation3 + $0x8] sm:$0xff] }
 0x10e   : > { %683 = vst.msk [vmem:[#allocation3] sm:$0xff] %vm405_vm3, %v681_v0  ;;  %v682_v3 = vadd.f32 %v677_v61, %v533_v2 }
 0x110   : > { %684 = vst.msk [vmem:[#allocation3 + $0x8] sm:$0xff] %vm405_vm3, %v682_v3 }
 0x115   : > { %v685_v4 = vld [vmem:[#allocation3] sm:$0xff] }
 0x117   : > { %v686_v8 = vld [vmem:[#allocation3 + $0x8] sm:$0xff] }
 0x125   : > { %v813_v5 = vpop.f32.mrb[4].mxu0  ;;  %v938_v12 = vpop.f32.mrb[4].mxu1 }
 0x126   : > { %v820_v6 = vadd.f32 %v813_v5, %v685_v4  ;;  %v815_v7 = vpop.f32.mrb[5].mxu0  ;;  %v940_v13 = vpop.f32.mrb[5].mxu1 }
 0x127   : > { %v816_v9 = vpop.f32.mrb[6].mxu0  ;;  %v941_v14 = vpop.f32.mrb[6].mxu1 }
 0x128   : > { %822 = vst.msk [vmem:[#allocation3] sm:$0xff] %vm405_vm3, %v820_v6  ;;  %v821_v10 = vadd.f32 %v816_v9, %v686_v8  ;;  %v818_v11 = vpop.f32.mrb[7].mxu0  ;;  %v943_v15 = vpop.f32.mrb[7].mxu1 }
 0x12a   : > { %823 = vst.msk [vmem:[#allocation3 + $0x8] sm:$0xff] %vm405_vm3, %v821_v10 }
 0x12f   : > { %v824_v16 = vld [vmem:[#allocation3] sm:$0xff] }
 0x130   : > { %v945_v17 = vadd.f32 %v938_v12, %v824_v16 }
 0x131   : > { %v825_v18 = vld [vmem:[#allocation3 + $0x8] sm:$0xff] }
 0x132   : > { %947 = vst.msk [vmem:[#allocation3] sm:$0xff] %vm405_vm3, %v945_v17  ;;  %v946_v19 = vadd.f32 %v941_v14, %v825_v18 }
 0x134   : > { %948 = vst.msk [vmem:[#allocation3 + $0x8] sm:$0xff] %vm405_vm3, %v946_v19 }
 0x139   : > { %v949_v20 = vld [vmem:[#allocation3] sm:$0xff] }
 0x13b   : > { %v950_v25 = vld [vmem:[#allocation3 + $0x8] sm:$0xff] }
 0x149   : > { %v1090_v22 = vpop.f32.mrb[8].mxu0 }
 0x14a   : > { %v1097_v23 = vadd.f32 %v1090_v22, %v949_v20  ;;  %v1092_v24 = vpop.f32.mrb[9].mxu0 }
 0x14b   : > { %v1093_v27 = vpop.f32.mrb[10].mxu0  ;;  %v1228_v30 = vpop.f32.mrb[8].mxu1 }
 0x14c   : > { %1099 = vst.msk [vmem:[#allocation3] sm:$0xff] %vm405_vm3, %v1097_v23  ;;  %v1098_v28 = vadd.f32 %v1093_v27, %v950_v25  ;;  %v1095_v29 = vpop.f32.mrb[11].mxu0  ;;  %v1230_v31 = vpop.f32.mrb[9].mxu1 }
 0x14d   : > { %v1231_v32 = vpop.f32.mrb[10].mxu1 }
 0x14e   : > { %1100 = vst.msk [vmem:[#allocation3 + $0x8] sm:$0xff] %vm405_vm3, %v1098_v28  ;;  %v1233_v33 = vpop.f32.mrb[11].mxu1 }
 0x153   : > { %v1101_v34 = vld [vmem:[#allocation3] sm:$0xff] }
 0x154   : > { %v1235_v35 = vadd.f32 %v1228_v30, %v1101_v34 }
 0x155   : > { %v1102_v36 = vld [vmem:[#allocation3 + $0x8] sm:$0xff] }
 0x156   : > { %1237 = vst.msk [vmem:[#allocation3] sm:$0xff] %vm405_vm3, %v1235_v35  ;;  %v1236_v37 = vadd.f32 %v1231_v32, %v1102_v36 }
 0x158   : > { %1238 = vst.msk [vmem:[#allocation3 + $0x8] sm:$0xff] %vm405_vm3, %v1236_v37 }
 0x15d   : > { %v1239_v38 = vld [vmem:[#allocation3] sm:$0xff] }
 0x15f   : > { %v1240_v41 = vld [vmem:[#allocation3 + $0x8] sm:$0xff] }
 0x16d   : > { %v1353_v39 = vpop.f32.mrb[12].mxu0 }
 0x16e   : > { %v1360_v1 = vadd.f32 %v1353_v39, %v1239_v38  ;;  %v1355_v40 = vpop.f32.mrb[13].mxu0 }
 0x16f   : > { %v1356_v26 = vpop.f32.mrb[14].mxu0  ;;  %v1505_v43 = vpop.f32.mrb[12].mxu1 }
 0x170   : > { %1362 = vst.msk [vmem:[#allocation3] sm:$0xff] %vm405_vm3, %v1360_v1  ;;  %v1361_v42 = vadd.f32 %v1356_v26, %v1240_v41  ;;  %v1358_v21 = vpop.f32.mrb[15].mxu0  ;;  %v1507_v44 = vpop.f32.mrb[13].mxu1 }
 0x171   : > { %v1508_v45 = vpop.f32.mrb[14].mxu1 }
 0x172   : > { %1363 = vst.msk [vmem:[#allocation3 + $0x8] sm:$0xff] %vm405_vm3, %v1361_v42  ;;  %v1510_v46 = vpop.f32.mrb[15].mxu1 }
 0x177   : > { %v1364_v47 = vld [vmem:[#allocation3] sm:$0xff] }
 0x178   : > { %v1512_v48 = vadd.f32 %v1505_v43, %v1364_v47 }
 0x179   : > { %v1365_v49 = vld [vmem:[#allocation3 + $0x8] sm:$0xff] }
 0x17a   : > { %1514 = vst.msk [vmem:[#allocation3] sm:$0xff] %vm405_vm3, %v1512_v48  ;;  %v1513_v50 = vadd.f32 %v1508_v45, %v1365_v49 }
 0x17c   : > { %1515 = vst.msk [vmem:[#allocation3 + $0x8] sm:$0xff] %vm405_vm3, %v1513_v50 }
 0x181   : > { %v1516_v51 = vld [vmem:[#allocation3] sm:$0xff] }
 0x183   : > { %v1517_v55 = vld [vmem:[#allocation3 + $0x8] sm:$0xff] }
 0x191   : > { %v1643_v52 = vpop.f32.mrb[16].mxu0 }
 0x192   : > { %v1650_v53 = vadd.f32 %v1643_v52, %v1516_v51  ;;  %v1645_v54 = vpop.f32.mrb[17].mxu0 }
 0x193   : > { %v1646_v56 = vpop.f32.mrb[18].mxu0 }
 0x194   : > { %1652 = vst.msk [vmem:[#allocation3] sm:$0xff] %vm405_vm3, %v1650_v53  ;;  %v1651_v57 = vadd.f32 %v1646_v56, %v1517_v55  ;;  %v1648_v58 = vpop.f32.mrb[19].mxu0 }
 0x196   : > { %1653 = vst.msk [vmem:[#allocation3 + $0x8] sm:$0xff] %vm405_vm3, %v1651_v57 }
 0x19b   : > { %v1654_v60 = vld [vmem:[#allocation3] sm:$0xff] }
 0x19c   : > { %v1663_v61 = vadd.f32 %v2077_v59, %v1654_v60 }
 0x19d   : > { %v1655_v62 = vld [vmem:[#allocation3 + $0x8] sm:$0xff] }
 0x19e   : > { %vm1665_vm4 = vcmp.gt.f32.partialorder %v1663_v61, 0.0  ;;  %v1667_v63 = vmul.f32 0.2, %v1663_v61  ;;  %v1664_v0 = vadd.f32 %v2077_v59, %v1655_v62 }
 0x1a0   : > { %v1669_v2 = vsel %vm1665_vm4, %v1663_v61, %v1667_v63  ;;  %vm1666_vm6 = vcmp.gt.f32.partialorder %v1664_v0, 0.0  ;;  %v1668_v3 = vmul.f32 0.2, %v1664_v0 }
 0x1a1   : > { %v2086_v4 = vpack.c.bf16 %v1669_v2, %v1669_v2 }
 0x1a2   : > { %v1670_v5 = vsel %vm1666_vm6, %v1664_v0, %v1668_v3 }
 0x1a3   : > { %1680 = vst.msk [vmem:[%s357_s29] sm:$0xf] %vm1679_vm5, %v2086_v4  ;;  %v2087_v6 = vpack.c.bf16 %v1670_v5, %v1670_v5 }
 0x1a5   : > { %1681 = vst.msk [vmem:[%s357_s29 + $0x4] sm:$0xf] %vm1679_vm5, %v2087_v6 }
 0x1a6 PF: > { %s15_s22 = sadd.s32 1, %s2254_s22   ;;  %s2770_s18 = smov %s2246_s20 }
 0x1a7   : > { %p12_p10 = scmp.ge.s32.totalorder %s15_s22, 6   ;;  %s2771_s19 = smov %s2250_s21 }
 0x1a8   : > { %s2772_s20 = smov %s2775_s23  ;;  %s2773_s21 = smov %s2779_s24 }
 0x1a9   :  { %14 = sbr.rel (!%p12_p10) target bundleno = 3 (0x3), region = 84 }

// kernel: gednet_forward.17
= control target key start
LH: loop header
LB: loop body
LE: loop exit
PB: predicated region body
PF: predicated region fallthrough
CT: control target
= control target key end

     0   :  { %s2645_s18 = smov 0   ;;  %s2647_s19 = smov 0   ;;  %s3216_s0 = inlined_call_operand.vmem [shape: bf16[2,96,144], index: 0, kind: input, shape index: {}, may-alias: {0,1,2}]   ;;  %s3217_s1 = inlined_call_operand.vmem [shape: bf16[2,96,144], index: 1, kind: input, shape index: {}, may-alias: {0,1,2}]   ;;  %s3218_s2 = inlined_call_operand.vmem [shape: bf16[2,96,144], index: 2, kind: input, shape index: {}, may-alias: {0,1,2}]   ;;  %s3219_s3 = inlined_call_operand.vmem [shape: bf16[9,144,32], index: 3, kind: input, shape index: {}]   ;;  %s3220_s4 = inlined_call_operand.vmem [shape: f32[1,32], index: 4, kind: input, shape index: {}]   ;;  %s3221_s5 = inlined_call_operand.vmem [shape: bf16[2,64,32], index: 5, kind: output, shape index: {}]  }
   0x1   :  { %s2649_s20 = smov 0   ;;  %s2651_s21 = smov 0  }
   0x2   :  { %s2653_s22 = smov 0  }
   0x3 LB: > { %s24_s23 = sadd.s32 1, %s2603_s20  ;;  %s27_s24 = sadd.s32 1, %s2607_s21  ;;  %s2611_s22 = sphi %s2653_s22, %s15_s22   ;;  %s2607_s21 = sphi %s2651_s21, %s3225_s21   ;;  %s2603_s20 = sphi %s2649_s20, %s3224_s20   ;;  %s2599_s19 = sphi %s2647_s19, %s3223_s19   ;;  %s2595_s18 = sphi %s2645_s18, %s3222_s18  }
   0x4   : > { %p25_p0 = scmp.ge.s32.totalorder %s24_s23, 2  ;;  %p2125_p1 = scmp.ge.s32.totalorder %s2611_s22, 1 }
   0x5   : > { %p265_p2 = scmp.lt.s32.totalorder %s2611_s22, 5 }
   0x6   : > { %s3227_s23 = smov (%p25_p0, %s24_s23), 0  ;;  %s3229_s24 = smov (!%p25_p0, %s27_s24), %s2607_s21 }
   0x7   : > { %p266_p3 = pnand %p2125_p1, %p265_p2  ;;  %p29_p4 = scmp.ge.s32.totalorder %s3229_s24, 2 }
   0x8   : > { %v2483_v0 = vld [vmem:[%s3219_s3] sm:$0xff] (!%p266_p3)   ;;  %v2613_v1 = vmov (!%p266_p3), 0   ;;  %v2484_v2 = vld [vmem:[%s3219_s3 + $0x48] sm:$0xff] (!%p266_p3)   ;;  %s2686_s29 = sshll.u32 (!%p266_p3), %s2595_s18, 2  ;;  %p328_p5 = scmp.lt.s32.totalorder (!%p266_p3), %s2599_s19, 1  ;;  %v2486_v4 = vld [vmem:[%s3219_s3 + $0x50] sm:$0xff] (!%p266_p3)  }
   0x9   : > { %s3231_s24 = smov (%p29_p4, %s3229_s24), 0  ;;  %269 = sbr.rel (%p266_p3) target bundleno = 423 (0x1a7), region = 40 }
   0xa   : > { %531 = vmatprep.subr.bf16.mxu0 (!%p266_p3), %v2613_v1  ;;  %438 = vst [vmem:[#allocation2 + $0x40] sm:$0xff] (!%p266_p3), %v2613_v1  ;;  %720 = vmatprep.subr.bf16.mxu1 (!%p266_p3), %v2613_v1  ;;  %v2485_v3 = vld [vmem:[%s3219_s3 + $0x8] sm:$0xff] (!%p266_p3)   ;;  %p330_p6 = scmp.lt.s32.totalorder (!%p266_p3), %s2686_s29, 11  ;;  %v2487_v5 = vld [vmem:[%s3219_s3 + $0x10] sm:$0xff] (!%p266_p3)   ;;  %v2488_v6 = vld [vmem:[%s3219_s3 + $0x58] sm:$0xff] (!%p266_p3)   ;;  %p373_p7 = scmp.lt.s32.totalorder (!%p266_p3), %s2686_s29, 7 }
   0xb   : > { %532 = vmatpush1.bf16.msra.mxu0 (!%p266_p3), %v2483_v0  ;;  %721 = vmatpush1.bf16.msra.mxu1 (!%p266_p3), %v2484_v2  ;;  %v2489_v7 = vld [vmem:[%s3219_s3 + $0x18] sm:$0xff] (!%p266_p3)   ;;  %v2490_v8 = vld [vmem:[%s3219_s3 + $0x60] sm:$0xff] (!%p266_p3)   ;;  %vm406_vm0 = vcmask (!%p266_p3), 130048   ;;  %s2726_s7 = sadd.s32 (!%p266_p3), 4, %s2686_s29  ;;  %v2492_v10 = vld [vmem:[%s3219_s3 + $0x68] sm:$0xff] (!%p266_p3)   ;;  %vm812_vm2 = vcmask (!%p266_p3), 1046528  }
   0xc   : > { %533 = vmatprep.subr.bf16.mxu0 (!%p266_p3), %v2613_v1  ;;  %722 = vmatprep.subr.bf16.mxu1 (!%p266_p3), %v2613_v1  ;;  %439 = vst.msk [vmem:[#allocation2 + $0x48] sm:$0xff] (!%p266_p3), %vm406_vm0, %v2613_v1  ;;  %v2491_v9 = vld [vmem:[%s3219_s3 + $0x20] sm:$0xff] (!%p266_p3)   ;;  %p343_p8 = scmp.lt.s32.totalorder (!%p266_p3), %s2726_s7, 11  ;;  %v2493_v11 = vld [vmem:[%s3219_s3 + $0x28] sm:$0xff] (!%p266_p3)   ;;  %v2494_v12 = vld [vmem:[%s3219_s3 + $0x70] sm:$0xff] (!%p266_p3)   ;;  %vm440_vm3 = vcmask (!%p266_p3), 261120  }
   0xd   : > { %v2495_v21 = vld [vmem:[%s3219_s3 + $0x30] sm:$0xff] (!%p266_p3)   ;;  %v2496_v22 = vld [vmem:[%s3219_s3 + $0x78] sm:$0xff] (!%p266_p3)   ;;  %vm617_vm1 = vsmask.f32 (!%p266_p3), 7424  ;;  %v2498_v25 = vld [vmem:[%s3219_s3 + $0x80] sm:$0xff] (!%p266_p3)   ;;  %vm1977_vm6 = vcmask (!%p266_p3), 257024  }
   0xe   : > { %v2497_v24 = vld [vmem:[%s3219_s3 + $0x38] sm:$0xff] (!%p266_p3)   ;;  %v2499_v33 = vld [vmem:[%s3219_s3 + $0x40] sm:$0xff] (!%p266_p3)   ;;  %v2500_v35 = vld [vmem:[%s3219_s3 + $0x88] sm:$0xff] (!%p266_p3)  }
   0xf   : > { %534 = vmatpush1.bf16.msra.mxu0 (!%p266_p3), %v2485_v3  ;;  %723 = vmatpush1.bf16.msra.mxu1 (!%p266_p3), %v2486_v4  ;;  %v2505_v41 = vld [vmem:[%s3219_s3 + $0x90] sm:$0xff] (!%p266_p3)   ;;  %v2506_v48 = vld [vmem:[%s3219_s3 + $0xd8] sm:$0xff] (!%p266_p3)   ;;  %v2508_v50 = vld [vmem:[%s3219_s3 + $0xe0] sm:$0xff] (!%p266_p3)  }
  0x10   : > { %s3233_s19 = smov (!%p328_p5, %s2599_s19), 1  ;;  %535 = vmatprep.subr.bf16.mxu0 %v2613_v1  ;;  %724 = vmatprep.subr.bf16.mxu1 %v2613_v1  ;;  %v2507_v49 = vld [vmem:[%s3219_s3 + $0x98] sm:$0xff]   ;;  %v2509_v56 = vld [vmem:[%s3219_s3 + $0xa0] sm:$0xff]   ;;  %v2510_v57 = vld [vmem:[%s3219_s3 + $0xe8] sm:$0xff]  }
  0x11   : > { %s331_s9 = scalar_select %p330_p6, %s2686_s29, 11  ;;  %v2511_v2 = vld [vmem:[%s3219_s3 + $0xa8] sm:$0xff]  }
  0x12   : > { %s2703_s12 = smul.u32 24, %s3233_s19  ;;  %s2138_s25 = sshll.u32 %s3233_s19, 3 }
  0x13   : > { %s2127_s15 = sshll.u32 %s331_s9, 1  ;;  %536 = vmatpush1.bf16.msra.mxu0 %v2487_v5  ;;  %725 = vmatpush1.bf16.msra.mxu1 %v2488_v6  ;;  %v2512_v5 = vld [vmem:[%s3219_s3 + $0xf0] sm:$0xff]  }
  0x14   : > { %s334_s16 = sadd.s32 %s2703_s12, %s2127_s15  ;;  %537 = vmatprep.subr.bf16.mxu0 %v2613_v1  ;;  %726 = vmatprep.subr.bf16.mxu1 %v2613_v1  ;;  %s2412_s15 = sadd.s32 2, %s2726_s7 }
  0x15   : > { %s374_s28 = scalar_select %p373_p7, %s2686_s29, 7 }
  0x16   : > { %s2128_s30 = sshll.u32 %s334_s16, 2  ;;  %p359_p9 = scmp.lt.s32.totalorder %s2412_s15, 11 }
  0x17   : > { %s2721_s6 = sadd.s32 %s2138_s25, %s374_s28  ;;  %538 = vmatpush1.bf16.msra.mxu0 %v2489_v7  ;;  %727 = vmatpush1.bf16.msra.mxu1 %v2490_v8  ;;  %s336_s14 = scalar_lea.vmem %s3216_s0, %s2128_s30  ;;  %v2513_v8 = vld [vmem:[%s3219_s3 + $0xb0] sm:$0xff]  }
  0x18   : > { %539 = vmatprep.subr.bf16.mxu0 %v2613_v1  ;;  %728 = vmatprep.subr.bf16.mxu1 %v2613_v1  ;;  %s344_s18 = scalar_select %p343_p8, %s2726_s7, 11  ;;  %v381_v13 = vld [vmem:[%s336_s14] sm:$0xff]  ;;  %v382_v14 = vld [vmem:[%s336_s14 + $0x8] sm:$0xff]  ;;  %v383_v16 = vld [vmem:[%s336_s14 + $0x10] sm:$0xff] }
  0x19   : > { %v2501_v15 = vld [vmem:[%s336_s14 + $0x4] ss:$8 sps:$4 sm:$0xff]   ;;  %v384_v17 = vld [vmem:[%s336_s14 + $0x18] sm:$0xff]  ;;  %v2140_v19 = vcombine.low %v381_v13, %v382_v14  ;;  %s3235_s15 = smov (!%p359_p9, %s2412_s15), 11  ;;  %v2614_v13 = vmov 0.0   ;;  %s2139_s30 = sshll.u32 %s2721_s6, 2 }
  0x1a   : > { %v2503_v18 = vld [vmem:[%s336_s14 + $0x14] ss:$8 sps:$4 sm:$0xff]   ;;  %407 = vst.msk [vmem:[#allocation2 + $0x8] sm:$0xff] %vm406_vm0, %v2501_v15  ;;  %v2750_v20 = vcombine.low %v383_v16, %v384_v17  ;;  %s2131_s25 = sshll.u32 %s344_s18, 1  ;;  %s2135_s8 = sshll.u32 %s3235_s15, 1  ;;  %v2520_v14 = vld [vmem:[%s3219_s3 + $0x108] sm:$0xff]  }
  0x1b   : > { %540 = vmatpush1.bf16.msra.mxu0 %v2491_v9  ;;  %729 = vmatpush1.bf16.msra.mxu1 %v2492_v10  ;;  %409 = vst.msk [vmem:[#allocation2 + $0x18] sm:$0xff] %vm406_vm0, %v2503_v18  ;;  %405 = vst [vmem:[#allocation2] sm:$0xff] %v2140_v19  ;;  %v621_v23 = vshll.u32 %v2140_v19, 16  ;;  %s347_s9 = sadd.s32 %s2703_s12, %s2131_s25  ;;  %v619_v26 = vshrl.u32 %v2140_v19, 16  ;;  %v2514_v9 = vld [vmem:[%s3219_s3 + $0xf8] sm:$0xff]   ;;  %s363_s11 = sadd.s32 %s2703_s12, %s2135_s8  ;;  %v2521_v15 = vld [vmem:[%s3219_s3 + $0xc8] sm:$0xff]  }
  0x1c   : > { %541 = vmatprep.subr.bf16.mxu0 %v2613_v1  ;;  %730 = vmatprep.subr.bf16.mxu1 %v2613_v1  ;;  %408 = vst [vmem:[#allocation2 + $0x10] sm:$0xff] %v2750_v20  ;;  %v626_v29 = vshll.u32 %v2750_v20, 16  ;;  %s2132_s13 = sshll.u32 %s347_s9, 2  ;;  %v642_v53 = vshrl.u32 %v2750_v20, 16  ;;  %v2515_v10 = vld [vmem:[%s3219_s3 + $0xb8] sm:$0xff]   ;;  %441 = vst.msk [vmem:[#allocation3] sm:$0xff] %vm440_vm3, %v2614_v13  ;;  %s378_s9 = scalar_lea.vmem %s3221_s5, %s2139_s30 }
  0x1d   : > { %v623_v28 = vrot.slane %v621_v23, 1  ;;  %s349_s25 = scalar_lea.vmem %s3217_s1, %s2132_s13  ;;  %442 = vst.msk [vmem:[#allocation3 + $0x8] sm:$0xff] %vm440_vm3, %v2614_v13  ;;  %443 = vst.msk [vmem:[#allocation3 + $0x10] sm:$0xff] %vm440_vm3, %v2614_v13  ;;  %s2136_s12 = sshll.u32 %s363_s11, 2  ;;  %v2522_v16 = vld [vmem:[%s3219_s3 + $0x110] sm:$0xff]  }
  0x1e   : > { %v628_v39 = vrot.slane %v626_v29, 1  ;;  %v410_v42 = vld [vmem:[%s349_s25] sm:$0xff]  ;;  %v411_v43 = vld [vmem:[%s349_s25 + $0x8] sm:$0xff]  ;;  %444 = vst.msk [vmem:[#allocation3 + $0x18] sm:$0xff] %vm440_vm3, %v2614_v13  ;;  %s365_s27 = scalar_lea.vmem %s3218_s2, %s2136_s12  ;;  %v2523_v18 = vld [vmem:[%s3219_s3 + $0xd0] sm:$0xff]  }
  0x1f   : > { %542 = vmatpush1.bf16.msra.mxu0 %v2493_v11  ;;  %731 = vmatpush1.bf16.msra.mxu1 %v2494_v12  ;;  %v624_v38 = vor.u32 %v623_v28, %v619_v26  ;;  %v2517_v45 = vld [vmem:[%s349_s25 + $0x4] ss:$8 sps:$4 sm:$0xff]   ;;  %v2791_v46 = vcombine.low %v410_v42, %v411_v43 }
  0x20   : > { %543 = vmatprep.subr.bf16.mxu0 %v2613_v1  ;;  %732 = vmatprep.subr.bf16.mxu1 %v2613_v1  ;;  %423 = vst.msk [vmem:[#allocation2 + $0x28] sm:$0xff] %vm406_vm0, %v2517_v45  ;;  %v2829_v63 = vor.u32 %v642_v53, %v628_v39  ;;  %v2516_v11 = vld [vmem:[%s3219_s3 + $0x100] sm:$0xff]   ;;  %v2536_v53 = vld [vmem:[%s3219_s3 + $0x190] sm:$0xff]  }
  0x21   : > { %v450_v27 = vld [vmem:[#allocation2 + $0x8] sm:$0xff]  ;;  %v629_v47 = vsel %vm617_vm1, %v624_v38, %v628_v39  ;;  %422 = vst [vmem:[#allocation2 + $0x20] sm:$0xff] %v2791_v46  ;;  %v2519_v12 = vld [vmem:[%s3219_s3 + $0xc0] sm:$0xff]   ;;  %v2528_v38 = vld [vmem:[%s3219_s3 + $0x170] sm:$0xff]  }
  0x22   : > { %2157 = vmatprep.mubr.msk.bf16.mxu0 %vm406_vm0, %v450_v27  ;;  %v2773_v30 = vld [vmem:[#allocation2 + $0x18] sm:$0xff]  ;;  %v631_v31 = vshrl.u32 %v450_v27, 16  ;;  %v633_v32 = vshll.u32 %v450_v27, 16  ;;  %v782_v54 = vld [vmem:[#allocation2 + $0x8] sm:$0xfe]  ;;  %v2525_v28 = vld [vmem:[%s3219_s3 + $0x120] sm:$0xff]  }
  0x23   : > { %544 = vmatpush1.bf16.msra.mxu0 %v2495_v21  ;;  %733 = vmatpush1.bf16.msra.mxu1 %v2496_v22  ;;  %v638_v34 = vshll.u32 %v2773_v30, 16  ;;  %v817_v51 = vrot.slane %v2773_v30, 1  ;;  %v650_v52 = vshrl.u32 %v2773_v30, 16  ;;  %v816_v55 = vrot.slane %v782_v54, 1  ;;  %v781_v17 = vld [vmem:[#allocation2] sm:$0xfe] }
  0x24   : > { %545 = vmatprep.subr.bf16.mxu0 %v2613_v1  ;;  %734 = vmatprep.subr.bf16.mxu1 %v2613_v1  ;;  %v635_v36 = vrot.slane %v633_v32, 1  ;;  %v813_v21 = vrot.slane %v781_v17, 1  ;;  %v814_v22 = vrot.slane %v2750_v20, 1  ;;  %v2547_v26 = vld [vmem:[%s365_s27 + $0x4] ss:$8 sps:$4 sm:$0xff]   ;;  %v2537_v54 = vld [vmem:[%s3219_s3 + $0x150] sm:$0xff]  }
  0x25   : > { %v640_v37 = vrot.slane %v638_v34, 1  ;;  %v818_v60 = vsel %vm812_vm2, %v816_v55, %v817_v51  ;;  %437 = vst.msk [vmem:[#allocation2 + $0x38] sm:$0xff] %vm406_vm0, %v2547_v26  ;;  %v2526_v32 = vld [vmem:[%s3219_s3 + $0x168] sm:$0xff]   ;;  %v2538_v55 = vld [vmem:[%s3219_s3 + $0x198] sm:$0xff]  }
  0x26   : > { %v636_v40 = vor.u32 %v635_v36, %v631_v31  ;;  %v815_v31 = vsel %vm812_vm2, %v813_v21, %v814_v22 }
  0x27   : > { %546 = vmatpush1.bf16.msra.mxu0 %v2497_v24  ;;  %735 = vmatpush1.bf16.msra.mxu1 %v2498_v25  ;;  %v597_v58 = vld [vmem:[#allocation2 + $0x28] sm:$0x1]  ;;  %v2826_v61 = vor.u32 %v650_v52, %v640_v37  ;;  %v424_v24 = vld [vmem:[%s365_s27] sm:$0xff] }
  0x28   : > { %547 = vmatprep.subr.bf16.mxu0 %v2613_v1  ;;  %736 = vmatprep.subr.bf16.mxu1 %v2613_v1  ;;  %v641_v44 = vsel %vm617_vm1, %v636_v40, %v640_v37  ;;  %v596_v59 = vld [vmem:[#allocation2 + $0x20] sm:$0x1]  ;;  %v654_v62 = vshll.u32 %v597_v58, 16  ;;  %v786_v23 = vld [vmem:[#allocation2 + $0x28] sm:$0x1] }
  0x29   : > { %2186 = vmatprep.mubr.msk.bf16.mxu1 %vm406_vm0, %v641_v44  ;;  %v646_v0 = vshll.u32 %v596_v59, 16  ;;  %v425_v25 = vld [vmem:[%s365_s27 + $0x8] sm:$0xff]  ;;  %v821_v29 = vrot.slane %v786_v23, 1  ;;  %v1279_v40 = vld [vmem:[#allocation2 + $0x18] sm:$0xfe]  ;;  %v2540_v59 = vld [vmem:[%s3219_s3 + $0x1a0] sm:$0xff]  }
  0x2a   : > { %v656_v3 = vrot.slane %v654_v62, 1  ;;  %v2896_v27 = vcombine.low %v424_v24, %v425_v25  ;;  %v2910_v34 = vld [vmem:[#allocation2 + $0x28] sm:$0xff]  ;;  %v1312_v42 = vrot.slane %v1279_v40, 1  ;;  %v2530_v44 = vld [vmem:[%s3219_s3 + $0x178] sm:$0xff]   ;;  %v2546_v25 = vld [vmem:[%s3219_s3 + $0x200] sm:$0xff]  }
  0x2b   : > { %548 = vmatpush1.bf16.msra.mxu0 %v2499_v33  ;;  %737 = vmatpush1.bf16.msra.mxu1 %v2500_v35  ;;  %v648_v4 = vrot.slane %v646_v0, 1  ;;  %v785_v33 = vld [vmem:[#allocation2 + $0x20] sm:$0x1]  ;;  %v2527_v35 = vld [vmem:[%s3219_s3 + $0x128] sm:$0xff]   ;;  %v822_v36 = vsel %vm812_vm2, %v817_v51, %v821_v29  ;;  %v1135_v37 = vshll.u32 %v2910_v34, 16  ;;  %v1313_v43 = vrot.slane %v2910_v34, 1 }
  0x2c   : > { %885 = vmatprep.subr.bf16.mxu0 %v2613_v1  ;;  %1029 = vmatprep.subr.bf16.mxu1 %v2613_v1  ;;  %v657_v6 = vsel %vm617_vm1, %v2826_v61, %v656_v3  ;;  %436 = vst [vmem:[#allocation2 + $0x30] sm:$0xff] %v2896_v27  ;;  %v819_v39 = vrot.slane %v785_v33, 1  ;;  %v2534_v51 = vld [vmem:[%s3219_s3 + $0x188] sm:$0xff]   ;;  %v1095_v58 = vld [vmem:[#allocation2 + $0x38] sm:$0x1]  ;;  %v2541_v0 = vld [vmem:[%s3219_s3 + $0x160] sm:$0xff]  }
  0x2d   : > { %v649_v7 = vsel %vm617_vm1, %v2829_v63, %v648_v4  ;;  %v2535_v52 = vld [vmem:[%s3219_s3 + $0x148] sm:$0xff]   ;;  %v1151_v62 = vshll.u32 %v1095_v58, 16  ;;  %v1310_v3 = vrot.slane %v2791_v46, 1  ;;  %v3008_v17 = vld [vmem:[#allocation2 + $0x38] sm:$0xff]  ;;  %v2549_v29 = vld [vmem:[%s3219_s3 + $0x1c0] sm:$0xff]  }
  0x2e   : > { %564 = vmatmul.mubr.bf16.vlgmr.msra.gmra.mrb[0].mxu0 %v2140_v19  ;;  %753 = vmatmul.mubr.bf16.vlgmr.msra.gmra.mrb[0].mxu1 %v629_v47  ;;  %v2524_v19 = vld [vmem:[%s3219_s3 + $0x118] sm:$0xff]   ;;  %v2542_v4 = vld [vmem:[%s3219_s3 + $0x1a8] sm:$0xff]   ;;  %v1631_v24 = vshll.u32 %v3008_v17, 16 }
  0x2f   : > { %886 = vmatpush1.bf16.msra.mxu0 %v2505_v41  ;;  %1030 = vmatpush1.bf16.msra.mxu1 %v2506_v48  ;;  %v820_v41 = vsel %vm812_vm2, %v814_v22, %v819_v39  ;;  %v2531_v47 = vld [vmem:[%s3219_s3 + $0x138] sm:$0xff]   ;;  %v1314_v48 = vsel %vm812_vm2, %v1312_v42, %v1313_v43  ;;  %v3054_v39 = vld [vmem:[#allocation2 + $0x40] sm:$0xff]  ;;  %v2560_v42 = vld [vmem:[%s3219_s3 + $0x230] sm:$0xff]  }
  0x30   : > { %887 = vmatprep.subr.bf16.mxu0 %v2613_v1  ;;  %1031 = vmatprep.subr.bf16.mxu1 %v2613_v1  ;;  %v2554_v40 = vld [vmem:[%s3219_s3 + $0x218] sm:$0xff]   ;;  %v2564_v58 = vld [vmem:[%s3219_s3 + $0x248] sm:$0xff]  }
  0x31   : > { %2158 = vmatprep.mubr.msk.bf16.mxu0 %vm406_vm0, %v2773_v30  ;;  %2187 = vmatprep.mubr.msk.bf16.mxu1 %vm406_vm0, %v657_v6 }
  0x33   : > { %888 = vmatpush1.bf16.msra.mxu0 %v2507_v49  ;;  %1032 = vmatpush1.bf16.msra.mxu1 %v2508_v50  ;;  %v2532_v49 = vld [vmem:[%s3219_s3 + $0x180] sm:$0xff]   ;;  %v1094_v6 = vld [vmem:[#allocation2 + $0x30] sm:$0x1] }
  0x34   : > { %889 = vmatprep.subr.bf16.mxu0 %v2613_v1  ;;  %1033 = vmatprep.subr.bf16.mxu1 %v2613_v1  ;;  %v2533_v50 = vld [vmem:[%s3219_s3 + $0x140] sm:$0xff]   ;;  %v1143_v13 = vshll.u32 %v1094_v6, 16 }
  0x36   : > { %572 = vmatmul.mubr.bf16.gmra.mrb[4].mxu0 %v2750_v20  ;;  %761 = vmatmul.mubr.bf16.gmra.mrb[4].mxu1 %v649_v7  ;;  %v1283_v7 = vld [vmem:[#allocation2 + $0x38] sm:$0x1]  ;;  %v1145_v22 = vrot.slane %v1143_v13, 1  ;;  %v1774_v13 = vld [vmem:[#allocation2 + $0x20] sm:$0xfe] }
  0x37   : > { %890 = vmatpush1.bf16.msra.mxu0 %v2509_v56  ;;  %2215 = vmatprep.mubr.msk.bf16.mxu0 %vm406_vm0, %v818_v60  ;;  %v2539_v56 = vld [vmem:[%s3219_s3 + $0x158] sm:$0xff]   ;;  %v1278_v60 = vld [vmem:[#allocation2 + $0x10] sm:$0xfe] }
  0x38   : > { %1034 = vmatpush1.bf16.msra.mxu1 %v2510_v57  ;;  %891 = vmatprep.subr.bf16.mxu0 %v2613_v1  ;;  %v1123_v57 = vshll.u32 %v2791_v46, 16 }
  0x39   : > { %1035 = vmatprep.subr.bf16.mxu1 %v2613_v1  ;;  %2244 = vmatprep.mubr.msk.bf16.mxu1 %vm406_vm0, %v2773_v30  ;;  %v2529_v30 = vld [vmem:[%s3219_s3 + $0x130] sm:$0xff]  }
  0x3b   : > { %892 = vmatpush1.bf16.msra.mxu0 %v2511_v2  ;;  %v1125_v2 = vrot.slane %v1123_v57, 1 }
  0x3c   : > { %1036 = vmatpush1.bf16.msra.mxu1 %v2512_v5  ;;  %893 = vmatprep.subr.bf16.mxu0 %v2613_v1  ;;  %v1309_v5 = vrot.slane %v1278_v60, 1  ;;  %v1775_v60 = vld [vmem:[#allocation2 + $0x28] sm:$0xfe] }
  0x3d   : > { %1037 = vmatprep.subr.bf16.mxu1 %v2613_v1 }
  0x3f   : > { %894 = vmatpush1.bf16.msra.mxu0 %v2513_v8 }
  0x40   : > { %1038 = vmatpush1.bf16.msra.mxu1 %v2514_v9  ;;  %895 = vmatprep.subr.bf16.mxu0 %v2613_v1  ;;  %v1153_v9 = vrot.slane %v1151_v62, 1 }
  0x41   : > { %1039 = vmatprep.subr.bf16.mxu1 %v2613_v1 }
  0x43   : > { %896 = vmatpush1.bf16.msra.mxu0 %v2515_v10  ;;  %v1126_v10 = vsel %vm617_vm1, %v2829_v63, %v1125_v2  ;;  %v1282_v63 = vld [vmem:[#allocation2 + $0x30] sm:$0x1] }
  0x44   : > { %1040 = vmatpush1.bf16.msra.mxu1 %v2516_v11  ;;  %897 = vmatprep.subr.bf16.mxu0 %v2613_v1  ;;  %v2543_v11 = vld [vmem:[%s3219_s3 + $0x1b0] sm:$0xff]   ;;  %v1315_v26 = vrot.slane %v1282_v63, 1 }
  0x45   : > { %1041 = vmatprep.subr.bf16.mxu1 %v2613_v1 }
  0x46   : > { %v1316_v33 = vsel %vm812_vm2, %v1310_v3, %v1315_v26 }
  0x47   : > { %898 = vmatpush1.bf16.msra.mxu0 %v2519_v12  ;;  %v1139_v12 = vshrl.u32 %v2791_v46, 16 }
  0x48   : > { %1042 = vmatpush1.bf16.msra.mxu1 %v2520_v14  ;;  %899 = vmatprep.subr.bf16.mxu0 %v2613_v1  ;;  %v1317_v14 = vrot.slane %v1283_v7, 1  ;;  %v2566_v7 = vld [vmem:[%s3219_s3 + $0x258] sm:$0xff]  }
  0x49   : > { %1043 = vmatprep.subr.bf16.mxu1 %v2613_v1  ;;  %v3015_v21 = vor.u32 %v1139_v12, %v1125_v2  ;;  %v1809_v2 = vrot.slane %v3008_v17, 1  ;;  %v2570_v12 = vld [vmem:[%s3219_s3 + $0x278] sm:$0xff]  }
  0x4a   : > { %v1318_v23 = vsel %vm812_vm2, %v1313_v43, %v1317_v14  ;;  %v1619_v43 = vshll.u32 %v2896_v27, 16  ;;  %v1778_v14 = vld [vmem:[#allocation2 + $0x40] sm:$0x1] }
  0x4b   : > { %900 = vmatpush1.bf16.msra.mxu0 %v2521_v15  ;;  %v1311_v15 = vsel %vm812_vm2, %v1309_v5, %v1310_v3  ;;  %v2565_v3 = vld [vmem:[%s3219_s3 + $0x250] sm:$0xff]   ;;  %v1811_v63 = vrot.slane %v1778_v14, 1 }
  0x4c   : > { %1044 = vmatpush1.bf16.msra.mxu1 %v2522_v16  ;;  %901 = vmatprep.subr.bf16.mxu0 %v2613_v1  ;;  %v2544_v16 = vld [vmem:[%s3219_s3 + $0x1f8] sm:$0xff]  }
  0x4d   : > { %1045 = vmatprep.subr.bf16.mxu1 %v2613_v1 }
  0x4f   : > { %902 = vmatpush1.bf16.msra.mxu0 %v2523_v18 }
  0x50   : > { %1046 = vmatpush1.bf16.msra.mxu1 %v2524_v19  ;;  %1217 = vmatprep.subr.bf16.mxu0 %v2613_v1  ;;  %v2545_v19 = vld [vmem:[%s3219_s3 + $0x1b8] sm:$0xff]  }
  0x51   : > { %1381 = vmatprep.subr.bf16.mxu1 %v2613_v1 }
  0x52   : > { %918 = vmatmul.mubr.bf16.vlgmr.msra.gmra.mrb[8].mxu0 %v815_v31  ;;  %v1633_v31 = vrot.slane %v1631_v24, 1 }
  0x53   : > { %1062 = vmatmul.mubr.bf16.vlgmr.msra.gmra.mrb[8].mxu1 %v2750_v20  ;;  %1218 = vmatpush1.bf16.msra.mxu0 %v2525_v28  ;;  %v1137_v20 = vrot.slane %v1135_v37, 1  ;;  %v1146_v28 = vsel %vm617_vm1, %v3015_v21, %v1145_v22  ;;  %v2552_v37 = vld [vmem:[%s3219_s3 + $0x210] sm:$0xff]  }
  0x54   : > { %1382 = vmatpush1.bf16.msra.mxu1 %v2526_v32  ;;  %1219 = vmatprep.subr.bf16.mxu0 %v2613_v1  ;;  %v2550_v32 = vld [vmem:[%s3219_s3 + $0x208] sm:$0xff]  }
  0x55   : > { %1383 = vmatprep.subr.bf16.mxu1 %v2613_v1  ;;  %2216 = vmatprep.mubr.msk.bf16.mxu0 %vm406_vm0, %v822_v36  ;;  %v1138_v45 = vsel %vm617_vm1, %v2826_v61, %v1137_v20  ;;  %v1147_v61 = vshrl.u32 %v2910_v34, 16 }
  0x56   : > { %2245 = vmatprep.mubr.msk.bf16.mxu1 %vm406_vm0, %v2910_v34 }
  0x57   : > { %1220 = vmatpush1.bf16.msra.mxu0 %v2527_v35  ;;  %v1149_v8 = vor.u32 %v1147_v61, %v1137_v20  ;;  %v2551_v35 = vld [vmem:[%s3219_s3 + $0x1c8] sm:$0xff]  }
  0x58   : > { %1384 = vmatpush1.bf16.msra.mxu1 %v2528_v38  ;;  %1221 = vmatprep.subr.bf16.mxu0 %v2613_v1  ;;  %v2553_v38 = vld [vmem:[%s3219_s3 + $0x1d0] sm:$0xff]   ;;  %v2558_v20 = vld [vmem:[%s3219_s3 + $0x228] sm:$0xff]  }
  0x59   : > { %1385 = vmatprep.subr.bf16.mxu1 %v2613_v1  ;;  %v1154_v18 = vsel %vm617_vm1, %v1149_v8, %v1153_v9  ;;  %v1634_v36 = vsel %vm617_vm1, %v1149_v8, %v1633_v31  ;;  %v2567_v9 = vld [vmem:[%s3219_s3 + $0x260] sm:$0xff]  }
  0x5a   : > { %926 = vmatmul.mubr.bf16.gmra.mrb[12].mxu0 %v820_v41  ;;  %v2559_v41 = vld [vmem:[%s3219_s3 + $0x1e8] sm:$0xff]  }
  0x5b   : > { %1222 = vmatpush1.bf16.msra.mxu0 %v2529_v30  ;;  %1070 = vmatmul.mubr.bf16.gmra.mrb[12].mxu1 %v2791_v46  ;;  %v2557_v30 = vld [vmem:[%s3219_s3 + $0x1e0] sm:$0xff]  }
  0x5c   : > { %1386 = vmatpush1.bf16.msra.mxu1 %v2530_v44  ;;  %1223 = vmatprep.subr.bf16.mxu0 %v2613_v1  ;;  %v1591_v44 = vld [vmem:[#allocation2 + $0x48] sm:$0x1] }
  0x5d   : > { %1387 = vmatprep.subr.bf16.mxu1 %v2613_v1  ;;  %2273 = vmatprep.mubr.msk.bf16.mxu0 %vm406_vm0, %v1138_v45  ;;  %v2561_v45 = vld [vmem:[%s3219_s3 + $0x1f0] sm:$0xff]  }
  0x5e   : > { %2302 = vmatprep.mubr.msk.bf16.mxu1 %vm406_vm0, %v1314_v48  ;;  %v1647_v48 = vshll.u32 %v1591_v44, 16 }
  0x5f   : > { %1224 = vmatpush1.bf16.msra.mxu0 %v2531_v47  ;;  %v1643_v47 = vshrl.u32 %v3008_v17, 16 }
  0x60   : > { %1388 = vmatpush1.bf16.msra.mxu1 %v2532_v49  ;;  %1225 = vmatprep.subr.bf16.mxu0 %v2613_v1  ;;  %v2562_v49 = vld [vmem:[%s3219_s3 + $0x238] sm:$0xff]  }
  0x61   : > { %1389 = vmatprep.subr.bf16.mxu1 %v2613_v1 }
  0x63   : > { %1226 = vmatpush1.bf16.msra.mxu0 %v2533_v50  ;;  %v1621_v50 = vrot.slane %v1619_v43, 1 }
  0x64   : > { %1390 = vmatpush1.bf16.msra.mxu1 %v2534_v51  ;;  %1227 = vmatprep.subr.bf16.mxu0 %v2613_v1  ;;  %v1590_v51 = vld [vmem:[#allocation2 + $0x40] sm:$0x1] }
  0x65   : > { %1391 = vmatprep.subr.bf16.mxu1 %v2613_v1  ;;  %v1639_v57 = vshll.u32 %v1590_v51, 16 }
  0x67   : > { %1228 = vmatpush1.bf16.msra.mxu0 %v2535_v52  ;;  %v2563_v52 = vld [vmem:[%s3219_s3 + $0x240] sm:$0xff]   ;;  %v1641_v62 = vrot.slane %v1639_v57, 1 }
  0x68   : > { %1392 = vmatpush1.bf16.msra.mxu1 %v2536_v53  ;;  %1229 = vmatprep.subr.bf16.mxu0 %v2613_v1  ;;  %v1645_v53 = vor.u32 %v1643_v47, %v1633_v31 }
  0x69   : > { %1393 = vmatprep.subr.bf16.mxu1 %v2613_v1 }
  0x6b   : > { %1230 = vmatpush1.bf16.msra.mxu0 %v2537_v54  ;;  %v1649_v54 = vrot.slane %v1647_v48, 1 }
  0x6c   : > { %1394 = vmatpush1.bf16.msra.mxu1 %v2538_v55  ;;  %1231 = vmatprep.subr.bf16.mxu0 %v2613_v1  ;;  %v1622_v55 = vsel %vm617_vm1, %v3015_v21, %v1621_v50  ;;  %v445_v21 = vld [vmem:[#allocation3] sm:$0xff] }
  0x6d   : > { %1395 = vmatprep.subr.bf16.mxu1 %v2613_v1 }
  0x6f   : > { %1232 = vmatpush1.bf16.msra.mxu0 %v2539_v56  ;;  %v1635_v56 = vshrl.u32 %v2896_v27, 16 }
  0x70   : > { %1396 = vmatpush1.bf16.msra.mxu1 %v2540_v59  ;;  %1233 = vmatprep.subr.bf16.mxu0 %v2613_v1  ;;  %v1650_v59 = vsel %vm617_vm1, %v1645_v53, %v1649_v54 }
  0x71   : > { %1397 = vmatprep.subr.bf16.mxu1 %v2613_v1  ;;  %v1637_v61 = vor.u32 %v1635_v56, %v1621_v50 }
  0x73   : > { %1234 = vmatpush1.bf16.msra.mxu0 %v2541_v0  ;;  %v1779_v0 = vld [vmem:[#allocation2 + $0x48] sm:$0x1]  ;;  %v1642_v5 = vsel %vm617_vm1, %v1637_v61, %v1641_v62 }
  0x74   : > { %1398 = vmatpush1.bf16.msra.mxu1 %v2542_v4  ;;  %1525 = vmatprep.subr.bf16.mxu0 %v2613_v1  ;;  %v1813_v4 = vrot.slane %v1779_v0, 1 }
  0x75   : > { %1713 = vmatprep.subr.bf16.mxu1 %v2613_v1 }
  0x76   : > { %1250 = vmatmul.mubr.bf16.vlgmr.msra.gmra.mrb[16].mxu0 %v1126_v10  ;;  %v1814_v8 = vsel %vm812_vm2, %v1809_v2, %v1813_v4  ;;  %v2568_v10 = vld [vmem:[%s3219_s3 + $0x268] sm:$0xff]  }
  0x77   : > { %1414 = vmatmul.mubr.bf16.vlgmr.msra.gmra.mrb[16].mxu1 %v1311_v15  ;;  %1526 = vmatpush1.bf16.msra.mxu0 %v2543_v11  ;;  %v2569_v11 = vld [vmem:[%s3219_s3 + $0x270] sm:$0xff]   ;;  %v2571_v15 = vld [vmem:[%s3219_s3 + $0x280] sm:$0xff]  }
  0x78   : > { %1714 = vmatpush1.bf16.msra.mxu1 %v2544_v16  ;;  %1527 = vmatprep.subr.bf16.mxu0 %v2613_v1  ;;  %v1805_v16 = vrot.slane %v1774_v13, 1 }
  0x79   : > { %1715 = vmatprep.subr.bf16.mxu1 %v2613_v1  ;;  %2274 = vmatprep.mubr.msk.bf16.mxu0 %vm406_vm0, %v1154_v18 }
  0x7a   : > { %2303 = vmatprep.mubr.msk.bf16.mxu1 %vm406_vm0, %v1318_v23  ;;  %v446_v23 = vld [vmem:[#allocation3 + $0x8] sm:$0xff] }
  0x7b   : > { %1528 = vmatpush1.bf16.msra.mxu0 %v2545_v19 }
  0x7c   : > { %1716 = vmatpush1.bf16.msra.mxu1 %v2546_v25  ;;  %1529 = vmatprep.subr.bf16.mxu0 %v2613_v1 }
  0x7d   : > { %1717 = vmatprep.subr.bf16.mxu1 %v2613_v1 }
  0x7e   : > { %1258 = vmatmul.mubr.bf16.gmra.mrb[20].mxu0 %v1146_v28 }
  0x7f   : > { %1530 = vmatpush1.bf16.msra.mxu0 %v2549_v29  ;;  %1422 = vmatmul.mubr.bf16.gmra.mrb[20].mxu1 %v1316_v33 }
  0x80   : > { %1718 = vmatpush1.bf16.msra.mxu1 %v2550_v32  ;;  %1531 = vmatprep.subr.bf16.mxu0 %v2613_v1 }
  0x81   : > { %1719 = vmatprep.subr.bf16.mxu1 %v2613_v1  ;;  %2331 = vmatprep.mubr.msk.bf16.mxu0 %vm406_vm0, %v2910_v34  ;;  %v2555_v1 = vld [vmem:[%s3219_s3 + $0x1d8] sm:$0xff]   ;;  %v2556_v34 = vld [vmem:[%s3219_s3 + $0x220] sm:$0xff]  }
  0x82   : > { %2360 = vmatprep.mubr.msk.bf16.mxu1 %vm406_vm0, %v1634_v36 }
  0x83   : > { %1532 = vmatpush1.bf16.msra.mxu0 %v2551_v35  ;;  %v447_v35 = vld [vmem:[#allocation3 + $0x10] sm:$0xff] }
  0x84   : > { %1720 = vmatpush1.bf16.msra.mxu1 %v2552_v37  ;;  %1533 = vmatprep.subr.bf16.mxu0 %v3054_v39  ;;  %v448_v37 = vld [vmem:[#allocation3 + $0x18] sm:$0xff] }
  0x85   : > { %1721 = vmatprep.subr.bf16.mxu1 %v3054_v39 }
  0x87   : > { %1534 = vmatpush1.bf16.msra.mxu0 %v2553_v38 }
  0x88   : > { %1722 = vmatpush1.bf16.msra.mxu1 %v2554_v40  ;;  %1535 = vmatprep.subr.bf16.mxu0 %v3054_v39 }
  0x89   : > { %1723 = vmatprep.subr.bf16.mxu1 %v3054_v39 }
  0x8b   : > { %1536 = vmatpush1.bf16.msra.mxu0 %v2555_v1 }
  0x8c   : > { %1724 = vmatpush1.bf16.msra.mxu1 %v2556_v34  ;;  %1537 = vmatprep.subr.bf16.mxu0 %v3054_v39 }
  0x8d   : > { %1725 = vmatprep.subr.bf16.mxu1 %v3054_v39 }
  0x8f   : > { %1538 = vmatpush1.bf16.msra.mxu0 %v2557_v30 }
  0x90   : > { %1726 = vmatpush1.bf16.msra.mxu1 %v2558_v20  ;;  %1539 = vmatprep.subr.bf16.mxu0 %v3054_v39 }
  0x91   : > { %1727 = vmatprep.subr.bf16.mxu1 %v3054_v39 }
  0x93   : > { %1540 = vmatpush1.bf16.msra.mxu0 %v2559_v41 }
  0x94   : > { %1728 = vmatpush1.bf16.msra.mxu1 %v2560_v42  ;;  %1541 = vmatprep.subr.bf16.mxu0 %v3054_v39 }
  0x95   : > { %1729 = vmatprep.subr.bf16.mxu1 %v3054_v39 }
  0x97   : > { %1542 = vmatpush1.bf16.msra.mxu0 %v2561_v45 }
  0x98   : > { %1730 = vmatpush1.bf16.msra.mxu1 %v2562_v49  ;;  %1877 = vmatprep.subr.bf16.mxu0 %v3054_v39 }
  0x99   : > { %2422 = vmatprep.subr.bf16.mxu1 %v3054_v39 }
  0x9a   : > { %1558 = vmatmul.mubr.bf16.vlgmr.msra.gmra.mrb[24].mxu0 %v2791_v46  ;;  %v1808_v46 = vrot.slane %v1775_v60, 1 }
  0x9b   : > { %1746 = vmatmul.mubr.bf16.vlgmr.msra.gmra.mrb[24].mxu1 %v1622_v55  ;;  %1878 = vmatpush1.bf16.msra.mxu0 %v2563_v52 }
  0x9c   : > { %2431 = vmatpush1.bf16.msra.mxu1 %v2563_v52  ;;  %1879 = vmatprep.subr.bf16.mxu0 %v3054_v39  ;;  %v1810_v6 = vsel %vm812_vm2, %v1808_v46, %v1809_v2 }
  0x9d   : > { %2423 = vmatprep.subr.bf16.mxu1 %v3054_v39  ;;  %2332 = vmatprep.mubr.msk.bf16.mxu0 %vm406_vm0, %v3008_v17  ;;  %v1806_v17 = vrot.slane %v2896_v27, 1 }
  0x9e   : > { %2361 = vmatprep.mubr.msk.bf16.mxu1 %vm406_vm0, %v1650_v59 }
  0x9f   : > { %1880 = vmatpush1.bf16.msra.mxu0 %v2564_v58  ;;  %v1807_v18 = vsel %vm812_vm2, %v1805_v16, %v1806_v17  ;;  %v1812_v19 = vsel %vm812_vm2, %v1806_v17, %v1811_v63 }
  0xa0   : > { %2432 = vmatpush1.bf16.msra.mxu1 %v2564_v58  ;;  %1881 = vmatprep.subr.bf16.mxu0 %v3054_v39 }
  0xa1   : > { %2424 = vmatprep.subr.bf16.mxu1 %v3054_v39 }
  0xa2   : > { %1566 = vmatmul.mubr.bf16.gmra.mrb[28].mxu0 %v2896_v27 }
  0xa3   : > { %1882 = vmatpush1.bf16.msra.mxu0 %v2565_v3  ;;  %1754 = vmatmul.mubr.bf16.gmra.mrb[28].mxu1 %v1642_v5 }
  0xa4   : > { %2433 = vmatpush1.bf16.msra.mxu1 %v2565_v3  ;;  %1883 = vmatprep.subr.bf16.mxu0 %v3054_v39 }
  0xa5   : > { %2425 = vmatprep.subr.bf16.mxu1 %v3054_v39  ;;  %2389 = vmatprep.mubr.msk.bf16.mxu0 %vm406_vm0, %v1810_v6 }
  0xa6   : > { %2390 = vmatprep.mubr.msk.bf16.mxu1 %vm406_vm0, %v1814_v8 }
  0xa7   : > { %1884 = vmatpush1.bf16.msra.mxu0 %v2566_v7 }
  0xa8   : > { %2434 = vmatpush1.bf16.msra.mxu1 %v2566_v7  ;;  %1885 = vmatprep.subr.bf16.mxu0 %v3054_v39 }
  0xa9   : > { %2426 = vmatprep.subr.bf16.mxu1 %v3054_v39 }
  0xab   : > { %1886 = vmatpush1.bf16.msra.mxu0 %v2567_v9 }
  0xac   : > { %2435 = vmatpush1.bf16.msra.mxu1 %v2567_v9  ;;  %1887 = vmatprep.subr.bf16.mxu0 %v3054_v39 }
  0xad   : > { %2427 = vmatprep.subr.bf16.mxu1 %v3054_v39 }
  0xaf   : > { %1888 = vmatpush1.bf16.msra.mxu0 %v2568_v10 }
  0xb0   : > { %2436 = vmatpush1.bf16.msra.mxu1 %v2568_v10  ;;  %1889 = vmatprep.subr.bf16.mxu0 %v3054_v39 }
  0xb1   : > { %2428 = vmatprep.subr.bf16.mxu1 %v3054_v39 }
  0xb3   : > { %1890 = vmatpush1.bf16.msra.mxu0 %v2569_v11 }
  0xb4   : > { %2437 = vmatpush1.bf16.msra.mxu1 %v2569_v11  ;;  %1891 = vmatprep.subr.bf16.mxu0 %v3054_v39 }
  0xb5   : > { %2429 = vmatprep.subr.bf16.mxu1 %v3054_v39 }
  0xb7   : > { %1892 = vmatpush1.bf16.msra.mxu0 %v2570_v12 }
  0xb8   : > { %2438 = vmatpush1.bf16.msra.mxu1 %v2570_v12  ;;  %1893 = vmatprep.subr.bf16.mxu0 %v3054_v39 }
  0xb9   : > { %2430 = vmatprep.subr.bf16.mxu1 %v3054_v39 }
  0xbb   : > { %1894 = vmatpush1.bf16.msra.mxu0 %v2571_v15 }
  0xbc   : > { %2439 = vmatpush1.bf16.msra.mxu1 %v2571_v15 }
  0xbe   : > { %1910 = vmatmul.mubr.bf16.vlgmr.msra.gmra.mrb[32].mxu0 %v1807_v18 }
  0xbf   : > { %1918 = vmatmul.mubr.bf16.vlgmr.msra.gmra.mrb[32].mxu1 %v1812_v19 }
 0x101   : > { %v565_v22 = vpop.f32.mrb[0].mxu0  ;;  %v754_v25 = vpop.f32.mrb[0].mxu1 }
 0x102   : > { %v580_v24 = vadd.f32 %v565_v22, %v445_v21  ;;  %v567_v27 = vpop.f32.mrb[1].mxu0  ;;  %v756_v26 = vpop.f32.mrb[1].mxu1 }
 0x103   : > { %v568_v28 = vpop.f32.mrb[2].mxu0  ;;  %v757_v31 = vpop.f32.mrb[2].mxu1 }
 0x104   : > { %584 = vst.msk [vmem:[#allocation3] sm:$0xff] %vm440_vm3, %v580_v24  ;;  %v581_v29 = vadd.f32 %v568_v28, %v446_v23  ;;  %v570_v32 = vpop.f32.mrb[3].mxu0  ;;  %v759_v33 = vpop.f32.mrb[3].mxu1 }
 0x106   : > { %585 = vst.msk [vmem:[#allocation3 + $0x8] sm:$0xff] %vm440_vm3, %v581_v29 }
 0x109   : > { %v573_v36 = vpop.f32.mrb[4].mxu0  ;;  %v762_v43 = vpop.f32.mrb[4].mxu1 }
 0x10a   : > { %v582_v38 = vadd.f32 %v573_v36, %v447_v35  ;;  %v575_v39 = vpop.f32.mrb[5].mxu0  ;;  %v764_v44 = vpop.f32.mrb[5].mxu1 }
 0x10b   : > { %v588_v40 = vld [vmem:[#allocation3] sm:$0xff]  ;;  %v576_v1 = vpop.f32.mrb[6].mxu0  ;;  %v765_v45 = vpop.f32.mrb[6].mxu1 }
 0x10c   : > { %v769_v34 = vadd.f32 %v754_v25, %v588_v40  ;;  %586 = vst.msk [vmem:[#allocation3 + $0x10] sm:$0xff] %vm440_vm3, %v582_v38  ;;  %v583_v30 = vadd.f32 %v576_v1, %v448_v37  ;;  %v578_v20 = vpop.f32.mrb[7].mxu0  ;;  %v767_v47 = vpop.f32.mrb[7].mxu1 }
 0x10d   : > { %v589_v41 = vld [vmem:[#allocation3 + $0x8] sm:$0xff] }
 0x10e   : > { %773 = vst.msk [vmem:[#allocation3] sm:$0xff] %vm440_vm3, %v769_v34  ;;  %v770_v42 = vadd.f32 %v757_v31, %v589_v41  ;;  %587 = vst.msk [vmem:[#allocation3 + $0x18] sm:$0xff] %vm440_vm3, %v583_v30 }
 0x110   : > { %774 = vst.msk [vmem:[#allocation3 + $0x8] sm:$0xff] %vm440_vm3, %v770_v42 }
 0x113   : > { %v590_v48 = vld [vmem:[#allocation3 + $0x10] sm:$0xff] }
 0x114   : > { %v771_v49 = vadd.f32 %v762_v43, %v590_v48 }
 0x115   : > { %v591_v50 = vld [vmem:[#allocation3 + $0x18] sm:$0xff]  ;;  %v777_v52 = vld [vmem:[#allocation3] sm:$0xff] }
 0x116   : > { %775 = vst.msk [vmem:[#allocation3 + $0x10] sm:$0xff] %vm440_vm3, %v771_v49  ;;  %v772_v51 = vadd.f32 %v765_v45, %v591_v50 }
 0x117   : > { %v778_v58 = vld [vmem:[#allocation3 + $0x8] sm:$0xff] }
 0x118   : > { %776 = vst.msk [vmem:[#allocation3 + $0x18] sm:$0xff] %vm440_vm3, %v772_v51 }
 0x11d   : > { %v779_v46 = vld [vmem:[#allocation3 + $0x10] sm:$0xff] }
 0x11f   : > { %v780_v7 = vld [vmem:[#allocation3 + $0x18] sm:$0xff] }
 0x125   : > { %v919_v53 = vpop.f32.mrb[8].mxu0 }
 0x126   : > { %v934_v54 = vadd.f32 %v919_v53, %v777_v52  ;;  %v1063_v55 = vpop.f32.mrb[8].mxu1  ;;  %v921_v56 = vpop.f32.mrb[9].mxu0 }
 0x127   : > { %v1065_v57 = vpop.f32.mrb[9].mxu1  ;;  %v922_v59 = vpop.f32.mrb[10].mxu0 }
 0x128   : > { %938 = vst.msk [vmem:[#allocation3] sm:$0xff] %vm440_vm3, %v934_v54  ;;  %v935_v60 = vadd.f32 %v922_v59, %v778_v58  ;;  %v1066_v61 = vpop.f32.mrb[10].mxu1  ;;  %v924_v62 = vpop.f32.mrb[11].mxu0 }
 0x129   : > { %v1068_v0 = vpop.f32.mrb[11].mxu1 }
 0x12a   : > { %939 = vst.msk [vmem:[#allocation3 + $0x8] sm:$0xff] %vm440_vm3, %v935_v60 }
 0x12d   : > { %v927_v2 = vpop.f32.mrb[12].mxu0 }
 0x12e   : > { %v936_v3 = vadd.f32 %v927_v2, %v779_v46  ;;  %v929_v4 = vpop.f32.mrb[13].mxu0  ;;  %v1071_v5 = vpop.f32.mrb[12].mxu1 }
 0x12f   : > { %v942_v6 = vld [vmem:[#allocation3] sm:$0xff]  ;;  %v930_v8 = vpop.f32.mrb[14].mxu0  ;;  %v1073_v9 = vpop.f32.mrb[13].mxu1 }
 0x130   : > { %v1078_v10 = vadd.f32 %v1063_v55, %v942_v6  ;;  %940 = vst.msk [vmem:[#allocation3 + $0x10] sm:$0xff] %vm440_vm3, %v936_v3  ;;  %v937_v11 = vadd.f32 %v930_v8, %v780_v7  ;;  %v1074_v12 = vpop.f32.mrb[14].mxu1  ;;  %v932_v13 = vpop.f32.mrb[15].mxu0 }
 0x131   : > { %v943_v14 = vld [vmem:[#allocation3 + $0x8] sm:$0xff]  ;;  %v1076_v15 = vpop.f32.mrb[15].mxu1 }
 0x132   : > { %1082 = vst.msk [vmem:[#allocation3] sm:$0xff] %vm440_vm3, %v1078_v10  ;;  %v1079_v16 = vadd.f32 %v1066_v61, %v943_v14  ;;  %941 = vst.msk [vmem:[#allocation3 + $0x18] sm:$0xff] %vm440_vm3, %v937_v11 }
 0x134   : > { %1083 = vst.msk [vmem:[#allocation3 + $0x8] sm:$0xff] %vm440_vm3, %v1079_v16 }
 0x137   : > { %v944_v17 = vld [vmem:[#allocation3 + $0x10] sm:$0xff] }
 0x138   : > { %v1080_v63 = vadd.f32 %v1071_v5, %v944_v17 }
 0x139   : > { %v945_v18 = vld [vmem:[#allocation3 + $0x18] sm:$0xff]  ;;  %v1086_v21 = vld [vmem:[#allocation3] sm:$0xff] }
 0x13a   : > { %1084 = vst.msk [vmem:[#allocation3 + $0x10] sm:$0xff] %vm440_vm3, %v1080_v63  ;;  %v1081_v19 = vadd.f32 %v1074_v12, %v945_v18 }
 0x13b   : > { %v1087_v26 = vld [vmem:[#allocation3 + $0x8] sm:$0xff] }
 0x13c   : > { %1085 = vst.msk [vmem:[#allocation3 + $0x18] sm:$0xff] %vm440_vm3, %v1081_v19 }
 0x141   : > { %v1088_v35 = vld [vmem:[#allocation3 + $0x10] sm:$0xff] }
 0x143   : > { %v1089_v1 = vld [vmem:[#allocation3 + $0x18] sm:$0xff] }
 0x149   : > { %v1251_v22 = vpop.f32.mrb[16].mxu0 }
 0x14a   : > { %v1266_v23 = vadd.f32 %v1251_v22, %v1086_v21  ;;  %v1415_v24 = vpop.f32.mrb[16].mxu1  ;;  %v1253_v25 = vpop.f32.mrb[17].mxu0 }
 0x14b   : > { %v1417_v27 = vpop.f32.mrb[17].mxu1  ;;  %v1254_v28 = vpop.f32.mrb[18].mxu0 }
 0x14c   : > { %1270 = vst.msk [vmem:[#allocation3] sm:$0xff] %vm440_vm3, %v1266_v23  ;;  %v1267_v29 = vadd.f32 %v1254_v28, %v1087_v26  ;;  %v1418_v31 = vpop.f32.mrb[18].mxu1  ;;  %v1256_v32 = vpop.f32.mrb[19].mxu0 }
 0x14d   : > { %v1420_v33 = vpop.f32.mrb[19].mxu1 }
 0x14e   : > { %1271 = vst.msk [vmem:[#allocation3 + $0x8] sm:$0xff] %vm440_vm3, %v1267_v29 }
 0x151   : > { %v1259_v36 = vpop.f32.mrb[20].mxu0 }
 0x152   : > { %v1268_v37 = vadd.f32 %v1259_v36, %v1088_v35  ;;  %v1261_v38 = vpop.f32.mrb[21].mxu0  ;;  %v1423_v39 = vpop.f32.mrb[20].mxu1 }
 0x153   : > { %v1274_v40 = vld [vmem:[#allocation3] sm:$0xff]  ;;  %v1262_v34 = vpop.f32.mrb[22].mxu0  ;;  %v1425_v30 = vpop.f32.mrb[21].mxu1 }
 0x154   : > { %v1430_v20 = vadd.f32 %v1415_v24, %v1274_v40  ;;  %1272 = vst.msk [vmem:[#allocation3 + $0x10] sm:$0xff] %vm440_vm3, %v1268_v37  ;;  %v1269_v41 = vadd.f32 %v1262_v34, %v1089_v1  ;;  %v1426_v42 = vpop.f32.mrb[22].mxu1  ;;  %v1264_v43 = vpop.f32.mrb[23].mxu0 }
 0x155   : > { %v1275_v44 = vld [vmem:[#allocation3 + $0x8] sm:$0xff]  ;;  %v1428_v45 = vpop.f32.mrb[23].mxu1 }
 0x156   : > { %1434 = vst.msk [vmem:[#allocation3] sm:$0xff] %vm440_vm3, %v1430_v20  ;;  %v1431_v47 = vadd.f32 %v1418_v31, %v1275_v44  ;;  %1273 = vst.msk [vmem:[#allocation3 + $0x18] sm:$0xff] %vm440_vm3, %v1269_v41 }
 0x158   : > { %1435 = vst.msk [vmem:[#allocation3 + $0x8] sm:$0xff] %vm440_vm3, %v1431_v47 }
 0x15b   : > { %v1276_v48 = vld [vmem:[#allocation3 + $0x10] sm:$0xff] }
 0x15c   : > { %v1432_v49 = vadd.f32 %v1423_v39, %v1276_v48  ;;  %v2391_v39 = vld [vmem:[%s3220_s4] ss:$0 sm:$0xff] }
 0x15d   : > { %v1277_v50 = vld [vmem:[#allocation3 + $0x18] sm:$0xff]  ;;  %v1438_v52 = vld [vmem:[#allocation3] sm:$0xff] }
 0x15e   : > { %1436 = vst.msk [vmem:[#allocation3 + $0x10] sm:$0xff] %vm440_vm3, %v1432_v49  ;;  %v1433_v51 = vadd.f32 %v1426_v42, %v1277_v50 }
 0x15f   : > { %v1439_v58 = vld [vmem:[#allocation3 + $0x8] sm:$0xff] }
 0x160   : > { %1437 = vst.msk [vmem:[#allocation3 + $0x18] sm:$0xff] %vm440_vm3, %v1433_v51 }
 0x165   : > { %v1440_v46 = vld [vmem:[#allocation3 + $0x10] sm:$0xff] }
 0x167   : > { %v1441_v7 = vld [vmem:[#allocation3 + $0x18] sm:$0xff] }
 0x16d   : > { %v1559_v53 = vpop.f32.mrb[24].mxu0 }
 0x16e   : > { %v1574_v54 = vadd.f32 %v1559_v53, %v1438_v52  ;;  %v1747_v55 = vpop.f32.mrb[24].mxu1  ;;  %v1561_v56 = vpop.f32.mrb[25].mxu0 }
 0x16f   : > { %v1749_v57 = vpop.f32.mrb[25].mxu1  ;;  %v1562_v59 = vpop.f32.mrb[26].mxu0 }
 0x170   : > { %1578 = vst.msk [vmem:[#allocation3] sm:$0xff] %vm440_vm3, %v1574_v54  ;;  %v1575_v60 = vadd.f32 %v1562_v59, %v1439_v58  ;;  %v1750_v61 = vpop.f32.mrb[26].mxu1  ;;  %v1564_v62 = vpop.f32.mrb[27].mxu0 }
 0x171   : > { %v1752_v0 = vpop.f32.mrb[27].mxu1 }
 0x172   : > { %1579 = vst.msk [vmem:[#allocation3 + $0x8] sm:$0xff] %vm440_vm3, %v1575_v60 }
 0x175   : > { %v1567_v2 = vpop.f32.mrb[28].mxu0 }
 0x176   : > { %v1576_v3 = vadd.f32 %v1567_v2, %v1440_v46  ;;  %v1569_v4 = vpop.f32.mrb[29].mxu0  ;;  %v1755_v5 = vpop.f32.mrb[28].mxu1 }
 0x177   : > { %v1582_v6 = vld [vmem:[#allocation3] sm:$0xff]  ;;  %v1570_v8 = vpop.f32.mrb[30].mxu0  ;;  %v1757_v9 = vpop.f32.mrb[29].mxu1 }
 0x178   : > { %v1762_v10 = vadd.f32 %v1747_v55, %v1582_v6  ;;  %1580 = vst.msk [vmem:[#allocation3 + $0x10] sm:$0xff] %vm440_vm3, %v1576_v3  ;;  %v1577_v11 = vadd.f32 %v1570_v8, %v1441_v7  ;;  %v1572_v12 = vpop.f32.mrb[31].mxu0  ;;  %v1758_v13 = vpop.f32.mrb[30].mxu1 }
 0x179   : > { %v1583_v14 = vld [vmem:[#allocation3 + $0x8] sm:$0xff]  ;;  %v1760_v15 = vpop.f32.mrb[31].mxu1 }
 0x17a   : > { %1766 = vst.msk [vmem:[#allocation3] sm:$0xff] %vm440_vm3, %v1762_v10  ;;  %v1763_v16 = vadd.f32 %v1750_v61, %v1583_v14  ;;  %1581 = vst.msk [vmem:[#allocation3 + $0x18] sm:$0xff] %vm440_vm3, %v1577_v11 }
 0x17c   : > { %1767 = vst.msk [vmem:[#allocation3 + $0x8] sm:$0xff] %vm440_vm3, %v1763_v16 }
 0x17f   : > { %v1584_v17 = vld [vmem:[#allocation3 + $0x10] sm:$0xff] }
 0x180   : > { %v1764_v63 = vadd.f32 %v1755_v5, %v1584_v17 }
 0x181   : > { %v1585_v18 = vld [vmem:[#allocation3 + $0x18] sm:$0xff]  ;;  %v1770_v21 = vld [vmem:[#allocation3] sm:$0xff] }
 0x182   : > { %1768 = vst.msk [vmem:[#allocation3 + $0x10] sm:$0xff] %vm440_vm3, %v1764_v63  ;;  %v1765_v19 = vadd.f32 %v1758_v13, %v1585_v18 }
 0x183   : > { %v1771_v29 = vld [vmem:[#allocation3 + $0x8] sm:$0xff] }
 0x184   : > { %1769 = vst.msk [vmem:[#allocation3 + $0x18] sm:$0xff] %vm440_vm3, %v1765_v19 }
 0x189   : > { %v1772_v24 = vld [vmem:[#allocation3 + $0x10] sm:$0xff] }
 0x18b   : > { %v1773_v33 = vld [vmem:[#allocation3 + $0x18] sm:$0xff] }
 0x191   : > { %v1911_v22 = vpop.f32.mrb[32].mxu0 }
 0x192   : > { %v1926_v23 = vadd.f32 %v1911_v22, %v1770_v21  ;;  %v1919_v25 = vpop.f32.mrb[32].mxu1  ;;  %v1913_v27 = vpop.f32.mrb[33].mxu0 }
 0x193   : > { %v1928_v26 = vadd.f32 %v1919_v25, %v1772_v24  ;;  %v1921_v28 = vpop.f32.mrb[33].mxu1  ;;  %v1914_v31 = vpop.f32.mrb[34].mxu0 }
 0x194   : > { %1930 = vst.msk [vmem:[#allocation3] sm:$0xff] %vm440_vm3, %v1926_v23  ;;  %v1927_v32 = vadd.f32 %v1914_v31, %v1771_v29  ;;  %v1922_v35 = vpop.f32.mrb[34].mxu1  ;;  %v1916_v36 = vpop.f32.mrb[35].mxu0 }
 0x195   : > { %1932 = vst.msk [vmem:[#allocation3 + $0x10] sm:$0xff] %vm440_vm3, %v1928_v26  ;;  %v1929_v37 = vadd.f32 %v1922_v35, %v1773_v33  ;;  %v1924_v38 = vpop.f32.mrb[35].mxu1 }
 0x196   : > { %1931 = vst.msk [vmem:[#allocation3 + $0x8] sm:$0xff] %vm440_vm3, %v1927_v32 }
 0x197   : > { %1933 = vst.msk [vmem:[#allocation3 + $0x18] sm:$0xff] %vm440_vm3, %v1929_v37 }
 0x19b   : > { %v1934_v40 = vld [vmem:[#allocation3] sm:$0xff] }
 0x19c   : > { %v1945_v1 = vadd.f32 %v2391_v39, %v1934_v40  ;;  %v1936_v34 = vld [vmem:[#allocation3 + $0x10] sm:$0xff] }
 0x19d   : > { %v1947_v30 = vadd.f32 %v2391_v39, %v1936_v34  ;;  %v1935_v20 = vld [vmem:[#allocation3 + $0x8] sm:$0xff] }
 0x19e   : > { %vm1949_vm4 = vcmp.gt.f32.partialorder %v1945_v1, 0.0  ;;  %v1953_v41 = vmul.f32 0.2, %v1945_v1  ;;  %v1946_v42 = vadd.f32 %v2391_v39, %v1935_v20  ;;  %v1937_v43 = vld [vmem:[#allocation3 + $0x18] sm:$0xff] }
 0x19f   : > { %vm1951_vm5 = vcmp.gt.f32.partialorder %v1947_v30, 0.0  ;;  %v1955_v44 = vmul.f32 0.2, %v1947_v30  ;;  %v1948_v45 = vadd.f32 %v2391_v39, %v1937_v43 }
 0x1a0   : > { %v1957_v47 = vsel %vm1949_vm4, %v1945_v1, %v1953_v41  ;;  %vm1950_vm7 = vcmp.gt.f32.partialorder %v1946_v42, 0.0  ;;  %v1954_v48 = vmul.f32 0.2, %v1946_v42 }
 0x1a1   : > { %v2413_v49 = vpack.c.bf16 %v1957_v47, %v1957_v47  ;;  %v1959_v50 = vsel %vm1951_vm5, %v1947_v30, %v1955_v44  ;;  %vm1952_vm8 = vcmp.gt.f32.partialorder %v1948_v45, 0.0  ;;  %v1956_v51 = vmul.f32 0.2, %v1948_v45 }
 0x1a2   : > { %v2415_v52 = vpack.c.bf16 %v1959_v50, %v1959_v50  ;;  %v1958_v53 = vsel %vm1950_vm7, %v1946_v42, %v1954_v48 }
 0x1a3   : > { %1978 = vst.msk [vmem:[%s378_s9] sm:$0xf] %vm1977_vm6, %v2413_v49  ;;  %v2414_v54 = vpack.c.bf16 %v1958_v53, %v1958_v53  ;;  %v1960_v55 = vsel %vm1952_vm8, %v1948_v45, %v1956_v51 }
 0x1a4   : > { %1980 = vst.msk [vmem:[%s378_s9 + $0x8] sm:$0xf] %vm1977_vm6, %v2415_v52  ;;  %v2416_v56 = vpack.c.bf16 %v1960_v55, %v1960_v55 }
 0x1a5   : > { %1979 = vst.msk [vmem:[%s378_s9 + $0x4] sm:$0xf] %vm1977_vm6, %v2414_v54 }
 0x1a6   : > { %1981 = vst.msk [vmem:[%s378_s9 + $0xc] sm:$0xf] %vm1977_vm6, %v2416_v56 }
 0x1a7 PF: > { %s15_s22 = sadd.s32 1, %s2611_s22   ;;  %s3222_s18 = smov %s2603_s20 }
 0x1a8   : > { %p12_p10 = scmp.ge.s32.totalorder %s15_s22, 6   ;;  %s3223_s19 = smov %s2607_s21 }
 0x1a9   : > { %s3224_s20 = smov %s3227_s23  ;;  %s3225_s21 = smov %s3231_s24 }
 0x1aa   :  { %14 = sbr.rel (!%p12_p10) target bundleno = 3 (0x3), region = 84 }

// kernel: gednet_forward.18
= control target key start
LH: loop header
LB: loop body
LE: loop exit
PB: predicated region body
PF: predicated region fallthrough
CT: control target
= control target key end

     0   :  { %s3057_s18 = smov 0   ;;  %s3059_s19 = smov 0   ;;  %s3576_s0 = inlined_call_operand.vmem [shape: bf16[2,160,112], index: 0, kind: input, shape index: {}, may-alias: {0,1,2}]   ;;  %s3577_s1 = inlined_call_operand.vmem [shape: bf16[2,160,112], index: 1, kind: input, shape index: {}, may-alias: {0,1,2}]   ;;  %s3578_s2 = inlined_call_operand.vmem [shape: bf16[2,160,112], index: 2, kind: input, shape index: {}, may-alias: {0,1,2}]   ;;  %s3579_s3 = inlined_call_operand.vmem [shape: bf16[9,112,32], index: 3, kind: input, shape index: {}]   ;;  %s3580_s4 = inlined_call_operand.vmem [shape: f32[1,32], index: 4, kind: input, shape index: {}]   ;;  %s3581_s5 = inlined_call_operand.vmem [shape: bf16[2,128,32], index: 5, kind: output, shape index: {}]  }
   0x1   :  { %s3061_s20 = smov 0   ;;  %s3063_s21 = smov 0  }
   0x2   :  { %s3065_s22 = smov 0  }
   0x3 LB: > { %s24_s23 = sadd.s32 1, %s3015_s20  ;;  %s27_s24 = sadd.s32 1, %s3019_s21  ;;  %s3023_s22 = sphi %s3065_s22, %s15_s22   ;;  %s3019_s21 = sphi %s3063_s21, %s3586_s21   ;;  %s3015_s20 = sphi %s3061_s20, %s3585_s20   ;;  %s3011_s19 = sphi %s3059_s19, %s3584_s19   ;;  %s3007_s18 = sphi %s3057_s18, %s3583_s18  }
   0x4   : > { %p25_p0 = scmp.ge.s32.totalorder %s24_s23, 2  ;;  %p2294_p1 = scmp.ge.s32.totalorder %s3023_s22, 1 }
   0x5   : > { %p270_p2 = scmp.lt.s32.totalorder %s3023_s22, 5 }
   0x6   : > { %s3588_s23 = smov (%p25_p0, %s24_s23), 0  ;;  %s3590_s24 = smov (!%p25_p0, %s27_s24), %s3019_s21 }
   0x7   : > { %p271_p3 = pnand %p2294_p1, %p270_p2  ;;  %p29_p4 = scmp.ge.s32.totalorder %s3590_s24, 2 }
   0x8   : > { %v2916_v0 = vld [vmem:[%s3579_s3] sm:$0xff] (!%p271_p3)   ;;  %s3090_s27 = sshll.u32 (!%p271_p3), %s3007_s18, 3  ;;  %v2917_v1 = vld [vmem:[%s3579_s3 + $0x38] sm:$0xff] (!%p271_p3)   ;;  %p338_p5 = scmp.lt.s32.totalorder (!%p271_p3), %s3011_s19, 1  ;;  %v2918_v2 = vld [vmem:[%s3579_s3 + $0x8] sm:$0xff] (!%p271_p3)   ;;  %vm424_vm0 = vcmask (!%p271_p3), 916480  }
   0x9   : > { %s3592_s24 = smov (%p29_p4, %s3590_s24), 0  ;;  %274 = sbr.rel (%p271_p3) target bundleno = 389 (0x185), region = 40 }
   0xa   : > { %2661 = vmatprep.subr.bf16.mxu0 (!%p271_p3), %v2916_v0  ;;  %p340_p6 = scmp.lt.s32.totalorder (!%p271_p3), %s3090_s27, 19  ;;  %2683 = vmatprep.subr.bf16.mxu1 (!%p271_p3), %v2917_v1  ;;  %v2919_v3 = vld [vmem:[%s3579_s3 + $0x40] sm:$0xff] (!%p271_p3)   ;;  %v2920_v4 = vld [vmem:[%s3579_s3 + $0x10] sm:$0xff] (!%p271_p3)   ;;  %v2921_v5 = vld [vmem:[%s3579_s3 + $0x48] sm:$0xff] (!%p271_p3)   ;;  %p384_p7 = scmp.lt.s32.totalorder (!%p271_p3), %s3090_s27, 15  ;;  %v3025_v17 = vmov (!%p271_p3), 0  }
   0xb   : > { %2662 = vmatpush3.bf16.msra.mxu0 (!%p271_p3), %v2916_v0  ;;  %2684 = vmatpush3.bf16.msra.mxu1 (!%p271_p3), %v2917_v1  ;;  %v2922_v6 = vld [vmem:[%s3579_s3 + $0x18] sm:$0xff] (!%p271_p3)   ;;  %v2923_v7 = vld [vmem:[%s3579_s3 + $0x50] sm:$0xff] (!%p271_p3)   ;;  %s3126_s8 = sadd.s32 (!%p271_p3), 8, %s3090_s27  ;;  %v2924_v8 = vld [vmem:[%s3579_s3 + $0x20] sm:$0xff] (!%p271_p3)   ;;  %447 = vst.msk [vmem:[#allocation2 + $0x30] sm:$0xff] (!%p271_p3), %vm424_vm0, %v3025_v17  ;;  %vm448_vm1 = vcmask (!%p271_p3), 261120  }
   0xc   : > { %2663 = vmatprep.subr.bf16.mxu0 (!%p271_p3), %v2918_v2  ;;  %2685 = vmatprep.subr.bf16.mxu1 (!%p271_p3), %v2919_v3  ;;  %p356_p8 = scmp.lt.s32.totalorder (!%p271_p3), %s3126_s8, 19  ;;  %v2925_v9 = vld [vmem:[%s3579_s3 + $0x58] sm:$0xff] (!%p271_p3)   ;;  %v2926_v10 = vld [vmem:[%s3579_s3 + $0x28] sm:$0xff] (!%p271_p3)   ;;  %v2927_v13 = vld [vmem:[%s3579_s3 + $0x60] sm:$0xff] (!%p271_p3)   ;;  %v3026_v25 = vmov (!%p271_p3), 0.0   ;;  %vm851_vm3 = vcmask (!%p271_p3), 1046528  }
   0xd   : > { %v2928_v15 = vld [vmem:[%s3579_s3 + $0x30] sm:$0xff] (!%p271_p3)   ;;  %v2929_v16 = vld [vmem:[%s3579_s3 + $0x68] sm:$0xff] (!%p271_p3)   ;;  %451 = vst.msk [vmem:[#allocation3 + $0x10] sm:$0xff] (!%p271_p3), %vm448_vm1, %v3026_v25  ;;  %449 = vst.msk [vmem:[#allocation3] sm:$0xff] (!%p271_p3), %vm448_vm1, %v3026_v25  ;;  %vm646_vm2 = vsmask.f32 (!%p271_p3), 7424 }
   0xe   : > { %v2933_v20 = vld [vmem:[%s3579_s3 + $0x70] sm:$0xff] (!%p271_p3)   ;;  %v2934_v24 = vld [vmem:[%s3579_s3 + $0xa8] sm:$0xff] (!%p271_p3)   ;;  %450 = vst.msk [vmem:[#allocation3 + $0x8] sm:$0xff] (!%p271_p3), %vm448_vm1, %v3026_v25  ;;  %452 = vst.msk [vmem:[#allocation3 + $0x18] sm:$0xff] (!%p271_p3), %vm448_vm1, %v3026_v25  ;;  %vm2151_vm4 = vcmask (!%p271_p3), 257024  }
   0xf   : > { %2664 = vmatpush3.bf16.msra.mxu0 (!%p271_p3), %v2918_v2  ;;  %2686 = vmatpush3.bf16.msra.mxu1 (!%p271_p3), %v2919_v3  ;;  %453 = vst.msk [vmem:[#allocation3 + $0x20] sm:$0xff] (!%p271_p3), %vm448_vm1, %v3026_v25  ;;  %454 = vst.msk [vmem:[#allocation3 + $0x28] sm:$0xff] (!%p271_p3), %vm448_vm1, %v3026_v25  ;;  %v2935_v32 = vld [vmem:[%s3579_s3 + $0x78] sm:$0xff] (!%p271_p3)   ;;  %v2936_v36 = vld [vmem:[%s3579_s3 + $0xb0] sm:$0xff] (!%p271_p3)  }
  0x10   : > { %s3594_s19 = smov (!%p338_p5, %s3011_s19), 1  ;;  %2665 = vmatprep.subr.bf16.mxu0 %v2920_v4  ;;  %2687 = vmatprep.subr.bf16.mxu1 %v2921_v5  ;;  %455 = vst.msk [vmem:[#allocation3 + $0x30] sm:$0xff] %vm448_vm1, %v3026_v25  ;;  %456 = vst.msk [vmem:[#allocation3 + $0x38] sm:$0xff] %vm448_vm1, %v3026_v25  ;;  %v2938_v42 = vld [vmem:[%s3579_s3 + $0x80] sm:$0xff]   ;;  %v2939_v45 = vld [vmem:[%s3579_s3 + $0xb8] sm:$0xff]  }
  0x11   : > { %s341_s11 = scalar_select %p340_p6, %s3090_s27, 19  ;;  %v2940_v50 = vld [vmem:[%s3579_s3 + $0x88] sm:$0xff]   ;;  %v2941_v53 = vld [vmem:[%s3579_s3 + $0xc0] sm:$0xff]   ;;  %v2942_v58 = vld [vmem:[%s3579_s3 + $0x90] sm:$0xff]  }
  0x12   : > { %s3109_s14 = smul.u32 20, %s3594_s19  ;;  %s2304_s28 = sshll.u32 %s3594_s19, 4  ;;  %v2943_v59 = vld [vmem:[%s3579_s3 + $0xc8] sm:$0xff]   ;;  %v2945_v62 = vld [vmem:[%s3579_s3 + $0x98] sm:$0xff]   ;;  %v2946_v63 = vld [vmem:[%s3579_s3 + $0xd0] sm:$0xff]  }
  0x13   : > { %s385_s29 = scalar_select %p384_p7, %s3090_s27, 15  ;;  %2666 = vmatpush3.bf16.msra.mxu0 %v2920_v4  ;;  %2688 = vmatpush3.bf16.msra.mxu1 %v2921_v5  ;;  %v2947_v0 = vld [vmem:[%s3579_s3 + $0xa0] sm:$0xff]   ;;  %v2948_v1 = vld [vmem:[%s3579_s3 + $0xd8] sm:$0xff]  }
  0x14   : > { %s343_s15 = sadd.s32 %s3109_s14, %s341_s11  ;;  %2667 = vmatprep.subr.bf16.mxu0 %v2922_v6  ;;  %2689 = vmatprep.subr.bf16.mxu1 %v2923_v7  ;;  %v2949_v3 = vld [vmem:[%s3579_s3 + $0xe0] sm:$0xff]   ;;  %v2950_v5 = vld [vmem:[%s3579_s3 + $0x118] sm:$0xff]  }
  0x15   : > { %s2296_s18 = sshll.u32 %s343_s15, 2  ;;  %s3131_s19 = sadd.s32 %s2304_s28, %s385_s29  ;;  %v2960_v25 = vld [vmem:[%s3579_s3 + $0x140] sm:$0xff]  }
  0x16   : > { %s3123_s7 = scalar_lea.vmem %s3576_s0, %s2296_s18  ;;  %s2548_s29 = sadd.s32 2, %s3126_s8 }
  0x17   : > { %v2930_v11 = vld [vmem:[%s3123_s7] sm:$0xff]   ;;  %2668 = vmatpush3.bf16.msra.mxu0 %v2922_v6  ;;  %v2931_v12 = vld [vmem:[%s3123_s7 + $0x8] sm:$0xff]   ;;  %2690 = vmatpush3.bf16.msra.mxu1 %v2923_v7  ;;  %s357_s17 = scalar_select %p356_p8, %s3126_s8, 19  ;;  %v2932_v14 = vld [vmem:[%s3123_s7 + $0x10] sm:$0xff]  }
  0x18   : > { %2669 = vmatprep.subr.bf16.mxu0 %v2924_v8  ;;  %425 = vst.msk [vmem:[#allocation2] sm:$0xff] %vm424_vm0, %v2930_v11  ;;  %2691 = vmatprep.subr.bf16.mxu1 %v2925_v9  ;;  %426 = vst.msk [vmem:[#allocation2 + $0x8] sm:$0xff] %vm424_vm0, %v2931_v12  ;;  %v2937_v18 = vld [vmem:[%s3123_s7 + $0x18] sm:$0xff]   ;;  %p3227_p9 = scmp.lt.s32.totalorder %s2548_s29, 19  ;;  %v2952_v11 = vld [vmem:[%s3579_s3 + $0x120] sm:$0xff]   ;;  %s2305_s6 = sshll.u32 %s3131_s19, 2 }
  0x19   : > { %427 = vst.msk [vmem:[#allocation2 + $0x10] sm:$0xff] %vm424_vm0, %v2932_v14  ;;  %s359_s26 = sadd.s32 %s3109_s14, %s357_s17  ;;  %428 = vst.msk [vmem:[#allocation2 + $0x18] sm:$0xff] %vm424_vm0, %v2937_v18  ;;  %v2953_v14 = vld [vmem:[%s3579_s3 + $0xf0] sm:$0xff]   ;;  %v2955_v18 = vld [vmem:[%s3579_s3 + $0xf8] sm:$0xff]  }
  0x1a   : > { %s3162_s9 = sshll.u32 %s359_s26, 2  ;;  %s3596_s29 = smov (!%p3227_p9, %s2548_s29), 19 }
  0x1b   : > { %2670 = vmatpush3.bf16.msra.mxu0 %v2924_v8  ;;  %2692 = vmatpush3.bf16.msra.mxu1 %v2925_v9  ;;  %s361_s27 = scalar_lea.vmem %s3577_s1, %s3162_s9  ;;  %s374_s18 = sadd.s32 %s3109_s14, %s3596_s29  ;;  %v2951_v9 = vld [vmem:[%s3579_s3 + $0xe8] sm:$0xff]  }
  0x1c   : > { %2671 = vmatprep.subr.bf16.mxu0 %v2926_v10  ;;  %2693 = vmatprep.subr.bf16.mxu1 %v2927_v13  ;;  %v2944_v38 = vld [vmem:[%s361_s27] sm:$0xff]   ;;  %s2302_s28 = sshll.u32 %s374_s18, 2  ;;  %s3542_s14 = scalar_lea.vmem %s3581_s5, %s2305_s6 }
  0x1d   : > { %437 = vst.msk [vmem:[#allocation2 + $0x20] sm:$0xff] %vm424_vm0, %v2944_v38  ;;  %s376_s10 = scalar_lea.vmem %s3578_s2, %s2302_s28 }
  0x1e   : > { %v2967_v8 = vld [vmem:[%s376_s10] sm:$0xff]  }
  0x1f   : > { %2672 = vmatpush3.bf16.msra.mxu0 %v2926_v10  ;;  %v465_v19 = vld [vmem:[#allocation2] sm:$0xff]  ;;  %2694 = vmatpush3.bf16.msra.mxu1 %v2927_v13  ;;  %v3164_v21 = vld [vmem:[#allocation2 + $0x8] sm:$0xff]  ;;  %446 = vst.msk [vmem:[#allocation2 + $0x28] sm:$0xff] %vm424_vm0, %v2967_v8  ;;  %v2981_v8 = vld [vmem:[%s3579_s3 + $0x1d8] sm:$0xff]  }
  0x20   : > { %2673 = vmatprep.subr.bf16.mxu0 %v2928_v15  ;;  %v648_v22 = vshrl.u32 %v465_v19, 16  ;;  %v650_v23 = vshll.u32 %v465_v19, 16  ;;  %2695 = vmatprep.subr.bf16.mxu1 %v2929_v16  ;;  %v655_v26 = vshll.u32 %v3164_v21, 16  ;;  %v659_v27 = vshrl.u32 %v3164_v21, 16  ;;  %v3181_v29 = vld [vmem:[#allocation2 + $0x10] sm:$0xff]  ;;  %v3202_v41 = vld [vmem:[#allocation2 + $0x18] sm:$0xff] }
  0x21   : > { %2675 = vmatprep.mubr.msk.bf16.mxu0 %vm424_vm0, %v465_v19  ;;  %v663_v31 = vshll.u32 %v3181_v29, 16  ;;  %v667_v37 = vshrl.u32 %v3181_v29, 16  ;;  %v671_v44 = vshll.u32 %v3202_v41, 16  ;;  %v853_v47 = vrot.slane %v3164_v21, 1  ;;  %v826_v49 = vld [vmem:[#allocation2] sm:$0xfe] }
  0x22   : > { %v652_v28 = vrot.slane %v650_v23, 1  ;;  %v657_v30 = vrot.slane %v655_v26, 1  ;;  %v675_v48 = vshrl.u32 %v3202_v41, 16  ;;  %v852_v52 = vrot.slane %v826_v49, 1  ;;  %v1365_v13 = vld [vmem:[#allocation2 + $0x8] sm:$0xfe] }
  0x23   : > { %2674 = vmatpush3.bf16.msra.mxu0 %v2928_v15  ;;  %2696 = vmatpush3.bf16.msra.mxu1 %v2929_v16  ;;  %v665_v35 = vrot.slane %v663_v31, 1  ;;  %v673_v46 = vrot.slane %v671_v44, 1  ;;  %v855_v2 = vrot.slane %v3181_v29, 1  ;;  %v3271_v4 = vrot.slane %v3202_v41, 1  ;;  %v2954_v15 = vld [vmem:[%s3579_s3 + $0x128] sm:$0xff]   ;;  %v2956_v19 = vld [vmem:[%s3579_s3 + $0x130] sm:$0xff]  }
  0x24   : > { %v653_v33 = vor.u32 %v652_v28, %v648_v22  ;;  %2705 = vmatprep.subr.bf16.mxu0 %v2933_v20  ;;  %v661_v34 = vor.u32 %v659_v27, %v657_v30  ;;  %2727 = vmatprep.subr.bf16.mxu1 %v2934_v24  ;;  %v630_v54 = vld [vmem:[#allocation2 + $0x20] sm:$0x1]  ;;  %v854_v55 = vsel %vm851_vm3, %v852_v52, %v853_v47  ;;  %v1390_v16 = vrot.slane %v1365_v13, 1  ;;  %v2958_v23 = vld [vmem:[%s3579_s3 + $0x138] sm:$0xff]   ;;  %v1903_v26 = vld [vmem:[#allocation2 + $0x10] sm:$0xfe] }
  0x25   : > { %v669_v43 = vor.u32 %v667_v37, %v665_v35  ;;  %v3237_v56 = vor.u32 %v675_v48, %v673_v46  ;;  %v679_v57 = vshll.u32 %v630_v54, 16  ;;  %v830_v6 = vld [vmem:[#allocation2 + $0x20] sm:$0x1]  ;;  %v856_v7 = vsel %vm851_vm3, %v853_v47, %v855_v2  ;;  %v2961_v28 = vld [vmem:[%s3579_s3 + $0x110] sm:$0xff]  }
  0x26   : > { %v658_v39 = vsel %vm646_vm2, %v653_v33, %v657_v30  ;;  %2676 = vmatmul.mubr.msk.bf16.vlgmr.msra.gmra.mrb[0].mxu0 %vm424_vm0, %v3164_v21  ;;  %v3200_v40 = vsel %vm646_vm2, %v661_v34, %v665_v35  ;;  %v3285_v10 = vsel %vm851_vm3, %v855_v2, %v3271_v4  ;;  %v859_v12 = vrot.slane %v830_v6, 1  ;;  %v2957_v22 = vld [vmem:[%s3579_s3 + $0x100] sm:$0xff]   ;;  %v2963_v33 = vld [vmem:[%s3579_s3 + $0x150] sm:$0xff]   ;;  %v1170_v35 = vld [vmem:[#allocation2 + $0x28] sm:$0x1] }
  0x27   : > { %2697 = vmatprep.mubr.msk.bf16.mxu1 %vm424_vm0, %v658_v39  ;;  %2706 = vmatpush3.bf16.msra.mxu0 %v2933_v20  ;;  %v3223_v51 = vsel %vm646_vm2, %v669_v43, %v673_v46  ;;  %v681_v60 = vrot.slane %v679_v57, 1  ;;  %v3312_v20 = vld [vmem:[#allocation2 + $0x20] sm:$0xff]  ;;  %v1928_v27 = vrot.slane %v1903_v26, 1  ;;  %v1218_v39 = vshll.u32 %v1170_v35, 16  ;;  %v2966_v43 = vld [vmem:[%s3579_s3 + $0x190] sm:$0xff]   ;;  %v2973_v57 = vld [vmem:[%s3579_s3 + $0x1a8] sm:$0xff]  }
  0x28   : > { %2698 = vmatmul.mubr.msk.bf16.vlgmr.msra.gmra.mrb[0].mxu1 %vm424_vm0, %v3200_v40  ;;  %2707 = vmatprep.subr.bf16.mxu0 %v2935_v32  ;;  %v860_v17 = vsel %vm851_vm3, %v3271_v4, %v859_v12  ;;  %v1210_v30 = vshll.u32 %v3312_v20, 16  ;;  %v3351_v37 = vrot.slane %v3312_v20, 1  ;;  %v1214_v38 = vshrl.u32 %v3312_v20, 16  ;;  %v2968_v48 = vld [vmem:[%s3579_s3 + $0x160] sm:$0xff]   ;;  %v2983_v12 = vld [vmem:[%s3579_s3 + $0x1e8] sm:$0xff]   ;;  %v2984_v13 = vld [vmem:[%s3579_s3 + $0x1f0] sm:$0xff]  }
  0x29   : > { %2728 = vmatpush3.bf16.msra.mxu1 %v2934_v24  ;;  %2679 = vmatprep.mubr.msk.bf16.mxu0 %vm424_vm0, %v3181_v29  ;;  %v682_v61 = vsel %vm646_vm2, %v3237_v56, %v681_v60  ;;  %v2959_v24 = vld [vmem:[%s3579_s3 + $0x108] sm:$0xff]   ;;  %v3339_v31 = vsel %vm851_vm3, %v1928_v27, %v3271_v4  ;;  %v1220_v47 = vrot.slane %v1218_v39, 1  ;;  %v2977_v60 = vld [vmem:[%s3579_s3 + $0x1b8] sm:$0xff]  }
  0x2a   : > { %2729 = vmatprep.subr.bf16.mxu1 %v2936_v36  ;;  %2701 = vmatprep.mubr.msk.bf16.mxu1 %vm424_vm0, %v3223_v51  ;;  %v1212_v34 = vrot.slane %v1210_v30, 1  ;;  %v3369_v44 = vsel %vm851_vm3, %v3271_v4, %v3351_v37  ;;  %v461_v35 = vld [vmem:[#allocation3 + $0x20] sm:$0xff] }
  0x2b   : > { %2708 = vmatpush3.bf16.msra.mxu0 %v2935_v32  ;;  %v2962_v32 = vld [vmem:[%s3579_s3 + $0x148] sm:$0xff]  }
  0x2c   : > { %2709 = vmatprep.subr.bf16.mxu0 %v2938_v42  ;;  %v1216_v46 = vor.u32 %v1214_v38, %v1212_v34 }
  0x2d   : > { %2730 = vmatpush3.bf16.msra.mxu1 %v2936_v36  ;;  %v2964_v36 = vld [vmem:[%s3579_s3 + $0x188] sm:$0xff]  }
  0x2e   : > { %2680 = vmatmul.mubr.msk.bf16.gmra.mrb[4].mxu0 %vm424_vm0, %v3202_v41  ;;  %2731 = vmatprep.subr.bf16.mxu1 %v2939_v45  ;;  %v1221_v52 = vsel %vm646_vm2, %v1216_v46, %v1220_v47 }
  0x2f   : > { %2710 = vmatpush3.bf16.msra.mxu0 %v2938_v42  ;;  %2719 = vmatprep.mubr.msk.bf16.mxu0 %vm424_vm0, %v854_v55  ;;  %v3359_v42 = vsel %vm646_vm2, %v3237_v56, %v1212_v34  ;;  %v2971_v55 = vld [vmem:[%s3579_s3 + $0x1a0] sm:$0xff]   ;;  %v2972_v56 = vld [vmem:[%s3579_s3 + $0x170] sm:$0xff]   ;;  %v463_v34 = vld [vmem:[#allocation3 + $0x30] sm:$0xff] }
  0x30   : > { %2711 = vmatprep.subr.bf16.mxu0 %v2940_v50  ;;  %2702 = vmatmul.mubr.msk.bf16.gmra.mrb[4].mxu1 %vm424_vm0, %v682_v61 }
  0x31   : > { %2732 = vmatpush3.bf16.msra.mxu1 %v2939_v45  ;;  %2741 = vmatprep.mubr.msk.bf16.mxu1 %vm424_vm0, %v3164_v21  ;;  %v1392_v21 = vsel %vm851_vm3, %v1390_v16, %v855_v2  ;;  %v1369_v45 = vld [vmem:[#allocation2 + $0x28] sm:$0x1] }
  0x32   : > { %2733 = vmatprep.subr.bf16.mxu1 %v2941_v53  ;;  %v1397_v49 = vrot.slane %v1369_v45, 1 }
  0x33   : > { %2712 = vmatpush3.bf16.msra.mxu0 %v2940_v50  ;;  %v2969_v50 = vld [vmem:[%s3579_s3 + $0x198] sm:$0xff]  }
  0x34   : > { %2713 = vmatprep.subr.bf16.mxu0 %v2942_v58  ;;  %v1398_v54 = vsel %vm851_vm3, %v3351_v37, %v1397_v49 }
  0x35   : > { %2734 = vmatpush3.bf16.msra.mxu1 %v2941_v53  ;;  %v2970_v53 = vld [vmem:[%s3579_s3 + $0x168] sm:$0xff]  }
  0x36   : > { %2735 = vmatprep.subr.bf16.mxu1 %v2943_v59 }
  0x37   : > { %2714 = vmatpush3.bf16.msra.mxu0 %v2942_v58  ;;  %v2975_v58 = vld [vmem:[%s3579_s3 + $0x1b0] sm:$0xff]  }
  0x38   : > { %2715 = vmatprep.subr.bf16.mxu0 %v2945_v62 }
  0x39   : > { %2736 = vmatpush3.bf16.msra.mxu1 %v2943_v59  ;;  %v3410_v59 = vld [vmem:[#allocation2 + $0x28] sm:$0xff] }
  0x3a   : > { %2737 = vmatprep.subr.bf16.mxu1 %v2946_v63  ;;  %v1748_v61 = vshll.u32 %v3410_v59, 16  ;;  %v1752_v2 = vshrl.u32 %v3410_v59, 16 }
  0x3b   : > { %2716 = vmatpush3.bf16.msra.mxu0 %v2945_v62  ;;  %v2978_v62 = vld [vmem:[%s3579_s3 + $0x1c0] sm:$0xff]  }
  0x3c   : > { %2717 = vmatprep.subr.bf16.mxu0 %v2947_v0 }
  0x3d   : > { %2738 = vmatpush3.bf16.msra.mxu1 %v2946_v63  ;;  %v1750_v63 = vrot.slane %v1748_v61, 1 }
  0x3e   : > { %2739 = vmatprep.subr.bf16.mxu1 %v2948_v1 }
  0x3f   : > { %2718 = vmatpush3.bf16.msra.mxu0 %v2947_v0  ;;  %v1708_v0 = vld [vmem:[#allocation2 + $0x30] sm:$0x1]  ;;  %v1751_v4 = vsel %vm646_vm2, %v1216_v46, %v1750_v63  ;;  %v1754_v6 = vor.u32 %v1752_v2, %v1750_v63 }
  0x40   : > { %2749 = vmatprep.subr.bf16.mxu0 %v2949_v3 }
  0x41   : > { %2740 = vmatpush3.bf16.msra.mxu1 %v2948_v1  ;;  %v2979_v1 = vld [vmem:[%s3579_s3 + $0x1c8] sm:$0xff]  }
  0x42   : > { %2720 = vmatmul.mubr.msk.bf16.vlgmr.msra.gmra.mrb[8].mxu0 %vm424_vm0, %v856_v7  ;;  %2771 = vmatprep.subr.bf16.mxu1 %v2950_v5  ;;  %v1933_v7 = vrot.slane %v3410_v59, 1 }
  0x43   : > { %2750 = vmatpush3.bf16.msra.mxu0 %v2949_v3  ;;  %2723 = vmatprep.mubr.msk.bf16.mxu0 %vm424_vm0, %v3285_v10  ;;  %v1756_v3 = vshll.u32 %v1708_v0, 16 }
  0x44   : > { %2742 = vmatmul.mubr.msk.bf16.vlgmr.msra.gmra.mrb[8].mxu1 %vm424_vm0, %v3181_v29  ;;  %2751 = vmatprep.subr.bf16.mxu0 %v2951_v9 }
  0x45   : > { %2772 = vmatpush3.bf16.msra.mxu1 %v2950_v5  ;;  %2745 = vmatprep.mubr.msk.bf16.mxu1 %vm424_vm0, %v3202_v41  ;;  %v2980_v5 = vld [vmem:[%s3579_s3 + $0x1d0] sm:$0xff]  }
  0x46   : > { %2773 = vmatprep.subr.bf16.mxu1 %v2952_v11 }
  0x47   : > { %2752 = vmatpush3.bf16.msra.mxu0 %v2951_v9 }
  0x48   : > { %2753 = vmatprep.subr.bf16.mxu0 %v2953_v14 }
  0x49   : > { %2774 = vmatpush3.bf16.msra.mxu1 %v2952_v11  ;;  %v2982_v11 = vld [vmem:[%s3579_s3 + $0x1e0] sm:$0xff]  }
  0x4a   : > { %2724 = vmatmul.mubr.msk.bf16.gmra.mrb[12].mxu0 %vm424_vm0, %v860_v17  ;;  %2775 = vmatprep.subr.bf16.mxu1 %v2954_v15  ;;  %v459_v17 = vld [vmem:[#allocation3 + $0x10] sm:$0xff] }
  0x4b   : > { %2754 = vmatpush3.bf16.msra.mxu0 %v2953_v14  ;;  %2763 = vmatprep.mubr.msk.bf16.mxu0 %vm424_vm0, %v3200_v40  ;;  %v2965_v40 = vld [vmem:[%s3579_s3 + $0x158] sm:$0xff]   ;;  %v1907_v14 = vld [vmem:[#allocation2 + $0x30] sm:$0x1] }
  0x4c   : > { %2755 = vmatprep.subr.bf16.mxu0 %v2955_v18  ;;  %2746 = vmatmul.mubr.msk.bf16.gmra.mrb[12].mxu1 %vm424_vm0, %v3312_v20 }
  0x4d   : > { %2776 = vmatpush3.bf16.msra.mxu1 %v2954_v15  ;;  %2785 = vmatprep.mubr.msk.bf16.mxu1 %vm424_vm0, %v1392_v21  ;;  %v1935_v15 = vrot.slane %v1907_v14, 1 }
  0x4e   : > { %2777 = vmatprep.subr.bf16.mxu1 %v2956_v19 }
  0x4f   : > { %2756 = vmatpush3.bf16.msra.mxu0 %v2955_v18  ;;  %v1936_v16 = vsel %vm851_vm3, %v1933_v7, %v1935_v15  ;;  %v457_v18 = vld [vmem:[#allocation3] sm:$0xff] }
  0x50   : > { %2757 = vmatprep.subr.bf16.mxu0 %v2957_v22 }
  0x51   : > { %2778 = vmatpush3.bf16.msra.mxu1 %v2956_v19 }
  0x52   : > { %2779 = vmatprep.subr.bf16.mxu1 %v2958_v23 }
  0x53   : > { %2758 = vmatpush3.bf16.msra.mxu0 %v2957_v22 }
  0x54   : > { %2759 = vmatprep.subr.bf16.mxu0 %v2959_v24 }
  0x55   : > { %2780 = vmatpush3.bf16.msra.mxu1 %v2958_v23  ;;  %v458_v23 = vld [vmem:[#allocation3 + $0x8] sm:$0xff] }
  0x56   : > { %2781 = vmatprep.subr.bf16.mxu1 %v2960_v25 }
  0x57   : > { %2760 = vmatpush3.bf16.msra.mxu0 %v2959_v24 }
  0x58   : > { %2761 = vmatprep.subr.bf16.mxu0 %v2961_v28 }
  0x59   : > { %2782 = vmatpush3.bf16.msra.mxu1 %v2960_v25 }
  0x5a   : > { %2783 = vmatprep.subr.bf16.mxu1 %v2962_v32 }
  0x5b   : > { %2762 = vmatpush3.bf16.msra.mxu0 %v2961_v28 }
  0x5c   : > { %2793 = vmatprep.subr.bf16.mxu0 %v2963_v33 }
  0x5d   : > { %2784 = vmatpush3.bf16.msra.mxu1 %v2962_v32 }
  0x5e   : > { %2764 = vmatmul.mubr.msk.bf16.vlgmr.msra.gmra.mrb[16].mxu0 %vm424_vm0, %v3223_v51  ;;  %2815 = vmatprep.subr.bf16.mxu1 %v2964_v36 }
  0x5f   : > { %2794 = vmatpush3.bf16.msra.mxu0 %v2963_v33  ;;  %2767 = vmatprep.mubr.msk.bf16.mxu0 %vm424_vm0, %v3359_v42 }
  0x60   : > { %2786 = vmatmul.mubr.msk.bf16.vlgmr.msra.gmra.mrb[16].mxu1 %vm424_vm0, %v3285_v10  ;;  %2795 = vmatprep.subr.bf16.mxu0 %v2965_v40  ;;  %v1934_v10 = vsel %vm851_vm3, %v3351_v37, %v1933_v7  ;;  %v464_v37 = vld [vmem:[#allocation3 + $0x38] sm:$0xff] }
  0x61   : > { %2816 = vmatpush3.bf16.msra.mxu1 %v2964_v36  ;;  %2789 = vmatprep.mubr.msk.bf16.mxu1 %vm424_vm0, %v3369_v44 }
  0x62   : > { %2817 = vmatprep.subr.bf16.mxu1 %v2966_v43 }
  0x63   : > { %2796 = vmatpush3.bf16.msra.mxu0 %v2965_v40  ;;  %v462_v40 = vld [vmem:[#allocation3 + $0x28] sm:$0xff] }
  0x64   : > { %2797 = vmatprep.subr.bf16.mxu0 %v2968_v48 }
  0x65   : > { %2818 = vmatpush3.bf16.msra.mxu1 %v2966_v43 }
  0x66   : > { %2768 = vmatmul.mubr.msk.bf16.gmra.mrb[20].mxu0 %vm424_vm0, %v1221_v52  ;;  %2819 = vmatprep.subr.bf16.mxu1 %v2969_v50 }
  0x67   : > { %2798 = vmatpush3.bf16.msra.mxu0 %v2968_v48  ;;  %2807 = vmatprep.mubr.msk.bf16.mxu0 %vm424_vm0, %v3181_v29  ;;  %v2974_v29 = vld [vmem:[%s3579_s3 + $0x178] sm:$0xff]  }
  0x68   : > { %2799 = vmatprep.subr.bf16.mxu0 %v2970_v53  ;;  %2790 = vmatmul.mubr.msk.bf16.gmra.mrb[20].mxu1 %vm424_vm0, %v1398_v54 }
  0x69   : > { %2820 = vmatpush3.bf16.msra.mxu1 %v2969_v50  ;;  %2829 = vmatprep.mubr.msk.bf16.mxu1 %vm424_vm0, %v3223_v51  ;;  %v2976_v51 = vld [vmem:[%s3579_s3 + $0x180] sm:$0xff]  }
  0x6a   : > { %2821 = vmatprep.subr.bf16.mxu1 %v2971_v55 }
  0x6b   : > { %2800 = vmatpush3.bf16.msra.mxu0 %v2970_v53 }
  0x6c   : > { %2801 = vmatprep.subr.bf16.mxu0 %v2972_v56 }
  0x6d   : > { %2822 = vmatpush3.bf16.msra.mxu1 %v2971_v55 }
  0x6e   : > { %2823 = vmatprep.subr.bf16.mxu1 %v2973_v57 }
  0x6f   : > { %2802 = vmatpush3.bf16.msra.mxu0 %v2972_v56 }
  0x70   : > { %2803 = vmatprep.subr.bf16.mxu0 %v2974_v29 }
  0x71   : > { %2824 = vmatpush3.bf16.msra.mxu1 %v2973_v57 }
  0x72   : > { %2825 = vmatprep.subr.bf16.mxu1 %v2975_v58 }
  0x73   : > { %2804 = vmatpush3.bf16.msra.mxu0 %v2974_v29 }
  0x74   : > { %2805 = vmatprep.subr.bf16.mxu0 %v2976_v51 }
  0x75   : > { %2826 = vmatpush3.bf16.msra.mxu1 %v2975_v58 }
  0x76   : > { %2827 = vmatprep.subr.bf16.mxu1 %v2977_v60 }
  0x77   : > { %2806 = vmatpush3.bf16.msra.mxu0 %v2976_v51 }
  0x78   : > { %2837 = vmatprep.subr.bf16.mxu0 %v2978_v62 }
  0x79   : > { %2828 = vmatpush3.bf16.msra.mxu1 %v2977_v60 }
  0x7a   : > { %2808 = vmatmul.mubr.msk.bf16.vlgmr.msra.gmra.mrb[24].mxu0 %vm424_vm0, %v3202_v41  ;;  %2859 = vmatprep.subr.bf16.mxu1 %v2978_v62  ;;  %v1758_v41 = vrot.slane %v1756_v3, 1 }
  0x7b   : > { %2838 = vmatpush3.bf16.msra.mxu0 %v2978_v62  ;;  %2811 = vmatprep.mubr.msk.bf16.mxu0 %vm424_vm0, %v3312_v20  ;;  %v460_v20 = vld [vmem:[#allocation3 + $0x18] sm:$0xff] }
  0x7c   : > { %2830 = vmatmul.mubr.msk.bf16.vlgmr.msra.gmra.mrb[24].mxu1 %vm424_vm0, %v3359_v42  ;;  %2839 = vmatprep.subr.bf16.mxu0 %v2979_v1  ;;  %v1759_v9 = vsel %vm646_vm2, %v1754_v6, %v1758_v41 }
  0x7d   : > { %2866 = vmatpush3.bf16.msra.mxu1 %v2978_v62  ;;  %2833 = vmatprep.mubr.msk.bf16.mxu1 %vm424_vm0, %v1751_v4 }
  0x7e   : > { %2860 = vmatprep.subr.bf16.mxu1 %v2979_v1 }
  0x7f   : > { %2840 = vmatpush3.bf16.msra.mxu0 %v2979_v1 }
  0x80   : > { %2841 = vmatprep.subr.bf16.mxu0 %v2980_v5 }
  0x81   : > { %2867 = vmatpush3.bf16.msra.mxu1 %v2979_v1 }
  0x82   : > { %2812 = vmatmul.mubr.msk.bf16.gmra.mrb[28].mxu0 %vm424_vm0, %v3410_v59  ;;  %2861 = vmatprep.subr.bf16.mxu1 %v2980_v5 }
  0x83   : > { %2842 = vmatpush3.bf16.msra.mxu0 %v2980_v5  ;;  %2851 = vmatprep.mubr.msk.bf16.mxu0 %vm424_vm0, %v3339_v31 }
  0x84   : > { %2843 = vmatprep.subr.bf16.mxu0 %v2981_v8  ;;  %2834 = vmatmul.mubr.msk.bf16.gmra.mrb[28].mxu1 %vm424_vm0, %v1759_v9 }
  0x85   : > { %2868 = vmatpush3.bf16.msra.mxu1 %v2980_v5  ;;  %2855 = vmatprep.mubr.msk.bf16.mxu1 %vm424_vm0, %v1934_v10 }
  0x86   : > { %2862 = vmatprep.subr.bf16.mxu1 %v2981_v8 }
  0x87   : > { %2844 = vmatpush3.bf16.msra.mxu0 %v2981_v8 }
  0x88   : > { %2845 = vmatprep.subr.bf16.mxu0 %v2982_v11 }
  0x89   : > { %2869 = vmatpush3.bf16.msra.mxu1 %v2981_v8 }
  0x8a   : > { %2863 = vmatprep.subr.bf16.mxu1 %v2982_v11 }
  0x8b   : > { %2846 = vmatpush3.bf16.msra.mxu0 %v2982_v11 }
  0x8c   : > { %2847 = vmatprep.subr.bf16.mxu0 %v2983_v12 }
  0x8d   : > { %2870 = vmatpush3.bf16.msra.mxu1 %v2982_v11 }
  0x8e   : > { %2864 = vmatprep.subr.bf16.mxu1 %v2983_v12 }
  0x8f   : > { %2848 = vmatpush3.bf16.msra.mxu0 %v2983_v12 }
  0x90   : > { %2849 = vmatprep.subr.bf16.mxu0 %v2984_v13 }
  0x91   : > { %2871 = vmatpush3.bf16.msra.mxu1 %v2983_v12 }
  0x92   : > { %2865 = vmatprep.subr.bf16.mxu1 %v2984_v13 }
  0x93   : > { %2850 = vmatpush3.bf16.msra.mxu0 %v2984_v13 }
  0x95   : > { %2872 = vmatpush3.bf16.msra.mxu1 %v2984_v13 }
  0x96   : > { %2852 = vmatmul.mubr.msk.bf16.vlgmr.msra.gmra.mrb[32].mxu0 %vm424_vm0, %v3369_v44 }
  0x98   : > { %2856 = vmatmul.mubr.msk.bf16.vlgmr.msra.gmra.mrb[32].mxu1 %vm424_vm0, %v1936_v16 }
  0xf9   : > { %v2677_v19 = vpop.f32.mrb[0].mxu0 }
  0xfa   : > { %v604_v21 = vadd.f32 %v2677_v19, %v459_v17  ;;  %v571_v22 = vpop.f32.mrb[1].mxu0 }
  0xfb   : > { %v2699_v24 = vpop.f32.mrb[0].mxu1  ;;  %v602_v25 = vadd.f32 %v571_v22, %v457_v18  ;;  %v2678_v26 = vpop.f32.mrb[2].mxu0 }
  0xfc   : > { %612 = vst.msk [vmem:[#allocation3 + $0x10] sm:$0xff] %vm448_vm1, %v604_v21  ;;  %v771_v27 = vpop.f32.mrb[1].mxu1  ;;  %v605_v28 = vadd.f32 %v2678_v26, %v460_v20  ;;  %v574_v30 = vpop.f32.mrb[3].mxu0 }
  0xfd   : > { %610 = vst.msk [vmem:[#allocation3] sm:$0xff] %vm448_vm1, %v602_v25  ;;  %v2700_v31 = vpop.f32.mrb[2].mxu1  ;;  %v603_v32 = vadd.f32 %v574_v30, %v458_v23 }
  0xfe   : > { %613 = vst.msk [vmem:[#allocation3 + $0x18] sm:$0xff] %vm448_vm1, %v605_v28  ;;  %v774_v33 = vpop.f32.mrb[3].mxu1 }
  0xff   : > { %611 = vst.msk [vmem:[#allocation3 + $0x8] sm:$0xff] %vm448_vm1, %v603_v32 }
 0x101   : > { %v2681_v36 = vpop.f32.mrb[4].mxu0 }
 0x102   : > { %v608_v38 = vadd.f32 %v2681_v36, %v463_v34  ;;  %v587_v39 = vpop.f32.mrb[5].mxu0 }
 0x103   : > { %v620_v42 = vld [vmem:[#allocation3 + $0x10] sm:$0xff]  ;;  %v606_v43 = vadd.f32 %v587_v39, %v461_v35  ;;  %v2682_v44 = vpop.f32.mrb[6].mxu0  ;;  %v2703_v56 = vpop.f32.mrb[4].mxu1 }
 0x104   : > { %v804_v45 = vadd.f32 %v2699_v24, %v620_v42  ;;  %v618_v46 = vld [vmem:[#allocation3] sm:$0xff]  ;;  %616 = vst.msk [vmem:[#allocation3 + $0x30] sm:$0xff] %vm448_vm1, %v608_v38  ;;  %v609_v47 = vadd.f32 %v2682_v44, %v464_v37  ;;  %v590_v48 = vpop.f32.mrb[7].mxu0  ;;  %v787_v57 = vpop.f32.mrb[5].mxu1 }
 0x105   : > { %v802_v49 = vadd.f32 %v771_v27, %v618_v46  ;;  %v621_v50 = vld [vmem:[#allocation3 + $0x18] sm:$0xff]  ;;  %614 = vst.msk [vmem:[#allocation3 + $0x20] sm:$0xff] %vm448_vm1, %v606_v43  ;;  %v607_v52 = vadd.f32 %v590_v48, %v462_v40  ;;  %v2704_v29 = vpop.f32.mrb[6].mxu1 }
 0x106   : > { %812 = vst.msk [vmem:[#allocation3 + $0x10] sm:$0xff] %vm448_vm1, %v804_v45  ;;  %v805_v53 = vadd.f32 %v2700_v31, %v621_v50  ;;  %v619_v54 = vld [vmem:[#allocation3 + $0x8] sm:$0xff]  ;;  %617 = vst.msk [vmem:[#allocation3 + $0x38] sm:$0xff] %vm448_vm1, %v609_v47  ;;  %v790_v58 = vpop.f32.mrb[7].mxu1 }
 0x107   : > { %810 = vst.msk [vmem:[#allocation3] sm:$0xff] %vm448_vm1, %v802_v49  ;;  %v803_v55 = vadd.f32 %v774_v33, %v619_v54  ;;  %615 = vst.msk [vmem:[#allocation3 + $0x28] sm:$0xff] %vm448_vm1, %v607_v52 }
 0x108   : > { %813 = vst.msk [vmem:[#allocation3 + $0x18] sm:$0xff] %vm448_vm1, %v805_v53 }
 0x109   : > { %811 = vst.msk [vmem:[#allocation3 + $0x8] sm:$0xff] %vm448_vm1, %v803_v55 }
 0x10b   : > { %v624_v59 = vld [vmem:[#allocation3 + $0x30] sm:$0xff] }
 0x10c   : > { %v808_v51 = vadd.f32 %v2703_v56, %v624_v59  ;;  %v622_v60 = vld [vmem:[#allocation3 + $0x20] sm:$0xff] }
 0x10d   : > { %v806_v61 = vadd.f32 %v787_v57, %v622_v60  ;;  %v625_v62 = vld [vmem:[#allocation3 + $0x38] sm:$0xff]  ;;  %v820_v2 = vld [vmem:[#allocation3 + $0x10] sm:$0xff] }
 0x10e   : > { %816 = vst.msk [vmem:[#allocation3 + $0x30] sm:$0xff] %vm448_vm1, %v808_v51  ;;  %v809_v63 = vadd.f32 %v2704_v29, %v625_v62  ;;  %v623_v0 = vld [vmem:[#allocation3 + $0x28] sm:$0xff]  ;;  %v818_v5 = vld [vmem:[#allocation3] sm:$0xff] }
 0x10f   : > { %814 = vst.msk [vmem:[#allocation3 + $0x20] sm:$0xff] %vm448_vm1, %v806_v61  ;;  %v807_v1 = vadd.f32 %v790_v58, %v623_v0  ;;  %v821_v8 = vld [vmem:[#allocation3 + $0x18] sm:$0xff] }
 0x110   : > { %817 = vst.msk [vmem:[#allocation3 + $0x38] sm:$0xff] %vm448_vm1, %v809_v63  ;;  %v819_v12 = vld [vmem:[#allocation3 + $0x8] sm:$0xff] }
 0x111   : > { %815 = vst.msk [vmem:[#allocation3 + $0x28] sm:$0xff] %vm448_vm1, %v807_v1 }
 0x115   : > { %v2721_v3 = vpop.f32.mrb[8].mxu0  ;;  %v824_v17 = vld [vmem:[#allocation3 + $0x30] sm:$0xff] }
 0x116   : > { %v982_v4 = vadd.f32 %v2721_v3, %v820_v2  ;;  %v949_v6 = vpop.f32.mrb[9].mxu0  ;;  %v822_v20 = vld [vmem:[#allocation3 + $0x20] sm:$0xff] }
 0x117   : > { %v2743_v41 = vpop.f32.mrb[8].mxu1  ;;  %v980_v7 = vadd.f32 %v949_v6, %v818_v5  ;;  %v2722_v9 = vpop.f32.mrb[10].mxu0  ;;  %v825_v24 = vld [vmem:[#allocation3 + $0x38] sm:$0xff] }
 0x118   : > { %990 = vst.msk [vmem:[#allocation3 + $0x10] sm:$0xff] %vm448_vm1, %v982_v4  ;;  %v1111_v10 = vpop.f32.mrb[9].mxu1  ;;  %v983_v11 = vadd.f32 %v2722_v9, %v821_v8  ;;  %v952_v13 = vpop.f32.mrb[11].mxu0  ;;  %v823_v31 = vld [vmem:[#allocation3 + $0x28] sm:$0xff] }
 0x119   : > { %988 = vst.msk [vmem:[#allocation3] sm:$0xff] %vm448_vm1, %v980_v7  ;;  %v2744_v14 = vpop.f32.mrb[10].mxu1  ;;  %v981_v15 = vadd.f32 %v952_v13, %v819_v12 }
 0x11a   : > { %991 = vst.msk [vmem:[#allocation3 + $0x18] sm:$0xff] %vm448_vm1, %v983_v11  ;;  %v1114_v16 = vpop.f32.mrb[11].mxu1 }
 0x11b   : > { %989 = vst.msk [vmem:[#allocation3 + $0x8] sm:$0xff] %vm448_vm1, %v981_v15 }
 0x11d   : > { %v2725_v18 = vpop.f32.mrb[12].mxu0 }
 0x11e   : > { %v986_v19 = vadd.f32 %v2725_v18, %v824_v17  ;;  %v965_v21 = vpop.f32.mrb[13].mxu0 }
 0x11f   : > { %v998_v22 = vld [vmem:[#allocation3 + $0x10] sm:$0xff]  ;;  %v984_v23 = vadd.f32 %v965_v21, %v822_v20  ;;  %v2726_v25 = vpop.f32.mrb[14].mxu0  ;;  %v2747_v26 = vpop.f32.mrb[12].mxu1 }
 0x120   : > { %v1144_v27 = vadd.f32 %v2743_v41, %v998_v22  ;;  %v996_v28 = vld [vmem:[#allocation3] sm:$0xff]  ;;  %994 = vst.msk [vmem:[#allocation3 + $0x30] sm:$0xff] %vm448_vm1, %v986_v19  ;;  %v987_v30 = vadd.f32 %v2726_v25, %v825_v24  ;;  %v968_v32 = vpop.f32.mrb[15].mxu0  ;;  %v1127_v33 = vpop.f32.mrb[13].mxu1 }
 0x121   : > { %v1142_v34 = vadd.f32 %v1111_v10, %v996_v28  ;;  %v999_v35 = vld [vmem:[#allocation3 + $0x18] sm:$0xff]  ;;  %992 = vst.msk [vmem:[#allocation3 + $0x20] sm:$0xff] %vm448_vm1, %v984_v23  ;;  %v985_v36 = vadd.f32 %v968_v32, %v823_v31  ;;  %v2748_v37 = vpop.f32.mrb[14].mxu1 }
 0x122   : > { %1152 = vst.msk [vmem:[#allocation3 + $0x10] sm:$0xff] %vm448_vm1, %v1144_v27  ;;  %v1145_v38 = vadd.f32 %v2744_v14, %v999_v35  ;;  %v997_v39 = vld [vmem:[#allocation3 + $0x8] sm:$0xff]  ;;  %995 = vst.msk [vmem:[#allocation3 + $0x38] sm:$0xff] %vm448_vm1, %v987_v30  ;;  %v1130_v40 = vpop.f32.mrb[15].mxu1 }
 0x123   : > { %1150 = vst.msk [vmem:[#allocation3] sm:$0xff] %vm448_vm1, %v1142_v34  ;;  %v1143_v42 = vadd.f32 %v1114_v16, %v997_v39  ;;  %993 = vst.msk [vmem:[#allocation3 + $0x28] sm:$0xff] %vm448_vm1, %v985_v36 }
 0x124   : > { %1153 = vst.msk [vmem:[#allocation3 + $0x18] sm:$0xff] %vm448_vm1, %v1145_v38 }
 0x125   : > { %1151 = vst.msk [vmem:[#allocation3 + $0x8] sm:$0xff] %vm448_vm1, %v1143_v42 }
 0x127   : > { %v1002_v43 = vld [vmem:[#allocation3 + $0x30] sm:$0xff] }
 0x128   : > { %v1148_v44 = vadd.f32 %v2747_v26, %v1002_v43  ;;  %v1000_v45 = vld [vmem:[#allocation3 + $0x20] sm:$0xff] }
 0x129   : > { %v1146_v46 = vadd.f32 %v1127_v33, %v1000_v45  ;;  %v1003_v47 = vld [vmem:[#allocation3 + $0x38] sm:$0xff]  ;;  %v1160_v52 = vld [vmem:[#allocation3 + $0x10] sm:$0xff] }
 0x12a   : > { %1156 = vst.msk [vmem:[#allocation3 + $0x30] sm:$0xff] %vm448_vm1, %v1148_v44  ;;  %v1149_v48 = vadd.f32 %v2748_v37, %v1003_v47  ;;  %v1001_v49 = vld [vmem:[#allocation3 + $0x28] sm:$0xff]  ;;  %v1158_v55 = vld [vmem:[#allocation3] sm:$0xff] }
 0x12b   : > { %1154 = vst.msk [vmem:[#allocation3 + $0x20] sm:$0xff] %vm448_vm1, %v1146_v46  ;;  %v1147_v50 = vadd.f32 %v1130_v40, %v1001_v49  ;;  %v1161_v58 = vld [vmem:[#allocation3 + $0x18] sm:$0xff] }
 0x12c   : > { %1157 = vst.msk [vmem:[#allocation3 + $0x38] sm:$0xff] %vm448_vm1, %v1149_v48  ;;  %v1159_v61 = vld [vmem:[#allocation3 + $0x8] sm:$0xff] }
 0x12d   : > { %1155 = vst.msk [vmem:[#allocation3 + $0x28] sm:$0xff] %vm448_vm1, %v1147_v50 }
 0x131   : > { %v2765_v53 = vpop.f32.mrb[16].mxu0  ;;  %v1164_v2 = vld [vmem:[#allocation3 + $0x30] sm:$0xff] }
 0x132   : > { %v1343_v54 = vadd.f32 %v2765_v53, %v1160_v52  ;;  %v1310_v56 = vpop.f32.mrb[17].mxu0  ;;  %v1162_v5 = vld [vmem:[#allocation3 + $0x20] sm:$0xff] }
 0x133   : > { %v2787_v57 = vpop.f32.mrb[16].mxu1  ;;  %v1341_v29 = vadd.f32 %v1310_v56, %v1158_v55  ;;  %v2766_v59 = vpop.f32.mrb[18].mxu0  ;;  %v1165_v8 = vld [vmem:[#allocation3 + $0x38] sm:$0xff] }
 0x134   : > { %1351 = vst.msk [vmem:[#allocation3 + $0x10] sm:$0xff] %vm448_vm1, %v1343_v54  ;;  %v1487_v51 = vpop.f32.mrb[17].mxu1  ;;  %v1344_v60 = vadd.f32 %v2766_v59, %v1161_v58  ;;  %v1313_v62 = vpop.f32.mrb[19].mxu0  ;;  %v1163_v14 = vld [vmem:[#allocation3 + $0x28] sm:$0xff] }
 0x135   : > { %1349 = vst.msk [vmem:[#allocation3] sm:$0xff] %vm448_vm1, %v1341_v29  ;;  %v2788_v63 = vpop.f32.mrb[18].mxu1  ;;  %v1342_v0 = vadd.f32 %v1313_v62, %v1159_v61 }
 0x136   : > { %1352 = vst.msk [vmem:[#allocation3 + $0x18] sm:$0xff] %vm448_vm1, %v1344_v60  ;;  %v1490_v1 = vpop.f32.mrb[19].mxu1 }
 0x137   : > { %1350 = vst.msk [vmem:[#allocation3 + $0x8] sm:$0xff] %vm448_vm1, %v1342_v0 }
 0x139   : > { %v2769_v3 = vpop.f32.mrb[20].mxu0 }
 0x13a   : > { %v1347_v4 = vadd.f32 %v2769_v3, %v1164_v2  ;;  %v1326_v6 = vpop.f32.mrb[21].mxu0 }
 0x13b   : > { %v1359_v41 = vld [vmem:[#allocation3 + $0x10] sm:$0xff]  ;;  %v1345_v7 = vadd.f32 %v1326_v6, %v1162_v5  ;;  %v2770_v9 = vpop.f32.mrb[22].mxu0  ;;  %v2791_v10 = vpop.f32.mrb[20].mxu1 }
 0x13c   : > { %v1520_v11 = vadd.f32 %v2787_v57, %v1359_v41  ;;  %v1357_v12 = vld [vmem:[#allocation3] sm:$0xff]  ;;  %1355 = vst.msk [vmem:[#allocation3 + $0x30] sm:$0xff] %vm448_vm1, %v1347_v4  ;;  %v1348_v13 = vadd.f32 %v2770_v9, %v1165_v8  ;;  %v1329_v15 = vpop.f32.mrb[23].mxu0  ;;  %v1503_v16 = vpop.f32.mrb[21].mxu1 }
 0x13d   : > { %v1518_v17 = vadd.f32 %v1487_v51, %v1357_v12  ;;  %v1360_v18 = vld [vmem:[#allocation3 + $0x18] sm:$0xff]  ;;  %1353 = vst.msk [vmem:[#allocation3 + $0x20] sm:$0xff] %vm448_vm1, %v1345_v7  ;;  %v1346_v19 = vadd.f32 %v1329_v15, %v1163_v14  ;;  %v2792_v20 = vpop.f32.mrb[22].mxu1 }
 0x13e   : > { %1528 = vst.msk [vmem:[#allocation3 + $0x10] sm:$0xff] %vm448_vm1, %v1520_v11  ;;  %v1521_v21 = vadd.f32 %v2788_v63, %v1360_v18  ;;  %v1358_v22 = vld [vmem:[#allocation3 + $0x8] sm:$0xff]  ;;  %1356 = vst.msk [vmem:[#allocation3 + $0x38] sm:$0xff] %vm448_vm1, %v1348_v13  ;;  %v1506_v23 = vpop.f32.mrb[23].mxu1 }
 0x13f   : > { %1526 = vst.msk [vmem:[#allocation3] sm:$0xff] %vm448_vm1, %v1518_v17  ;;  %v1519_v24 = vadd.f32 %v1490_v1, %v1358_v22  ;;  %1354 = vst.msk [vmem:[#allocation3 + $0x28] sm:$0xff] %vm448_vm1, %v1346_v19 }
 0x140   : > { %1529 = vst.msk [vmem:[#allocation3 + $0x18] sm:$0xff] %vm448_vm1, %v1521_v21 }
 0x141   : > { %1527 = vst.msk [vmem:[#allocation3 + $0x8] sm:$0xff] %vm448_vm1, %v1519_v24 }
 0x143   : > { %v1363_v25 = vld [vmem:[#allocation3 + $0x30] sm:$0xff] }
 0x144   : > { %v1524_v26 = vadd.f32 %v2791_v10, %v1363_v25  ;;  %v1361_v27 = vld [vmem:[#allocation3 + $0x20] sm:$0xff] }
 0x145   : > { %v1522_v28 = vadd.f32 %v1503_v16, %v1361_v27  ;;  %v1364_v30 = vld [vmem:[#allocation3 + $0x38] sm:$0xff]  ;;  %v1536_v34 = vld [vmem:[#allocation3 + $0x10] sm:$0xff] }
 0x146   : > { %1532 = vst.msk [vmem:[#allocation3 + $0x30] sm:$0xff] %vm448_vm1, %v1524_v26  ;;  %v1525_v31 = vadd.f32 %v2792_v20, %v1364_v30  ;;  %v1362_v32 = vld [vmem:[#allocation3 + $0x28] sm:$0xff]  ;;  %v1534_v37 = vld [vmem:[#allocation3] sm:$0xff] }
 0x147   : > { %1530 = vst.msk [vmem:[#allocation3 + $0x20] sm:$0xff] %vm448_vm1, %v1522_v28  ;;  %v1523_v33 = vadd.f32 %v1506_v23, %v1362_v32  ;;  %v1537_v42 = vld [vmem:[#allocation3 + $0x18] sm:$0xff] }
 0x148   : > { %1533 = vst.msk [vmem:[#allocation3 + $0x38] sm:$0xff] %vm448_vm1, %v1525_v31  ;;  %v1535_v46 = vld [vmem:[#allocation3 + $0x8] sm:$0xff] }
 0x149   : > { %1531 = vst.msk [vmem:[#allocation3 + $0x28] sm:$0xff] %vm448_vm1, %v1523_v33 }
 0x14d   : > { %v2809_v35 = vpop.f32.mrb[24].mxu0  ;;  %v1540_v52 = vld [vmem:[#allocation3 + $0x30] sm:$0xff] }
 0x14e   : > { %v1682_v36 = vadd.f32 %v2809_v35, %v1536_v34  ;;  %v1649_v38 = vpop.f32.mrb[25].mxu0  ;;  %v1538_v55 = vld [vmem:[#allocation3 + $0x20] sm:$0xff] }
 0x14f   : > { %v2831_v39 = vpop.f32.mrb[24].mxu1  ;;  %v1680_v40 = vadd.f32 %v1649_v38, %v1534_v37  ;;  %v2810_v43 = vpop.f32.mrb[26].mxu0  ;;  %v1541_v58 = vld [vmem:[#allocation3 + $0x38] sm:$0xff] }
 0x150   : > { %1690 = vst.msk [vmem:[#allocation3 + $0x10] sm:$0xff] %vm448_vm1, %v1682_v36  ;;  %v1848_v44 = vpop.f32.mrb[25].mxu1  ;;  %v1683_v45 = vadd.f32 %v2810_v43, %v1537_v42  ;;  %v1652_v47 = vpop.f32.mrb[27].mxu0  ;;  %v1539_v63 = vld [vmem:[#allocation3 + $0x28] sm:$0xff] }
 0x151   : > { %1688 = vst.msk [vmem:[#allocation3] sm:$0xff] %vm448_vm1, %v1680_v40  ;;  %v2832_v48 = vpop.f32.mrb[26].mxu1  ;;  %v1681_v49 = vadd.f32 %v1652_v47, %v1535_v46  ;;  %v2523_v43 = vld [vmem:[%s3580_s4] ss:$0 sm:$0xff] }
 0x152   : > { %1691 = vst.msk [vmem:[#allocation3 + $0x18] sm:$0xff] %vm448_vm1, %v1683_v45  ;;  %v1851_v50 = vpop.f32.mrb[27].mxu1 }
 0x153   : > { %1689 = vst.msk [vmem:[#allocation3 + $0x8] sm:$0xff] %vm448_vm1, %v1681_v49 }
 0x155   : > { %v2813_v53 = vpop.f32.mrb[28].mxu0 }
 0x156   : > { %v1686_v54 = vadd.f32 %v2813_v53, %v1540_v52  ;;  %v1665_v56 = vpop.f32.mrb[29].mxu0 }
 0x157   : > { %v1698_v57 = vld [vmem:[#allocation3 + $0x10] sm:$0xff]  ;;  %v1684_v29 = vadd.f32 %v1665_v56, %v1538_v55  ;;  %v2814_v59 = vpop.f32.mrb[30].mxu0  ;;  %v2835_v51 = vpop.f32.mrb[28].mxu1 }
 0x158   : > { %v1881_v60 = vadd.f32 %v2831_v39, %v1698_v57  ;;  %v1696_v61 = vld [vmem:[#allocation3] sm:$0xff]  ;;  %1694 = vst.msk [vmem:[#allocation3 + $0x30] sm:$0xff] %vm448_vm1, %v1686_v54  ;;  %v1687_v62 = vadd.f32 %v2814_v59, %v1541_v58  ;;  %v1668_v0 = vpop.f32.mrb[31].mxu0  ;;  %v1864_v1 = vpop.f32.mrb[29].mxu1 }
 0x159   : > { %v1879_v2 = vadd.f32 %v1848_v44, %v1696_v61  ;;  %v1699_v3 = vld [vmem:[#allocation3 + $0x18] sm:$0xff]  ;;  %1692 = vst.msk [vmem:[#allocation3 + $0x20] sm:$0xff] %vm448_vm1, %v1684_v29  ;;  %v1685_v4 = vadd.f32 %v1668_v0, %v1539_v63  ;;  %v2836_v5 = vpop.f32.mrb[30].mxu1 }
 0x15a   : > { %1889 = vst.msk [vmem:[#allocation3 + $0x10] sm:$0xff] %vm448_vm1, %v1881_v60  ;;  %v1882_v6 = vadd.f32 %v2832_v48, %v1699_v3  ;;  %v1697_v41 = vld [vmem:[#allocation3 + $0x8] sm:$0xff]  ;;  %1695 = vst.msk [vmem:[#allocation3 + $0x38] sm:$0xff] %vm448_vm1, %v1687_v62  ;;  %v1867_v7 = vpop.f32.mrb[31].mxu1 }
 0x15b   : > { %1887 = vst.msk [vmem:[#allocation3] sm:$0xff] %vm448_vm1, %v1879_v2  ;;  %v1880_v8 = vadd.f32 %v1851_v50, %v1697_v41  ;;  %1693 = vst.msk [vmem:[#allocation3 + $0x28] sm:$0xff] %vm448_vm1, %v1685_v4 }
 0x15c   : > { %1890 = vst.msk [vmem:[#allocation3 + $0x18] sm:$0xff] %vm448_vm1, %v1882_v6 }
 0x15d   : > { %1888 = vst.msk [vmem:[#allocation3 + $0x8] sm:$0xff] %vm448_vm1, %v1880_v8 }
 0x15f   : > { %v1702_v9 = vld [vmem:[#allocation3 + $0x30] sm:$0xff] }
 0x160   : > { %v1885_v10 = vadd.f32 %v2835_v51, %v1702_v9  ;;  %v1700_v11 = vld [vmem:[#allocation3 + $0x20] sm:$0xff] }
 0x161   : > { %v1883_v12 = vadd.f32 %v1864_v1, %v1700_v11  ;;  %v1703_v13 = vld [vmem:[#allocation3 + $0x38] sm:$0xff]  ;;  %v1897_v17 = vld [vmem:[#allocation3 + $0x10] sm:$0xff] }
 0x162   : > { %1893 = vst.msk [vmem:[#allocation3 + $0x30] sm:$0xff] %vm448_vm1, %v1885_v10  ;;  %v1886_v14 = vadd.f32 %v2836_v5, %v1703_v13  ;;  %v1701_v15 = vld [vmem:[#allocation3 + $0x28] sm:$0xff]  ;;  %v1895_v21 = vld [vmem:[#allocation3] sm:$0xff] }
 0x163   : > { %1891 = vst.msk [vmem:[#allocation3 + $0x20] sm:$0xff] %vm448_vm1, %v1883_v12  ;;  %v1884_v16 = vadd.f32 %v1867_v7, %v1701_v15  ;;  %v1898_v26 = vld [vmem:[#allocation3 + $0x18] sm:$0xff] }
 0x164   : > { %1894 = vst.msk [vmem:[#allocation3 + $0x38] sm:$0xff] %vm448_vm1, %v1886_v14  ;;  %v1896_v33 = vld [vmem:[#allocation3 + $0x8] sm:$0xff] }
 0x165   : > { %1892 = vst.msk [vmem:[#allocation3 + $0x28] sm:$0xff] %vm448_vm1, %v1884_v16 }
 0x169   : > { %v2853_v18 = vpop.f32.mrb[32].mxu0  ;;  %v1901_v19 = vld [vmem:[#allocation3 + $0x30] sm:$0xff] }
 0x16a   : > { %v2058_v20 = vadd.f32 %v2853_v18, %v1897_v17  ;;  %v2025_v22 = vpop.f32.mrb[33].mxu0  ;;  %v1899_v23 = vld [vmem:[#allocation3 + $0x20] sm:$0xff] }
 0x16b   : > { %v2857_v24 = vpop.f32.mrb[32].mxu1  ;;  %v2056_v25 = vadd.f32 %v2025_v22, %v1895_v21  ;;  %v2854_v27 = vpop.f32.mrb[34].mxu0  ;;  %v1902_v28 = vld [vmem:[#allocation3 + $0x38] sm:$0xff] }
 0x16c   : > { %2066 = vst.msk [vmem:[#allocation3 + $0x10] sm:$0xff] %vm448_vm1, %v2058_v20  ;;  %v2062_v30 = vadd.f32 %v2857_v24, %v1901_v19  ;;  %v2041_v31 = vpop.f32.mrb[33].mxu1  ;;  %v2059_v32 = vadd.f32 %v2854_v27, %v1898_v26  ;;  %v2028_v34 = vpop.f32.mrb[35].mxu0  ;;  %v1900_v35 = vld [vmem:[#allocation3 + $0x28] sm:$0xff] }
 0x16d   : > { %2064 = vst.msk [vmem:[#allocation3] sm:$0xff] %vm448_vm1, %v2056_v25  ;;  %v2060_v36 = vadd.f32 %v2041_v31, %v1899_v23  ;;  %v2858_v37 = vpop.f32.mrb[34].mxu1  ;;  %v2057_v38 = vadd.f32 %v2028_v34, %v1896_v33 }
 0x16e   : > { %2070 = vst.msk [vmem:[#allocation3 + $0x30] sm:$0xff] %vm448_vm1, %v2062_v30  ;;  %2067 = vst.msk [vmem:[#allocation3 + $0x18] sm:$0xff] %vm448_vm1, %v2059_v32  ;;  %v2063_v39 = vadd.f32 %v2858_v37, %v1902_v28  ;;  %v2044_v40 = vpop.f32.mrb[35].mxu1 }
 0x16f   : > { %2068 = vst.msk [vmem:[#allocation3 + $0x20] sm:$0xff] %vm448_vm1, %v2060_v36  ;;  %2065 = vst.msk [vmem:[#allocation3 + $0x8] sm:$0xff] %vm448_vm1, %v2057_v38  ;;  %v2061_v42 = vadd.f32 %v2044_v40, %v1900_v35 }
 0x170   : > { %2071 = vst.msk [vmem:[#allocation3 + $0x38] sm:$0xff] %vm448_vm1, %v2063_v39 }
 0x171   : > { %2069 = vst.msk [vmem:[#allocation3 + $0x28] sm:$0xff] %vm448_vm1, %v2061_v42 }
 0x173   : > { %v2074_v44 = vld [vmem:[#allocation3 + $0x10] sm:$0xff] }
 0x174   : > { %v2089_v45 = vadd.f32 %v2523_v43, %v2074_v44  ;;  %v2072_v46 = vld [vmem:[#allocation3] sm:$0xff] }
 0x175   : > { %v2078_v47 = vld [vmem:[#allocation3 + $0x30] sm:$0xff]  ;;  %v2087_v48 = vadd.f32 %v2523_v43, %v2072_v46  ;;  %v2075_v49 = vld [vmem:[#allocation3 + $0x18] sm:$0xff] }
 0x176   : > { %vm2097_vm5 = vcmp.gt.f32.partialorder %v2089_v45, 0.0  ;;  %v2105_v50 = vmul.f32 0.2, %v2089_v45  ;;  %v2093_v52 = vadd.f32 %v2523_v43, %v2078_v47  ;;  %v2076_v53 = vld [vmem:[#allocation3 + $0x20] sm:$0xff]  ;;  %v2090_v54 = vadd.f32 %v2523_v43, %v2075_v49  ;;  %v2073_v55 = vld [vmem:[#allocation3 + $0x8] sm:$0xff] }
 0x177   : > { %vm2095_vm6 = vcmp.gt.f32.partialorder %v2087_v48, 0.0  ;;  %v2103_v56 = vmul.f32 0.2, %v2087_v48  ;;  %v2091_v57 = vadd.f32 %v2523_v43, %v2076_v53  ;;  %v2079_v29 = vld [vmem:[#allocation3 + $0x38] sm:$0xff]  ;;  %v2088_v58 = vadd.f32 %v2523_v43, %v2073_v55 }
 0x178   : > { %v2113_v59 = vsel %vm2097_vm5, %v2089_v45, %v2105_v50  ;;  %vm2101_vm7 = vcmp.gt.f32.partialorder %v2093_v52, 0.0  ;;  %v2109_v51 = vmul.f32 0.2, %v2093_v52  ;;  %vm2098_vm8 = vcmp.gt.f32.partialorder %v2090_v54, 0.0  ;;  %v2077_v3 = vld [vmem:[#allocation3 + $0x28] sm:$0xff] }
 0x179   : > { %v2551_v60 = vpack.c.bf16 %v2113_v59, %v2113_v59  ;;  %v2111_v61 = vsel %vm2095_vm6, %v2087_v48, %v2103_v56  ;;  %vm2099_vm9 = vcmp.gt.f32.partialorder %v2091_v57, 0.0  ;;  %v2107_v62 = vmul.f32 0.2, %v2091_v57 }
 0x17a   : > { %v2117_v63 = vsel %vm2101_vm7, %v2093_v52, %v2109_v51  ;;  %v2549_v0 = vpack.c.bf16 %v2111_v61, %v2111_v61  ;;  %v2106_v1 = vmul.f32 0.2, %v2090_v54  ;;  %v2094_v2 = vadd.f32 %v2523_v43, %v2079_v29 }
 0x17b   : > { %2154 = vst.msk [vmem:[%s3542_s14 + $0x8] sm:$0xf] %vm2151_vm4, %v2551_v60  ;;  %v2555_v4 = vpack.c.bf16 %v2117_v63, %v2117_v63  ;;  %v2115_v5 = vsel %vm2099_vm9, %v2091_v57, %v2107_v62  ;;  %vm2096_vm10 = vcmp.gt.f32.partialorder %v2088_v58, 0.0  ;;  %v2104_v6 = vmul.f32 0.2, %v2088_v58 }
 0x17c   : > { %2152 = vst.msk [vmem:[%s3542_s14] sm:$0xf] %vm2151_vm4, %v2549_v0  ;;  %v2553_v41 = vpack.c.bf16 %v2115_v5, %v2115_v5  ;;  %v2114_v7 = vsel %vm2098_vm8, %v2090_v54, %v2106_v1  ;;  %vm2102_vm11 = vcmp.gt.f32.partialorder %v2094_v2, 0.0  ;;  %v2110_v8 = vmul.f32 0.2, %v2094_v2 }
 0x17d   : > { %2158 = vst.msk [vmem:[%s3542_s14 + $0x18] sm:$0xf] %vm2151_vm4, %v2555_v4  ;;  %v2552_v9 = vpack.c.bf16 %v2114_v7, %v2114_v7  ;;  %v2112_v10 = vsel %vm2096_vm10, %v2088_v58, %v2104_v6  ;;  %v2092_v11 = vadd.f32 %v2523_v43, %v2077_v3 }
 0x17e   : > { %2156 = vst.msk [vmem:[%s3542_s14 + $0x10] sm:$0xf] %vm2151_vm4, %v2553_v41  ;;  %v2118_v12 = vsel %vm2102_vm11, %v2094_v2, %v2110_v8  ;;  %v2550_v13 = vpack.c.bf16 %v2112_v10, %v2112_v10 }
 0x17f   : > { %2155 = vst.msk [vmem:[%s3542_s14 + $0xc] sm:$0xf] %vm2151_vm4, %v2552_v9  ;;  %v2556_v14 = vpack.c.bf16 %v2118_v12, %v2118_v12  ;;  %vm2100_vm12 = vcmp.gt.f32.partialorder %v2092_v11, 0.0  ;;  %v2108_v15 = vmul.f32 0.2, %v2092_v11 }
 0x180   : > { %2153 = vst.msk [vmem:[%s3542_s14 + $0x4] sm:$0xf] %vm2151_vm4, %v2550_v13 }
 0x181   : > { %2159 = vst.msk [vmem:[%s3542_s14 + $0x1c] sm:$0xf] %vm2151_vm4, %v2556_v14  ;;  %v2116_v16 = vsel %vm2100_vm12, %v2092_v11, %v2108_v15 }
 0x182   : > { %v2554_v17 = vpack.c.bf16 %v2116_v16, %v2116_v16 }
 0x184   : > { %2157 = vst.msk [vmem:[%s3542_s14 + $0x14] sm:$0xf] %vm2151_vm4, %v2554_v17 }
 0x185 PF: > { %s15_s22 = sadd.s32 1, %s3023_s22   ;;  %s3583_s18 = smov %s3015_s20 }
 0x186   : > { %p12_p10 = scmp.ge.s32.totalorder %s15_s22, 6   ;;  %s3584_s19 = smov %s3019_s21 }
 0x187   : > { %s3585_s20 = smov %s3588_s23  ;;  %s3586_s21 = smov %s3592_s24 }
 0x188   :  { %14 = sbr.rel (!%p12_p10) target bundleno = 3 (0x3), region = 84 }

// kernel: gednet_forward.19
= control target key start
LH: loop header
LB: loop body
LE: loop exit
PB: predicated region body
PF: predicated region fallthrough
CT: control target
= control target key end

     0   :  { %s5553_s20 = smov 0   ;;  %s5555_s21 = smov 0   ;;  %s6779_s0 = inlined_call_operand.vmem [shape: bf16[2,576,33], index: 0, kind: input, shape index: {}, may-alias: {0,1,2}]   ;;  %s6780_s1 = inlined_call_operand.vmem [shape: bf16[2,576,33], index: 1, kind: input, shape index: {}, may-alias: {0,1,2}]   ;;  %s6781_s2 = inlined_call_operand.vmem [shape: bf16[2,576,33], index: 2, kind: input, shape index: {}, may-alias: {0,1,2}]   ;;  %s6782_s3 = inlined_call_operand.vmem [shape: bf16[9,33,1], index: 3, kind: input, shape index: {}]   ;;  %s6783_s4 = inlined_call_operand.<no memory space> [shape: f32[1,1], index: 4, kind: input, shape index: {}]   ;;  %s6784_s5 = inlined_call_operand.vmem [shape: f32[2,512,1], index: 5, kind: output, shape index: {}]  }
   0x1   :  { %v10_v0 = vstv %s6783_s4  ;;  %s5557_s22 = smov 0   ;;  %s5559_s23 = smov 0  }
   0x2   :  { %11 = vst [vmem:[#allocation4] sm:$0x1] %v10_v0  ;;  %s5561_s24 = smov 0  }
   0x3 LB: > { %s26_s4 = sadd.s32 1, %s5508_s22  ;;  %s29_s25 = sadd.s32 1, %s5512_s23  ;;  %s5516_s24 = sphi %s5561_s24, %s17_s24   ;;  %s5512_s23 = sphi %s5559_s23, %s6788_s23   ;;  %s5508_s22 = sphi %s5557_s22, %s6787_s22   ;;  %s5504_s21 = sphi %s5555_s21, %s6786_s21   ;;  %s5500_s20 = sphi %s5553_s20, %s6785_s20  }
   0x4   : > { %p27_p0 = scmp.ge.s32.totalorder %s26_s4, 2  ;;  %p4603_p1 = scmp.ge.s32.totalorder %s5516_s24, 1 }
   0x5   : > { %p272_p2 = scmp.lt.s32.totalorder %s5516_s24, 5 }
   0x6   : > { %s6790_s4 = smov (%p27_p0, %s26_s4), 0  ;;  %s6792_s25 = smov (!%p27_p0, %s29_s25), %s5512_s23 }
   0x7   : > { %p273_p3 = pnand %p4603_p1, %p272_p2  ;;  %p31_p4 = scmp.ge.s32.totalorder %s6792_s25, 2 }
   0x8   : > { %v5431_v1 = vld [vmem:[%s6782_s3] sm:$0xff] (!%p273_p3)   ;;  %vm522_vm0 = vcmask (!%p273_p3), 269312   ;;  %v5432_v2 = vld [vmem:[%s6782_s3 + $0x8] sm:$0xff] (!%p273_p3)   ;;  %v5518_v3 = vmov (!%p273_p3), 0   ;;  %vm725_vm1 = vcmask (!%p273_p3), 1040384   ;;  %s5597_s7 = sshll.u32 (!%p273_p3), %s5500_s20, 5 }
   0x9   : > { %s6794_s25 = smov (%p31_p4, %s6792_s25), 0  ;;  %276 = sbr.rel (%p273_p3) target bundleno = 556 (0x22c), region = 40 }
   0xa   : > { %5382 = vmatprep.subr.bf16.mxu1 (!%p273_p3), %v5431_v1  ;;  %5040 = vmatprep.subr.bf16.mxu0 (!%p273_p3), %v5431_v1  ;;  %575 = vst.msk [vmem:[#allocation2 + $0xa0] sm:$0xff] (!%p273_p3), %vm522_vm0, %v5518_v3  ;;  %v5433_v4 = vld [vmem:[%s6782_s3 + $0x10] ss:$0 sps:$4 sm:$0x11] (!%p273_p3)   ;;  %v5595_v5 = vsel (!%p273_p3), %vm725_vm1, 65535, %v5518_v3  ;;  %p340_p5 = scmp.lt.s32.totalorder (!%p273_p3), %s5504_s21, 1 }
   0xb   : > { %5385 = vmatpush3.bf16.msra.mxu1 (!%p273_p3), %v5431_v1  ;;  %5041 = vmatpush3.bf16.msra.mxu0 (!%p273_p3), %v5431_v1  ;;  %v729_v6 = vand.u32 (!%p273_p3), %v5433_v4, %v5595_v5  ;;  %p342_p6 = scmp.lt.s32.totalorder (!%p273_p3), %s5597_s7, 71  ;;  %p386_p7 = scmp.lt.s32.totalorder (!%p273_p3), %s5597_s7, 63  ;;  %v5435_v7 = vld [vmem:[%s6782_s3 + $0x14] sm:$0xff] (!%p273_p3)   ;;  %v5441_v8 = vld [vmem:[%s6782_s3 + $0x28] sm:$0xff] (!%p273_p3)   ;;  %v5442_v16 = vld [vmem:[%s6782_s3 + $0x1c] sm:$0xff] (!%p273_p3)   ;;  %vm1507_vm3 = vcmask (!%p273_p3), 1046528  }
   0xc   : > { %5383 = vmatprep.subr.bf16.mxu1 (!%p273_p3), %v5432_v2  ;;  %5042 = vmatprep.subr.bf16.mxu0 (!%p273_p3), %v5432_v2  ;;  %s5629_s26 = sadd.s32 (!%p273_p3), 32, %s5597_s7  ;;  %v5448_v18 = vld [vmem:[%s6782_s3 + $0x24] ss:$0 sps:$4 sm:$0x11] (!%p273_p3)   ;;  %v5447_v21 = vld [vmem:[%s6782_s3 + $0x30] sm:$0xff] (!%p273_p3)   ;;  %v5699_v35 = vld [vmem:[%s6782_s3 + $0x3c] sm:$0xff] (!%p273_p3)  }
   0xd   : > { %p358_p8 = scmp.lt.s32.totalorder (!%p273_p3), %s5629_s26, 71  ;;  %v5455_v22 = vld [vmem:[%s6782_s3 + $0x38] ss:$0 sps:$4 sm:$0x11] (!%p273_p3)   ;;  %v1208_v29 = vand.u32 (!%p273_p3), %v5448_v18, %v5595_v5  ;;  %v5718_v41 = vld [vmem:[%s6782_s3 + $0x50] sm:$0xff] (!%p273_p3)   ;;  %s4863_s27 = sadd.s32 (!%p273_p3), 4, %s5629_s26 }
   0xe   : > { %v1605_v34 = vand.u32 (!%p273_p3), %v5455_v22, %v5595_v5  ;;  %vm1011_vm2 = vsmask.f32 (!%p273_p3), 7424  ;;  %p373_p9 = scmp.lt.s32.totalorder (!%p273_p3), %s4863_s27, 71  ;;  %vm576_vm4 = vcmask (!%p273_p3), 7168  }
   0xf   : > { %5386 = vmatpush3.bf16.msra.mxu1 (!%p273_p3), %v5432_v2  ;;  %5043 = vmatpush3.bf16.msra.mxu0 (!%p273_p3), %v5432_v2 }
  0x10   : > { %s6796_s21 = smov (!%p340_p5, %s5504_s21), 1  ;;  %5384 = vmatprep.subr.bf16.mxu1 %v729_v6  ;;  %5044 = vmatprep.subr.bf16.mxu0 %v729_v6  ;;  %s6798_s27 = smov (!%p373_p9, %s4863_s27), 71 }
  0x11   : > { %s343_s8 = scalar_select %p342_p6, %s5597_s7, 71 }
  0x12   : > { %s5605_s9 = smul.u32 72, %s6796_s21  ;;  %s4613_s10 = sshll.u32 %s6796_s21, 6 }
  0x13   : > { %s387_s11 = scalar_select %p386_p7, %s5597_s7, 63  ;;  %5387 = vmatpush3.bf16.msra.mxu1 %v729_v6  ;;  %5045 = vmatpush3.bf16.msra.mxu0 %v729_v6 }
  0x14   : > { %s345_s16 = sadd.s32 %s5605_s9, %s343_s8  ;;  %5078 = vmatprep.subr.bf16.mxu1 %v5435_v7  ;;  %5116 = vmatprep.subr.bf16.mxu0 %v5441_v8 }
  0x15   : > { %s4605_s17 = sshll.u32 %s345_s16, 2  ;;  %s5615_s18 = sadd.s32 %s4613_s10, %s387_s11 }
  0x16   : > { %s5620_s21 = scalar_lea.vmem %s6779_s0, %s4605_s17  ;;  %s4614_s20 = sshll.u32 %s5615_s18, 3 }
  0x17   : > { %v5434_v9 = vld [vmem:[%s5620_s21 + $0x40] sm:$0xff]   ;;  %v5436_v10 = vld [vmem:[%s5620_s21 + $0x48] sm:$0xff]   ;;  %v5439_v13 = vld [vmem:[%s5620_s21 + $0x50] sm:$0xff]   ;;  %s5666_s11 = scalar_select %p358_p8, %s5629_s26, 71 }
  0x18   : > { %531 = vst.msk [vmem:[#allocation2 + $0x40] sm:$0xff] %vm522_vm0, %v5434_v9  ;;  %v5437_v11 = vld [vmem:[%s5620_s21] sm:$0xff]   ;;  %532 = vst.msk [vmem:[#allocation2 + $0x48] sm:$0xff] %vm522_vm0, %v5436_v10  ;;  %v5438_v12 = vld [vmem:[%s5620_s21 + $0x8] sm:$0xff]   ;;  %s376_s26 = sadd.s32 %s5605_s9, %s6798_s27  ;;  %s6617_s27 = scalar_lea.vmem %s6784_s5, %s4614_s20 }
  0x19   : > { %523 = vst.msk [vmem:[#allocation2] sm:$0xff] %vm522_vm0, %v5437_v11  ;;  %524 = vst.msk [vmem:[#allocation2 + $0x8] sm:$0xff] %vm522_vm0, %v5438_v12  ;;  %v5440_v14 = vld [vmem:[%s5620_s21 + $0x58] sm:$0xff]   ;;  %v5443_v15 = vld [vmem:[%s5620_s21 + $0x10] sm:$0xff]   ;;  %s361_s12 = sadd.s32 %s5605_s9, %s5666_s11  ;;  %s4611_s7 = sshll.u32 %s376_s26, 2 }
  0x1a   : > { %533 = vst.msk [vmem:[#allocation2 + $0x50] sm:$0xff] %vm522_vm0, %v5439_v13  ;;  %534 = vst.msk [vmem:[#allocation2 + $0x58] sm:$0xff] %vm522_vm0, %v5440_v14  ;;  %v5444_v17 = vld [vmem:[%s5620_s21 + $0x18] sm:$0xff]   ;;  %v5445_v19 = vld [vmem:[%s5620_s21 + $0x60] sm:$0xff]   ;;  %s4608_s15 = sshll.u32 %s361_s12, 2  ;;  %s5798_s12 = scalar_lea.vmem %s6781_s2, %s4611_s7 }
  0x1b   : > { %525 = vst.msk [vmem:[#allocation2 + $0x10] sm:$0xff] %vm522_vm0, %v5443_v15  ;;  %526 = vst.msk [vmem:[#allocation2 + $0x18] sm:$0xff] %vm522_vm0, %v5444_v17  ;;  %v5446_v24 = vld [vmem:[%s5620_s21 + $0x68] sm:$0xff]   ;;  %v5449_v26 = vld [vmem:[%s5620_s21 + $0x20] sm:$0xff]  }
  0x1c   : > { %535 = vst.msk [vmem:[#allocation2 + $0x60] sm:$0xff] %vm522_vm0, %v5445_v19  ;;  %536 = vst.msk [vmem:[#allocation2 + $0x68] sm:$0xff] %vm522_vm0, %v5446_v24  ;;  %v5450_v30 = vld [vmem:[%s5620_s21 + $0x28] sm:$0xff]   ;;  %v5451_v32 = vld [vmem:[%s5620_s21 + $0x70] sm:$0xff]  }
  0x1d   : > { %527 = vst.msk [vmem:[#allocation2 + $0x20] sm:$0xff] %vm522_vm0, %v5449_v26  ;;  %528 = vst.msk [vmem:[#allocation2 + $0x28] sm:$0xff] %vm522_vm0, %v5450_v30  ;;  %v5452_v37 = vld [vmem:[%s5620_s21 + $0x78] sm:$0xff]   ;;  %v5453_v39 = vld [vmem:[%s5620_s21 + $0x30] sm:$0xff]  }
  0x1e   : > { %537 = vst.msk [vmem:[#allocation2 + $0x70] sm:$0xff] %vm522_vm0, %v5451_v32  ;;  %538 = vst.msk [vmem:[#allocation2 + $0x78] sm:$0xff] %vm522_vm0, %v5452_v37  ;;  %v5454_v40 = vld [vmem:[%s5620_s21 + $0x38] sm:$0xff]   ;;  %s363_s21 = scalar_lea.vmem %s6780_s1, %s4608_s15  ;;  %v5458_v12 = vld [vmem:[%s6782_s3 + $0x44] sm:$0xff]  }
  0x1f   : > { %v5648_v20 = vld [vmem:[#allocation2 + $0x40] sm:$0xff]  ;;  %v5659_v23 = vld [vmem:[#allocation2 + $0x48] sm:$0xff]  ;;  %529 = vst.msk [vmem:[#allocation2 + $0x30] sm:$0xff] %vm522_vm0, %v5453_v39  ;;  %530 = vst.msk [vmem:[#allocation2 + $0x38] sm:$0xff] %vm522_vm0, %v5454_v40 }
  0x20   : > { %5062 = vmatprep.mubr.msk.bf16.mxu1 %vm522_vm0, %v5648_v20  ;;  %v5670_v25 = vld [vmem:[#allocation2] sm:$0xff]  ;;  %v5675_v27 = vld [vmem:[#allocation2 + $0x8] sm:$0xff]  ;;  %v5459_v19 = vld [vmem:[%s6782_s3 + $0x58] sm:$0xff]  }
  0x21   : > { %5063 = vmatmul.mubr.msk.bf16.vlgmr.msra.gmra.mrb[0].mxu1 %vm522_vm0, %v5659_v23  ;;  %5046 = vmatprep.mubr.msk.bf16.mxu0 %vm522_vm0, %v5670_v25  ;;  %v5680_v28 = vld [vmem:[#allocation2 + $0x50] sm:$0xff]  ;;  %v5687_v31 = vld [vmem:[#allocation2 + $0x58] sm:$0xff]  ;;  %v1015_v43 = vshll.u32 %v5670_v25, 16  ;;  %v5462_v44 = vld [vmem:[%s363_s21] sm:$0xff]   ;;  %v1013_v47 = vshrl.u32 %v5670_v25, 16  ;;  %v1020_v49 = vshll.u32 %v5675_v27, 16 }
  0x22   : > { %5079 = vmatpush3.bf16.msra.mxu1 %v5435_v7  ;;  %5047 = vmatmul.mubr.msk.bf16.vlgmr.msra.gmra.mrb[0].mxu0 %vm522_vm0, %v5675_v27  ;;  %v5692_v33 = vld [vmem:[#allocation2 + $0x10] sm:$0xff]  ;;  %v5703_v36 = vld [vmem:[#allocation2 + $0x18] sm:$0xff]  ;;  %555 = vst.msk [vmem:[#allocation2 + $0x80] sm:$0xff] %vm522_vm0, %v5462_v44  ;;  %v1467_v52 = vld [vmem:[#allocation2] sm:$0xfe]  ;;  %v1509_v55 = vrot.slane %v5675_v27, 1 }
  0x23   : > { %5080 = vmatprep.subr.bf16.mxu1 %v5442_v16  ;;  %5066 = vmatprep.mubr.msk.bf16.mxu1 %vm522_vm0, %v5680_v28  ;;  %v5707_v38 = vld [vmem:[#allocation2 + $0x60] sm:$0xff]  ;;  %v5735_v45 = vld [vmem:[#allocation2 + $0x68] sm:$0xff]  ;;  %v1017_v48 = vrot.slane %v1015_v43, 1  ;;  %v1022_v54 = vrot.slane %v1020_v49, 1  ;;  %v1028_v56 = vshll.u32 %v5692_v33, 16  ;;  %v1508_v57 = vrot.slane %v1467_v52, 1 }
  0x24   : > { %5117 = vmatpush3.bf16.msra.mxu0 %v5441_v8  ;;  %5050 = vmatprep.mubr.msk.bf16.mxu0 %vm522_vm0, %v5692_v33  ;;  %v5722_v42 = vld [vmem:[#allocation2 + $0x20] sm:$0xff]  ;;  %v5742_v50 = vld [vmem:[#allocation2 + $0x28] sm:$0xff]  ;;  %v1024_v60 = vshrl.u32 %v5675_v27, 16  ;;  %v1032_v62 = vshrl.u32 %v5692_v33, 16  ;;  %v1036_v63 = vshll.u32 %v5703_v36, 16  ;;  %v1511_v7 = vrot.slane %v5692_v33, 1 }
  0x25   : > { %5118 = vmatprep.subr.bf16.mxu0 %v5447_v21  ;;  %v5737_v46 = vld [vmem:[#allocation2 + $0x70] sm:$0xff]  ;;  %v1018_v53 = vor.u32 %v1017_v48, %v1013_v47  ;;  %v5469_v58 = vld [vmem:[%s363_s21 + $0x8] sm:$0xff]   ;;  %v5757_v59 = vld [vmem:[#allocation2 + $0x78] sm:$0xff]  ;;  %v1030_v1 = vrot.slane %v1028_v56, 1  ;;  %v1510_v2 = vsel %vm1507_vm3, %v1508_v57, %v1509_v55  ;;  %v1044_v8 = vshll.u32 %v5722_v42, 16 }
  0x26   : > { %5081 = vmatpush3.bf16.msra.mxu1 %v5442_v16  ;;  %v5746_v51 = vld [vmem:[#allocation2 + $0x30] sm:$0xff]  ;;  %556 = vst.msk [vmem:[#allocation2 + $0x88] sm:$0xff] %vm522_vm0, %v5469_v58  ;;  %v5764_v0 = vld [vmem:[#allocation2 + $0x38] sm:$0xff]  ;;  %v1026_v3 = vor.u32 %v1024_v60, %v1022_v54  ;;  %v1038_v6 = vrot.slane %v1036_v63, 1  ;;  %v5776_v9 = vrot.slane %v5703_v36, 1  ;;  %v1040_v11 = vshrl.u32 %v5703_v36, 16 }
  0x27   : > { %5082 = vmatprep.subr.bf16.mxu1 %v1208_v29  ;;  %v1023_v61 = vsel %vm1011_vm2, %v1018_v53, %v1022_v54  ;;  %v1034_v4 = vor.u32 %v1032_v62, %v1030_v1  ;;  %v5460_v13 = vld [vmem:[%s6782_s3 + $0x4c] ss:$0 sps:$4 sm:$0x11]   ;;  %v1048_v15 = vshrl.u32 %v5722_v42, 16  ;;  %v1052_v16 = vshll.u32 %v5742_v50, 16  ;;  %v5470_v24 = vld [vmem:[%s5798_s12] sm:$0xff]  }
  0x28   : > { %5119 = vmatpush3.bf16.msra.mxu0 %v5447_v21  ;;  %v1031_v10 = vsel %vm1011_vm2, %v1026_v3, %v1030_v1  ;;  %v5461_v17 = vld [vmem:[%s6782_s3 + $0x60] ss:$0 sps:$4 sm:$0x11]   ;;  %v1512_v18 = vsel %vm1507_vm3, %v1509_v55, %v1511_v7  ;;  %v1046_v21 = vrot.slane %v1044_v8, 1  ;;  %v1514_v22 = vsel %vm1507_vm3, %v1511_v7, %v5776_v9  ;;  %573 = vst.msk [vmem:[#allocation2 + $0x90] sm:$0xff] %vm522_vm0, %v5470_v24  ;;  %v5832_v44 = vld [vmem:[%s6782_s3 + $0x64] sm:$0xff]  }
  0x29   : > { %5067 = vmatmul.mubr.msk.bf16.gmra.mrb[4].mxu1 %vm522_vm0, %v5687_v31  ;;  %5120 = vmatprep.subr.bf16.mxu0 %v1605_v34  ;;  %v5788_v14 = vsel %vm1011_vm2, %v1034_v4, %v1038_v6  ;;  %v1042_v25 = vor.u32 %v1040_v11, %v1038_v6  ;;  %v1054_v27 = vrot.slane %v1052_v16, 1  ;;  %v1515_v30 = vrot.slane %v5722_v42, 1  ;;  %v5846_v52 = vld [vmem:[%s6782_s3 + $0x78] sm:$0xff]  }
  0x2a   : > { %5070 = vmatprep.mubr.msk.bf16.mxu1 %vm522_vm0, %v5707_v38  ;;  %5083 = vmatpush3.bf16.msra.mxu1 %v1208_v29  ;;  %v1050_v26 = vor.u32 %v1048_v15, %v1046_v21  ;;  %v1950_v29 = vand.u32 %v5460_v13, %v5595_v5  ;;  %v1060_v32 = vshll.u32 %v5746_v51, 16  ;;  %v1056_v39 = vshrl.u32 %v5742_v50, 16 }
  0x2b   : > { %5051 = vmatmul.mubr.msk.bf16.gmra.mrb[4].mxu0 %vm522_vm0, %v5703_v36  ;;  %5154 = vmatprep.subr.bf16.mxu1 %v5699_v35  ;;  %v5821_v37 = vsel %vm1011_vm2, %v1042_v25, %v1046_v21  ;;  %v1068_v43 = vshll.u32 %v5764_v0, 16  ;;  %v5836_v47 = vsel %vm1507_vm3, %v5776_v9, %v1515_v30  ;;  %v1519_v56 = vrot.slane %v5746_v51, 1 }
  0x2c   : > { %5054 = vmatprep.mubr.msk.bf16.mxu0 %vm522_vm0, %v5722_v42  ;;  %5121 = vmatpush3.bf16.msra.mxu0 %v1605_v34  ;;  %v1517_v34 = vrot.slane %v5742_v50, 1  ;;  %v5825_v40 = vsel %vm1011_vm2, %v1050_v26, %v1054_v27  ;;  %v1062_v48 = vrot.slane %v1060_v32, 1  ;;  %v1058_v53 = vor.u32 %v1056_v39, %v1054_v27 }
  0x2d   : > { %5192 = vmatprep.subr.bf16.mxu0 %v5718_v41  ;;  %v1070_v55 = vrot.slane %v1068_v43, 1  ;;  %v1076_v57 = vshll.u32 %v5648_v20, 16  ;;  %v5858_v58 = vrot.slane %v5764_v0, 1  ;;  %v1080_v63 = vshrl.u32 %v5648_v20, 16 }
  0x2e   : > { %v5841_v49 = vsel %vm1507_vm3, %v1515_v30, %v1517_v34  ;;  %v5862_v60 = vsel %vm1011_vm2, %v1058_v53, %v1062_v48  ;;  %v1084_v1 = vshll.u32 %v5659_v23, 16  ;;  %v1092_v11 = vshll.u32 %v5680_v28, 16 }
  0x2f   : > { %v1078_v3 = vrot.slane %v1076_v57, 1  ;;  %v5877_v4 = vsel %vm1507_vm3, %v1519_v56, %v5858_v58  ;;  %v1088_v15 = vshrl.u32 %v5659_v23, 16  ;;  %v1527_v27 = vrot.slane %v5680_v28, 1 }
  0x30   : > { %v1086_v8 = vrot.slane %v1084_v1, 1  ;;  %v1094_v21 = vrot.slane %v1092_v11, 1  ;;  %v1529_v30 = vrot.slane %v5687_v31, 1  ;;  %v1112_v39 = vshrl.u32 %v5707_v38, 16 }
  0x31   : > { %5071 = vmatmul.mubr.msk.bf16.gmra.mrb[8].mxu1 %vm522_vm0, %v5735_v45  ;;  %v1082_v7 = vor.u32 %v1080_v63, %v1078_v3  ;;  %v1531_v57 = vrot.slane %v5707_v38, 1  ;;  %v1533_v63 = vrot.slane %v5735_v45, 1 }
  0x32   : > { %5074 = vmatprep.mubr.msk.bf16.mxu1 %vm522_vm0, %v5737_v46  ;;  %v1090_v24 = vor.u32 %v1088_v15, %v1086_v8  ;;  %v1530_v53 = vsel %vm1507_vm3, %v1527_v27, %v1529_v30 }
  0x33   : > { %5055 = vmatmul.mubr.msk.bf16.gmra.mrb[8].mxu0 %vm522_vm0, %v5742_v50  ;;  %v5893_v16 = vsel %vm1011_vm2, %v1082_v7, %v1086_v8  ;;  %v1128_v7 = vshrl.u32 %v5737_v46, 16  ;;  %v1132_v8 = vshll.u32 %v5757_v59, 16 }
  0x34   : > { %5058 = vmatprep.mubr.msk.bf16.mxu0 %vm522_vm0, %v5746_v51  ;;  %v5910_v32 = vsel %vm1011_vm2, %v1090_v24, %v1094_v21  ;;  %v5519_v24 = vmov 0.0  }
  0x35   : > { %595 = vst.msk [vmem:[#allocation3 + $0x90] sm:$0xff] %vm576_vm4, %v5519_v24  ;;  %577 = vst.msk [vmem:[#allocation3] sm:$0xff] %vm576_vm4, %v5519_v24 }
  0x36   : > { %578 = vst.msk [vmem:[#allocation3 + $0x8] sm:$0xff] %vm576_vm4, %v5519_v24  ;;  %579 = vst.msk [vmem:[#allocation3 + $0x10] sm:$0xff] %vm576_vm4, %v5519_v24 }
  0x37   : > { %580 = vst.msk [vmem:[#allocation3 + $0x18] sm:$0xff] %vm576_vm4, %v5519_v24  ;;  %581 = vst.msk [vmem:[#allocation3 + $0x20] sm:$0xff] %vm576_vm4, %v5519_v24 }
  0x38   : > { %582 = vst.msk [vmem:[#allocation3 + $0x28] sm:$0xff] %vm576_vm4, %v5519_v24  ;;  %583 = vst.msk [vmem:[#allocation3 + $0x30] sm:$0xff] %vm576_vm4, %v5519_v24 }
  0x39   : > { %5075 = vmatmul.mubr.msk.bf16.gmra.mrb[12].mxu1 %vm522_vm0, %v5757_v59  ;;  %584 = vst.msk [vmem:[#allocation3 + $0x38] sm:$0xff] %vm576_vm4, %v5519_v24  ;;  %585 = vst.msk [vmem:[#allocation3 + $0x40] sm:$0xff] %vm576_vm4, %v5519_v24 }
  0x3a   : > { %5084 = vmatprep.mubr.msk.bf16.mxu1 %vm522_vm0, %v1023_v61  ;;  %v1072_v61 = vshrl.u32 %v5764_v0, 16  ;;  %586 = vst.msk [vmem:[#allocation3 + $0x48] sm:$0xff] %vm576_vm4, %v5519_v24  ;;  %587 = vst.msk [vmem:[#allocation3 + $0x50] sm:$0xff] %vm576_vm4, %v5519_v24 }
  0x3b   : > { %5059 = vmatmul.mubr.msk.bf16.gmra.mrb[12].mxu0 %vm522_vm0, %v5764_v0  ;;  %588 = vst.msk [vmem:[#allocation3 + $0x58] sm:$0xff] %vm576_vm4, %v5519_v24  ;;  %589 = vst.msk [vmem:[#allocation3 + $0x60] sm:$0xff] %vm576_vm4, %v5519_v24 }
  0x3c   : > { %5122 = vmatprep.mubr.msk.bf16.mxu0 %vm522_vm0, %v1510_v2  ;;  %v5871_v2 = vsel %vm1507_vm3, %v1517_v34, %v1519_v56  ;;  %v1074_v6 = vor.u32 %v1072_v61, %v1070_v55  ;;  %v1104_v34 = vshrl.u32 %v5687_v31, 16  ;;  %v1124_v61 = vshll.u32 %v5737_v46, 16  ;;  %590 = vst.msk [vmem:[#allocation3 + $0x68] sm:$0xff] %vm576_vm4, %v5519_v24  ;;  %591 = vst.msk [vmem:[#allocation3 + $0x70] sm:$0xff] %vm576_vm4, %v5519_v24 }
  0x3d   : > { %592 = vst.msk [vmem:[#allocation3 + $0x78] sm:$0xff] %vm576_vm4, %v5519_v24  ;;  %593 = vst.msk [vmem:[#allocation3 + $0x80] sm:$0xff] %vm576_vm4, %v5519_v24 }
  0x3e   : > { %v5889_v13 = vsel %vm1011_vm2, %v1074_v6, %v1078_v3  ;;  %v1120_v3 = vshrl.u32 %v5735_v45, 16  ;;  %v1126_v11 = vrot.slane %v1124_v61, 1  ;;  %594 = vst.msk [vmem:[#allocation3 + $0x88] sm:$0xff] %vm576_vm4, %v5519_v24  ;;  %596 = vst.msk [vmem:[#allocation3 + $0x98] sm:$0xff] %vm576_vm4, %v5519_v24 }
  0x3f   : > { %597 = vst.msk [vmem:[#allocation3 + $0xa0] sm:$0xff] %vm576_vm4, %v5519_v24  ;;  %598 = vst.msk [vmem:[#allocation3 + $0xa8] sm:$0xff] %vm576_vm4, %v5519_v24  ;;  %v5468_v61 = vld [vmem:[%s6782_s3 + $0x88] ss:$0 sps:$4 sm:$0x11]  }
  0x40   : > { %599 = vst.msk [vmem:[#allocation3 + $0xb0] sm:$0xff] %vm576_vm4, %v5519_v24  ;;  %600 = vst.msk [vmem:[#allocation3 + $0xb8] sm:$0xff] %vm576_vm4, %v5519_v24 }
  0x41   : > { %5085 = vmatmul.mubr.msk.bf16.vlgmr.msra.gmra.mrb[16].mxu1 %vm522_vm0, %v1031_v10  ;;  %v1523_v10 = vrot.slane %v5648_v20, 1  ;;  %601 = vst.msk [vmem:[#allocation3 + $0xc0] sm:$0xff] %vm576_vm4, %v5519_v24  ;;  %602 = vst.msk [vmem:[#allocation3 + $0xc8] sm:$0xff] %vm576_vm4, %v5519_v24 }
  0x42   : > { %5155 = vmatpush3.bf16.msra.mxu1 %v5699_v35  ;;  %5088 = vmatprep.mubr.msk.bf16.mxu1 %vm522_vm0, %v5788_v14  ;;  %v2428_v35 = vand.u32 %v5461_v17, %v5595_v5  ;;  %v1096_v17 = vshrl.u32 %v5680_v28, 16  ;;  %603 = vst.msk [vmem:[#allocation3 + $0xd0] sm:$0xff] %vm576_vm4, %v5519_v24  ;;  %604 = vst.msk [vmem:[#allocation3 + $0xd8] sm:$0xff] %vm576_vm4, %v5519_v24 }
  0x43   : > { %5123 = vmatmul.mubr.msk.bf16.vlgmr.msra.gmra.mrb[16].mxu0 %vm522_vm0, %v1512_v18  ;;  %5156 = vmatprep.subr.bf16.mxu1 %v5458_v12  ;;  %v1100_v18 = vshll.u32 %v5687_v31, 16  ;;  %605 = vst.msk [vmem:[#allocation3 + $0xe0] sm:$0xff] %vm576_vm4, %v5519_v24  ;;  %606 = vst.msk [vmem:[#allocation3 + $0xe8] sm:$0xff] %vm576_vm4, %v5519_v24 }
  0x44   : > { %5193 = vmatpush3.bf16.msra.mxu0 %v5718_v41  ;;  %5126 = vmatprep.mubr.msk.bf16.mxu0 %vm522_vm0, %v1514_v22  ;;  %v1064_v41 = vshrl.u32 %v5746_v51, 16  ;;  %v1098_v25 = vor.u32 %v1096_v17, %v1094_v21  ;;  %v1130_v17 = vor.u32 %v1128_v7, %v1126_v11  ;;  %v1535_v21 = vrot.slane %v5737_v46, 1  ;;  %607 = vst.msk [vmem:[#allocation3 + $0xf0] sm:$0xff] %vm576_vm4, %v5519_v24  ;;  %v5474_v7 = vld [vmem:[%s6782_s3 + $0xa8] sm:$0xff]  }
  0x45   : > { %5194 = vmatprep.subr.bf16.mxu0 %v5459_v19  ;;  %v1102_v26 = vrot.slane %v1100_v18, 1  ;;  %v1134_v18 = vrot.slane %v1132_v8, 1  ;;  %608 = vst.msk [vmem:[#allocation3 + $0xf8] sm:$0xff] %vm576_vm4, %v5519_v24  ;;  %v5476_v8 = vld [vmem:[%s6782_s3 + $0xb0] ss:$0 sps:$4 sm:$0x11]  }
  0x46   : > { %5157 = vmatpush3.bf16.msra.mxu1 %v5458_v12  ;;  %v1066_v54 = vor.u32 %v1064_v41, %v1062_v48  ;;  %v1525_v12 = vrot.slane %v5659_v23, 1  ;;  %v1116_v41 = vshll.u32 %v5735_v45, 16 }
  0x47   : > { %5158 = vmatprep.subr.bf16.mxu1 %v1950_v29 }
  0x48   : > { %5195 = vmatpush3.bf16.msra.mxu0 %v5459_v19  ;;  %v5866_v62 = vsel %vm1011_vm2, %v1066_v54, %v1070_v55  ;;  %v1524_v19 = vsel %vm1507_vm3, %v5858_v58, %v1523_v10  ;;  %v1526_v22 = vsel %vm1507_vm3, %v1523_v10, %v1525_v12  ;;  %v1528_v43 = vsel %vm1507_vm3, %v1525_v12, %v1527_v27 }
  0x49   : > { %5089 = vmatmul.mubr.msk.bf16.gmra.mrb[20].mxu1 %vm522_vm0, %v5821_v37  ;;  %5196 = vmatprep.subr.bf16.mxu0 %v2428_v35  ;;  %v1106_v54 = vor.u32 %v1104_v34, %v1102_v26  ;;  %v1118_v56 = vrot.slane %v1116_v41, 1  ;;  %v1532_v10 = vsel %vm1507_vm3, %v1529_v30, %v1531_v57  ;;  %v1534_v12 = vsel %vm1507_vm3, %v1531_v57, %v1533_v63  ;;  %v5467_v57 = vld [vmem:[%s6782_s3 + $0x74] ss:$0 sps:$4 sm:$0x11]  }
  0x4a   : > { %5092 = vmatprep.mubr.msk.bf16.mxu1 %vm522_vm0, %v5825_v40  ;;  %5159 = vmatpush3.bf16.msra.mxu1 %v1950_v29  ;;  %v1108_v29 = vshll.u32 %v5707_v38, 16  ;;  %v1536_v30 = vsel %vm1507_vm3, %v1533_v63, %v1535_v21 }
  0x4b   : > { %5127 = vmatmul.mubr.msk.bf16.gmra.mrb[20].mxu0 %vm522_vm0, %v5836_v47  ;;  %5230 = vmatprep.subr.bf16.mxu1 %v5832_v44  ;;  %v1122_v15 = vor.u32 %v1120_v3, %v1118_v56 }
  0x4c   : > { %5130 = vmatprep.mubr.msk.bf16.mxu0 %vm522_vm0, %v5841_v49  ;;  %5197 = vmatpush3.bf16.msra.mxu0 %v2428_v35  ;;  %v5914_v35 = vsel %vm1011_vm2, %v1098_v25, %v1102_v26  ;;  %v1110_v48 = vrot.slane %v1108_v29, 1  ;;  %v1136_v26 = vshrl.u32 %v5757_v59, 16  ;;  %v5985_v29 = vsel %vm1011_vm2, %v1130_v17, %v1134_v18  ;;  %v6168_v17 = vld [vmem:[#allocation2 + $0x60] sm:$0xff] }
  0x4d   : > { %5268 = vmatprep.subr.bf16.mxu0 %v5846_v52  ;;  %v5981_v25 = vsel %vm1011_vm2, %v1122_v15, %v1126_v11  ;;  %v6128_v11 = vld [vmem:[#allocation2 + $0x48] sm:$0xff] }
  0x4e   : > { %v1114_v55 = vor.u32 %v1112_v39, %v1110_v48  ;;  %v5930_v1 = vsel %vm1011_vm2, %v1106_v54, %v1110_v48  ;;  %v1483_v39 = vld [vmem:[#allocation2 + $0x80] sm:$0x1]  ;;  %v5993_v41 = vor.u32 %v1136_v26, %v1134_v18  ;;  %v5477_v54 = vld [vmem:[%s5798_s12 + $0x8] sm:$0xff]   ;;  %v6190_v26 = vld [vmem:[#allocation2 + $0x78] sm:$0xff] }
  0x4f   : > { %v1539_v48 = vrot.slane %v1483_v39, 1  ;;  %574 = vst.msk [vmem:[#allocation2 + $0x98] sm:$0xff] %vm522_vm0, %v5477_v54  ;;  %v6170_v18 = vld [vmem:[#allocation2 + $0x68] sm:$0xff]  ;;  %v3428_v39 = vld [vmem:[#allocation2 + $0x20] sm:$0xff] }
  0x50   : > { %v5934_v6 = vsel %vm1011_vm2, %v1114_v55, %v1118_v56  ;;  %v5465_v56 = vld [vmem:[%s6782_s3 + $0x6c] sm:$0xff]  }
  0x51   : > { %5093 = vmatmul.mubr.msk.bf16.gmra.mrb[24].mxu1 %vm522_vm0, %v5862_v60 }
  0x52   : > { %5096 = vmatprep.mubr.msk.bf16.mxu1 %vm522_vm0, %v5866_v62 }
  0x53   : > { %5131 = vmatmul.mubr.msk.bf16.gmra.mrb[24].mxu0 %vm522_vm0, %v5871_v2 }
  0x54   : > { %5134 = vmatprep.mubr.msk.bf16.mxu0 %vm522_vm0, %v5877_v4 }
  0x59   : > { %5097 = vmatmul.mubr.msk.bf16.gmra.mrb[28].mxu1 %vm522_vm0, %v5889_v13 }
  0x5a   : > { %5100 = vmatprep.mubr.msk.bf16.mxu1 %vm522_vm0, %v5893_v16 }
  0x5b   : > { %5135 = vmatmul.mubr.msk.bf16.gmra.mrb[28].mxu0 %vm522_vm0, %v1524_v19  ;;  %v1004_v19 = vld [vmem:[#allocation2 + $0x80] sm:$0x1] }
  0x5c   : > { %5138 = vmatprep.mubr.msk.bf16.mxu0 %vm522_vm0, %v1526_v22  ;;  %v1537_v22 = vrot.slane %v5757_v59, 1  ;;  %v1140_v27 = vshll.u32 %v1004_v19, 16  ;;  %v2746_v19 = vrot.slane %v6168_v17, 1 }
  0x5e   : > { %v1538_v34 = vsel %vm1507_vm3, %v1535_v21, %v1537_v22  ;;  %v1540_v55 = vsel %vm1507_vm3, %v1537_v22, %v1539_v48  ;;  %v2748_v21 = vrot.slane %v6170_v18, 1  ;;  %v3454_v48 = vshll.u32 %v3428_v39, 16 }
  0x60   : > { %v6186_v24 = vsel %vm1507_vm3, %v2746_v19, %v2748_v21 }
  0x61   : > { %5101 = vmatmul.mubr.msk.bf16.gmra.mrb[32].mxu1 %vm522_vm0, %v5910_v32 }
  0x62   : > { %5104 = vmatprep.mubr.msk.bf16.mxu1 %vm522_vm0, %v5914_v35 }
  0x63   : > { %5139 = vmatmul.mubr.msk.bf16.gmra.mrb[32].mxu0 %vm522_vm0, %v1528_v43  ;;  %v1142_v43 = vrot.slane %v1140_v27, 1 }
  0x64   : > { %5142 = vmatprep.mubr.msk.bf16.mxu0 %vm522_vm0, %v1530_v53 }
  0x65   : > { %v1143_v53 = vsel %vm1011_vm2, %v5993_v41, %v1142_v43 }
  0x69   : > { %5105 = vmatmul.mubr.msk.bf16.gmra.mrb[36].mxu1 %vm522_vm0, %v5930_v1 }
  0x6a   : > { %5108 = vmatprep.mubr.msk.bf16.mxu1 %vm522_vm0, %v5934_v6 }
  0x6b   : > { %5143 = vmatmul.mubr.msk.bf16.gmra.mrb[36].mxu0 %vm522_vm0, %v1532_v10  ;;  %v6126_v10 = vld [vmem:[#allocation2 + $0x40] sm:$0xff] }
  0x6c   : > { %5146 = vmatprep.mubr.msk.bf16.mxu0 %vm522_vm0, %v1534_v12 }
  0x71   : > { %5109 = vmatmul.mubr.msk.bf16.gmra.mrb[40].mxu1 %vm522_vm0, %v5981_v25 }
  0x72   : > { %5112 = vmatprep.mubr.msk.bf16.mxu1 %vm522_vm0, %v5985_v29 }
  0x73   : > { %5147 = vmatmul.mubr.msk.bf16.gmra.mrb[40].mxu0 %vm522_vm0, %v1536_v30 }
  0x74   : > { %5150 = vmatprep.mubr.msk.bf16.mxu0 %vm522_vm0, %v1538_v34 }
  0x79   : > { %5113 = vmatmul.mubr.msk.bf16.gmra.mrb[44].mxu1 %vm522_vm0, %v1143_v53  ;;  %v6221_v53 = vld [vmem:[#allocation2 + $0x28] sm:$0xff] }
  0x7a   : > { %5160 = vmatprep.mubr.msk.bf16.mxu1 %vm522_vm0, %v5692_v33  ;;  %v5466_v33 = vld [vmem:[%s6782_s3 + $0x80] sm:$0xff]  }
  0x7b   : > { %5151 = vmatmul.mubr.msk.bf16.gmra.mrb[44].mxu0 %vm522_vm0, %v1540_v55  ;;  %v2703_v55 = vld [vmem:[#allocation2 + $0x90] sm:$0x1] }
  0x7c   : > { %5198 = vmatprep.mubr.msk.bf16.mxu0 %vm522_vm0, %v5788_v14  ;;  %v2824_v14 = vand.u32 %v5467_v57, %v5595_v5  ;;  %v3452_v57 = vshrl.u32 %v3428_v39, 16  ;;  %v6248_v39 = vld [vmem:[#allocation2 + $0x98] sm:$0xff] }
  0x81   : > { %5161 = vmatmul.mubr.msk.bf16.vlgmr.msra.gmra.mrb[48].mxu1 %vm522_vm0, %v5703_v36  ;;  %v3169_v36 = vand.u32 %v5468_v61, %v5595_v5  ;;  %v3459_v61 = vshll.u32 %v6221_v53, 16 }
  0x82   : > { %5231 = vmatpush3.bf16.msra.mxu1 %v5832_v44  ;;  %5164 = vmatprep.mubr.msk.bf16.mxu1 %vm522_vm0, %v5722_v42  ;;  %v5471_v44 = vld [vmem:[%s6782_s3 + $0x8c] sm:$0xff]  }
  0x83   : > { %5199 = vmatmul.mubr.msk.bf16.vlgmr.msra.gmra.mrb[48].mxu0 %vm522_vm0, %v5821_v37  ;;  %5232 = vmatprep.subr.bf16.mxu1 %v5465_v56  ;;  %v5472_v37 = vld [vmem:[%s6782_s3 + $0xa0] sm:$0xff]  }
  0x84   : > { %5269 = vmatpush3.bf16.msra.mxu0 %v5846_v52  ;;  %5202 = vmatprep.mubr.msk.bf16.mxu0 %vm522_vm0, %v5825_v40 }
  0x85   : > { %5270 = vmatprep.subr.bf16.mxu0 %v5466_v33 }
  0x86   : > { %5233 = vmatpush3.bf16.msra.mxu1 %v5465_v56 }
  0x87   : > { %5234 = vmatprep.subr.bf16.mxu1 %v2824_v14 }
  0x88   : > { %5271 = vmatpush3.bf16.msra.mxu0 %v5466_v33  ;;  %v3456_v33 = vrot.slane %v3454_v48, 1 }
  0x89   : > { %5165 = vmatmul.mubr.msk.bf16.gmra.mrb[52].mxu1 %vm522_vm0, %v5742_v50  ;;  %5272 = vmatprep.subr.bf16.mxu0 %v3169_v36 }
  0x8a   : > { %5168 = vmatprep.mubr.msk.bf16.mxu1 %vm522_vm0, %v5746_v51  ;;  %5235 = vmatpush3.bf16.msra.mxu1 %v2824_v14  ;;  %v2758_v14 = vrot.slane %v2703_v55, 1  ;;  %v631_v55 = vld [vmem:[#allocation3 + $0xb0] sm:$0xff] }
  0x8b   : > { %5203 = vmatmul.mubr.msk.bf16.gmra.mrb[52].mxu0 %vm522_vm0, %v5862_v60  ;;  %5306 = vmatprep.subr.bf16.mxu1 %v5471_v44 }
  0x8c   : > { %5206 = vmatprep.mubr.msk.bf16.mxu0 %vm522_vm0, %v5866_v62  ;;  %5273 = vmatpush3.bf16.msra.mxu0 %v3169_v36  ;;  %v2225_v62 = vld [vmem:[#allocation2 + $0x90] sm:$0x1] }
  0x8d   : > { %5344 = vmatprep.subr.bf16.mxu0 %v5472_v37  ;;  %v6228_v36 = vld [vmem:[#allocation2 + $0x90] sm:$0xff] }
  0x91   : > { %5169 = vmatmul.mubr.msk.bf16.gmra.mrb[56].mxu1 %vm522_vm0, %v5764_v0 }
  0x92   : > { %5172 = vmatprep.mubr.msk.bf16.mxu1 %vm522_vm0, %v5648_v20  ;;  %v6070_v20 = vld [vmem:[#allocation2 + $0x80] sm:$0xff] }
  0x93   : > { %5207 = vmatmul.mubr.msk.bf16.gmra.mrb[56].mxu0 %vm522_vm0, %v5889_v13 }
  0x94   : > { %5210 = vmatprep.mubr.msk.bf16.mxu0 %vm522_vm0, %v5893_v16  ;;  %v2360_v16 = vshll.u32 %v2225_v62, 16  ;;  %v611_v62 = vld [vmem:[#allocation3 + $0x10] sm:$0xff] }
  0x99   : > { %5173 = vmatmul.mubr.msk.bf16.gmra.mrb[60].mxu1 %vm522_vm0, %v5659_v23  ;;  %v6072_v23 = vld [vmem:[#allocation2 + $0x88] sm:$0xff] }
  0x9a   : > { %5176 = vmatprep.mubr.msk.bf16.mxu1 %vm522_vm0, %v5680_v28  ;;  %v2344_v28 = vshll.u32 %v6070_v20, 16  ;;  %v2352_v40 = vshll.u32 %v6072_v23, 16  ;;  %v2356_v13 = vshrl.u32 %v6072_v23, 16  ;;  %v2756_v43 = vrot.slane %v6072_v23, 1 }
  0x9b   : > { %5211 = vmatmul.mubr.msk.bf16.gmra.mrb[60].mxu0 %vm522_vm0, %v5910_v32  ;;  %v2687_v32 = vld [vmem:[#allocation2 + $0x10] sm:$0xfe] }
  0x9c   : > { %5214 = vmatprep.mubr.msk.bf16.mxu0 %vm522_vm0, %v5914_v35  ;;  %v2354_v60 = vrot.slane %v2352_v40, 1  ;;  %v2727_v35 = vrot.slane %v2687_v32, 1  ;;  %v3461_v40 = vrot.slane %v3459_v61, 1  ;;  %v626_v32 = vld [vmem:[#allocation3 + $0x88] sm:$0xff] }
  0x9e   : > { %v2358_v63 = vor.u32 %v2356_v13, %v2354_v60  ;;  %v2729_v3 = vsel %vm1507_vm3, %v2727_v35, %v5776_v9  ;;  %v5475_v9 = vld [vmem:[%s6782_s3 + $0x9c] ss:$0 sps:$4 sm:$0x11]   ;;  %v609_v35 = vld [vmem:[#allocation3] sm:$0xff] }
  0xa1   : > { %5177 = vmatmul.mubr.msk.bf16.gmra.mrb[64].mxu1 %vm522_vm0, %v5687_v31  ;;  %v2348_v31 = vshrl.u32 %v6070_v20, 16 }
  0xa2   : > { %5180 = vmatprep.mubr.msk.bf16.mxu1 %vm522_vm0, %v5707_v38  ;;  %v2346_v38 = vrot.slane %v2344_v28, 1  ;;  %v625_v28 = vld [vmem:[#allocation3 + $0x80] sm:$0xff] }
  0xa3   : > { %5215 = vmatmul.mubr.msk.bf16.gmra.mrb[64].mxu0 %vm522_vm0, %v5930_v1  ;;  %v2362_v1 = vrot.slane %v2360_v16, 1 }
  0xa4   : > { %5218 = vmatprep.mubr.msk.bf16.mxu0 %vm522_vm0, %v5934_v6  ;;  %v2350_v52 = vor.u32 %v2348_v31, %v2346_v38  ;;  %v3457_v31 = vor.u32 %v3456_v33, %v3452_v57 }
  0xa5   : > { %v2363_v6 = vsel %vm1011_vm2, %v2358_v63, %v2362_v1 }
  0xa9   : > { %5181 = vmatmul.mubr.msk.bf16.gmra.mrb[68].mxu1 %vm522_vm0, %v5735_v45  ;;  %v2347_v45 = vsel %vm1011_vm2, %v5993_v41, %v2346_v38  ;;  %v2754_v41 = vrot.slane %v6070_v20, 1  ;;  %v6235_v38 = vld [vmem:[#allocation2 + $0x38] sm:$0xff] }
  0xaa   : > { %5184 = vmatprep.mubr.msk.bf16.mxu1 %vm522_vm0, %v5737_v46  ;;  %v2355_v46 = vsel %vm1011_vm2, %v2350_v52, %v2354_v60  ;;  %v628_v60 = vld [vmem:[#allocation3 + $0x98] sm:$0xff] }
  0xab   : > { %5219 = vmatmul.mubr.msk.bf16.gmra.mrb[68].mxu0 %vm522_vm0, %v5981_v25  ;;  %v6188_v25 = vld [vmem:[#allocation2 + $0x70] sm:$0xff]  ;;  %v2757_v56 = vsel %vm1507_vm3, %v2754_v41, %v2756_v43 }
  0xac   : > { %5222 = vmatprep.mubr.msk.bf16.mxu0 %vm522_vm0, %v5985_v29  ;;  %v2750_v27 = vrot.slane %v6188_v25, 1  ;;  %v6200_v29 = vrot.slane %v6190_v26, 1 }
  0xae   : > { %v6205_v30 = vsel %vm1507_vm3, %v2748_v21, %v2750_v27  ;;  %v6209_v34 = vsel %vm1507_vm3, %v2750_v27, %v6200_v29  ;;  %v2755_v54 = vsel %vm1507_vm3, %v6200_v29, %v2754_v41 }
  0xb1   : > { %5185 = vmatmul.mubr.msk.bf16.gmra.mrb[72].mxu1 %vm522_vm0, %v5757_v59  ;;  %v5473_v59 = vld [vmem:[%s6782_s3 + $0x94] sm:$0xff]  }
  0xb2   : > { %5188 = vmatprep.mubr.msk.bf16.mxu1 %vm522_vm0, %v6070_v20 }
  0xb3   : > { %5223 = vmatmul.mubr.msk.bf16.gmra.mrb[72].mxu0 %vm522_vm0, %v2347_v45 }
  0xb4   : > { %5226 = vmatprep.mubr.msk.bf16.mxu0 %vm522_vm0, %v2355_v46  ;;  %v2759_v46 = vsel %vm1507_vm3, %v2756_v43, %v2758_v14  ;;  %v629_v14 = vld [vmem:[#allocation3 + $0xa0] sm:$0xff] }
  0xb9   : > { %5189 = vmatmul.mubr.msk.bf16.gmra.mrb[76].mxu1 %vm522_vm0, %v6072_v23 }
  0xba   : > { %5236 = vmatprep.mubr.msk.bf16.mxu1 %vm522_vm0, %v2729_v3 }
  0xbb   : > { %5227 = vmatmul.mubr.msk.bf16.gmra.mrb[76].mxu0 %vm522_vm0, %v2363_v6 }
  0xbc   : > { %5274 = vmatprep.mubr.msk.bf16.mxu0 %vm522_vm0, %v5722_v42  ;;  %v3647_v42 = vand.u32 %v5475_v9, %v5595_v5  ;;  %v3463_v9 = vshrl.u32 %v6221_v53, 16 }
  0xbe   : > { %v3465_v57 = vor.u32 %v3463_v9, %v3461_v40 }
  0xc1   : > { %5237 = vmatmul.mubr.msk.bf16.vlgmr.msra.gmra.mrb[80].mxu1 %vm522_vm0, %v5836_v47  ;;  %v4043_v47 = vand.u32 %v5476_v8, %v5595_v5  ;;  %v2740_v5 = vrot.slane %v6128_v11, 1  ;;  %v3475_v8 = vshll.u32 %v6235_v38, 16 }
  0xc2   : > { %5307 = vmatpush3.bf16.msra.mxu1 %v5471_v44  ;;  %5240 = vmatprep.mubr.msk.bf16.mxu1 %vm522_vm0, %v5841_v49  ;;  %v6230_v44 = vld [vmem:[#allocation2 + $0x30] sm:$0xff] }
  0xc3   : > { %5275 = vmatmul.mubr.msk.bf16.vlgmr.msra.gmra.mrb[80].mxu0 %vm522_vm0, %v5742_v50  ;;  %5308 = vmatprep.subr.bf16.mxu1 %v5473_v59  ;;  %v6135_v50 = vrot.slane %v6126_v10, 1  ;;  %v3467_v45 = vshll.u32 %v6230_v44, 16  ;;  %v3477_v61 = vrot.slane %v3475_v8, 1  ;;  %v3487_v8 = vshrl.u32 %v6126_v10, 16 }
  0xc4   : > { %5345 = vmatpush3.bf16.msra.mxu0 %v5472_v37  ;;  %5278 = vmatprep.mubr.msk.bf16.mxu0 %vm522_vm0, %v5746_v51  ;;  %v627_v37 = vld [vmem:[#allocation3 + $0x90] sm:$0xff] }
  0xc5   : > { %5346 = vmatprep.subr.bf16.mxu0 %v5474_v7  ;;  %v2739_v51 = vsel %vm1507_vm3, %v5858_v58, %v6135_v50  ;;  %v6147_v49 = vsel %vm1507_vm3, %v6135_v50, %v2740_v5  ;;  %v3469_v41 = vrot.slane %v3467_v45, 1  ;;  %v3479_v45 = vshrl.u32 %v6235_v38, 16 }
  0xc6   : > { %5309 = vmatpush3.bf16.msra.mxu1 %v5473_v59  ;;  %v612_v59 = vld [vmem:[#allocation3 + $0x18] sm:$0xff] }
  0xc7   : > { %5310 = vmatprep.subr.bf16.mxu1 %v3647_v42 }
  0xc8   : > { %5347 = vmatpush3.bf16.msra.mxu0 %v5474_v7  ;;  %v3471_v7 = vshrl.u32 %v6230_v44, 16 }
  0xc9   : > { %5241 = vmatmul.mubr.msk.bf16.gmra.mrb[84].mxu1 %vm522_vm0, %v5871_v2  ;;  %5348 = vmatprep.subr.bf16.mxu0 %v4043_v47  ;;  %v6149_v2 = vld [vmem:[#allocation2 + $0x50] sm:$0xff] }
  0xca   : > { %5244 = vmatprep.mubr.msk.bf16.mxu1 %vm522_vm0, %v5877_v4  ;;  %5311 = vmatpush3.bf16.msra.mxu1 %v3647_v42  ;;  %v6151_v4 = vld [vmem:[#allocation2 + $0x58] sm:$0xff]  ;;  %v3473_v33 = vor.u32 %v3471_v7, %v3469_v41  ;;  %v614_v7 = vld [vmem:[#allocation3 + $0x28] sm:$0xff] }
  0xcb   : > { %5279 = vmatmul.mubr.msk.bf16.gmra.mrb[84].mxu0 %vm522_vm0, %v5764_v0  ;;  %v2742_v0 = vrot.slane %v6149_v2, 1  ;;  %v2744_v58 = vrot.slane %v6151_v4, 1 }
  0xcc   : > { %5282 = vmatprep.mubr.msk.bf16.mxu0 %vm522_vm0, %v6126_v10  ;;  %5349 = vmatpush3.bf16.msra.mxu0 %v4043_v47 }
  0xcd   : > { %v6163_v12 = vsel %vm1507_vm3, %v2740_v5, %v2742_v0  ;;  %v6166_v15 = vsel %vm1507_vm3, %v2742_v0, %v2744_v58  ;;  %v6183_v22 = vsel %vm1507_vm3, %v2744_v58, %v2746_v19  ;;  %v610_v0 = vld [vmem:[#allocation3 + $0x8] sm:$0xff]  ;;  %v3462_v58 = vsel %vm1011_vm2, %v3457_v31, %v3461_v40 }
  0xce   : > { %v3949_v31 = vrot.slane %v6230_v44, 1 }
  0xd1   : > { %5245 = vmatmul.mubr.msk.bf16.gmra.mrb[88].mxu1 %vm522_vm0, %v2739_v51 }
  0xd2   : > { %5248 = vmatprep.mubr.msk.bf16.mxu1 %vm522_vm0, %v6147_v49 }
  0xd3   : > { %5283 = vmatmul.mubr.msk.bf16.gmra.mrb[88].mxu0 %vm522_vm0, %v6128_v11 }
  0xd4   : > { %5286 = vmatprep.mubr.msk.bf16.mxu0 %vm522_vm0, %v6149_v2 }
  0xd9   : > { %5249 = vmatmul.mubr.msk.bf16.gmra.mrb[92].mxu1 %vm522_vm0, %v6163_v12 }
  0xda   : > { %5252 = vmatprep.mubr.msk.bf16.mxu1 %vm522_vm0, %v6166_v15 }
  0xdb   : > { %5287 = vmatmul.mubr.msk.bf16.gmra.mrb[92].mxu0 %vm522_vm0, %v6151_v4 }
  0xdc   : > { %5290 = vmatprep.mubr.msk.bf16.mxu0 %vm522_vm0, %v6168_v17 }
  0xe1   : > { %5253 = vmatmul.mubr.msk.bf16.gmra.mrb[96].mxu1 %vm522_vm0, %v6183_v22 }
  0xe2   : > { %5256 = vmatprep.mubr.msk.bf16.mxu1 %vm522_vm0, %v6186_v24 }
  0xe3   : > { %5291 = vmatmul.mubr.msk.bf16.gmra.mrb[96].mxu0 %vm522_vm0, %v6170_v18 }
  0xe4   : > { %5294 = vmatprep.mubr.msk.bf16.mxu0 %vm522_vm0, %v6188_v25 }
  0xe9   : > { %5257 = vmatmul.mubr.msk.bf16.gmra.mrb[100].mxu1 %vm522_vm0, %v6205_v30 }
  0xea   : > { %5260 = vmatprep.mubr.msk.bf16.mxu1 %vm522_vm0, %v6209_v34 }
  0xeb   : > { %5295 = vmatmul.mubr.msk.bf16.gmra.mrb[100].mxu0 %vm522_vm0, %v6190_v26 }
  0xec   : > { %5298 = vmatprep.mubr.msk.bf16.mxu0 %vm522_vm0, %v6070_v20  ;;  %v3906_v20 = vld [vmem:[#allocation2 + $0x20] sm:$0xfe] }
  0xed   : > { %v3946_v63 = vrot.slane %v3906_v20, 1  ;;  %v632_v20 = vld [vmem:[#allocation3 + $0xb8] sm:$0xff] }
  0xf1   : > { %5261 = vmatmul.mubr.msk.bf16.gmra.mrb[104].mxu1 %vm522_vm0, %v2755_v54 }
  0xf2   : > { %5264 = vmatprep.mubr.msk.bf16.mxu1 %vm522_vm0, %v2757_v56 }
  0xf3   : > { %5299 = vmatmul.mubr.msk.bf16.gmra.mrb[104].mxu0 %vm522_vm0, %v6072_v23  ;;  %v3947_v23 = vrot.slane %v6221_v53, 1  ;;  %v635_v53 = vld [vmem:[#allocation3 + $0xd0] sm:$0xff] }
  0xf4   : > { %v5064_v52 = vpop.f32.mrb[0].mxu1  ;;  %5302 = vmatprep.mubr.msk.bf16.mxu0 %vm522_vm0, %v6228_v36 }
  0xf5   : > { %v910_v13 = vadd.f32 %v5064_v52, %v627_v37  ;;  %v829_v16 = vpop.f32.mrb[1].mxu1  ;;  %v5048_v6 = vpop.f32.mrb[0].mxu0  ;;  %v3948_v54 = vsel %vm1507_vm3, %v3946_v63, %v3947_v23 }
  0xf6   : > { %v908_v1 = vadd.f32 %v829_v16, %v625_v28  ;;  %v5065_v3 = vpop.f32.mrb[2].mxu1  ;;  %v894_v5 = vadd.f32 %v5048_v6, %v611_v62  ;;  %v765_v51 = vpop.f32.mrb[1].mxu0  ;;  %v615_v28 = vld [vmem:[#allocation3 + $0x30] sm:$0xff]  ;;  %v613_v62 = vld [vmem:[#allocation3 + $0x20] sm:$0xff]  ;;  %v3951_v16 = vrot.slane %v6235_v38, 1 }
  0xf7   : > { %942 = vst.msk [vmem:[#allocation3 + $0x90] sm:$0xff] %vm576_vm4, %v910_v13  ;;  %v911_v42 = vadd.f32 %v5065_v3, %v628_v60  ;;  %v832_v47 = vpop.f32.mrb[3].mxu1  ;;  %v892_v21 = vadd.f32 %v765_v51, %v609_v35  ;;  %v5049_v27 = vpop.f32.mrb[2].mxu0  ;;  %v630_v60 = vld [vmem:[#allocation3 + $0xa8] sm:$0xff]  ;;  %v3483_v13 = vshll.u32 %v6126_v10, 16  ;;  %v3470_v35 = vsel %vm1011_vm2, %v3465_v57, %v3469_v41  ;;  %v633_v41 = vld [vmem:[#allocation3 + $0xc0] sm:$0xff] }
  0xf8   : > { %940 = vst.msk [vmem:[#allocation3 + $0x80] sm:$0xff] %vm576_vm4, %v908_v1  ;;  %v909_v19 = vadd.f32 %v832_v47, %v626_v32  ;;  %926 = vst.msk [vmem:[#allocation3 + $0x10] sm:$0xff] %vm576_vm4, %v894_v5  ;;  %v895_v43 = vadd.f32 %v5049_v27, %v612_v59  ;;  %v768_v48 = vpop.f32.mrb[3].mxu0  ;;  %v616_v1 = vld [vmem:[#allocation3 + $0x38] sm:$0xff]  ;;  %v3478_v3 = vsel %vm1011_vm2, %v3473_v33, %v3477_v61  ;;  %v3499_v57 = vshll.u32 %v6149_v2, 16 }
  0xf9   : > { %943 = vst.msk [vmem:[#allocation3 + $0x98] sm:$0xff] %vm576_vm4, %v911_v42  ;;  %5265 = vmatmul.mubr.msk.bf16.gmra.mrb[108].mxu1 %vm522_vm0, %v2759_v46  ;;  %924 = vst.msk [vmem:[#allocation3] sm:$0xff] %vm576_vm4, %v892_v21  ;;  %v893_v56 = vadd.f32 %v768_v48, %v610_v0  ;;  %v3491_v42 = vshll.u32 %v6128_v11, 16  ;;  %v3950_v0 = vsel %vm1507_vm3, %v3947_v23, %v3949_v31  ;;  %v3485_v21 = vrot.slane %v3483_v13, 1 }
  0xfa   : > { %941 = vst.msk [vmem:[#allocation3 + $0x88] sm:$0xff] %vm576_vm4, %v909_v19  ;;  %5312 = vmatprep.mubr.msk.bf16.mxu1 %vm522_vm0, %v3462_v58  ;;  %927 = vst.msk [vmem:[#allocation3 + $0x18] sm:$0xff] %vm576_vm4, %v895_v43  ;;  %v3481_v10 = vor.u32 %v3479_v45, %v3477_v61  ;;  %v3952_v27 = vsel %vm1507_vm3, %v3949_v31, %v3951_v16  ;;  %v3507_v45 = vshll.u32 %v6151_v4, 16 }
  0xfb   : > { %5303 = vmatmul.mubr.msk.bf16.gmra.mrb[108].mxu0 %vm522_vm0, %v6248_v39  ;;  %925 = vst.msk [vmem:[#allocation3 + $0x8] sm:$0xff] %vm576_vm4, %v893_v56  ;;  %v3489_v43 = vor.u32 %v3487_v8, %v3485_v21  ;;  %v3493_v48 = vrot.slane %v3491_v42, 1  ;;  %v619_v56 = vld [vmem:[#allocation3 + $0x50] sm:$0xff] }
  0xfc   : > { %v5068_v37 = vpop.f32.mrb[4].mxu1  ;;  %5350 = vmatprep.mubr.msk.bf16.mxu0 %vm522_vm0, %v3948_v54 }
  0xfd   : > { %v914_v40 = vadd.f32 %v5068_v37, %v631_v55  ;;  %v845_v52 = vpop.f32.mrb[5].mxu1  ;;  %v636_v55 = vld [vmem:[#allocation3 + $0xd8] sm:$0xff]  ;;  %v3486_v37 = vsel %vm1011_vm2, %v3481_v10, %v3485_v21  ;;  %v621_v10 = vld [vmem:[#allocation3 + $0x60] sm:$0xff]  ;;  %v3515_v21 = vshll.u32 %v6168_v17, 16 }
  0xfe   : > { %v912_v32 = vadd.f32 %v845_v52, %v629_v14  ;;  %v5069_v46 = vpop.f32.mrb[6].mxu1  ;;  %v5052_v63 = vpop.f32.mrb[4].mxu0  ;;  %v634_v14 = vld [vmem:[#allocation3 + $0xc8] sm:$0xff]  ;;  %v620_v52 = vld [vmem:[#allocation3 + $0x58] sm:$0xff] }
  0xff   : > { %946 = vst.msk [vmem:[#allocation3 + $0xb0] sm:$0xff] %vm576_vm4, %v914_v40  ;;  %v915_v44 = vadd.f32 %v5069_v46, %v632_v20  ;;  %v848_v6 = vpop.f32.mrb[7].mxu1  ;;  %v898_v59 = vadd.f32 %v5052_v63, %v615_v28  ;;  %v781_v9 = vpop.f32.mrb[5].mxu0  ;;  %v617_v20 = vld [vmem:[#allocation3 + $0x40] sm:$0xff]  ;;  %v618_v63 = vld [vmem:[#allocation3 + $0x48] sm:$0xff] }
 0x100   : > { %944 = vst.msk [vmem:[#allocation3 + $0xa0] sm:$0xff] %vm576_vm4, %v912_v32  ;;  %v913_v47 = vadd.f32 %v848_v6, %v630_v60  ;;  %v896_v5 = vadd.f32 %v781_v9, %v613_v62  ;;  %v5053_v51 = vpop.f32.mrb[6].mxu0  ;;  %v3495_v60 = vshrl.u32 %v6128_v11, 16  ;;  %v3503_v62 = vshrl.u32 %v6149_v2, 16 }
 0x101   : > { %947 = vst.msk [vmem:[#allocation3 + $0xb8] sm:$0xff] %vm576_vm4, %v915_v44  ;;  %5313 = vmatmul.mubr.msk.bf16.vlgmr.msra.gmra.mrb[112].mxu1 %vm522_vm0, %v3470_v35  ;;  %930 = vst.msk [vmem:[#allocation3 + $0x30] sm:$0xff] %vm576_vm4, %v898_v59  ;;  %v899_v58 = vadd.f32 %v5053_v51, %v616_v1  ;;  %v784_v19 = vpop.f32.mrb[7].mxu0  ;;  %v3494_v1 = vsel %vm1011_vm2, %v3489_v43, %v3493_v48  ;;  %v3954_v11 = vsel %vm1507_vm3, %v3951_v16, %v6135_v50  ;;  %v637_v16 = vld [vmem:[#allocation3 + $0xe0] sm:$0xff]  ;;  %v623_v51 = vld [vmem:[#allocation3 + $0x70] sm:$0xff] }
 0x102   : > { %945 = vst.msk [vmem:[#allocation3 + $0xa8] sm:$0xff] %vm576_vm4, %v913_v47  ;;  %928 = vst.msk [vmem:[#allocation3 + $0x20] sm:$0xff] %vm576_vm4, %v896_v5  ;;  %v897_v23 = vadd.f32 %v784_v19, %v614_v7  ;;  %5316 = vmatprep.mubr.msk.bf16.mxu1 %vm522_vm0, %v3478_v3  ;;  %v3501_v2 = vrot.slane %v3499_v57, 1  ;;  %v639_v7 = vld [vmem:[#allocation3 + $0xf0] sm:$0xff]  ;;  %v3497_v38 = vor.u32 %v3495_v60, %v3493_v48  ;;  %v3509_v50 = vrot.slane %v3507_v45, 1  ;;  %v640_v5 = vld [vmem:[#allocation3 + $0xf8] sm:$0xff] }
 0x103   : > { %931 = vst.msk [vmem:[#allocation3 + $0x38] sm:$0xff] %vm576_vm4, %v899_v58  ;;  %5351 = vmatmul.mubr.msk.bf16.vlgmr.msra.gmra.mrb[112].mxu0 %vm522_vm0, %v3950_v0  ;;  %v638_v19 = vld [vmem:[#allocation3 + $0xe8] sm:$0xff]  ;;  %v624_v43 = vld [vmem:[#allocation3 + $0x78] sm:$0xff]  ;;  %v958_v45 = vld [vmem:[#allocation3 + $0x10] sm:$0xff] }
 0x104   : > { %v5072_v54 = vpop.f32.mrb[8].mxu1  ;;  %929 = vst.msk [vmem:[#allocation3 + $0x28] sm:$0xff] %vm576_vm4, %v897_v23  ;;  %5354 = vmatprep.mubr.msk.bf16.mxu0 %vm522_vm0, %v3952_v27  ;;  %v3505_v42 = vor.u32 %v3503_v62, %v3501_v2  ;;  %v3502_v23 = vsel %vm1011_vm2, %v3497_v38, %v3501_v2  ;;  %v3539_v38 = vshll.u32 %v6190_v26, 16 }
 0x105   : > { %v918_v33 = vadd.f32 %v5072_v54, %v635_v53  ;;  %v861_v61 = vpop.f32.mrb[9].mxu1  ;;  %v3511_v54 = vshrl.u32 %v6151_v4, 16 }
 0x106   : > { %v916_v28 = vadd.f32 %v861_v61, %v633_v41  ;;  %v5073_v31 = vpop.f32.mrb[10].mxu1  ;;  %v5056_v40 = vpop.f32.mrb[8].mxu0  ;;  %v3510_v48 = vsel %vm1011_vm2, %v3505_v42, %v3509_v50  ;;  %v3519_v61 = vshrl.u32 %v6168_v17, 16 }
 0x107   : > { %950 = vst.msk [vmem:[#allocation3 + $0xd0] sm:$0xff] %vm576_vm4, %v918_v33  ;;  %v919_v13 = vadd.f32 %v5073_v31, %v636_v55  ;;  %v864_v32 = vpop.f32.mrb[11].mxu1  ;;  %v902_v46 = vadd.f32 %v5056_v40, %v619_v56  ;;  %v797_v35 = vpop.f32.mrb[9].mxu0  ;;  %v622_v33 = vld [vmem:[#allocation3 + $0x68] sm:$0xff]  ;;  %v3517_v40 = vrot.slane %v3515_v21, 1 }
 0x108   : > { %948 = vst.msk [vmem:[#allocation3 + $0xc0] sm:$0xff] %vm576_vm4, %v916_v28  ;;  %v917_v3 = vadd.f32 %v864_v32, %v634_v14  ;;  %v900_v44 = vadd.f32 %v797_v35, %v617_v20  ;;  %v5057_v6 = vpop.f32.mrb[10].mxu0  ;;  %v3523_v14 = vshll.u32 %v6170_v18, 16 }
 0x109   : > { %951 = vst.msk [vmem:[#allocation3 + $0xd8] sm:$0xff] %vm576_vm4, %v919_v13  ;;  %5317 = vmatmul.mubr.msk.bf16.gmra.mrb[116].mxu1 %vm522_vm0, %v3486_v37  ;;  %934 = vst.msk [vmem:[#allocation3 + $0x50] sm:$0xff] %vm576_vm4, %v902_v46  ;;  %v903_v59 = vadd.f32 %v5057_v6, %v620_v52  ;;  %v800_v9 = vpop.f32.mrb[11].mxu0  ;;  %v3513_v52 = vor.u32 %v3511_v54, %v3509_v50  ;;  %v3521_v60 = vor.u32 %v3519_v61, %v3517_v40  ;;  %v956_v46 = vld [vmem:[#allocation3] sm:$0xff] }
 0x10a   : > { %949 = vst.msk [vmem:[#allocation3 + $0xc8] sm:$0xff] %vm576_vm4, %v917_v3  ;;  %932 = vst.msk [vmem:[#allocation3 + $0x40] sm:$0xff] %vm576_vm4, %v900_v44  ;;  %v901_v8 = vadd.f32 %v800_v9, %v618_v63  ;;  %5320 = vmatprep.mubr.msk.bf16.mxu1 %vm522_vm0, %v3494_v1  ;;  %v3525_v62 = vrot.slane %v3523_v14, 1  ;;  %v3531_v63 = vshll.u32 %v6188_v25, 16  ;;  %v959_v3 = vld [vmem:[#allocation3 + $0x18] sm:$0xff] }
 0x10b   : > { %935 = vst.msk [vmem:[#allocation3 + $0x58] sm:$0xff] %vm576_vm4, %v903_v59  ;;  %5355 = vmatmul.mubr.msk.bf16.gmra.mrb[116].mxu0 %vm522_vm0, %v3954_v11  ;;  %v3518_v6 = vsel %vm1011_vm2, %v3513_v52, %v3517_v40  ;;  %v3527_v11 = vshrl.u32 %v6170_v18, 16  ;;  %v957_v59 = vld [vmem:[#allocation3 + $0x8] sm:$0xff] }
 0x10c   : > { %v5076_v47 = vpop.f32.mrb[12].mxu1  ;;  %933 = vst.msk [vmem:[#allocation3 + $0x48] sm:$0xff] %vm576_vm4, %v901_v8  ;;  %5358 = vmatprep.mubr.msk.bf16.mxu0 %vm522_vm0, %v6147_v49  ;;  %v3535_v8 = vshrl.u32 %v6188_v25, 16  ;;  %v961_v61 = vld [vmem:[#allocation3 + $0x28] sm:$0xff] }
 0x10d   : > { %v922_v0 = vadd.f32 %v5076_v47, %v639_v7  ;;  %v877_v58 = vpop.f32.mrb[13].mxu1  ;;  %v6343_v47 = vld [vmem:[#allocation2 + $0x80] sm:$0xff] }
 0x10e   : > { %v920_v27 = vadd.f32 %v877_v58, %v637_v16  ;;  %v5077_v53 = vpop.f32.mrb[14].mxu1  ;;  %v5060_v41 = vpop.f32.mrb[12].mxu0  ;;  %v3533_v16 = vrot.slane %v3531_v63, 1  ;;  %v962_v58 = vld [vmem:[#allocation3 + $0x30] sm:$0xff]  ;;  %v3969_v63 = vrot.slane %v6343_v47, 1 }
 0x10f   : > { %954 = vst.msk [vmem:[#allocation3 + $0xf0] sm:$0xff] %vm576_vm4, %v922_v0  ;;  %v923_v55 = vadd.f32 %v5077_v53, %v640_v5  ;;  %v880_v49 = vpop.f32.mrb[15].mxu1  ;;  %v906_v56 = vadd.f32 %v5060_v41, %v623_v51  ;;  %v813_v57 = vpop.f32.mrb[13].mxu0  ;;  %v3529_v5 = vor.u32 %v3527_v11, %v3525_v62  ;;  %v3541_v51 = vrot.slane %v3539_v38, 1  ;;  %v6349_v0 = vld [vmem:[#allocation2 + $0x88] sm:$0xff] }
 0x110   : > { %952 = vst.msk [vmem:[#allocation3 + $0xe0] sm:$0xff] %vm576_vm4, %v920_v27  ;;  %v921_v37 = vadd.f32 %v880_v49, %v638_v19  ;;  %v904_v20 = vadd.f32 %v813_v57, %v621_v10  ;;  %v5061_v28 = vpop.f32.mrb[14].mxu0  ;;  %v3537_v25 = vor.u32 %v3535_v8, %v3533_v16  ;;  %v3547_v10 = vshll.u32 %v6343_v47, 16  ;;  %v960_v27 = vld [vmem:[#allocation3 + $0x20] sm:$0xff] }
 0x111   : > { %955 = vst.msk [vmem:[#allocation3 + $0xf8] sm:$0xff] %vm576_vm4, %v923_v55  ;;  %5321 = vmatmul.mubr.msk.bf16.gmra.mrb[120].mxu1 %vm522_vm0, %v3502_v23  ;;  %938 = vst.msk [vmem:[#allocation3 + $0x70] sm:$0xff] %vm576_vm4, %v906_v56  ;;  %v907_v4 = vadd.f32 %v5061_v28, %v624_v43  ;;  %v816_v31 = vpop.f32.mrb[15].mxu0  ;;  %v3543_v23 = vshrl.u32 %v6190_v26, 16  ;;  %v3534_v54 = vsel %vm1011_vm2, %v3529_v5, %v3533_v16  ;;  %v3551_v49 = vshrl.u32 %v6343_v47, 16 }
 0x112   : > { %953 = vst.msk [vmem:[#allocation3 + $0xe8] sm:$0xff] %vm576_vm4, %v921_v37  ;;  %936 = vst.msk [vmem:[#allocation3 + $0x60] sm:$0xff] %vm576_vm4, %v904_v20  ;;  %v905_v17 = vadd.f32 %v816_v31, %v622_v33  ;;  %5324 = vmatprep.mubr.msk.bf16.mxu1 %vm522_vm0, %v3510_v48  ;;  %v963_v48 = vld [vmem:[#allocation3 + $0x38] sm:$0xff]  ;;  %v3555_v56 = vshll.u32 %v6349_v0, 16  ;;  %v3542_v26 = vsel %vm1011_vm2, %v3537_v25, %v3541_v51  ;;  %v3549_v40 = vrot.slane %v3547_v10, 1 }
 0x113   : > { %939 = vst.msk [vmem:[#allocation3 + $0x78] sm:$0xff] %vm576_vm4, %v907_v4  ;;  %5359 = vmatmul.mubr.msk.bf16.gmra.mrb[120].mxu0 %vm522_vm0, %v6163_v12  ;;  %v3567_v47 = vshrl.u32 %v6228_v36, 16  ;;  %v3571_v5 = vshll.u32 %v6248_v39, 16  ;;  %v3970_v10 = vsel %vm1507_vm3, %v6200_v29, %v3969_v63 }
 0x114   : > { %v5086_v13 = vpop.f32.mrb[16].mxu1  ;;  %937 = vst.msk [vmem:[#allocation3 + $0x68] sm:$0xff] %vm576_vm4, %v905_v17  ;;  %5362 = vmatprep.mubr.msk.bf16.mxu0 %vm522_vm0, %v6166_v15  ;;  %v3526_v15 = vsel %vm1011_vm2, %v3521_v60, %v3525_v62 }
 0x115   : > { %v1373_v32 = vadd.f32 %v5086_v13, %v958_v45  ;;  %v1244_v35 = vpop.f32.mrb[17].mxu1  ;;  %v3545_v45 = vor.u32 %v3543_v23, %v3541_v51  ;;  %v3553_v13 = vor.u32 %v3551_v49, %v3549_v40 }
 0x116   : > { %v1371_v1 = vadd.f32 %v1244_v35, %v956_v46  ;;  %v5087_v44 = vpop.f32.mrb[18].mxu1  ;;  %v5124_v12 = vpop.f32.mrb[16].mxu0  ;;  %v966_v46 = vld [vmem:[#allocation3 + $0x50] sm:$0xff] }
 0x117   : > { %1405 = vst.msk [vmem:[#allocation3 + $0x10] sm:$0xff] %vm576_vm4, %v1373_v32  ;;  %v1374_v2 = vadd.f32 %v5087_v44, %v959_v3  ;;  %v1247_v9 = vpop.f32.mrb[19].mxu1  ;;  %v1641_v7 = vpop.f32.mrb[17].mxu0  ;;  %v3557_v32 = vrot.slane %v3555_v56, 1  ;;  %v964_v3 = vld [vmem:[#allocation3 + $0x40] sm:$0xff]  ;;  %v3973_v56 = vrot.slane %v6228_v36, 1 }
 0x118   : > { %1403 = vst.msk [vmem:[#allocation3] sm:$0xff] %vm576_vm4, %v1371_v1  ;;  %v1372_v42 = vadd.f32 %v1247_v9, %v957_v59  ;;  %v5125_v50 = vpop.f32.mrb[18].mxu0  ;;  %v967_v59 = vld [vmem:[#allocation3 + $0x58] sm:$0xff]  ;;  %v3550_v9 = vsel %vm1011_vm2, %v3545_v45, %v3549_v40 }
 0x119   : > { %1406 = vst.msk [vmem:[#allocation3 + $0x18] sm:$0xff] %vm576_vm4, %v1374_v2  ;;  %5325 = vmatmul.mubr.msk.bf16.gmra.mrb[124].mxu1 %vm522_vm0, %v3518_v6  ;;  %v1644_v18 = vpop.f32.mrb[19].mxu0  ;;  %v3563_v6 = vshll.u32 %v6228_v36, 16 }
 0x11a   : > { %1404 = vst.msk [vmem:[#allocation3 + $0x8] sm:$0xff] %vm576_vm4, %v1372_v42  ;;  %5328 = vmatprep.mubr.msk.bf16.mxu1 %vm522_vm0, %v3526_v15  ;;  %v3558_v15 = vsel %vm1011_vm2, %v3553_v13, %v3557_v32 }
 0x11b   : > { %5363 = vmatmul.mubr.msk.bf16.gmra.mrb[124].mxu0 %vm522_vm0, %v6183_v22  ;;  %v3565_v23 = vrot.slane %v3563_v6, 1 }
 0x11c   : > { %v5090_v19 = vpop.f32.mrb[20].mxu1  ;;  %5366 = vmatprep.mubr.msk.bf16.mxu0 %vm522_vm0, %v6186_v24 }
 0x11d   : > { %v1377_v21 = vadd.f32 %v5090_v19, %v962_v58  ;;  %v1260_v53 = vpop.f32.mrb[21].mxu1 }
 0x11e   : > { %v1437_v41 = vld [vmem:[#allocation3 + $0x10] sm:$0xff]  ;;  %v1375_v43 = vadd.f32 %v1260_v53, %v960_v27  ;;  %v5091_v22 = vpop.f32.mrb[22].mxu1  ;;  %v5128_v55 = vpop.f32.mrb[20].mxu0 }
 0x11f   : > { %v1770_v57 = vadd.f32 %v5124_v12, %v1437_v41  ;;  %1409 = vst.msk [vmem:[#allocation3 + $0x30] sm:$0xff] %vm576_vm4, %v1377_v21  ;;  %v1435_v24 = vld [vmem:[#allocation3] sm:$0xff]  ;;  %v1378_v33 = vadd.f32 %v5091_v22, %v963_v48  ;;  %v1263_v14 = vpop.f32.mrb[23].mxu1  ;;  %v1657_v37 = vpop.f32.mrb[21].mxu0  ;;  %v3971_v12 = vrot.slane %v6349_v0, 1  ;;  %v3569_v48 = vor.u32 %v3567_v47, %v3565_v23 }
 0x120   : > { %v1768_v20 = vadd.f32 %v1641_v7, %v1435_v24  ;;  %1407 = vst.msk [vmem:[#allocation3 + $0x20] sm:$0xff] %vm576_vm4, %v1375_v43  ;;  %v1438_v28 = vld [vmem:[#allocation3 + $0x18] sm:$0xff]  ;;  %v1376_v4 = vadd.f32 %v1263_v14, %v961_v61  ;;  %v5129_v31 = vpop.f32.mrb[22].mxu0  ;;  %v3573_v22 = vrot.slane %v3571_v5, 1  ;;  %v968_v24 = vld [vmem:[#allocation3 + $0x60] sm:$0xff]  ;;  %v3975_v61 = vrot.slane %v6248_v39, 1 }
 0x121   : > { %1802 = vst.msk [vmem:[#allocation3 + $0x10] sm:$0xff] %vm576_vm4, %v1770_v57  ;;  %v1771_v17 = vadd.f32 %v5125_v50, %v1438_v28  ;;  %1410 = vst.msk [vmem:[#allocation3 + $0x38] sm:$0xff] %vm576_vm4, %v1378_v33  ;;  %v1436_v52 = vld [vmem:[#allocation3 + $0x8] sm:$0xff]  ;;  %5329 = vmatmul.mubr.msk.bf16.gmra.mrb[128].mxu1 %vm522_vm0, %v3534_v54  ;;  %v1660_v60 = vpop.f32.mrb[23].mxu0  ;;  %v3972_v41 = vsel %vm1507_vm3, %v3969_v63, %v3971_v12  ;;  %v3444_v54 = vld [vmem:[#allocation2 + $0xa0] sm:$0x1] }
 0x122   : > { %1800 = vst.msk [vmem:[#allocation3] sm:$0xff] %vm576_vm4, %v1768_v20  ;;  %v1769_v62 = vadd.f32 %v1644_v18, %v1436_v52  ;;  %1408 = vst.msk [vmem:[#allocation3 + $0x28] sm:$0xff] %vm576_vm4, %v1376_v4  ;;  %5332 = vmatprep.mubr.msk.bf16.mxu1 %vm522_vm0, %v3542_v26  ;;  %v965_v50 = vld [vmem:[#allocation3 + $0x48] sm:$0xff]  ;;  %v971_v26 = vld [vmem:[#allocation3 + $0x78] sm:$0xff]  ;;  %v3579_v40 = vshll.u32 %v3444_v54, 16  ;;  %v3574_v13 = vsel %vm1011_vm2, %v3569_v48, %v3573_v22 }
 0x123   : > { %1803 = vst.msk [vmem:[#allocation3 + $0x18] sm:$0xff] %vm576_vm4, %v1771_v17  ;;  %5367 = vmatmul.mubr.msk.bf16.gmra.mrb[128].mxu0 %vm522_vm0, %v6205_v30 }
 0x124   : > { %1801 = vst.msk [vmem:[#allocation3 + $0x8] sm:$0xff] %vm576_vm4, %v1769_v62  ;;  %v5094_v35 = vpop.f32.mrb[24].mxu1  ;;  %5370 = vmatprep.mubr.msk.bf16.mxu0 %vm522_vm0, %v6209_v34  ;;  %v3559_v34 = vshrl.u32 %v6349_v0, 16 }
 0x125   : > { %v1381_v1 = vadd.f32 %v5094_v35, %v966_v46  ;;  %v1276_v44 = vpop.f32.mrb[25].mxu1 }
 0x126   : > { %v1441_v11 = vld [vmem:[#allocation3 + $0x30] sm:$0xff]  ;;  %v1379_v2 = vadd.f32 %v1276_v44, %v964_v3  ;;  %v5095_v30 = vpop.f32.mrb[26].mxu1  ;;  %v5132_v7 = vpop.f32.mrb[24].mxu0  ;;  %v3561_v29 = vor.u32 %v3559_v34, %v3557_v32  ;;  %v972_v34 = vld [vmem:[#allocation3 + $0x80] sm:$0xff] }
 0x127   : > { %v1774_v8 = vadd.f32 %v5128_v55, %v1441_v11  ;;  %1413 = vst.msk [vmem:[#allocation3 + $0x50] sm:$0xff] %vm576_vm4, %v1381_v1  ;;  %v1439_v38 = vld [vmem:[#allocation3 + $0x20] sm:$0xff]  ;;  %v1382_v42 = vadd.f32 %v5095_v30, %v967_v59  ;;  %v1279_v18 = vpop.f32.mrb[27].mxu1  ;;  %v1673_v16 = vpop.f32.mrb[25].mxu0  ;;  %v970_v55 = vld [vmem:[#allocation3 + $0x70] sm:$0xff]  ;;  %v3974_v1 = vsel %vm1507_vm3, %v3971_v12, %v3973_v56  ;;  %v3976_v11 = vsel %vm1507_vm3, %v3973_v56, %v3975_v61 }
 0x128   : > { %v1772_v25 = vadd.f32 %v1657_v37, %v1439_v38  ;;  %1411 = vst.msk [vmem:[#allocation3 + $0x40] sm:$0xff] %vm576_vm4, %v1379_v2  ;;  %v1442_v51 = vld [vmem:[#allocation3 + $0x38] sm:$0xff]  ;;  %v1380_v58 = vadd.f32 %v1279_v18, %v965_v50  ;;  %v5133_v19 = vpop.f32.mrb[26].mxu0  ;;  %v3566_v28 = vsel %vm1011_vm2, %v3561_v29, %v3565_v23  ;;  %v3581_v12 = vrot.slane %v3579_v40, 1  ;;  %v974_v30 = vld [vmem:[#allocation3 + $0x90] sm:$0xff] }
 0x129   : > { %1806 = vst.msk [vmem:[#allocation3 + $0x30] sm:$0xff] %vm576_vm4, %v1774_v8  ;;  %v1775_v21 = vadd.f32 %v5129_v31, %v1442_v51  ;;  %1414 = vst.msk [vmem:[#allocation3 + $0x58] sm:$0xff] %vm576_vm4, %v1382_v42  ;;  %v1440_v27 = vld [vmem:[#allocation3 + $0x28] sm:$0xff]  ;;  %5333 = vmatmul.mubr.msk.bf16.gmra.mrb[132].mxu1 %vm522_vm0, %v3550_v9  ;;  %v1676_v53 = vpop.f32.mrb[27].mxu0  ;;  %v3575_v31 = vshrl.u32 %v6248_v39, 16  ;;  %v975_v50 = vld [vmem:[#allocation3 + $0x98] sm:$0xff] }
 0x12a   : > { %1804 = vst.msk [vmem:[#allocation3 + $0x20] sm:$0xff] %vm576_vm4, %v1772_v25  ;;  %v1773_v43 = vadd.f32 %v1660_v60, %v1440_v27  ;;  %1412 = vst.msk [vmem:[#allocation3 + $0x48] sm:$0xff] %vm576_vm4, %v1380_v58  ;;  %5336 = vmatprep.mubr.msk.bf16.mxu1 %vm522_vm0, %v3558_v15  ;;  %v969_v60 = vld [vmem:[#allocation3 + $0x68] sm:$0xff]  ;;  %v3922_v2 = vld [vmem:[#allocation2 + $0xa0] sm:$0x1] }
 0x12b   : > { %1807 = vst.msk [vmem:[#allocation3 + $0x38] sm:$0xff] %vm576_vm4, %v1775_v21  ;;  %5371 = vmatmul.mubr.msk.bf16.gmra.mrb[132].mxu0 %vm522_vm0, %v3970_v10  ;;  %v3577_v0 = vor.u32 %v3575_v31, %v3573_v22  ;;  %v973_v58 = vld [vmem:[#allocation3 + $0x88] sm:$0xff]  ;;  %v978_v39 = vld [vmem:[#allocation3 + $0xb0] sm:$0xff] }
 0x12c   : > { %1805 = vst.msk [vmem:[#allocation3 + $0x28] sm:$0xff] %vm576_vm4, %v1773_v43  ;;  %v5098_v49 = vpop.f32.mrb[28].mxu1  ;;  %5374 = vmatprep.mubr.msk.bf16.mxu0 %vm522_vm0, %v3972_v41 }
 0x12d   : > { %v1385_v57 = vadd.f32 %v5098_v49, %v970_v55  ;;  %v1292_v33 = vpop.f32.mrb[29].mxu1  ;;  %v976_v49 = vld [vmem:[#allocation3 + $0xa0] sm:$0xff] }
 0x12e   : > { %v1445_v14 = vld [vmem:[#allocation3 + $0x50] sm:$0xff]  ;;  %v1383_v37 = vadd.f32 %v1292_v33, %v968_v24  ;;  %v5099_v20 = vpop.f32.mrb[30].mxu1  ;;  %v5136_v4 = vpop.f32.mrb[28].mxu0  ;;  %v979_v33 = vld [vmem:[#allocation3 + $0xb8] sm:$0xff] }
 0x12f   : > { %v1778_v17 = vadd.f32 %v5132_v7, %v1445_v14  ;;  %1417 = vst.msk [vmem:[#allocation3 + $0x70] sm:$0xff] %vm576_vm4, %v1385_v57  ;;  %v1443_v52 = vld [vmem:[#allocation3 + $0x40] sm:$0xff]  ;;  %v1386_v36 = vadd.f32 %v5099_v20, %v971_v26  ;;  %v1295_v62 = vpop.f32.mrb[31].mxu1  ;;  %v1689_v45 = vpop.f32.mrb[29].mxu0  ;;  %v3977_v7 = vrot.slane %v3922_v2, 1 }
 0x130   : > { %v1776_v32 = vadd.f32 %v1673_v16, %v1443_v52  ;;  %1415 = vst.msk [vmem:[#allocation3 + $0x60] sm:$0xff] %vm576_vm4, %v1383_v37  ;;  %v1446_v46 = vld [vmem:[#allocation3 + $0x58] sm:$0xff]  ;;  %v1384_v35 = vadd.f32 %v1295_v62, %v969_v60  ;;  %v5137_v63 = vpop.f32.mrb[30].mxu0  ;;  %v3582_v16 = vsel %vm1011_vm2, %v3577_v0, %v3581_v12 }
 0x131   : > { %1810 = vst.msk [vmem:[#allocation3 + $0x50] sm:$0xff] %vm576_vm4, %v1778_v17  ;;  %v1779_v3 = vadd.f32 %v5133_v19, %v1446_v46  ;;  %1418 = vst.msk [vmem:[#allocation3 + $0x78] sm:$0xff] %vm576_vm4, %v1386_v36  ;;  %v1444_v44 = vld [vmem:[#allocation3 + $0x48] sm:$0xff]  ;;  %5337 = vmatmul.mubr.msk.bf16.gmra.mrb[136].mxu1 %vm522_vm0, %v3566_v28  ;;  %v1692_v6 = vpop.f32.mrb[31].mxu0  ;;  %v3978_v41 = vsel %vm1507_vm3, %v3975_v61, %v3977_v7 }
 0x132   : > { %1808 = vst.msk [vmem:[#allocation3 + $0x40] sm:$0xff] %vm576_vm4, %v1776_v32  ;;  %v1777_v59 = vadd.f32 %v1676_v53, %v1444_v44  ;;  %1416 = vst.msk [vmem:[#allocation3 + $0x68] sm:$0xff] %vm576_vm4, %v1384_v35  ;;  %5340 = vmatprep.mubr.msk.bf16.mxu1 %vm522_vm0, %v3574_v13  ;;  %v977_v28 = vld [vmem:[#allocation3 + $0xa8] sm:$0xff]  ;;  %v982_v32 = vld [vmem:[#allocation3 + $0xd0] sm:$0xff] }
 0x133   : > { %1811 = vst.msk [vmem:[#allocation3 + $0x58] sm:$0xff] %vm576_vm4, %v1779_v3  ;;  %5375 = vmatmul.mubr.msk.bf16.gmra.mrb[136].mxu0 %vm522_vm0, %v3974_v1 }
 0x134   : > { %1809 = vst.msk [vmem:[#allocation3 + $0x48] sm:$0xff] %vm576_vm4, %v1777_v59  ;;  %v5102_v9 = vpop.f32.mrb[32].mxu1  ;;  %5378 = vmatprep.mubr.msk.bf16.mxu0 %vm522_vm0, %v3976_v11 }
 0x135   : > { %v1389_v15 = vadd.f32 %v5102_v9, %v974_v30  ;;  %v1308_v8 = vpop.f32.mrb[33].mxu1  ;;  %v981_v30 = vld [vmem:[#allocation3 + $0xc8] sm:$0xff] }
 0x136   : > { %v1449_v38 = vld [vmem:[#allocation3 + $0x70] sm:$0xff]  ;;  %v1387_v42 = vadd.f32 %v1308_v8, %v972_v34  ;;  %v5103_v18 = vpop.f32.mrb[34].mxu1  ;;  %v5140_v47 = vpop.f32.mrb[32].mxu0 }
 0x137   : > { %v1782_v5 = vadd.f32 %v5136_v4, %v1449_v38  ;;  %1421 = vst.msk [vmem:[#allocation3 + $0x90] sm:$0xff] %vm576_vm4, %v1389_v15  ;;  %v1447_v25 = vld [vmem:[#allocation3 + $0x60] sm:$0xff]  ;;  %v1390_v51 = vadd.f32 %v5103_v18, %v975_v50  ;;  %v1311_v19 = vpop.f32.mrb[35].mxu1  ;;  %v1705_v10 = vpop.f32.mrb[33].mxu0 }
 0x138   : > { %v1780_v21 = vadd.f32 %v1689_v45, %v1447_v25  ;;  %1419 = vst.msk [vmem:[#allocation3 + $0x80] sm:$0xff] %vm576_vm4, %v1387_v42  ;;  %v1450_v27 = vld [vmem:[#allocation3 + $0x78] sm:$0xff]  ;;  %v1388_v53 = vadd.f32 %v1311_v19, %v973_v58  ;;  %v5141_v23 = vpop.f32.mrb[34].mxu0 }
 0x139   : > { %1814 = vst.msk [vmem:[#allocation3 + $0x70] sm:$0xff] %vm576_vm4, %v1782_v5  ;;  %v1783_v43 = vadd.f32 %v5137_v63, %v1450_v27  ;;  %1422 = vst.msk [vmem:[#allocation3 + $0x98] sm:$0xff] %vm576_vm4, %v1390_v51  ;;  %v1448_v29 = vld [vmem:[#allocation3 + $0x68] sm:$0xff]  ;;  %5341 = vmatmul.mubr.msk.bf16.gmra.mrb[140].mxu1 %vm522_vm0, %v3582_v16  ;;  %v1708_v48 = vpop.f32.mrb[35].mxu0  ;;  %v980_v63 = vld [vmem:[#allocation3 + $0xc0] sm:$0xff] }
 0x13a   : > { %1812 = vst.msk [vmem:[#allocation3 + $0x60] sm:$0xff] %vm576_vm4, %v1780_v21  ;;  %v1781_v22 = vadd.f32 %v1692_v6, %v1448_v29  ;;  %1420 = vst.msk [vmem:[#allocation3 + $0x88] sm:$0xff] %vm576_vm4, %v1388_v53  ;;  %v983_v6 = vld [vmem:[#allocation3 + $0xd8] sm:$0xff]  ;;  %v984_v51 = vld [vmem:[#allocation3 + $0xe0] sm:$0xff] }
 0x13b   : > { %1815 = vst.msk [vmem:[#allocation3 + $0x78] sm:$0xff] %vm576_vm4, %v1783_v43  ;;  %5379 = vmatmul.mubr.msk.bf16.gmra.mrb[140].mxu0 %vm522_vm0, %v3978_v41  ;;  %v987_v21 = vld [vmem:[#allocation3 + $0xf8] sm:$0xff]  ;;  %v985_v29 = vld [vmem:[#allocation3 + $0xe8] sm:$0xff] }
 0x13c   : > { %1813 = vst.msk [vmem:[#allocation3 + $0x68] sm:$0xff] %vm576_vm4, %v1781_v22  ;;  %v5106_v54 = vpop.f32.mrb[36].mxu1 }
 0x13d   : > { %v1393_v55 = vadd.f32 %v5106_v54, %v978_v39  ;;  %v1324_v56 = vpop.f32.mrb[37].mxu1 }
 0x13e   : > { %v1453_v57 = vld [vmem:[#allocation3 + $0x90] sm:$0xff]  ;;  %v1391_v24 = vadd.f32 %v1324_v56, %v976_v49  ;;  %v5107_v61 = vpop.f32.mrb[38].mxu1  ;;  %v5144_v14 = vpop.f32.mrb[36].mxu0 }
 0x13f   : > { %v1786_v37 = vadd.f32 %v5140_v47, %v1453_v57  ;;  %1425 = vst.msk [vmem:[#allocation3 + $0xb0] sm:$0xff] %vm576_vm4, %v1393_v55  ;;  %v1451_v26 = vld [vmem:[#allocation3 + $0x80] sm:$0xff]  ;;  %v1394_v20 = vadd.f32 %v5107_v61, %v979_v33  ;;  %v1327_v4 = vpop.f32.mrb[39].mxu1  ;;  %v1721_v31 = vpop.f32.mrb[37].mxu0  ;;  %v986_v47 = vld [vmem:[#allocation3 + $0xf0] sm:$0xff] }
 0x140   : > { %v1784_v40 = vadd.f32 %v1705_v10, %v1451_v26  ;;  %1423 = vst.msk [vmem:[#allocation3 + $0xa0] sm:$0xff] %vm576_vm4, %v1391_v24  ;;  %v1454_v17 = vld [vmem:[#allocation3 + $0x98] sm:$0xff]  ;;  %v1392_v52 = vadd.f32 %v1327_v4, %v977_v28  ;;  %v5145_v36 = vpop.f32.mrb[38].mxu0  ;;  %v1834_v61 = vld [vmem:[#allocation3 + $0x10] sm:$0xff]  ;;  %v1832_v26 = vld [vmem:[#allocation3] sm:$0xff] }
 0x141   : > { %1818 = vst.msk [vmem:[#allocation3 + $0x90] sm:$0xff] %vm576_vm4, %v1786_v37  ;;  %v1787_v60 = vadd.f32 %v5141_v23, %v1454_v17  ;;  %1426 = vst.msk [vmem:[#allocation3 + $0xb8] sm:$0xff] %vm576_vm4, %v1394_v20  ;;  %v1452_v62 = vld [vmem:[#allocation3 + $0x88] sm:$0xff]  ;;  %v1724_v45 = vpop.f32.mrb[39].mxu0 }
 0x142   : > { %1816 = vst.msk [vmem:[#allocation3 + $0x80] sm:$0xff] %vm576_vm4, %v1784_v40  ;;  %v1785_v13 = vadd.f32 %v1708_v48, %v1452_v62  ;;  %1424 = vst.msk [vmem:[#allocation3 + $0xa8] sm:$0xff] %vm576_vm4, %v1392_v52  ;;  %v1833_v62 = vld [vmem:[#allocation3 + $0x8] sm:$0xff] }
 0x143   : > { %1819 = vst.msk [vmem:[#allocation3 + $0x98] sm:$0xff] %vm576_vm4, %v1787_v60 }
 0x144   : > { %1817 = vst.msk [vmem:[#allocation3 + $0x88] sm:$0xff] %vm576_vm4, %v1785_v13  ;;  %v5110_v46 = vpop.f32.mrb[40].mxu1 }
 0x145   : > { %v1397_v35 = vadd.f32 %v5110_v46, %v982_v32  ;;  %v1340_v1 = vpop.f32.mrb[41].mxu1 }
 0x146   : > { %v1457_v3 = vld [vmem:[#allocation3 + $0xb0] sm:$0xff]  ;;  %v1395_v44 = vadd.f32 %v1340_v1, %v980_v63  ;;  %v5111_v11 = vpop.f32.mrb[42].mxu1  ;;  %v5148_v2 = vpop.f32.mrb[40].mxu0 }
 0x147   : > { %v1790_v59 = vadd.f32 %v5144_v14, %v1457_v3  ;;  %1429 = vst.msk [vmem:[#allocation3 + $0xd0] sm:$0xff] %vm576_vm4, %v1397_v35  ;;  %v1455_v0 = vld [vmem:[#allocation3 + $0xa0] sm:$0xff]  ;;  %v1398_v12 = vadd.f32 %v5111_v11, %v983_v6  ;;  %v1343_v9 = vpop.f32.mrb[43].mxu1  ;;  %v1737_v7 = vpop.f32.mrb[41].mxu0  ;;  %v1838_v11 = vld [vmem:[#allocation3 + $0x30] sm:$0xff] }
 0x148   : > { %v1788_v15 = vadd.f32 %v1721_v31, %v1455_v0  ;;  %1427 = vst.msk [vmem:[#allocation3 + $0xc0] sm:$0xff] %vm576_vm4, %v1395_v44  ;;  %v1458_v34 = vld [vmem:[#allocation3 + $0xb8] sm:$0xff]  ;;  %v1396_v8 = vadd.f32 %v1343_v9, %v981_v30  ;;  %v5149_v38 = vpop.f32.mrb[42].mxu0  ;;  %v1836_v0 = vld [vmem:[#allocation3 + $0x20] sm:$0xff] }
 0x149   : > { %1822 = vst.msk [vmem:[#allocation3 + $0xb0] sm:$0xff] %vm576_vm4, %v1790_v59  ;;  %v1791_v42 = vadd.f32 %v5145_v36, %v1458_v34  ;;  %1430 = vst.msk [vmem:[#allocation3 + $0xd8] sm:$0xff] %vm576_vm4, %v1398_v12  ;;  %v1456_v50 = vld [vmem:[#allocation3 + $0xa8] sm:$0xff]  ;;  %v1740_v18 = vpop.f32.mrb[43].mxu0  ;;  %v1835_v31 = vld [vmem:[#allocation3 + $0x18] sm:$0xff] }
 0x14a   : > { %1820 = vst.msk [vmem:[#allocation3 + $0xa0] sm:$0xff] %vm576_vm4, %v1788_v15  ;;  %v1789_v16 = vadd.f32 %v1724_v45, %v1456_v50  ;;  %1428 = vst.msk [vmem:[#allocation3 + $0xc8] sm:$0xff] %vm576_vm4, %v1396_v8  ;;  %v1837_v50 = vld [vmem:[#allocation3 + $0x28] sm:$0xff] }
 0x14b   : > { %1823 = vst.msk [vmem:[#allocation3 + $0xb8] sm:$0xff] %vm576_vm4, %v1791_v42 }
 0x14c   : > { %1821 = vst.msk [vmem:[#allocation3 + $0xa8] sm:$0xff] %vm576_vm4, %v1789_v16  ;;  %v5114_v5 = vpop.f32.mrb[44].mxu1 }
 0x14d   : > { %v1401_v25 = vadd.f32 %v5114_v5, %v986_v47  ;;  %v1356_v58 = vpop.f32.mrb[45].mxu1 }
 0x14e   : > { %v1461_v19 = vld [vmem:[#allocation3 + $0xd0] sm:$0xff]  ;;  %v1399_v10 = vadd.f32 %v1356_v58, %v984_v51  ;;  %v5115_v27 = vpop.f32.mrb[46].mxu1  ;;  %v5152_v53 = vpop.f32.mrb[44].mxu0 }
 0x14f   : > { %v1794_v23 = vadd.f32 %v5148_v2, %v1461_v19  ;;  %1433 = vst.msk [vmem:[#allocation3 + $0xf0] sm:$0xff] %vm576_vm4, %v1401_v25  ;;  %v1459_v41 = vld [vmem:[#allocation3 + $0xc0] sm:$0xff]  ;;  %v1402_v43 = vadd.f32 %v5115_v27, %v987_v21  ;;  %v1359_v48 = vpop.f32.mrb[47].mxu1  ;;  %v1753_v22 = vpop.f32.mrb[45].mxu0  ;;  %v1842_v27 = vld [vmem:[#allocation3 + $0x50] sm:$0xff] }
 0x150   : > { %v1792_v39 = vadd.f32 %v1737_v7, %v1459_v41  ;;  %1431 = vst.msk [vmem:[#allocation3 + $0xe0] sm:$0xff] %vm576_vm4, %v1399_v10  ;;  %v1462_v54 = vld [vmem:[#allocation3 + $0xd8] sm:$0xff]  ;;  %v1400_v55 = vadd.f32 %v1359_v48, %v985_v29  ;;  %v5153_v49 = vpop.f32.mrb[46].mxu0  ;;  %v1840_v41 = vld [vmem:[#allocation3 + $0x40] sm:$0xff] }
 0x151   : > { %1826 = vst.msk [vmem:[#allocation3 + $0xd0] sm:$0xff] %vm576_vm4, %v1794_v23  ;;  %v1795_v56 = vadd.f32 %v5149_v38, %v1462_v54  ;;  %1434 = vst.msk [vmem:[#allocation3 + $0xf8] sm:$0xff] %vm576_vm4, %v1402_v43  ;;  %v1460_v57 = vld [vmem:[#allocation3 + $0xc8] sm:$0xff]  ;;  %v1756_v24 = vpop.f32.mrb[47].mxu0  ;;  %v1839_v7 = vld [vmem:[#allocation3 + $0x38] sm:$0xff] }
 0x152   : > { %1824 = vst.msk [vmem:[#allocation3 + $0xc0] sm:$0xff] %vm576_vm4, %v1792_v39  ;;  %v1793_v33 = vadd.f32 %v1740_v18, %v1460_v57  ;;  %1432 = vst.msk [vmem:[#allocation3 + $0xe8] sm:$0xff] %vm576_vm4, %v1400_v55  ;;  %v1841_v57 = vld [vmem:[#allocation3 + $0x48] sm:$0xff] }
 0x153   : > { %1827 = vst.msk [vmem:[#allocation3 + $0xd8] sm:$0xff] %vm576_vm4, %v1795_v56 }
 0x154   : > { %1825 = vst.msk [vmem:[#allocation3 + $0xc8] sm:$0xff] %vm576_vm4, %v1793_v33  ;;  %v5162_v14 = vpop.f32.mrb[48].mxu1 }
 0x155   : > { %v2115_v37 = vadd.f32 %v5162_v14, %v1834_v61  ;;  %v1986_v20 = vpop.f32.mrb[49].mxu1 }
 0x156   : > { %v1465_v28 = vld [vmem:[#allocation3 + $0xf0] sm:$0xff]  ;;  %v2113_v4 = vadd.f32 %v1986_v20, %v1832_v26  ;;  %v5163_v40 = vpop.f32.mrb[50].mxu1  ;;  %v5200_v17 = vpop.f32.mrb[48].mxu0 }
 0x157   : > { %v1798_v52 = vadd.f32 %v5152_v53, %v1465_v28  ;;  %v1463_v36 = vld [vmem:[#allocation3 + $0xe0] sm:$0xff]  ;;  %2147 = vst.msk [vmem:[#allocation3 + $0x10] sm:$0xff] %vm576_vm4, %v2115_v37  ;;  %v2116_v60 = vadd.f32 %v5163_v40, %v1835_v31  ;;  %v1989_v45 = vpop.f32.mrb[51].mxu1  ;;  %v2464_v13 = vpop.f32.mrb[49].mxu0  ;;  %v1846_v40 = vld [vmem:[#allocation3 + $0x70] sm:$0xff] }
 0x158   : > { %v1796_v32 = vadd.f32 %v1753_v22, %v1463_v36  ;;  %v1466_v46 = vld [vmem:[#allocation3 + $0xf8] sm:$0xff]  ;;  %2145 = vst.msk [vmem:[#allocation3] sm:$0xff] %vm576_vm4, %v2113_v4  ;;  %v2114_v35 = vadd.f32 %v1989_v45, %v1833_v62  ;;  %v5201_v63 = vpop.f32.mrb[50].mxu0  ;;  %v1844_v36 = vld [vmem:[#allocation3 + $0x60] sm:$0xff] }
 0x159   : > { %1830 = vst.msk [vmem:[#allocation3 + $0xf0] sm:$0xff] %vm576_vm4, %v1798_v52  ;;  %v1799_v1 = vadd.f32 %v5153_v49, %v1466_v46  ;;  %v1464_v3 = vld [vmem:[#allocation3 + $0xe8] sm:$0xff]  ;;  %2148 = vst.msk [vmem:[#allocation3 + $0x18] sm:$0xff] %vm576_vm4, %v2116_v60  ;;  %v2467_v44 = vpop.f32.mrb[51].mxu0  ;;  %v1843_v22 = vld [vmem:[#allocation3 + $0x58] sm:$0xff] }
 0x15a   : > { %1828 = vst.msk [vmem:[#allocation3 + $0xe0] sm:$0xff] %vm576_vm4, %v1796_v32  ;;  %v1797_v6 = vadd.f32 %v1756_v24, %v1464_v3  ;;  %2146 = vst.msk [vmem:[#allocation3 + $0x8] sm:$0xff] %vm576_vm4, %v2114_v35  ;;  %v1845_v3 = vld [vmem:[#allocation3 + $0x68] sm:$0xff] }
 0x15b   : > { %1831 = vst.msk [vmem:[#allocation3 + $0xf8] sm:$0xff] %vm576_vm4, %v1799_v1 }
 0x15c   : > { %1829 = vst.msk [vmem:[#allocation3 + $0xe8] sm:$0xff] %vm576_vm4, %v1797_v6  ;;  %v5166_v2 = vpop.f32.mrb[52].mxu1 }
 0x15d   : > { %v2119_v59 = vadd.f32 %v5166_v2, %v1838_v11  ;;  %v2002_v12 = vpop.f32.mrb[53].mxu1 }
 0x15e   : > { %v2179_v30 = vld [vmem:[#allocation3 + $0x10] sm:$0xff]  ;;  %v2117_v9 = vadd.f32 %v2002_v12, %v1836_v0  ;;  %v5167_v15 = vpop.f32.mrb[54].mxu1  ;;  %v5204_v34 = vpop.f32.mrb[52].mxu0 }
 0x15f   : > { %v2593_v8 = vadd.f32 %v5200_v17, %v2179_v30  ;;  %2151 = vst.msk [vmem:[#allocation3 + $0x30] sm:$0xff] %vm576_vm4, %v2119_v59  ;;  %v2177_v38 = vld [vmem:[#allocation3] sm:$0xff]  ;;  %v2120_v42 = vadd.f32 %v5167_v15, %v1839_v7  ;;  %v2005_v18 = vpop.f32.mrb[55].mxu1  ;;  %v2480_v16 = vpop.f32.mrb[53].mxu0  ;;  %v1850_v15 = vld [vmem:[#allocation3 + $0x90] sm:$0xff] }
 0x160   : > { %v2591_v47 = vadd.f32 %v2464_v13, %v2177_v38  ;;  %2149 = vst.msk [vmem:[#allocation3 + $0x20] sm:$0xff] %vm576_vm4, %v2117_v9  ;;  %v2180_v5 = vld [vmem:[#allocation3 + $0x18] sm:$0xff]  ;;  %v2118_v25 = vadd.f32 %v2005_v18, %v1837_v50  ;;  %v5205_v51 = vpop.f32.mrb[54].mxu0  ;;  %v1848_v38 = vld [vmem:[#allocation3 + $0x80] sm:$0xff] }
 0x161   : > { %2625 = vst.msk [vmem:[#allocation3 + $0x10] sm:$0xff] %vm576_vm4, %v2593_v8  ;;  %v2594_v58 = vadd.f32 %v5201_v63, %v2180_v5  ;;  %2152 = vst.msk [vmem:[#allocation3 + $0x38] sm:$0xff] %vm576_vm4, %v2120_v42  ;;  %v2178_v19 = vld [vmem:[#allocation3 + $0x8] sm:$0xff]  ;;  %v2483_v10 = vpop.f32.mrb[55].mxu0  ;;  %v1847_v13 = vld [vmem:[#allocation3 + $0x78] sm:$0xff] }
 0x162   : > { %2623 = vst.msk [vmem:[#allocation3] sm:$0xff] %vm576_vm4, %v2591_v47  ;;  %v2592_v21 = vadd.f32 %v2467_v44, %v2178_v19  ;;  %2150 = vst.msk [vmem:[#allocation3 + $0x28] sm:$0xff] %vm576_vm4, %v2118_v25  ;;  %v1849_v19 = vld [vmem:[#allocation3 + $0x88] sm:$0xff] }
 0x163   : > { %2626 = vst.msk [vmem:[#allocation3 + $0x18] sm:$0xff] %vm576_vm4, %v2594_v58 }
 0x164   : > { %2624 = vst.msk [vmem:[#allocation3 + $0x8] sm:$0xff] %vm576_vm4, %v2592_v21  ;;  %v5170_v53 = vpop.f32.mrb[56].mxu1 }
 0x165   : > { %v2123_v23 = vadd.f32 %v5170_v53, %v1842_v27  ;;  %v2018_v43 = vpop.f32.mrb[57].mxu1 }
 0x166   : > { %v2183_v29 = vld [vmem:[#allocation3 + $0x30] sm:$0xff]  ;;  %v2121_v48 = vadd.f32 %v2018_v43, %v1840_v41  ;;  %v5171_v39 = vpop.f32.mrb[58].mxu1  ;;  %v5208_v54 = vpop.f32.mrb[56].mxu0 }
 0x167   : > { %v2597_v55 = vadd.f32 %v5204_v34, %v2183_v29  ;;  %2155 = vst.msk [vmem:[#allocation3 + $0x50] sm:$0xff] %vm576_vm4, %v2123_v23  ;;  %v2181_v49 = vld [vmem:[#allocation3 + $0x20] sm:$0xff]  ;;  %v2124_v56 = vadd.f32 %v5171_v39, %v1843_v22  ;;  %v2021_v24 = vpop.f32.mrb[59].mxu1  ;;  %v2496_v33 = vpop.f32.mrb[57].mxu0  ;;  %v1854_v39 = vld [vmem:[#allocation3 + $0xb0] sm:$0xff] }
 0x168   : > { %v2595_v61 = vadd.f32 %v2480_v16, %v2181_v49  ;;  %2153 = vst.msk [vmem:[#allocation3 + $0x40] sm:$0xff] %vm576_vm4, %v2121_v48  ;;  %v2184_v14 = vld [vmem:[#allocation3 + $0x38] sm:$0xff]  ;;  %v2122_v37 = vadd.f32 %v2021_v24, %v1841_v57  ;;  %v5209_v26 = vpop.f32.mrb[58].mxu0  ;;  %v1852_v49 = vld [vmem:[#allocation3 + $0xa0] sm:$0xff] }
 0x169   : > { %2629 = vst.msk [vmem:[#allocation3 + $0x30] sm:$0xff] %vm576_vm4, %v2597_v55  ;;  %v2598_v20 = vadd.f32 %v5205_v51, %v2184_v14  ;;  %2156 = vst.msk [vmem:[#allocation3 + $0x58] sm:$0xff] %vm576_vm4, %v2124_v56  ;;  %v2182_v28 = vld [vmem:[#allocation3 + $0x28] sm:$0xff]  ;;  %v2499_v4 = vpop.f32.mrb[59].mxu0  ;;  %v1851_v16 = vld [vmem:[#allocation3 + $0x98] sm:$0xff] }
 0x16a   : > { %2627 = vst.msk [vmem:[#allocation3 + $0x20] sm:$0xff] %vm576_vm4, %v2595_v61  ;;  %v2596_v31 = vadd.f32 %v2483_v10, %v2182_v28  ;;  %2154 = vst.msk [vmem:[#allocation3 + $0x48] sm:$0xff] %vm576_vm4, %v2122_v37  ;;  %v1853_v28 = vld [vmem:[#allocation3 + $0xa8] sm:$0xff] }
 0x16b   : > { %2630 = vst.msk [vmem:[#allocation3 + $0x38] sm:$0xff] %vm576_vm4, %v2598_v20 }
 0x16c   : > { %2628 = vst.msk [vmem:[#allocation3 + $0x28] sm:$0xff] %vm576_vm4, %v2596_v31  ;;  %v5174_v17 = vpop.f32.mrb[60].mxu1 }
 0x16d   : > { %v2127_v52 = vadd.f32 %v5174_v17, %v1846_v40  ;;  %v2034_v60 = vpop.f32.mrb[61].mxu1 }
 0x16e   : > { %v2187_v62 = vld [vmem:[#allocation3 + $0x50] sm:$0xff]  ;;  %v2125_v45 = vadd.f32 %v2034_v60, %v1844_v36  ;;  %v5175_v32 = vpop.f32.mrb[62].mxu1  ;;  %v5212_v46 = vpop.f32.mrb[60].mxu0 }
 0x16f   : > { %v2601_v35 = vadd.f32 %v5208_v54, %v2187_v62  ;;  %2159 = vst.msk [vmem:[#allocation3 + $0x70] sm:$0xff] %vm576_vm4, %v2127_v52  ;;  %v2185_v63 = vld [vmem:[#allocation3 + $0x40] sm:$0xff]  ;;  %v2128_v1 = vadd.f32 %v5175_v32, %v1847_v13  ;;  %v2037_v44 = vpop.f32.mrb[63].mxu1  ;;  %v2512_v6 = vpop.f32.mrb[61].mxu0  ;;  %v1858_v32 = vld [vmem:[#allocation3 + $0xd0] sm:$0xff] }
 0x170   : > { %v2599_v11 = vadd.f32 %v2496_v33, %v2185_v63  ;;  %2157 = vst.msk [vmem:[#allocation3 + $0x60] sm:$0xff] %vm576_vm4, %v2125_v45  ;;  %v2188_v2 = vld [vmem:[#allocation3 + $0x58] sm:$0xff]  ;;  %v2126_v59 = vadd.f32 %v2037_v44, %v1845_v3  ;;  %v5213_v0 = vpop.f32.mrb[62].mxu0  ;;  %v1856_v63 = vld [vmem:[#allocation3 + $0xc0] sm:$0xff] }
 0x171   : > { %2633 = vst.msk [vmem:[#allocation3 + $0x50] sm:$0xff] %vm576_vm4, %v2601_v35  ;;  %v2602_v12 = vadd.f32 %v5209_v26, %v2188_v2  ;;  %2160 = vst.msk [vmem:[#allocation3 + $0x78] sm:$0xff] %vm576_vm4, %v2128_v1  ;;  %v2186_v30 = vld [vmem:[#allocation3 + $0x48] sm:$0xff]  ;;  %v2515_v9 = vpop.f32.mrb[63].mxu0  ;;  %v1855_v33 = vld [vmem:[#allocation3 + $0xb8] sm:$0xff] }
 0x172   : > { %2631 = vst.msk [vmem:[#allocation3 + $0x40] sm:$0xff] %vm576_vm4, %v2599_v11  ;;  %v2600_v7 = vadd.f32 %v2499_v4, %v2186_v30  ;;  %2158 = vst.msk [vmem:[#allocation3 + $0x68] sm:$0xff] %vm576_vm4, %v2126_v59  ;;  %v1857_v30 = vld [vmem:[#allocation3 + $0xc8] sm:$0xff] }
 0x173   : > { %2634 = vst.msk [vmem:[#allocation3 + $0x58] sm:$0xff] %vm576_vm4, %v2602_v12 }
 0x174   : > { %2632 = vst.msk [vmem:[#allocation3 + $0x48] sm:$0xff] %vm576_vm4, %v2600_v7  ;;  %v5178_v34 = vpop.f32.mrb[64].mxu1 }
 0x175   : > { %v2131_v8 = vadd.f32 %v5178_v34, %v1850_v15  ;;  %v2050_v42 = vpop.f32.mrb[65].mxu1 }
 0x176   : > { %v2191_v50 = vld [vmem:[#allocation3 + $0x70] sm:$0xff]  ;;  %v2129_v18 = vadd.f32 %v2050_v42, %v1848_v38  ;;  %v5179_v47 = vpop.f32.mrb[66].mxu1  ;;  %v5216_v5 = vpop.f32.mrb[64].mxu0 }
 0x177   : > { %v2605_v25 = vadd.f32 %v5212_v46, %v2191_v50  ;;  %2163 = vst.msk [vmem:[#allocation3 + $0x90] sm:$0xff] %vm576_vm4, %v2131_v8  ;;  %v2189_v51 = vld [vmem:[#allocation3 + $0x60] sm:$0xff]  ;;  %v2132_v58 = vadd.f32 %v5179_v47, %v1851_v16  ;;  %v2053_v10 = vpop.f32.mrb[67].mxu1  ;;  %v2528_v21 = vpop.f32.mrb[65].mxu0  ;;  %v1862_v47 = vld [vmem:[#allocation3 + $0xf0] sm:$0xff] }
 0x178   : > { %v2603_v27 = vadd.f32 %v2512_v6, %v2189_v51  ;;  %2161 = vst.msk [vmem:[#allocation3 + $0x80] sm:$0xff] %vm576_vm4, %v2129_v18  ;;  %v2192_v53 = vld [vmem:[#allocation3 + $0x78] sm:$0xff]  ;;  %v2130_v23 = vadd.f32 %v2053_v10, %v1849_v19  ;;  %v5217_v41 = vpop.f32.mrb[66].mxu0  ;;  %v1860_v51 = vld [vmem:[#allocation3 + $0xe0] sm:$0xff] }
 0x179   : > { %2637 = vst.msk [vmem:[#allocation3 + $0x70] sm:$0xff] %vm576_vm4, %v2605_v25  ;;  %v2606_v43 = vadd.f32 %v5213_v0, %v2192_v53  ;;  %2164 = vst.msk [vmem:[#allocation3 + $0x98] sm:$0xff] %vm576_vm4, %v2132_v58  ;;  %v2190_v29 = vld [vmem:[#allocation3 + $0x68] sm:$0xff]  ;;  %v2531_v48 = vpop.f32.mrb[67].mxu0  ;;  %v1859_v6 = vld [vmem:[#allocation3 + $0xd8] sm:$0xff] }
 0x17a   : > { %2635 = vst.msk [vmem:[#allocation3 + $0x60] sm:$0xff] %vm576_vm4, %v2603_v27  ;;  %v2604_v22 = vadd.f32 %v2515_v9, %v2190_v29  ;;  %2162 = vst.msk [vmem:[#allocation3 + $0x88] sm:$0xff] %vm576_vm4, %v2130_v23  ;;  %v1861_v29 = vld [vmem:[#allocation3 + $0xe8] sm:$0xff] }
 0x17b   : > { %2638 = vst.msk [vmem:[#allocation3 + $0x78] sm:$0xff] %vm576_vm4, %v2606_v43 }
 0x17c   : > { %2636 = vst.msk [vmem:[#allocation3 + $0x68] sm:$0xff] %vm576_vm4, %v2604_v22  ;;  %v5182_v54 = vpop.f32.mrb[68].mxu1 }
 0x17d   : > { %v2135_v55 = vadd.f32 %v5182_v54, %v1854_v39  ;;  %v2066_v56 = vpop.f32.mrb[69].mxu1 }
 0x17e   : > { %v2195_v57 = vld [vmem:[#allocation3 + $0x90] sm:$0xff]  ;;  %v2133_v24 = vadd.f32 %v2066_v56, %v1852_v49  ;;  %v5183_v61 = vpop.f32.mrb[70].mxu1  ;;  %v5220_v14 = vpop.f32.mrb[68].mxu0 }
 0x17f   : > { %v2609_v37 = vadd.f32 %v5216_v5, %v2195_v57  ;;  %2167 = vst.msk [vmem:[#allocation3 + $0xb0] sm:$0xff] %vm576_vm4, %v2135_v55  ;;  %v2193_v26 = vld [vmem:[#allocation3 + $0x80] sm:$0xff]  ;;  %v2136_v20 = vadd.f32 %v5183_v61, %v1855_v33  ;;  %v2069_v4 = vpop.f32.mrb[71].mxu1  ;;  %v2544_v31 = vpop.f32.mrb[69].mxu0  ;;  %v2657_v61 = vld [vmem:[#allocation3 + $0x10] sm:$0xff] }
 0x180   : > { %v2607_v40 = vadd.f32 %v2528_v21, %v2193_v26  ;;  %2165 = vst.msk [vmem:[#allocation3 + $0xa0] sm:$0xff] %vm576_vm4, %v2133_v24  ;;  %v2196_v17 = vld [vmem:[#allocation3 + $0x98] sm:$0xff]  ;;  %v2134_v52 = vadd.f32 %v2069_v4, %v1853_v28  ;;  %v5221_v36 = vpop.f32.mrb[70].mxu0  ;;  %v2655_v26 = vld [vmem:[#allocation3] sm:$0xff] }
 0x181   : > { %2641 = vst.msk [vmem:[#allocation3 + $0x90] sm:$0xff] %vm576_vm4, %v2609_v37  ;;  %v2610_v60 = vadd.f32 %v5217_v41, %v2196_v17  ;;  %2168 = vst.msk [vmem:[#allocation3 + $0xb8] sm:$0xff] %vm576_vm4, %v2136_v20  ;;  %v2194_v62 = vld [vmem:[#allocation3 + $0x88] sm:$0xff]  ;;  %v2547_v45 = vpop.f32.mrb[71].mxu0  ;;  %v1863_v21 = vld [vmem:[#allocation3 + $0xf8] sm:$0xff] }
 0x182   : > { %2639 = vst.msk [vmem:[#allocation3 + $0x80] sm:$0xff] %vm576_vm4, %v2607_v40  ;;  %v2608_v13 = vadd.f32 %v2531_v48, %v2194_v62  ;;  %2166 = vst.msk [vmem:[#allocation3 + $0xa8] sm:$0xff] %vm576_vm4, %v2134_v52  ;;  %v2656_v62 = vld [vmem:[#allocation3 + $0x8] sm:$0xff] }
 0x183   : > { %2642 = vst.msk [vmem:[#allocation3 + $0x98] sm:$0xff] %vm576_vm4, %v2610_v60 }
 0x184   : > { %2640 = vst.msk [vmem:[#allocation3 + $0x88] sm:$0xff] %vm576_vm4, %v2608_v13  ;;  %v5186_v46 = vpop.f32.mrb[72].mxu1 }
 0x185   : > { %v2139_v35 = vadd.f32 %v5186_v46, %v1858_v32  ;;  %v2082_v1 = vpop.f32.mrb[73].mxu1 }
 0x186   : > { %v2199_v3 = vld [vmem:[#allocation3 + $0xb0] sm:$0xff]  ;;  %v2137_v44 = vadd.f32 %v2082_v1, %v1856_v63  ;;  %v5187_v11 = vpop.f32.mrb[74].mxu1  ;;  %v5224_v2 = vpop.f32.mrb[72].mxu0 }
 0x187   : > { %v2613_v59 = vadd.f32 %v5220_v14, %v2199_v3  ;;  %2171 = vst.msk [vmem:[#allocation3 + $0xd0] sm:$0xff] %vm576_vm4, %v2139_v35  ;;  %v2197_v0 = vld [vmem:[#allocation3 + $0xa0] sm:$0xff]  ;;  %v2140_v12 = vadd.f32 %v5187_v11, %v1859_v6  ;;  %v2085_v9 = vpop.f32.mrb[75].mxu1  ;;  %v2560_v7 = vpop.f32.mrb[73].mxu0  ;;  %v2661_v11 = vld [vmem:[#allocation3 + $0x30] sm:$0xff] }
 0x188   : > { %v2611_v15 = vadd.f32 %v2544_v31, %v2197_v0  ;;  %2169 = vst.msk [vmem:[#allocation3 + $0xc0] sm:$0xff] %vm576_vm4, %v2137_v44  ;;  %v2200_v34 = vld [vmem:[#allocation3 + $0xb8] sm:$0xff]  ;;  %v2138_v8 = vadd.f32 %v2085_v9, %v1857_v30  ;;  %v5225_v38 = vpop.f32.mrb[74].mxu0  ;;  %v2659_v0 = vld [vmem:[#allocation3 + $0x20] sm:$0xff] }
 0x189   : > { %2645 = vst.msk [vmem:[#allocation3 + $0xb0] sm:$0xff] %vm576_vm4, %v2613_v59  ;;  %v2614_v42 = vadd.f32 %v5221_v36, %v2200_v34  ;;  %2172 = vst.msk [vmem:[#allocation3 + $0xd8] sm:$0xff] %vm576_vm4, %v2140_v12  ;;  %v2198_v50 = vld [vmem:[#allocation3 + $0xa8] sm:$0xff]  ;;  %v2563_v18 = vpop.f32.mrb[75].mxu0  ;;  %v2658_v31 = vld [vmem:[#allocation3 + $0x18] sm:$0xff] }
 0x18a   : > { %2643 = vst.msk [vmem:[#allocation3 + $0xa0] sm:$0xff] %vm576_vm4, %v2611_v15  ;;  %v2612_v16 = vadd.f32 %v2547_v45, %v2198_v50  ;;  %2170 = vst.msk [vmem:[#allocation3 + $0xc8] sm:$0xff] %vm576_vm4, %v2138_v8  ;;  %v2660_v50 = vld [vmem:[#allocation3 + $0x28] sm:$0xff] }
 0x18b   : > { %2646 = vst.msk [vmem:[#allocation3 + $0xb8] sm:$0xff] %vm576_vm4, %v2614_v42 }
 0x18c   : > { %2644 = vst.msk [vmem:[#allocation3 + $0xa8] sm:$0xff] %vm576_vm4, %v2612_v16  ;;  %v5190_v5 = vpop.f32.mrb[76].mxu1 }
 0x18d   : > { %v2143_v25 = vadd.f32 %v5190_v5, %v1862_v47  ;;  %v2098_v58 = vpop.f32.mrb[77].mxu1 }
 0x18e   : > { %v2203_v19 = vld [vmem:[#allocation3 + $0xd0] sm:$0xff]  ;;  %v2141_v10 = vadd.f32 %v2098_v58, %v1860_v51  ;;  %v5191_v27 = vpop.f32.mrb[78].mxu1  ;;  %v5228_v53 = vpop.f32.mrb[76].mxu0 }
 0x18f   : > { %v2617_v23 = vadd.f32 %v5224_v2, %v2203_v19  ;;  %2175 = vst.msk [vmem:[#allocation3 + $0xf0] sm:$0xff] %vm576_vm4, %v2143_v25  ;;  %v2201_v41 = vld [vmem:[#allocation3 + $0xc0] sm:$0xff]  ;;  %v2144_v43 = vadd.f32 %v5191_v27, %v1863_v21  ;;  %v2101_v48 = vpop.f32.mrb[79].mxu1  ;;  %v2576_v22 = vpop.f32.mrb[77].mxu0  ;;  %v2665_v27 = vld [vmem:[#allocation3 + $0x50] sm:$0xff] }
 0x190   : > { %v2615_v39 = vadd.f32 %v2560_v7, %v2201_v41  ;;  %2173 = vst.msk [vmem:[#allocation3 + $0xe0] sm:$0xff] %vm576_vm4, %v2141_v10  ;;  %v2204_v54 = vld [vmem:[#allocation3 + $0xd8] sm:$0xff]  ;;  %v2142_v55 = vadd.f32 %v2101_v48, %v1861_v29  ;;  %v5229_v49 = vpop.f32.mrb[78].mxu0  ;;  %v2663_v41 = vld [vmem:[#allocation3 + $0x40] sm:$0xff] }
 0x191   : > { %2649 = vst.msk [vmem:[#allocation3 + $0xd0] sm:$0xff] %vm576_vm4, %v2617_v23  ;;  %v2618_v56 = vadd.f32 %v5225_v38, %v2204_v54  ;;  %2176 = vst.msk [vmem:[#allocation3 + $0xf8] sm:$0xff] %vm576_vm4, %v2144_v43  ;;  %v2202_v57 = vld [vmem:[#allocation3 + $0xc8] sm:$0xff]  ;;  %v2579_v24 = vpop.f32.mrb[79].mxu0  ;;  %v2662_v7 = vld [vmem:[#allocation3 + $0x38] sm:$0xff] }
 0x192   : > { %2647 = vst.msk [vmem:[#allocation3 + $0xc0] sm:$0xff] %vm576_vm4, %v2615_v39  ;;  %v2616_v33 = vadd.f32 %v2563_v18, %v2202_v57  ;;  %2174 = vst.msk [vmem:[#allocation3 + $0xe8] sm:$0xff] %vm576_vm4, %v2142_v55  ;;  %v2664_v57 = vld [vmem:[#allocation3 + $0x48] sm:$0xff] }
 0x193   : > { %2650 = vst.msk [vmem:[#allocation3 + $0xd8] sm:$0xff] %vm576_vm4, %v2618_v56 }
 0x194   : > { %2648 = vst.msk [vmem:[#allocation3 + $0xc8] sm:$0xff] %vm576_vm4, %v2616_v33  ;;  %v5238_v14 = vpop.f32.mrb[80].mxu1 }
 0x195   : > { %v2989_v37 = vadd.f32 %v5238_v14, %v2657_v61  ;;  %v2860_v20 = vpop.f32.mrb[81].mxu1 }
 0x196   : > { %v2207_v28 = vld [vmem:[#allocation3 + $0xf0] sm:$0xff]  ;;  %v2987_v4 = vadd.f32 %v2860_v20, %v2655_v26  ;;  %v5239_v40 = vpop.f32.mrb[82].mxu1  ;;  %v5276_v17 = vpop.f32.mrb[80].mxu0 }
 0x197   : > { %v2621_v52 = vadd.f32 %v5228_v53, %v2207_v28  ;;  %v2205_v36 = vld [vmem:[#allocation3 + $0xe0] sm:$0xff]  ;;  %3021 = vst.msk [vmem:[#allocation3 + $0x10] sm:$0xff] %vm576_vm4, %v2989_v37  ;;  %v2990_v60 = vadd.f32 %v5239_v40, %v2658_v31  ;;  %v2863_v45 = vpop.f32.mrb[83].mxu1  ;;  %v3205_v13 = vpop.f32.mrb[81].mxu0  ;;  %v2669_v40 = vld [vmem:[#allocation3 + $0x70] sm:$0xff] }
 0x198   : > { %v2619_v32 = vadd.f32 %v2576_v22, %v2205_v36  ;;  %v2208_v46 = vld [vmem:[#allocation3 + $0xf8] sm:$0xff]  ;;  %3019 = vst.msk [vmem:[#allocation3] sm:$0xff] %vm576_vm4, %v2987_v4  ;;  %v2988_v35 = vadd.f32 %v2863_v45, %v2656_v62  ;;  %v5277_v63 = vpop.f32.mrb[82].mxu0  ;;  %v2667_v36 = vld [vmem:[#allocation3 + $0x60] sm:$0xff] }
 0x199   : > { %2653 = vst.msk [vmem:[#allocation3 + $0xf0] sm:$0xff] %vm576_vm4, %v2621_v52  ;;  %v2622_v1 = vadd.f32 %v5229_v49, %v2208_v46  ;;  %v2206_v3 = vld [vmem:[#allocation3 + $0xe8] sm:$0xff]  ;;  %3022 = vst.msk [vmem:[#allocation3 + $0x18] sm:$0xff] %vm576_vm4, %v2990_v60  ;;  %v3208_v44 = vpop.f32.mrb[83].mxu0  ;;  %v2666_v22 = vld [vmem:[#allocation3 + $0x58] sm:$0xff] }
 0x19a   : > { %2651 = vst.msk [vmem:[#allocation3 + $0xe0] sm:$0xff] %vm576_vm4, %v2619_v32  ;;  %v2620_v6 = vadd.f32 %v2579_v24, %v2206_v3  ;;  %3020 = vst.msk [vmem:[#allocation3 + $0x8] sm:$0xff] %vm576_vm4, %v2988_v35  ;;  %v2668_v3 = vld [vmem:[#allocation3 + $0x68] sm:$0xff] }
 0x19b   : > { %2654 = vst.msk [vmem:[#allocation3 + $0xf8] sm:$0xff] %vm576_vm4, %v2622_v1 }
 0x19c   : > { %2652 = vst.msk [vmem:[#allocation3 + $0xe8] sm:$0xff] %vm576_vm4, %v2620_v6  ;;  %v5242_v2 = vpop.f32.mrb[84].mxu1 }
 0x19d   : > { %v2993_v59 = vadd.f32 %v5242_v2, %v2661_v11  ;;  %v2876_v12 = vpop.f32.mrb[85].mxu1 }
 0x19e   : > { %v3053_v30 = vld [vmem:[#allocation3 + $0x10] sm:$0xff]  ;;  %v2991_v9 = vadd.f32 %v2876_v12, %v2659_v0  ;;  %v5243_v15 = vpop.f32.mrb[86].mxu1  ;;  %v5280_v34 = vpop.f32.mrb[84].mxu0 }
 0x19f   : > { %v3334_v8 = vadd.f32 %v5276_v17, %v3053_v30  ;;  %3025 = vst.msk [vmem:[#allocation3 + $0x30] sm:$0xff] %vm576_vm4, %v2993_v59  ;;  %v3051_v38 = vld [vmem:[#allocation3] sm:$0xff]  ;;  %v2994_v42 = vadd.f32 %v5243_v15, %v2662_v7  ;;  %v2879_v18 = vpop.f32.mrb[87].mxu1  ;;  %v3221_v16 = vpop.f32.mrb[85].mxu0  ;;  %v2673_v15 = vld [vmem:[#allocation3 + $0x90] sm:$0xff] }
 0x1a0   : > { %v3332_v47 = vadd.f32 %v3205_v13, %v3051_v38  ;;  %3023 = vst.msk [vmem:[#allocation3 + $0x20] sm:$0xff] %vm576_vm4, %v2991_v9  ;;  %v3054_v5 = vld [vmem:[#allocation3 + $0x18] sm:$0xff]  ;;  %v2992_v25 = vadd.f32 %v2879_v18, %v2660_v50  ;;  %v5281_v51 = vpop.f32.mrb[86].mxu0  ;;  %v2671_v38 = vld [vmem:[#allocation3 + $0x80] sm:$0xff] }
 0x1a1   : > { %3366 = vst.msk [vmem:[#allocation3 + $0x10] sm:$0xff] %vm576_vm4, %v3334_v8  ;;  %v3335_v58 = vadd.f32 %v5277_v63, %v3054_v5  ;;  %3026 = vst.msk [vmem:[#allocation3 + $0x38] sm:$0xff] %vm576_vm4, %v2994_v42  ;;  %v3052_v19 = vld [vmem:[#allocation3 + $0x8] sm:$0xff]  ;;  %v3224_v10 = vpop.f32.mrb[87].mxu0  ;;  %v2670_v13 = vld [vmem:[#allocation3 + $0x78] sm:$0xff] }
 0x1a2   : > { %3364 = vst.msk [vmem:[#allocation3] sm:$0xff] %vm576_vm4, %v3332_v47  ;;  %v3333_v21 = vadd.f32 %v3208_v44, %v3052_v19  ;;  %3024 = vst.msk [vmem:[#allocation3 + $0x28] sm:$0xff] %vm576_vm4, %v2992_v25  ;;  %v2672_v19 = vld [vmem:[#allocation3 + $0x88] sm:$0xff] }
 0x1a3   : > { %3367 = vst.msk [vmem:[#allocation3 + $0x18] sm:$0xff] %vm576_vm4, %v3335_v58 }
 0x1a4   : > { %3365 = vst.msk [vmem:[#allocation3 + $0x8] sm:$0xff] %vm576_vm4, %v3333_v21  ;;  %v5246_v53 = vpop.f32.mrb[88].mxu1 }
 0x1a5   : > { %v2997_v23 = vadd.f32 %v5246_v53, %v2665_v27  ;;  %v2892_v43 = vpop.f32.mrb[89].mxu1 }
 0x1a6   : > { %v3057_v29 = vld [vmem:[#allocation3 + $0x30] sm:$0xff]  ;;  %v2995_v48 = vadd.f32 %v2892_v43, %v2663_v41  ;;  %v5247_v39 = vpop.f32.mrb[90].mxu1  ;;  %v5284_v54 = vpop.f32.mrb[88].mxu0 }
 0x1a7   : > { %v3338_v55 = vadd.f32 %v5280_v34, %v3057_v29  ;;  %3029 = vst.msk [vmem:[#allocation3 + $0x50] sm:$0xff] %vm576_vm4, %v2997_v23  ;;  %v3055_v49 = vld [vmem:[#allocation3 + $0x20] sm:$0xff]  ;;  %v2998_v56 = vadd.f32 %v5247_v39, %v2666_v22  ;;  %v2895_v24 = vpop.f32.mrb[91].mxu1  ;;  %v3237_v33 = vpop.f32.mrb[89].mxu0  ;;  %v2677_v39 = vld [vmem:[#allocation3 + $0xb0] sm:$0xff] }
 0x1a8   : > { %v3336_v61 = vadd.f32 %v3221_v16, %v3055_v49  ;;  %3027 = vst.msk [vmem:[#allocation3 + $0x40] sm:$0xff] %vm576_vm4, %v2995_v48  ;;  %v3058_v14 = vld [vmem:[#allocation3 + $0x38] sm:$0xff]  ;;  %v2996_v37 = vadd.f32 %v2895_v24, %v2664_v57  ;;  %v5285_v26 = vpop.f32.mrb[90].mxu0  ;;  %v2675_v49 = vld [vmem:[#allocation3 + $0xa0] sm:$0xff] }
 0x1a9   : > { %3370 = vst.msk [vmem:[#allocation3 + $0x30] sm:$0xff] %vm576_vm4, %v3338_v55  ;;  %v3339_v20 = vadd.f32 %v5281_v51, %v3058_v14  ;;  %3030 = vst.msk [vmem:[#allocation3 + $0x58] sm:$0xff] %vm576_vm4, %v2998_v56  ;;  %v3056_v28 = vld [vmem:[#allocation3 + $0x28] sm:$0xff]  ;;  %v3240_v4 = vpop.f32.mrb[91].mxu0  ;;  %v2674_v16 = vld [vmem:[#allocation3 + $0x98] sm:$0xff] }
 0x1aa   : > { %3368 = vst.msk [vmem:[#allocation3 + $0x20] sm:$0xff] %vm576_vm4, %v3336_v61  ;;  %v3337_v31 = vadd.f32 %v3224_v10, %v3056_v28  ;;  %3028 = vst.msk [vmem:[#allocation3 + $0x48] sm:$0xff] %vm576_vm4, %v2996_v37  ;;  %v2676_v28 = vld [vmem:[#allocation3 + $0xa8] sm:$0xff] }
 0x1ab   : > { %3371 = vst.msk [vmem:[#allocation3 + $0x38] sm:$0xff] %vm576_vm4, %v3339_v20 }
 0x1ac   : > { %3369 = vst.msk [vmem:[#allocation3 + $0x28] sm:$0xff] %vm576_vm4, %v3337_v31  ;;  %v5250_v17 = vpop.f32.mrb[92].mxu1 }
 0x1ad   : > { %v3001_v52 = vadd.f32 %v5250_v17, %v2669_v40  ;;  %v2908_v60 = vpop.f32.mrb[93].mxu1 }
 0x1ae   : > { %v3061_v62 = vld [vmem:[#allocation3 + $0x50] sm:$0xff]  ;;  %v2999_v45 = vadd.f32 %v2908_v60, %v2667_v36  ;;  %v5251_v32 = vpop.f32.mrb[94].mxu1  ;;  %v5288_v46 = vpop.f32.mrb[92].mxu0 }
 0x1af   : > { %v3342_v35 = vadd.f32 %v5284_v54, %v3061_v62  ;;  %3033 = vst.msk [vmem:[#allocation3 + $0x70] sm:$0xff] %vm576_vm4, %v3001_v52  ;;  %v3059_v63 = vld [vmem:[#allocation3 + $0x40] sm:$0xff]  ;;  %v3002_v1 = vadd.f32 %v5251_v32, %v2670_v13  ;;  %v2911_v44 = vpop.f32.mrb[95].mxu1  ;;  %v3253_v6 = vpop.f32.mrb[93].mxu0  ;;  %v2681_v32 = vld [vmem:[#allocation3 + $0xd0] sm:$0xff] }
 0x1b0   : > { %v3340_v11 = vadd.f32 %v3237_v33, %v3059_v63  ;;  %3031 = vst.msk [vmem:[#allocation3 + $0x60] sm:$0xff] %vm576_vm4, %v2999_v45  ;;  %v3062_v2 = vld [vmem:[#allocation3 + $0x58] sm:$0xff]  ;;  %v3000_v59 = vadd.f32 %v2911_v44, %v2668_v3  ;;  %v5289_v0 = vpop.f32.mrb[94].mxu0  ;;  %v2679_v63 = vld [vmem:[#allocation3 + $0xc0] sm:$0xff] }
 0x1b1   : > { %3374 = vst.msk [vmem:[#allocation3 + $0x50] sm:$0xff] %vm576_vm4, %v3342_v35  ;;  %v3343_v12 = vadd.f32 %v5285_v26, %v3062_v2  ;;  %3034 = vst.msk [vmem:[#allocation3 + $0x78] sm:$0xff] %vm576_vm4, %v3002_v1  ;;  %v3060_v30 = vld [vmem:[#allocation3 + $0x48] sm:$0xff]  ;;  %v3256_v9 = vpop.f32.mrb[95].mxu0  ;;  %v2678_v33 = vld [vmem:[#allocation3 + $0xb8] sm:$0xff] }
 0x1b2   : > { %3372 = vst.msk [vmem:[#allocation3 + $0x40] sm:$0xff] %vm576_vm4, %v3340_v11  ;;  %v3341_v7 = vadd.f32 %v3240_v4, %v3060_v30  ;;  %3032 = vst.msk [vmem:[#allocation3 + $0x68] sm:$0xff] %vm576_vm4, %v3000_v59  ;;  %v2680_v30 = vld [vmem:[#allocation3 + $0xc8] sm:$0xff] }
 0x1b3   : > { %3375 = vst.msk [vmem:[#allocation3 + $0x58] sm:$0xff] %vm576_vm4, %v3343_v12 }
 0x1b4   : > { %3373 = vst.msk [vmem:[#allocation3 + $0x48] sm:$0xff] %vm576_vm4, %v3341_v7  ;;  %v5254_v34 = vpop.f32.mrb[96].mxu1 }
 0x1b5   : > { %v3005_v8 = vadd.f32 %v5254_v34, %v2673_v15  ;;  %v2924_v42 = vpop.f32.mrb[97].mxu1 }
 0x1b6   : > { %v3065_v50 = vld [vmem:[#allocation3 + $0x70] sm:$0xff]  ;;  %v3003_v18 = vadd.f32 %v2924_v42, %v2671_v38  ;;  %v5255_v47 = vpop.f32.mrb[98].mxu1  ;;  %v5292_v5 = vpop.f32.mrb[96].mxu0 }
 0x1b7   : > { %v3346_v25 = vadd.f32 %v5288_v46, %v3065_v50  ;;  %3037 = vst.msk [vmem:[#allocation3 + $0x90] sm:$0xff] %vm576_vm4, %v3005_v8  ;;  %v3063_v51 = vld [vmem:[#allocation3 + $0x60] sm:$0xff]  ;;  %v3006_v58 = vadd.f32 %v5255_v47, %v2674_v16  ;;  %v2927_v10 = vpop.f32.mrb[99].mxu1  ;;  %v3269_v21 = vpop.f32.mrb[97].mxu0  ;;  %v2685_v47 = vld [vmem:[#allocation3 + $0xf0] sm:$0xff] }
 0x1b8   : > { %v3344_v27 = vadd.f32 %v3253_v6, %v3063_v51  ;;  %3035 = vst.msk [vmem:[#allocation3 + $0x80] sm:$0xff] %vm576_vm4, %v3003_v18  ;;  %v3066_v53 = vld [vmem:[#allocation3 + $0x78] sm:$0xff]  ;;  %v3004_v23 = vadd.f32 %v2927_v10, %v2672_v19  ;;  %v5293_v41 = vpop.f32.mrb[98].mxu0  ;;  %v2683_v51 = vld [vmem:[#allocation3 + $0xe0] sm:$0xff] }
 0x1b9   : > { %3378 = vst.msk [vmem:[#allocation3 + $0x70] sm:$0xff] %vm576_vm4, %v3346_v25  ;;  %v3347_v43 = vadd.f32 %v5289_v0, %v3066_v53  ;;  %3038 = vst.msk [vmem:[#allocation3 + $0x98] sm:$0xff] %vm576_vm4, %v3006_v58  ;;  %v3064_v29 = vld [vmem:[#allocation3 + $0x68] sm:$0xff]  ;;  %v3272_v48 = vpop.f32.mrb[99].mxu0  ;;  %v2682_v6 = vld [vmem:[#allocation3 + $0xd8] sm:$0xff] }
 0x1ba   : > { %3376 = vst.msk [vmem:[#allocation3 + $0x60] sm:$0xff] %vm576_vm4, %v3344_v27  ;;  %v3345_v22 = vadd.f32 %v3256_v9, %v3064_v29  ;;  %3036 = vst.msk [vmem:[#allocation3 + $0x88] sm:$0xff] %vm576_vm4, %v3004_v23  ;;  %v2684_v29 = vld [vmem:[#allocation3 + $0xe8] sm:$0xff] }
 0x1bb   : > { %3379 = vst.msk [vmem:[#allocation3 + $0x78] sm:$0xff] %vm576_vm4, %v3347_v43 }
 0x1bc   : > { %3377 = vst.msk [vmem:[#allocation3 + $0x68] sm:$0xff] %vm576_vm4, %v3345_v22  ;;  %v5258_v54 = vpop.f32.mrb[100].mxu1 }
 0x1bd   : > { %v3009_v55 = vadd.f32 %v5258_v54, %v2677_v39  ;;  %v2940_v56 = vpop.f32.mrb[101].mxu1 }
 0x1be   : > { %v3069_v57 = vld [vmem:[#allocation3 + $0x90] sm:$0xff]  ;;  %v3007_v24 = vadd.f32 %v2940_v56, %v2675_v49  ;;  %v5259_v61 = vpop.f32.mrb[102].mxu1  ;;  %v5296_v14 = vpop.f32.mrb[100].mxu0 }
 0x1bf   : > { %v3350_v37 = vadd.f32 %v5292_v5, %v3069_v57  ;;  %3041 = vst.msk [vmem:[#allocation3 + $0xb0] sm:$0xff] %vm576_vm4, %v3009_v55  ;;  %v3067_v26 = vld [vmem:[#allocation3 + $0x80] sm:$0xff]  ;;  %v3010_v20 = vadd.f32 %v5259_v61, %v2678_v33  ;;  %v2943_v4 = vpop.f32.mrb[103].mxu1  ;;  %v3285_v31 = vpop.f32.mrb[101].mxu0  ;;  %v3398_v61 = vld [vmem:[#allocation3 + $0x10] sm:$0xff] }
 0x1c0   : > { %v3348_v40 = vadd.f32 %v3269_v21, %v3067_v26  ;;  %3039 = vst.msk [vmem:[#allocation3 + $0xa0] sm:$0xff] %vm576_vm4, %v3007_v24  ;;  %v3070_v17 = vld [vmem:[#allocation3 + $0x98] sm:$0xff]  ;;  %v3008_v52 = vadd.f32 %v2943_v4, %v2676_v28  ;;  %v5297_v36 = vpop.f32.mrb[102].mxu0  ;;  %v3396_v26 = vld [vmem:[#allocation3] sm:$0xff] }
 0x1c1   : > { %3382 = vst.msk [vmem:[#allocation3 + $0x90] sm:$0xff] %vm576_vm4, %v3350_v37  ;;  %v3351_v60 = vadd.f32 %v5293_v41, %v3070_v17  ;;  %3042 = vst.msk [vmem:[#allocation3 + $0xb8] sm:$0xff] %vm576_vm4, %v3010_v20  ;;  %v3068_v62 = vld [vmem:[#allocation3 + $0x88] sm:$0xff]  ;;  %v3288_v45 = vpop.f32.mrb[103].mxu0  ;;  %v2686_v21 = vld [vmem:[#allocation3 + $0xf8] sm:$0xff] }
 0x1c2   : > { %3380 = vst.msk [vmem:[#allocation3 + $0x80] sm:$0xff] %vm576_vm4, %v3348_v40  ;;  %v3349_v13 = vadd.f32 %v3272_v48, %v3068_v62  ;;  %3040 = vst.msk [vmem:[#allocation3 + $0xa8] sm:$0xff] %vm576_vm4, %v3008_v52  ;;  %v3397_v62 = vld [vmem:[#allocation3 + $0x8] sm:$0xff] }
 0x1c3   : > { %3383 = vst.msk [vmem:[#allocation3 + $0x98] sm:$0xff] %vm576_vm4, %v3351_v60 }
 0x1c4   : > { %3381 = vst.msk [vmem:[#allocation3 + $0x88] sm:$0xff] %vm576_vm4, %v3349_v13  ;;  %v5262_v46 = vpop.f32.mrb[104].mxu1 }
 0x1c5   : > { %v3013_v35 = vadd.f32 %v5262_v46, %v2681_v32  ;;  %v2956_v1 = vpop.f32.mrb[105].mxu1 }
 0x1c6   : > { %v3073_v3 = vld [vmem:[#allocation3 + $0xb0] sm:$0xff]  ;;  %v3011_v44 = vadd.f32 %v2956_v1, %v2679_v63  ;;  %v5263_v11 = vpop.f32.mrb[106].mxu1  ;;  %v5300_v2 = vpop.f32.mrb[104].mxu0 }
 0x1c7   : > { %v3354_v59 = vadd.f32 %v5296_v14, %v3073_v3  ;;  %3045 = vst.msk [vmem:[#allocation3 + $0xd0] sm:$0xff] %vm576_vm4, %v3013_v35  ;;  %v3071_v0 = vld [vmem:[#allocation3 + $0xa0] sm:$0xff]  ;;  %v3014_v12 = vadd.f32 %v5263_v11, %v2682_v6  ;;  %v2959_v9 = vpop.f32.mrb[107].mxu1  ;;  %v3301_v7 = vpop.f32.mrb[105].mxu0  ;;  %v3402_v11 = vld [vmem:[#allocation3 + $0x30] sm:$0xff] }
 0x1c8   : > { %v3352_v15 = vadd.f32 %v3285_v31, %v3071_v0  ;;  %3043 = vst.msk [vmem:[#allocation3 + $0xc0] sm:$0xff] %vm576_vm4, %v3011_v44  ;;  %v3074_v34 = vld [vmem:[#allocation3 + $0xb8] sm:$0xff]  ;;  %v3012_v8 = vadd.f32 %v2959_v9, %v2680_v30  ;;  %v5301_v38 = vpop.f32.mrb[106].mxu0  ;;  %v3400_v0 = vld [vmem:[#allocation3 + $0x20] sm:$0xff] }
 0x1c9   : > { %3386 = vst.msk [vmem:[#allocation3 + $0xb0] sm:$0xff] %vm576_vm4, %v3354_v59  ;;  %v3355_v42 = vadd.f32 %v5297_v36, %v3074_v34  ;;  %3046 = vst.msk [vmem:[#allocation3 + $0xd8] sm:$0xff] %vm576_vm4, %v3014_v12  ;;  %v3072_v50 = vld [vmem:[#allocation3 + $0xa8] sm:$0xff]  ;;  %v3304_v18 = vpop.f32.mrb[107].mxu0  ;;  %v3399_v31 = vld [vmem:[#allocation3 + $0x18] sm:$0xff] }
 0x1ca   : > { %3384 = vst.msk [vmem:[#allocation3 + $0xa0] sm:$0xff] %vm576_vm4, %v3352_v15  ;;  %v3353_v16 = vadd.f32 %v3288_v45, %v3072_v50  ;;  %3044 = vst.msk [vmem:[#allocation3 + $0xc8] sm:$0xff] %vm576_vm4, %v3012_v8  ;;  %v3401_v50 = vld [vmem:[#allocation3 + $0x28] sm:$0xff] }
 0x1cb   : > { %3387 = vst.msk [vmem:[#allocation3 + $0xb8] sm:$0xff] %vm576_vm4, %v3355_v42 }
 0x1cc   : > { %3385 = vst.msk [vmem:[#allocation3 + $0xa8] sm:$0xff] %vm576_vm4, %v3353_v16  ;;  %v5266_v5 = vpop.f32.mrb[108].mxu1 }
 0x1cd   : > { %v3017_v25 = vadd.f32 %v5266_v5, %v2685_v47  ;;  %v2972_v58 = vpop.f32.mrb[109].mxu1 }
 0x1ce   : > { %v3077_v19 = vld [vmem:[#allocation3 + $0xd0] sm:$0xff]  ;;  %v3015_v10 = vadd.f32 %v2972_v58, %v2683_v51  ;;  %v5267_v27 = vpop.f32.mrb[110].mxu1  ;;  %v5304_v53 = vpop.f32.mrb[108].mxu0 }
 0x1cf   : > { %v3358_v23 = vadd.f32 %v5300_v2, %v3077_v19  ;;  %3049 = vst.msk [vmem:[#allocation3 + $0xf0] sm:$0xff] %vm576_vm4, %v3017_v25  ;;  %v3075_v41 = vld [vmem:[#allocation3 + $0xc0] sm:$0xff]  ;;  %v3018_v43 = vadd.f32 %v5267_v27, %v2686_v21  ;;  %v2975_v48 = vpop.f32.mrb[111].mxu1  ;;  %v3317_v22 = vpop.f32.mrb[109].mxu0  ;;  %v3406_v27 = vld [vmem:[#allocation3 + $0x50] sm:$0xff] }
 0x1d0   : > { %v3356_v39 = vadd.f32 %v3301_v7, %v3075_v41  ;;  %3047 = vst.msk [vmem:[#allocation3 + $0xe0] sm:$0xff] %vm576_vm4, %v3015_v10  ;;  %v3078_v54 = vld [vmem:[#allocation3 + $0xd8] sm:$0xff]  ;;  %v3016_v55 = vadd.f32 %v2975_v48, %v2684_v29  ;;  %v5305_v49 = vpop.f32.mrb[110].mxu0  ;;  %v3404_v41 = vld [vmem:[#allocation3 + $0x40] sm:$0xff] }
 0x1d1   : > { %3390 = vst.msk [vmem:[#allocation3 + $0xd0] sm:$0xff] %vm576_vm4, %v3358_v23  ;;  %v3359_v56 = vadd.f32 %v5301_v38, %v3078_v54  ;;  %3050 = vst.msk [vmem:[#allocation3 + $0xf8] sm:$0xff] %vm576_vm4, %v3018_v43  ;;  %v3076_v57 = vld [vmem:[#allocation3 + $0xc8] sm:$0xff]  ;;  %v3320_v24 = vpop.f32.mrb[111].mxu0  ;;  %v3403_v7 = vld [vmem:[#allocation3 + $0x38] sm:$0xff] }
 0x1d2   : > { %3388 = vst.msk [vmem:[#allocation3 + $0xc0] sm:$0xff] %vm576_vm4, %v3356_v39  ;;  %v3357_v33 = vadd.f32 %v3304_v18, %v3076_v57  ;;  %3048 = vst.msk [vmem:[#allocation3 + $0xe8] sm:$0xff] %vm576_vm4, %v3016_v55  ;;  %v6603_v29 = vld [vmem:[#allocation4] ss:$0 sm:$0xff]  ;;  %v3407_v39 = vld [vmem:[#allocation3 + $0x58] sm:$0xff] }
 0x1d3   : > { %3391 = vst.msk [vmem:[#allocation3 + $0xd8] sm:$0xff] %vm576_vm4, %v3359_v56 }
 0x1d4   : > { %3389 = vst.msk [vmem:[#allocation3 + $0xc8] sm:$0xff] %vm576_vm4, %v3357_v33  ;;  %v5314_v14 = vpop.f32.mrb[112].mxu1 }
 0x1d5   : > { %v3812_v37 = vadd.f32 %v5314_v14, %v3398_v61  ;;  %v3683_v20 = vpop.f32.mrb[113].mxu1 }
 0x1d6   : > { %v3081_v28 = vld [vmem:[#allocation3 + $0xf0] sm:$0xff]  ;;  %v3810_v4 = vadd.f32 %v3683_v20, %v3396_v26  ;;  %v5315_v40 = vpop.f32.mrb[114].mxu1  ;;  %v5352_v17 = vpop.f32.mrb[112].mxu0 }
 0x1d7   : > { %v3362_v52 = vadd.f32 %v5304_v53, %v3081_v28  ;;  %v3079_v36 = vld [vmem:[#allocation3 + $0xe0] sm:$0xff]  ;;  %3844 = vst.msk [vmem:[#allocation3 + $0x10] sm:$0xff] %vm576_vm4, %v3812_v37  ;;  %v3813_v60 = vadd.f32 %v5315_v40, %v3399_v31  ;;  %v3686_v45 = vpop.f32.mrb[115].mxu1  ;;  %v4079_v13 = vpop.f32.mrb[113].mxu0 }
 0x1d8   : > { %v3360_v32 = vadd.f32 %v3317_v22, %v3079_v36  ;;  %v3082_v46 = vld [vmem:[#allocation3 + $0xf8] sm:$0xff]  ;;  %3842 = vst.msk [vmem:[#allocation3] sm:$0xff] %vm576_vm4, %v3810_v4  ;;  %v3811_v35 = vadd.f32 %v3686_v45, %v3397_v62  ;;  %v5353_v63 = vpop.f32.mrb[114].mxu0 }
 0x1d9   : > { %3394 = vst.msk [vmem:[#allocation3 + $0xf0] sm:$0xff] %vm576_vm4, %v3362_v52  ;;  %v3363_v1 = vadd.f32 %v5305_v49, %v3082_v46  ;;  %v3080_v3 = vld [vmem:[#allocation3 + $0xe8] sm:$0xff]  ;;  %3845 = vst.msk [vmem:[#allocation3 + $0x18] sm:$0xff] %vm576_vm4, %v3813_v60  ;;  %v4082_v44 = vpop.f32.mrb[115].mxu0 }
 0x1da   : > { %3392 = vst.msk [vmem:[#allocation3 + $0xe0] sm:$0xff] %vm576_vm4, %v3360_v32  ;;  %v3361_v6 = vadd.f32 %v3320_v24, %v3080_v3  ;;  %3843 = vst.msk [vmem:[#allocation3 + $0x8] sm:$0xff] %vm576_vm4, %v3811_v35  ;;  %v3405_v24 = vld [vmem:[#allocation3 + $0x48] sm:$0xff] }
 0x1db   : > { %3395 = vst.msk [vmem:[#allocation3 + $0xf8] sm:$0xff] %vm576_vm4, %v3363_v1 }
 0x1dc   : > { %3393 = vst.msk [vmem:[#allocation3 + $0xe8] sm:$0xff] %vm576_vm4, %v3361_v6  ;;  %v5318_v2 = vpop.f32.mrb[116].mxu1 }
 0x1dd   : > { %v3816_v59 = vadd.f32 %v5318_v2, %v3402_v11  ;;  %v3699_v12 = vpop.f32.mrb[117].mxu1  ;;  %v3408_v11 = vld [vmem:[#allocation3 + $0x60] sm:$0xff] }
 0x1de   : > { %v3876_v30 = vld [vmem:[#allocation3 + $0x10] sm:$0xff]  ;;  %v3814_v9 = vadd.f32 %v3699_v12, %v3400_v0  ;;  %v5319_v15 = vpop.f32.mrb[118].mxu1  ;;  %v5356_v34 = vpop.f32.mrb[116].mxu0 }
 0x1df   : > { %v4208_v8 = vadd.f32 %v5352_v17, %v3876_v30  ;;  %3848 = vst.msk [vmem:[#allocation3 + $0x30] sm:$0xff] %vm576_vm4, %v3816_v59  ;;  %v3874_v38 = vld [vmem:[#allocation3] sm:$0xff]  ;;  %v3817_v42 = vadd.f32 %v5319_v15, %v3403_v7  ;;  %v3702_v18 = vpop.f32.mrb[119].mxu1  ;;  %v4095_v16 = vpop.f32.mrb[117].mxu0  ;;  %v3411_v59 = vld [vmem:[#allocation3 + $0x78] sm:$0xff] }
 0x1e0   : > { %v4206_v47 = vadd.f32 %v4079_v13, %v3874_v38  ;;  %3846 = vst.msk [vmem:[#allocation3 + $0x20] sm:$0xff] %vm576_vm4, %v3814_v9  ;;  %v3877_v5 = vld [vmem:[#allocation3 + $0x18] sm:$0xff]  ;;  %v3815_v25 = vadd.f32 %v3702_v18, %v3401_v50  ;;  %v5357_v51 = vpop.f32.mrb[118].mxu0  ;;  %v3409_v50 = vld [vmem:[#allocation3 + $0x68] sm:$0xff] }
 0x1e1   : > { %4240 = vst.msk [vmem:[#allocation3 + $0x10] sm:$0xff] %vm576_vm4, %v4208_v8  ;;  %v4209_v58 = vadd.f32 %v5353_v63, %v3877_v5  ;;  %3849 = vst.msk [vmem:[#allocation3 + $0x38] sm:$0xff] %vm576_vm4, %v3817_v42  ;;  %v3875_v19 = vld [vmem:[#allocation3 + $0x8] sm:$0xff]  ;;  %v4098_v10 = vpop.f32.mrb[119].mxu0  ;;  %v3410_v63 = vld [vmem:[#allocation3 + $0x70] sm:$0xff] }
 0x1e2   : > { %4238 = vst.msk [vmem:[#allocation3] sm:$0xff] %vm576_vm4, %v4206_v47  ;;  %v4207_v21 = vadd.f32 %v4082_v44, %v3875_v19  ;;  %3847 = vst.msk [vmem:[#allocation3 + $0x28] sm:$0xff] %vm576_vm4, %v3815_v25 }
 0x1e3   : > { %4241 = vst.msk [vmem:[#allocation3 + $0x18] sm:$0xff] %vm576_vm4, %v4209_v58 }
 0x1e4   : > { %4239 = vst.msk [vmem:[#allocation3 + $0x8] sm:$0xff] %vm576_vm4, %v4207_v21  ;;  %v5322_v53 = vpop.f32.mrb[120].mxu1 }
 0x1e5   : > { %v3820_v23 = vadd.f32 %v5322_v53, %v3406_v27  ;;  %v3715_v43 = vpop.f32.mrb[121].mxu1 }
 0x1e6   : > { %v3880_v48 = vld [vmem:[#allocation3 + $0x30] sm:$0xff]  ;;  %v3818_v22 = vadd.f32 %v3715_v43, %v3404_v41  ;;  %v5323_v54 = vpop.f32.mrb[122].mxu1  ;;  %v5360_v55 = vpop.f32.mrb[120].mxu0 }
 0x1e7   : > { %v4212_v49 = vadd.f32 %v5356_v34, %v3880_v48  ;;  %3852 = vst.msk [vmem:[#allocation3 + $0x50] sm:$0xff] %vm576_vm4, %v3820_v23  ;;  %v3878_v56 = vld [vmem:[#allocation3 + $0x20] sm:$0xff]  ;;  %v3821_v57 = vadd.f32 %v5323_v54, %v3407_v39  ;;  %v3718_v33 = vpop.f32.mrb[123].mxu1  ;;  %v4111_v61 = vpop.f32.mrb[121].mxu0 }
 0x1e8   : > { %v4272_v14 = vld [vmem:[#allocation3 + $0x10] sm:$0xff]  ;;  %v4210_v37 = vadd.f32 %v4095_v16, %v3878_v56  ;;  %3850 = vst.msk [vmem:[#allocation3 + $0x40] sm:$0xff] %vm576_vm4, %v3818_v22  ;;  %v3881_v26 = vld [vmem:[#allocation3 + $0x38] sm:$0xff]  ;;  %v3819_v20 = vadd.f32 %v3718_v33, %v3405_v24  ;;  %v5361_v28 = vpop.f32.mrb[122].mxu0 }
 0x1e9   : > { %v4311_v4 = vadd.f32 %v6603_v29, %v4272_v14  ;;  %v4270_v31 = vld [vmem:[#allocation3] sm:$0xff]  ;;  %4244 = vst.msk [vmem:[#allocation3 + $0x30] sm:$0xff] %vm576_vm4, %v4212_v49  ;;  %v4213_v40 = vadd.f32 %v5357_v51, %v3881_v26  ;;  %3853 = vst.msk [vmem:[#allocation3 + $0x58] sm:$0xff] %vm576_vm4, %v3821_v57  ;;  %v3879_v17 = vld [vmem:[#allocation3 + $0x28] sm:$0xff]  ;;  %v4114_v52 = vpop.f32.mrb[123].mxu0 }
 0x1ea   : > { %v4309_v36 = vadd.f32 %v6603_v29, %v4270_v31  ;;  %v4273_v60 = vld [vmem:[#allocation3 + $0x18] sm:$0xff]  ;;  %4242 = vst.msk [vmem:[#allocation3 + $0x20] sm:$0xff] %vm576_vm4, %v4210_v37  ;;  %v4211_v62 = vadd.f32 %v4098_v10, %v3879_v17  ;;  %3851 = vst.msk [vmem:[#allocation3 + $0x48] sm:$0xff] %vm576_vm4, %v3819_v20  ;;  %v3414_v56 = vld [vmem:[#allocation3 + $0x90] sm:$0xff] }
 0x1eb   : > { %vm4343_vm5 = vcmp.gt.f32.partialorder %v4311_v4, 0.0  ;;  %v4375_v45 = vmul.f32 0.2, %v4311_v4  ;;  %v4312_v13 = vadd.f32 %v6603_v29, %v4273_v60  ;;  %v4271_v32 = vld [vmem:[#allocation3 + $0x8] sm:$0xff]  ;;  %4245 = vst.msk [vmem:[#allocation3 + $0x38] sm:$0xff] %vm576_vm4, %v4213_v40  ;;  %v3412_v14 = vld [vmem:[#allocation3 + $0x80] sm:$0xff] }
 0x1ec   : > { %vm4341_vm6 = vcmp.gt.f32.partialorder %v4309_v36, 0.0  ;;  %v4373_v46 = vmul.f32 0.2, %v4309_v36  ;;  %v4310_v35 = vadd.f32 %v6603_v29, %v4271_v32  ;;  %4243 = vst.msk [vmem:[#allocation3 + $0x28] sm:$0xff] %vm576_vm4, %v4211_v62  ;;  %v5326_v1 = vpop.f32.mrb[124].mxu1  ;;  %v3415_v26 = vld [vmem:[#allocation3 + $0x98] sm:$0xff] }
 0x1ed   : > { %v4407_v3 = vsel %vm4343_vm5, %v4311_v4, %v4375_v45  ;;  %vm4344_vm7 = vcmp.gt.f32.partialorder %v4312_v13, 0.0  ;;  %v4376_v44 = vmul.f32 0.2, %v4312_v13  ;;  %v3824_v6 = vadd.f32 %v5326_v1, %v3410_v63  ;;  %v3731_v2 = vpop.f32.mrb[125].mxu1  ;;  %v3413_v45 = vld [vmem:[#allocation3 + $0x88] sm:$0xff] }
 0x1ee   : > { %4439 = vst.msk [vmem:[%s6617_s27 + $0x10] sm:$0xff] %vm576_vm4, %v4407_v3  ;;  %v4405_v0 = vsel %vm4341_vm6, %v4309_v36, %v4373_v46  ;;  %vm4342_vm8 = vcmp.gt.f32.partialorder %v4310_v35, 0.0  ;;  %v4374_v12 = vmul.f32 0.2, %v4310_v35  ;;  %v3884_v30 = vld [vmem:[#allocation3 + $0x50] sm:$0xff]  ;;  %v3822_v9 = vadd.f32 %v3731_v2, %v3408_v11  ;;  %v5327_v7 = vpop.f32.mrb[126].mxu1 }
 0x1ef   : > { %v5364_v15 = vpop.f32.mrb[124].mxu0  ;;  %4437 = vst.msk [vmem:[%s6617_s27] sm:$0xff] %vm576_vm4, %v4405_v0  ;;  %v4408_v34 = vsel %vm4344_vm7, %v4312_v13, %v4376_v44  ;;  %v4216_v8 = vadd.f32 %v5360_v55, %v3884_v30  ;;  %3856 = vst.msk [vmem:[#allocation3 + $0x70] sm:$0xff] %vm576_vm4, %v3824_v6  ;;  %v3882_v38 = vld [vmem:[#allocation3 + $0x40] sm:$0xff]  ;;  %v3825_v42 = vadd.f32 %v5327_v7, %v3411_v59  ;;  %v3734_v18 = vpop.f32.mrb[127].mxu1 }
 0x1f0   : > { %v4127_v16 = vpop.f32.mrb[125].mxu0  ;;  %4440 = vst.msk [vmem:[%s6617_s27 + $0x18] sm:$0xff] %vm576_vm4, %v4408_v34  ;;  %v4406_v47 = vsel %vm4342_vm8, %v4310_v35, %v4374_v12  ;;  %v4276_v5 = vld [vmem:[#allocation3 + $0x30] sm:$0xff]  ;;  %v4214_v25 = vadd.f32 %v4111_v61, %v3882_v38  ;;  %3854 = vst.msk [vmem:[#allocation3 + $0x60] sm:$0xff] %vm576_vm4, %v3822_v9  ;;  %v3885_v51 = vld [vmem:[#allocation3 + $0x58] sm:$0xff]  ;;  %v3823_v58 = vadd.f32 %v3734_v18, %v3409_v50 }
 0x1f1   : > { %v5365_v19 = vpop.f32.mrb[126].mxu0  ;;  %4438 = vst.msk [vmem:[%s6617_s27 + $0x8] sm:$0xff] %vm576_vm4, %v4406_v47  ;;  %v4315_v10 = vadd.f32 %v6603_v29, %v4276_v5  ;;  %v4274_v21 = vld [vmem:[#allocation3 + $0x20] sm:$0xff]  ;;  %4248 = vst.msk [vmem:[#allocation3 + $0x50] sm:$0xff] %vm576_vm4, %v4216_v8  ;;  %v4217_v27 = vadd.f32 %v5361_v28, %v3885_v51  ;;  %v3883_v53 = vld [vmem:[#allocation3 + $0x48] sm:$0xff] }
 0x1f2   : > { %3857 = vst.msk [vmem:[#allocation3 + $0x78] sm:$0xff] %vm576_vm4, %v3825_v42  ;;  %v4130_v23 = vpop.f32.mrb[127].mxu0  ;;  %v4313_v41 = vadd.f32 %v6603_v29, %v4274_v21  ;;  %v4277_v43 = vld [vmem:[#allocation3 + $0x38] sm:$0xff]  ;;  %4246 = vst.msk [vmem:[#allocation3 + $0x40] sm:$0xff] %vm576_vm4, %v4214_v25  ;;  %v4215_v48 = vadd.f32 %v4114_v52, %v3883_v53  ;;  %v3418_v42 = vld [vmem:[#allocation3 + $0xb0] sm:$0xff] }
 0x1f3   : > { %3855 = vst.msk [vmem:[#allocation3 + $0x68] sm:$0xff] %vm576_vm4, %v3823_v58  ;;  %vm4347_vm9 = vcmp.gt.f32.partialorder %v4315_v10, 0.0  ;;  %v4379_v22 = vmul.f32 0.2, %v4315_v10  ;;  %v4316_v39 = vadd.f32 %v6603_v29, %v4277_v43  ;;  %v4275_v54 = vld [vmem:[#allocation3 + $0x28] sm:$0xff]  ;;  %4249 = vst.msk [vmem:[#allocation3 + $0x58] sm:$0xff] %vm576_vm4, %v4217_v27 }
 0x1f4   : > { %vm4345_vm10 = vcmp.gt.f32.partialorder %v4313_v41, 0.0  ;;  %v4377_v55 = vmul.f32 0.2, %v4313_v41  ;;  %v4314_v49 = vadd.f32 %v6603_v29, %v4275_v54  ;;  %4247 = vst.msk [vmem:[#allocation3 + $0x48] sm:$0xff] %vm576_vm4, %v4215_v48  ;;  %v5330_v57 = vpop.f32.mrb[128].mxu1  ;;  %v3416_v5 = vld [vmem:[#allocation3 + $0xa0] sm:$0xff] }
 0x1f5   : > { %v4411_v24 = vsel %vm4347_vm9, %v4315_v10, %v4379_v22  ;;  %vm4348_vm11 = vcmp.gt.f32.partialorder %v4316_v39, 0.0  ;;  %v4380_v33 = vmul.f32 0.2, %v4316_v39  ;;  %v3828_v61 = vadd.f32 %v5330_v57, %v3414_v56  ;;  %v3747_v37 = vpop.f32.mrb[129].mxu1  ;;  %v3419_v51 = vld [vmem:[#allocation3 + $0xb8] sm:$0xff]  ;;  %v3417_v22 = vld [vmem:[#allocation3 + $0xa8] sm:$0xff] }
 0x1f6   : > { %4443 = vst.msk [vmem:[%s6617_s27 + $0x30] sm:$0xff] %vm576_vm4, %v4411_v24  ;;  %v4409_v20 = vsel %vm4345_vm10, %v4313_v41, %v4377_v55  ;;  %vm4346_vm12 = vcmp.gt.f32.partialorder %v4314_v49, 0.0  ;;  %v4378_v28 = vmul.f32 0.2, %v4314_v49  ;;  %v3888_v4 = vld [vmem:[#allocation3 + $0x70] sm:$0xff]  ;;  %v3826_v31 = vadd.f32 %v3747_v37, %v3412_v14  ;;  %v5331_v40 = vpop.f32.mrb[130].mxu1 }
 0x1f7   : > { %v5368_v17 = vpop.f32.mrb[128].mxu0  ;;  %4441 = vst.msk [vmem:[%s6617_s27 + $0x20] sm:$0xff] %vm576_vm4, %v4409_v20  ;;  %v4412_v52 = vsel %vm4348_vm11, %v4316_v39, %v4380_v33  ;;  %v4220_v36 = vadd.f32 %v5364_v15, %v3888_v4  ;;  %3860 = vst.msk [vmem:[#allocation3 + $0x90] sm:$0xff] %vm576_vm4, %v3828_v61  ;;  %v3886_v60 = vld [vmem:[#allocation3 + $0x60] sm:$0xff]  ;;  %v3829_v62 = vadd.f32 %v5331_v40, %v3415_v26  ;;  %v3750_v13 = vpop.f32.mrb[131].mxu1 }
 0x1f8   : > { %v4143_v32 = vpop.f32.mrb[129].mxu0  ;;  %4444 = vst.msk [vmem:[%s6617_s27 + $0x38] sm:$0xff] %vm576_vm4, %v4412_v52  ;;  %v4410_v46 = vsel %vm4346_vm12, %v4314_v49, %v4378_v28  ;;  %v4280_v35 = vld [vmem:[#allocation3 + $0x50] sm:$0xff]  ;;  %v4218_v63 = vadd.f32 %v4127_v16, %v3886_v60  ;;  %3858 = vst.msk [vmem:[#allocation3 + $0x80] sm:$0xff] %vm576_vm4, %v3826_v31  ;;  %v3827_v3 = vadd.f32 %v3750_v13, %v3413_v45 }
 0x1f9   : > { %v3889_v1 = vld [vmem:[#allocation3 + $0x78] sm:$0xff]  ;;  %v5369_v44 = vpop.f32.mrb[130].mxu0  ;;  %4442 = vst.msk [vmem:[%s6617_s27 + $0x28] sm:$0xff] %vm576_vm4, %v4410_v46  ;;  %v4319_v6 = vadd.f32 %v6603_v29, %v4280_v35  ;;  %v4278_v11 = vld [vmem:[#allocation3 + $0x40] sm:$0xff]  ;;  %4252 = vst.msk [vmem:[#allocation3 + $0x70] sm:$0xff] %vm576_vm4, %v4220_v36 }
 0x1fa   : > { %v4221_v2 = vadd.f32 %v5365_v19, %v3889_v1  ;;  %3861 = vst.msk [vmem:[#allocation3 + $0x98] sm:$0xff] %vm576_vm4, %v3829_v62  ;;  %v3887_v59 = vld [vmem:[#allocation3 + $0x68] sm:$0xff]  ;;  %v4146_v0 = vpop.f32.mrb[131].mxu0  ;;  %v4317_v12 = vadd.f32 %v6603_v29, %v4278_v11  ;;  %v4281_v30 = vld [vmem:[#allocation3 + $0x58] sm:$0xff]  ;;  %4250 = vst.msk [vmem:[#allocation3 + $0x60] sm:$0xff] %vm576_vm4, %v4218_v63 }
 0x1fb   : > { %v4219_v9 = vadd.f32 %v4130_v23, %v3887_v59  ;;  %3859 = vst.msk [vmem:[#allocation3 + $0x88] sm:$0xff] %vm576_vm4, %v3827_v3  ;;  %vm4351_vm13 = vcmp.gt.f32.partialorder %v4319_v6, 0.0  ;;  %v4383_v7 = vmul.f32 0.2, %v4319_v6  ;;  %v4320_v15 = vadd.f32 %v6603_v29, %v4281_v30  ;;  %v4279_v34 = vld [vmem:[#allocation3 + $0x48] sm:$0xff]  ;;  %v3422_v62 = vld [vmem:[#allocation3 + $0xd0] sm:$0xff] }
 0x1fc   : > { %4253 = vst.msk [vmem:[#allocation3 + $0x78] sm:$0xff] %vm576_vm4, %v4221_v2  ;;  %vm4349_vm14 = vcmp.gt.f32.partialorder %v4317_v12, 0.0  ;;  %v4381_v8 = vmul.f32 0.2, %v4317_v12  ;;  %v4318_v38 = vadd.f32 %v6603_v29, %v4279_v34  ;;  %v5334_v50 = vpop.f32.mrb[132].mxu1  ;;  %v3420_v35 = vld [vmem:[#allocation3 + $0xc0] sm:$0xff] }
 0x1fd   : > { %4251 = vst.msk [vmem:[#allocation3 + $0x68] sm:$0xff] %vm576_vm4, %v4219_v9  ;;  %v4415_v18 = vsel %vm4351_vm13, %v4319_v6, %v4383_v7  ;;  %vm4352_vm15 = vcmp.gt.f32.partialorder %v4320_v15, 0.0  ;;  %v4384_v16 = vmul.f32 0.2, %v4320_v15  ;;  %v3832_v47 = vadd.f32 %v5334_v50, %v3418_v42  ;;  %v3763_v25 = vpop.f32.mrb[133].mxu1  ;;  %v3423_v1 = vld [vmem:[#allocation3 + $0xd8] sm:$0xff] }
 0x1fe   : > { %4447 = vst.msk [vmem:[%s6617_s27 + $0x50] sm:$0xff] %vm576_vm4, %v4415_v18  ;;  %v4413_v58 = vsel %vm4349_vm14, %v4317_v12, %v4381_v8  ;;  %vm4350_vm0 = vcmp.gt.f32.partialorder %v4318_v38, 0.0  ;;  %v4382_v19 = vmul.f32 0.2, %v4318_v38  ;;  %v3892_v10 = vld [vmem:[#allocation3 + $0x90] sm:$0xff]  ;;  %v3830_v21 = vadd.f32 %v3763_v25, %v3416_v5  ;;  %v5335_v27 = vpop.f32.mrb[134].mxu1 }
 0x1ff   : > { %v5372_v53 = vpop.f32.mrb[132].mxu0  ;;  %4445 = vst.msk [vmem:[%s6617_s27 + $0x40] sm:$0xff] %vm576_vm4, %v4413_v58  ;;  %v4416_v23 = vsel %vm4352_vm15, %v4320_v15, %v4384_v16  ;;  %v4224_v41 = vadd.f32 %v5368_v17, %v3892_v10  ;;  %3864 = vst.msk [vmem:[#allocation3 + $0xb0] sm:$0xff] %vm576_vm4, %v3832_v47  ;;  %v3890_v43 = vld [vmem:[#allocation3 + $0x80] sm:$0xff]  ;;  %v3833_v48 = vadd.f32 %v5335_v27, %v3419_v51  ;;  %v3766_v39 = vpop.f32.mrb[135].mxu1  ;;  %v3421_v7 = vld [vmem:[#allocation3 + $0xc8] sm:$0xff] }
 0x200   : > { %v4159_v54 = vpop.f32.mrb[133].mxu0  ;;  %4448 = vst.msk [vmem:[%s6617_s27 + $0x58] sm:$0xff] %vm576_vm4, %v4416_v23  ;;  %v4414_v55 = vsel %vm4350_vm0, %v4318_v38, %v4382_v19  ;;  %v4284_v49 = vld [vmem:[#allocation3 + $0x70] sm:$0xff]  ;;  %v4222_v56 = vadd.f32 %v4143_v32, %v3890_v43  ;;  %3862 = vst.msk [vmem:[#allocation3 + $0xa0] sm:$0xff] %vm576_vm4, %v3830_v21  ;;  %v3831_v24 = vadd.f32 %v3766_v39, %v3417_v22 }
 0x201   : > { %v3893_v57 = vld [vmem:[#allocation3 + $0x98] sm:$0xff]  ;;  %v5373_v33 = vpop.f32.mrb[134].mxu0  ;;  %4446 = vst.msk [vmem:[%s6617_s27 + $0x48] sm:$0xff] %vm576_vm4, %v4414_v55  ;;  %v4323_v61 = vadd.f32 %v6603_v29, %v4284_v49  ;;  %v4282_v14 = vld [vmem:[#allocation3 + $0x60] sm:$0xff]  ;;  %4256 = vst.msk [vmem:[#allocation3 + $0x90] sm:$0xff] %vm576_vm4, %v4224_v41 }
 0x202   : > { %v4225_v37 = vadd.f32 %v5369_v44, %v3893_v57  ;;  %3865 = vst.msk [vmem:[#allocation3 + $0xb8] sm:$0xff] %vm576_vm4, %v3833_v48  ;;  %v3891_v26 = vld [vmem:[#allocation3 + $0x88] sm:$0xff]  ;;  %v4162_v20 = vpop.f32.mrb[135].mxu0  ;;  %v4321_v28 = vadd.f32 %v6603_v29, %v4282_v14  ;;  %4254 = vst.msk [vmem:[#allocation3 + $0x80] sm:$0xff] %vm576_vm4, %v4222_v56  ;;  %v3426_v48 = vld [vmem:[#allocation3 + $0xf0] sm:$0xff] }
 0x203   : > { %v4285_v4 = vld [vmem:[#allocation3 + $0x78] sm:$0xff]  ;;  %v4223_v31 = vadd.f32 %v4146_v0, %v3891_v26  ;;  %3863 = vst.msk [vmem:[#allocation3 + $0xa8] sm:$0xff] %vm576_vm4, %v3831_v24  ;;  %vm4355_vm1 = vcmp.gt.f32.partialorder %v4323_v61, 0.0  ;;  %v4387_v40 = vmul.f32 0.2, %v4323_v61  ;;  %v3424_v49 = vld [vmem:[#allocation3 + $0xe0] sm:$0xff] }
 0x204   : > { %v4324_v17 = vadd.f32 %v6603_v29, %v4285_v4  ;;  %v4283_v52 = vld [vmem:[#allocation3 + $0x68] sm:$0xff]  ;;  %4257 = vst.msk [vmem:[#allocation3 + $0x98] sm:$0xff] %vm576_vm4, %v4225_v37  ;;  %vm4353_vm2 = vcmp.gt.f32.partialorder %v4321_v28, 0.0  ;;  %v4385_v36 = vmul.f32 0.2, %v4321_v28  ;;  %v5338_v45 = vpop.f32.mrb[136].mxu1 }
 0x205   : > { %v4322_v60 = vadd.f32 %v6603_v29, %v4283_v52  ;;  %4255 = vst.msk [vmem:[#allocation3 + $0x88] sm:$0xff] %vm576_vm4, %v4223_v31  ;;  %v4419_v13 = vsel %vm4355_vm1, %v4323_v61, %v4387_v40  ;;  %v3836_v46 = vadd.f32 %v5338_v45, %v3422_v62  ;;  %v3779_v63 = vpop.f32.mrb[137].mxu1  ;;  %v3427_v57 = vld [vmem:[#allocation3 + $0xf8] sm:$0xff]  ;;  %v3425_v40 = vld [vmem:[#allocation3 + $0xe8] sm:$0xff] }
 0x206   : > { %vm4356_vm3 = vcmp.gt.f32.partialorder %v4324_v17, 0.0  ;;  %v4388_v32 = vmul.f32 0.2, %v4324_v17  ;;  %4451 = vst.msk [vmem:[%s6617_s27 + $0x70] sm:$0xff] %vm576_vm4, %v4419_v13  ;;  %v4417_v3 = vsel %vm4353_vm2, %v4321_v28, %v4385_v36  ;;  %v3896_v6 = vld [vmem:[#allocation3 + $0xb0] sm:$0xff]  ;;  %v3834_v11 = vadd.f32 %v3779_v63, %v3420_v35  ;;  %v5339_v2 = vpop.f32.mrb[138].mxu1 }
 0x207   : > { %vm4354_vm5 = vcmp.gt.f32.partialorder %v4322_v60, 0.0  ;;  %v4386_v44 = vmul.f32 0.2, %v4322_v60  ;;  %v5376_v59 = vpop.f32.mrb[136].mxu0  ;;  %4449 = vst.msk [vmem:[%s6617_s27 + $0x60] sm:$0xff] %vm576_vm4, %v4417_v3  ;;  %v4228_v12 = vadd.f32 %v5372_v53, %v3896_v6  ;;  %3868 = vst.msk [vmem:[#allocation3 + $0xd0] sm:$0xff] %vm576_vm4, %v3836_v46  ;;  %v3837_v9 = vadd.f32 %v5339_v2, %v3423_v1 }
 0x208   : > { %v4420_v0 = vsel %vm4356_vm3, %v4324_v17, %v4388_v32  ;;  %v3894_v30 = vld [vmem:[#allocation3 + $0xa0] sm:$0xff]  ;;  %v3782_v15 = vpop.f32.mrb[139].mxu1  ;;  %v4175_v34 = vpop.f32.mrb[137].mxu0  ;;  %v4288_v38 = vld [vmem:[#allocation3 + $0x90] sm:$0xff]  ;;  %3866 = vst.msk [vmem:[#allocation3 + $0xc0] sm:$0xff] %vm576_vm4, %v3834_v11 }
 0x209   : > { %4452 = vst.msk [vmem:[%s6617_s27 + $0x78] sm:$0xff] %vm576_vm4, %v4420_v0  ;;  %v4418_v8 = vsel %vm4354_vm5, %v4322_v60, %v4386_v44  ;;  %v4226_v42 = vadd.f32 %v4159_v54, %v3894_v30  ;;  %v3897_v50 = vld [vmem:[#allocation3 + $0xb8] sm:$0xff]  ;;  %v3835_v18 = vadd.f32 %v3782_v15, %v3421_v7  ;;  %v5377_v16 = vpop.f32.mrb[138].mxu0  ;;  %v4327_v47 = vadd.f32 %v6603_v29, %v4288_v38  ;;  %v4286_v5 = vld [vmem:[#allocation3 + $0x80] sm:$0xff] }
 0x20a   : > { %4450 = vst.msk [vmem:[%s6617_s27 + $0x68] sm:$0xff] %vm576_vm4, %v4418_v8  ;;  %4260 = vst.msk [vmem:[#allocation3 + $0xb0] sm:$0xff] %vm576_vm4, %v4228_v12  ;;  %v4229_v25 = vadd.f32 %v5373_v33, %v3897_v50  ;;  %v3895_v51 = vld [vmem:[#allocation3 + $0xa8] sm:$0xff]  ;;  %v4178_v58 = vpop.f32.mrb[139].mxu0  ;;  %v4325_v19 = vadd.f32 %v6603_v29, %v4286_v5 }
 0x20b   : > { %3869 = vst.msk [vmem:[#allocation3 + $0xd8] sm:$0xff] %vm576_vm4, %v3837_v9  ;;  %v4289_v10 = vld [vmem:[#allocation3 + $0x98] sm:$0xff]  ;;  %4258 = vst.msk [vmem:[#allocation3 + $0xa0] sm:$0xff] %vm576_vm4, %v4226_v42  ;;  %v4227_v21 = vadd.f32 %v4162_v20, %v3895_v51  ;;  %vm4359_vm6 = vcmp.gt.f32.partialorder %v4327_v47, 0.0  ;;  %v4391_v27 = vmul.f32 0.2, %v4327_v47 }
 0x20c   : > { %3867 = vst.msk [vmem:[#allocation3 + $0xc8] sm:$0xff] %vm576_vm4, %v3835_v18  ;;  %v4328_v53 = vadd.f32 %v6603_v29, %v4289_v10  ;;  %v4287_v23 = vld [vmem:[#allocation3 + $0x88] sm:$0xff]  ;;  %4261 = vst.msk [vmem:[#allocation3 + $0xb8] sm:$0xff] %vm576_vm4, %v4229_v25  ;;  %vm4357_vm7 = vcmp.gt.f32.partialorder %v4325_v19, 0.0  ;;  %v4389_v41 = vmul.f32 0.2, %v4325_v19 }
 0x20d   : > { %v4326_v43 = vadd.f32 %v6603_v29, %v4287_v23  ;;  %4259 = vst.msk [vmem:[#allocation3 + $0xa8] sm:$0xff] %vm576_vm4, %v4227_v21  ;;  %v5342_v22 = vpop.f32.mrb[140].mxu1  ;;  %v4423_v39 = vsel %vm4359_vm6, %v4327_v47, %v4391_v27 }
 0x20e   : > { %vm4360_vm8 = vcmp.gt.f32.partialorder %v4328_v53, 0.0  ;;  %v4392_v54 = vmul.f32 0.2, %v4328_v53  ;;  %v3840_v55 = vadd.f32 %v5342_v22, %v3426_v48  ;;  %v3795_v56 = vpop.f32.mrb[141].mxu1  ;;  %4455 = vst.msk [vmem:[%s6617_s27 + $0x90] sm:$0xff] %vm576_vm4, %v4423_v39  ;;  %v4421_v24 = vsel %vm4357_vm7, %v4325_v19, %v4389_v41  ;;  %v3900_v61 = vld [vmem:[#allocation3 + $0xd0] sm:$0xff] }
 0x20f   : > { %vm4358_vm9 = vcmp.gt.f32.partialorder %v4326_v43, 0.0  ;;  %v4390_v33 = vmul.f32 0.2, %v4326_v43  ;;  %v3838_v14 = vadd.f32 %v3795_v56, %v3424_v49  ;;  %v5343_v37 = vpop.f32.mrb[142].mxu1  ;;  %v5380_v26 = vpop.f32.mrb[140].mxu0  ;;  %4453 = vst.msk [vmem:[%s6617_s27 + $0x80] sm:$0xff] %vm576_vm4, %v4421_v24  ;;  %v4232_v28 = vadd.f32 %v5376_v59, %v3900_v61 }
 0x210   : > { %v4424_v20 = vsel %vm4360_vm8, %v4328_v53, %v4392_v54  ;;  %3872 = vst.msk [vmem:[#allocation3 + $0xf0] sm:$0xff] %vm576_vm4, %v3840_v55  ;;  %v3898_v4 = vld [vmem:[#allocation3 + $0xc0] sm:$0xff]  ;;  %v3841_v31 = vadd.f32 %v5343_v37, %v3427_v57  ;;  %v3798_v17 = vpop.f32.mrb[143].mxu1  ;;  %v4191_v52 = vpop.f32.mrb[141].mxu0 }
 0x211   : > { %4456 = vst.msk [vmem:[%s6617_s27 + $0x98] sm:$0xff] %vm576_vm4, %v4424_v20  ;;  %v4422_v36 = vsel %vm4358_vm9, %v4326_v43, %v4390_v33  ;;  %v4292_v60 = vld [vmem:[#allocation3 + $0xb0] sm:$0xff]  ;;  %v4230_v62 = vadd.f32 %v4175_v34, %v3898_v4  ;;  %3870 = vst.msk [vmem:[#allocation3 + $0xe0] sm:$0xff] %vm576_vm4, %v3838_v14  ;;  %v3839_v13 = vadd.f32 %v3798_v17, %v3425_v40  ;;  %v5381_v32 = vpop.f32.mrb[142].mxu0 }
 0x212   : > { %v3901_v45 = vld [vmem:[#allocation3 + $0xd8] sm:$0xff]  ;;  %4454 = vst.msk [vmem:[%s6617_s27 + $0x88] sm:$0xff] %vm576_vm4, %v4422_v36  ;;  %v4331_v46 = vadd.f32 %v6603_v29, %v4292_v60  ;;  %v4290_v35 = vld [vmem:[#allocation3 + $0xa0] sm:$0xff]  ;;  %4264 = vst.msk [vmem:[#allocation3 + $0xd0] sm:$0xff] %vm576_vm4, %v4232_v28  ;;  %v4194_v3 = vpop.f32.mrb[143].mxu0 }
 0x213   : > { %v4233_v63 = vadd.f32 %v5377_v16, %v3901_v45  ;;  %3873 = vst.msk [vmem:[#allocation3 + $0xf8] sm:$0xff] %vm576_vm4, %v3841_v31  ;;  %v3899_v1 = vld [vmem:[#allocation3 + $0xc8] sm:$0xff]  ;;  %v4329_v44 = vadd.f32 %v6603_v29, %v4290_v35  ;;  %v4293_v6 = vld [vmem:[#allocation3 + $0xb8] sm:$0xff]  ;;  %4262 = vst.msk [vmem:[#allocation3 + $0xc0] sm:$0xff] %vm576_vm4, %v4230_v62 }
 0x214   : > { %v4231_v11 = vadd.f32 %v4178_v58, %v3899_v1  ;;  %3871 = vst.msk [vmem:[#allocation3 + $0xe8] sm:$0xff] %vm576_vm4, %v3839_v13  ;;  %vm4363_vm10 = vcmp.gt.f32.partialorder %v4331_v46, 0.0  ;;  %v4395_v2 = vmul.f32 0.2, %v4331_v46  ;;  %v4332_v59 = vadd.f32 %v6603_v29, %v4293_v6  ;;  %v4291_v0 = vld [vmem:[#allocation3 + $0xa8] sm:$0xff] }
 0x215   : > { %4265 = vst.msk [vmem:[#allocation3 + $0xd8] sm:$0xff] %vm576_vm4, %v4233_v63  ;;  %vm4361_vm11 = vcmp.gt.f32.partialorder %v4329_v44, 0.0  ;;  %v4393_v12 = vmul.f32 0.2, %v4329_v44  ;;  %v4330_v30 = vadd.f32 %v6603_v29, %v4291_v0 }
 0x216   : > { %4263 = vst.msk [vmem:[#allocation3 + $0xc8] sm:$0xff] %vm576_vm4, %v4231_v11  ;;  %v4427_v9 = vsel %vm4363_vm10, %v4331_v46, %v4395_v2  ;;  %vm4364_vm12 = vcmp.gt.f32.partialorder %v4332_v59, 0.0  ;;  %v4396_v7 = vmul.f32 0.2, %v4332_v59 }
 0x217   : > { %4459 = vst.msk [vmem:[%s6617_s27 + $0xb0] sm:$0xff] %vm576_vm4, %v4427_v9  ;;  %v4425_v15 = vsel %vm4361_vm11, %v4329_v44, %v4393_v12  ;;  %vm4362_vm13 = vcmp.gt.f32.partialorder %v4330_v30, 0.0  ;;  %v4394_v34 = vmul.f32 0.2, %v4330_v30  ;;  %v3904_v8 = vld [vmem:[#allocation3 + $0xf0] sm:$0xff] }
 0x218   : > { %4457 = vst.msk [vmem:[%s6617_s27 + $0xa0] sm:$0xff] %vm576_vm4, %v4425_v15  ;;  %v4428_v38 = vsel %vm4364_vm12, %v4332_v59, %v4396_v7  ;;  %v4236_v42 = vadd.f32 %v5380_v26, %v3904_v8  ;;  %v3902_v50 = vld [vmem:[#allocation3 + $0xe0] sm:$0xff] }
 0x219   : > { %4460 = vst.msk [vmem:[%s6617_s27 + $0xb8] sm:$0xff] %vm576_vm4, %v4428_v38  ;;  %v4426_v18 = vsel %vm4362_vm13, %v4330_v30, %v4394_v34  ;;  %v4296_v16 = vld [vmem:[#allocation3 + $0xd0] sm:$0xff]  ;;  %v4234_v47 = vadd.f32 %v4191_v52, %v3902_v50 }
 0x21a   : > { %v3905_v5 = vld [vmem:[#allocation3 + $0xf8] sm:$0xff]  ;;  %4458 = vst.msk [vmem:[%s6617_s27 + $0xa8] sm:$0xff] %vm576_vm4, %v4426_v18  ;;  %v4335_v25 = vadd.f32 %v6603_v29, %v4296_v16  ;;  %v4294_v51 = vld [vmem:[#allocation3 + $0xc0] sm:$0xff]  ;;  %4268 = vst.msk [vmem:[#allocation3 + $0xf0] sm:$0xff] %vm576_vm4, %v4236_v42 }
 0x21b   : > { %v4237_v58 = vadd.f32 %v5381_v32, %v3905_v5  ;;  %v3903_v19 = vld [vmem:[#allocation3 + $0xe8] sm:$0xff]  ;;  %v4333_v10 = vadd.f32 %v6603_v29, %v4294_v51  ;;  %4266 = vst.msk [vmem:[#allocation3 + $0xe0] sm:$0xff] %vm576_vm4, %v4234_v47 }
 0x21c   : > { %v4297_v21 = vld [vmem:[#allocation3 + $0xd8] sm:$0xff]  ;;  %v4235_v27 = vadd.f32 %v4194_v3, %v3903_v19  ;;  %vm4367_vm14 = vcmp.gt.f32.partialorder %v4335_v25, 0.0  ;;  %v4399_v53 = vmul.f32 0.2, %v4335_v25 }
 0x21d   : > { %v4336_v23 = vadd.f32 %v6603_v29, %v4297_v21  ;;  %v4295_v41 = vld [vmem:[#allocation3 + $0xc8] sm:$0xff]  ;;  %4269 = vst.msk [vmem:[#allocation3 + $0xf8] sm:$0xff] %vm576_vm4, %v4237_v58  ;;  %vm4365_vm15 = vcmp.gt.f32.partialorder %v4333_v10, 0.0  ;;  %v4397_v43 = vmul.f32 0.2, %v4333_v10 }
 0x21e   : > { %v4334_v48 = vadd.f32 %v6603_v29, %v4295_v41  ;;  %4267 = vst.msk [vmem:[#allocation3 + $0xe8] sm:$0xff] %vm576_vm4, %v4235_v27  ;;  %v4431_v22 = vsel %vm4367_vm14, %v4335_v25, %v4399_v53 }
 0x21f   : > { %vm4368_vm0 = vcmp.gt.f32.partialorder %v4336_v23, 0.0  ;;  %v4400_v39 = vmul.f32 0.2, %v4336_v23  ;;  %4463 = vst.msk [vmem:[%s6617_s27 + $0xd0] sm:$0xff] %vm576_vm4, %v4431_v22  ;;  %v4429_v54 = vsel %vm4365_vm15, %v4333_v10, %v4397_v43 }
 0x220   : > { %vm4366_vm1 = vcmp.gt.f32.partialorder %v4334_v48, 0.0  ;;  %v4398_v55 = vmul.f32 0.2, %v4334_v48  ;;  %4461 = vst.msk [vmem:[%s6617_s27 + $0xc0] sm:$0xff] %vm576_vm4, %v4429_v54 }
 0x221   : > { %v4432_v49 = vsel %vm4368_vm0, %v4336_v23, %v4400_v39  ;;  %v4300_v57 = vld [vmem:[#allocation3 + $0xf0] sm:$0xff] }
 0x222   : > { %4464 = vst.msk [vmem:[%s6617_s27 + $0xd8] sm:$0xff] %vm576_vm4, %v4432_v49  ;;  %v4430_v56 = vsel %vm4366_vm1, %v4334_v48, %v4398_v55  ;;  %v4339_v24 = vadd.f32 %v6603_v29, %v4300_v57  ;;  %v4298_v33 = vld [vmem:[#allocation3 + $0xe0] sm:$0xff] }
 0x223   : > { %4462 = vst.msk [vmem:[%s6617_s27 + $0xc8] sm:$0xff] %vm576_vm4, %v4430_v56  ;;  %v4337_v61 = vadd.f32 %v6603_v29, %v4298_v33 }
 0x224   : > { %v4301_v14 = vld [vmem:[#allocation3 + $0xf8] sm:$0xff]  ;;  %vm4371_vm2 = vcmp.gt.f32.partialorder %v4339_v24, 0.0  ;;  %v4403_v37 = vmul.f32 0.2, %v4339_v24 }
 0x225   : > { %v4340_v26 = vadd.f32 %v6603_v29, %v4301_v14  ;;  %v4299_v20 = vld [vmem:[#allocation3 + $0xe8] sm:$0xff]  ;;  %vm4369_vm3 = vcmp.gt.f32.partialorder %v4337_v61, 0.0  ;;  %v4401_v28 = vmul.f32 0.2, %v4337_v61 }
 0x226   : > { %v4338_v4 = vadd.f32 %v6603_v29, %v4299_v20  ;;  %v4435_v31 = vsel %vm4371_vm2, %v4339_v24, %v4403_v37 }
 0x227   : > { %vm4372_vm5 = vcmp.gt.f32.partialorder %v4340_v26, 0.0  ;;  %v4404_v40 = vmul.f32 0.2, %v4340_v26  ;;  %4467 = vst.msk [vmem:[%s6617_s27 + $0xf0] sm:$0xff] %vm576_vm4, %v4435_v31  ;;  %v4433_v17 = vsel %vm4369_vm3, %v4337_v61, %v4401_v28 }
 0x228   : > { %vm4370_vm6 = vcmp.gt.f32.partialorder %v4338_v4, 0.0  ;;  %v4402_v52 = vmul.f32 0.2, %v4338_v4  ;;  %4465 = vst.msk [vmem:[%s6617_s27 + $0xe0] sm:$0xff] %vm576_vm4, %v4433_v17 }
 0x229   : > { %v4436_v36 = vsel %vm4372_vm5, %v4340_v26, %v4404_v40 }
 0x22a   : > { %4468 = vst.msk [vmem:[%s6617_s27 + $0xf8] sm:$0xff] %vm576_vm4, %v4436_v36  ;;  %v4434_v60 = vsel %vm4370_vm6, %v4338_v4, %v4402_v52 }
 0x22b   : > { %4466 = vst.msk [vmem:[%s6617_s27 + $0xe8] sm:$0xff] %vm576_vm4, %v4434_v60 }
 0x22c PF: > { %s17_s24 = sadd.s32 1, %s5516_s24   ;;  %s6785_s20 = smov %s5508_s22 }
 0x22d   : > { %p14_p10 = scmp.ge.s32.totalorder %s17_s24, 6   ;;  %s6786_s21 = smov %s5512_s23 }
 0x22e   : > { %s6787_s22 = smov %s6790_s4  ;;  %s6788_s23 = smov %s6794_s25 }
 0x22f   :  { %16 = sbr.rel (!%p14_p10) target bundleno = 3 (0x3), region = 84 }

</bundles_post_ra>
